<compile_context>
chip_gen: v6e
topology: v6e:2x2x1
jax: 0.10.0
libtpu: 0.0.40
codegen_flags: <defaults>
</compile_context>

<pallas_src>
import functools

import jax
import jax.numpy as jnp
from jax import lax
from jax.experimental import pallas as pl
from jax.experimental.pallas import tpu as pltpu


def _round_up(v, m):
    return ((v + m - 1) // m) * m


# ---------------------------------------------------------------------------
# Pallas kernel: fused im2col + matmul + bias for one (batch, H-tile, C-tile).
#   x_ref : (1, tile_h + (K-1)*d, Wp, Cin)   zero-dilated, padded input window
#   w_ref : (K, K, Cin, tile_c)              spatially flipped weights
#   b_ref : (1, tile_c)                      bias (zeros if module has no bias)
#   o_ref : (1, tile_h, Wout_p, tile_c)
#   acc   : (tile_h * Wout_p, tile_c) f32 VMEM scratch
# ---------------------------------------------------------------------------
def _fused_convt_kernel(x_ref, w_ref, b_ref, o_ref, acc_ref, *, K, d, tile_h, wout_p):
    mt = tile_h * wout_p
    x = x_ref[0]                                  # (tile_h + (K-1)*d, Wp, Cin)
    first = True
    for kh in range(K):                           # static unroll: K*K MXU calls
        for kw in range(K):
            xs = x[kh * d:kh * d + tile_h, kw * d:kw * d + wout_p, :]
            xs = xs.reshape(mt, xs.shape[-1])     # Wout_p % 8 == 0 -> free collapse
            part = jnp.dot(xs, w_ref[kh, kw], preferred_element_type=jnp.float32)
            if first:
                acc_ref[...] = part
                first = False
            else:
                acc_ref[...] += part
    out = acc_ref[...] + b_ref[...]               # fused bias epilogue
    o_ref[...] = out.reshape(o_ref.shape).astype(o_ref.dtype)


def _convt_pallas_call(x_pad, wk, b2, out_dtype, *, K, d, tile_h, hout_p,
                       wout_p, tile_c, use_element):
    N, Hp, Wp, Cin = x_pad.shape
    cout_p = wk.shape[-1]
    halo = (K - 1) * d
    num_h = hout_p // tile_h
    num_c = cout_p // tile_c
    grid = (N, num_h, num_c)

    if use_element:
        # Overlapping row windows: element offset h*tile_h, size tile_h + halo.
        x_h_dim = pl.Element(tile_h + halo)
        x_index = lambda n, h, c: (n, h * tile_h, 0, 0)
    else:
        # Fallback: one H block per image (tile_h == hout_p, block covers Hp).
        x_h_dim = Hp
        x_index = lambda n, h, c: (n, 0, 0, 0)

    kernel = functools.partial(_fused_convt_kernel, K=K, d=d,
                               tile_h=tile_h, wout_p=wout_p)

    # Rough per-step VMEM footprint (double-buffered ins/outs + accumulator),
    # used to set an explicit scoped-VMEM limit (v5e default 16 MiB, v7x 64 MiB
    # physical -> keep it bounded).
    x_blk = (tile_h + halo) * _round_up(Wp, 8) * _round_up(Cin, 128) * 4
    w_blk = K * K * _round_up(Cin, 8) * tile_c * 4
    o_blk = tile_h * wout_p * tile_c * 4
    vmem_need = 2 * (x_blk + w_blk + o_blk) + o_blk + (2 << 20)
    vmem_limit = int(min(max(2 * vmem_need, 16 << 20), 48 << 20))

    flops = 2 * N * hout_p * wout_p * K * K * Cin * cout_p
    bytes_accessed = int(
        x_pad.size * x_pad.dtype.itemsize * num_c
        + wk.size * wk.dtype.itemsize * N * num_h
        + N * hout_p * wout_p * cout_p * jnp.dtype(out_dtype).itemsize)

    return pl.pallas_call(
        kernel,
        out_shape=jax.ShapeDtypeStruct((N, hout_p, wout_p, cout_p), out_dtype),
        grid_spec=pltpu.PrefetchScalarGridSpec(
            num_scalar_prefetch=0,
            grid=grid,
            in_specs=[
                pl.BlockSpec((1, x_h_dim, Wp, Cin), x_index),
                pl.BlockSpec((K, K, Cin, tile_c), lambda n, h, c: (0, 0, 0, c)),
                pl.BlockSpec((1, tile_c), lambda n, h, c: (0, c)),
            ],
            out_specs=pl.BlockSpec((1, tile_h, wout_p, tile_c),
                                   lambda n, h, c: (n, h, 0, c)),
            scratch_shapes=[pltpu.VMEM((tile_h * wout_p, tile_c), jnp.float32)],
        ),
        compiler_params=pltpu.CompilerParams(
            dimension_semantics=("parallel", "parallel", "parallel"),
            vmem_limit_bytes=vmem_limit),
        cost_estimate=pl.CostEstimate(flops=flops, transcendentals=0,
                                      bytes_accessed=bytes_accessed),
    )(x_pad, wk, b2)


# ---------------------------------------------------------------------------
# conv_transpose2d = zero-dilate + pad + (fused im2col matmul kernel).
#   x      : (N, Cin, H, W)
#   w_kkio : (K, K, Cin, Cout)   spatially flipped, (kh, kw, ci, co) layout
#   bias   : (Cout,) or None
# ---------------------------------------------------------------------------
def conv_transpose2d_pallas(x, w_kkio, bias_vec, stride, padding,
                            output_padding, dilation):
    N, Cin, H, W = x.shape
    K = w_kkio.shape[0]
    Cout = w_kkio.shape[-1]
    s, p, op, d = stride, padding, output_padding, dilation

    pad_lo = d * (K - 1) - p
    pad_hi = pad_lo + op
    # TODO(synk): padding > dilation*(K-1) would require cropping, not padding.
    assert pad_lo >= 0, "padding > dilation*(K-1) not supported in this kernel"

    Hout = (H - 1) * s - 2 * p + d * (K - 1) + op + 1
    Wout = (W - 1) * s - 2 * p + d * (K - 1) + op + 1
    halo = (K - 1) * d

    # Lane-dense / aligned tiling choices.
    tile_c = 128                                   # MXU-aligned on v5e/v6e/v7x
    cout_p = _round_up(max(Cout, tile_c), tile_c)
    wout_p = _round_up(Wout, 16)                   # sublane-aligned (also for bf16)
    tile_h = max(1, min(Hout, 512 // wout_p))      # ~512 output rows per grid step
    hout_p = _round_up(Hout, tile_h)
    Hp = hout_p + halo
    Wp = wout_p + halo

    # NCHW -> NHWC, zero-dilate by the stride, pad: transposed-conv "full"
    # padding plus alignment padding so every grid tile is full-size.
    x_nhwc = jnp.transpose(x, (0, 2, 3, 1)).astype(jnp.float32)
    Hu, Wu = (H - 1) * s + 1, (W - 1) * s + 1
    x_up = jnp.zeros((N, Hu, Wu, Cin), jnp.float32).at[:, ::s, ::s, :].set(x_nhwc)
    x_pad = jnp.pad(x_up, ((0, 0),
                           (pad_lo, Hp - Hu - pad_lo),
                           (pad_lo, Wp - Wu - pad_lo),
                           (0, 0)))

    wk = jnp.pad(w_kkio.astype(jnp.float32),
                 ((0, 0), (0, 0), (0, 0), (0, cout_p - Cout)))
    if bias_vec is None:
        b2 = jnp.zeros((1, cout_p), jnp.float32)
    else:
        b2 = jnp.pad(bias_vec.astype(jnp.float32),
                     (0, cout_p - Cout)).reshape(1, cout_p)

    common = dict(K=K, d=d, wout_p=wout_p, tile_c=tile_c, hout_p=hout_p)
    try:
        y = _convt_pallas_call(x_pad, wk, b2, x.dtype, tile_h=tile_h,
                               use_element=True, **common)
    except Exception:
        # TODO(synk): fallback for environments without Element-offset BlockSpec
        # support — one H block per image (does not scale to very large images).
        y = _convt_pallas_call(x_pad, wk, b2, x.dtype, tile_h=hout_p,
                               use_element=False, **common)

    y = y[:, :Hout, :Wout, :Cout]                  # drop alignment / lane padding
    return jnp.transpose(y, (0, 3, 1, 2))          # NHWC -> NCHW (single pass)


# ---------------------------------------------------------------------------
# JAX/Pallas port of DynamicConvTranspose2d.
# ---------------------------------------------------------------------------
class DynamicConvTranspose2dPallas:
    def __init__(self, candidate_in_channels_list, candidate_out_channels_list,
                 candidate_kernel_size_list, stride=1, padding=0,
                 output_padding=0, groups=1, bias=False, dilation=1, key=None):
        self.candidate_in_channels_list = candidate_in_channels_list
        self.candidate_out_channels_list = candidate_out_channels_list
        self.candidate_kernel_size_list = candidate_kernel_size_list
        self.stride = stride
        self.padding = padding
        self.output_padding = output_padding
        self.groups = groups
        self.has_bias = bias
        self.dilation = dilation

        max_in = max(candidate_in_channels_list)
        max_out = max(candidate_out_channels_list)
        max_ks = max(candidate_kernel_size_list)

        # nn.ConvTranspose2d weight layout: (in_channels, out_channels // groups, kH, kW)
        key = jax.random.PRNGKey(0) if key is None else key
        wkey, bkey = jax.random.split(key)
        bound = 1.0 / float(max_in * max_ks * max_ks) ** 0.5
        self.weight = jax.random.uniform(
            wkey, (max_in, max_out // groups, max_ks, max_ks),
            dtype=jnp.float32, minval=-bound, maxval=bound)
        self.bias = (
            jax.random.uniform(bkey, (max_out,), dtype=jnp.float32,
                               minval=-bound, maxval=bound)
            if bias else None)

        # Precompute the flipped / (kh, kw, ci, co)-ordered weight once.
        self._w_kkio = jnp.transpose(self.weight[:, :, ::-1, ::-1], (2, 3, 0, 1))

        self.is_depthwsie_conv = (self.groups == max_in)
        self._ks_set = sorted(set(candidate_kernel_size_list))
        self.active_in_channel = max_in
        self.active_out_channel = max_out
        self.active_kernel_size = max_ks

    def get_active_filter(self, in_channel, out_channel, kernel_size):
        # Matches the PyTorch module — kernel_size is accepted but not sliced.
        return self.weight[:in_channel, :out_channel, :, :]

    def get_active_bias(self, out_channel):
        return self.bias[:out_channel] if self.has_bias else None

    def forward(self, x, out_channel=None, kernel_size=None):
        if kernel_size is None:
            kernel_size = self.active_kernel_size
        if out_channel is None:
            out_channel = self.active_out_channel
        in_channel = x.shape[1]
        self.active_in_channel = in_channel
        if self.is_depthwsie_conv:
            self.groups = in_channel
            out_channel = in_channel
        # TODO(synk): grouped / depthwise conv_transpose (groups > 1) is not
        # implemented in this Pallas lowering; only groups == 1 is supported.
        assert self.groups == 1, "groups > 1 not supported in this Pallas port"

        wk = self._w_kkio[:, :, :in_channel, :out_channel]   # (K, K, Cin, Cout)
        bias = self.get_active_bias(out_channel)

        return conv_transpose2d_pallas(
            x, wk, bias, self.stride, self.padding,
            self.output_padding, self.dilation)


# ---------------------------------------------------------------------------
# main
# ---------------------------------------------------------------------------
if __name__ == "__main__":
    key = jax.random.PRNGKey(0)
    kx, kw = jax.random.split(key)

    module = DynamicConvTranspose2dPallas(
        candidate_in_channels_list=[2, 4],
        candidate_out_channels_list=[4, 8],
        candidate_kernel_size_list=[3],
        stride=2, padding=1, output_padding=1,
        groups=1, bias=True, dilation=1, key=kw)

    # x: NCHW, batch=2, channels=4 (== max in-channels), spatial 16x16
    x = jax.random.normal(kx, (2, 4, 16, 16), dtype=jnp.float32)

    y = module.forward(x)
    y = jax.block_until_ready(y)

    # Independent XLA reference for the same conv_transpose2d semantics.
    filters = module.get_active_filter(x.shape[1], module.active_out_channel,
                                       module.active_kernel_size)
    bias = module.get_active_bias(module.active_out_channel)
    s, p, op, d = module.stride, module.padding, module.output_padding, module.dilation
    K = filters.shape[-1]
    pad_lo = d * (K - 1) - p
    pad_hi = pad_lo + op
    ref = lax.conv_general_dilated(
        x,
        jnp.transpose(filters, (1, 0, 2, 3))[:, :, ::-1, ::-1],  # OIHW, flipped
        window_strides=(1, 1),
        padding=[(pad_lo, pad_hi), (pad_lo, pad_hi)],
        lhs_dilation=(s, s),
        rhs_dilation=(d, d),
        dimension_numbers=("NCHW", "OIHW", "NCHW"))
    if bias is not None:
        ref = ref + bias.reshape(1, -1, 1, 1)

    assert y.shape == ref.shape, (y.shape, ref.shape)
    err = float(jnp.abs(y - ref).max())
    assert jnp.allclose(y, ref, atol=1e-4, rtol=1e-4), err
    print("KERNEL_OK")
</pallas_src>

<mosaic_0001>
module attributes {stable_mosaic.version = 11 : i64} {
  func.func @_fused_convt_kernel(%arg0: i32, %arg1: i32, %arg2: i32, %arg3: memref<1x34x34x4xf32, #tpu.memory_space<vmem>>, %arg4: memref<3x3x4x128xf32, #tpu.memory_space<vmem>>, %arg5: memref<1x128xf32, #tpu.memory_space<vmem>>, %arg6: memref<1x32x32x128xf32, #tpu.memory_space<vmem>>, %arg7: memref<1024x128xf32, #tpu.memory_space<vmem>>) attributes {dimension_semantics = [#tpu.dimension_semantics<parallel>, #tpu.dimension_semantics<parallel>, #tpu.dimension_semantics<parallel>], iteration_bounds = array<i64: 2, 1, 1>, scalar_prefetch = 0 : i64, scratch_operands = 1 : i64, tpu.core_type = #tpu.core_type<tc>, window_params = [{transform_indices = @transform_0, window_bounds = array<i64: 1, 34, 34, 4>}, {transform_indices = @transform_1, window_bounds = array<i64: 3, 3, 4, 128>}, {transform_indices = @transform_2, window_bounds = array<i64: 1, 128>}, {transform_indices = @transform_3, window_bounds = array<i64: 1, 32, 32, 128>}]} {
    %c0 = arith.constant 0 : index
    %c0_0 = arith.constant 0 : index
    %c0_1 = arith.constant 0 : index
    %c0_2 = arith.constant 0 : index
    %0 = vector.load %arg3[%c0, %c0_0, %c0_1, %c0_2] : memref<1x34x34x4xf32, #tpu.memory_space<vmem>>, vector<1x34x34x4xf32>
    %1 = vector.shape_cast %0 : vector<1x34x34x4xf32> to vector<34x34x4xf32>
    %2 = vector.extract_strided_slice %1 {offsets = [0, 0, 0], sizes = [32, 32, 4], strides = [1, 1, 1]} : vector<34x34x4xf32> to vector<32x32x4xf32>
    %3 = vector.shape_cast %2 : vector<32x32x4xf32> to vector<1024x4xf32>
    %c0_3 = arith.constant 0 : index
    %c0_4 = arith.constant 0 : index
    %c0_5 = arith.constant 0 : index
    %c0_6 = arith.constant 0 : index
    %4 = vector.load %arg4[%c0_3, %c0_4, %c0_5, %c0_6] : memref<3x3x4x128xf32, #tpu.memory_space<vmem>>, vector<1x1x4x128xf32>
    %5 = vector.shape_cast %4 : vector<1x1x4x128xf32> to vector<4x128xf32>
    %cst = arith.constant dense<0.000000e+00> : vector<1024x128xf32>
    %6 = tpu.matmul %3, %5, %cst {dimension_numbers = #tpu.dot_dimension_numbers<[1], [0], [0], [1], [0, 0, 1, 1], [], []>} : vector<1024x4xf32>, vector<4x128xf32>, vector<1024x128xf32> -> vector<1024x128xf32>
    %c0_7 = arith.constant 0 : index
    %c0_8 = arith.constant 0 : index
    %7 = vector.load %arg7[%c0_7, %c0_8] : memref<1024x128xf32, #tpu.memory_space<vmem>>, vector<1024x128xf32>
    tpu.vector_store %arg7[%c0_7, %c0_8], %6 {strides = array<i32>} : memref<1024x128xf32, #tpu.memory_space<vmem>>, vector<1024x128xf32>,
    %8 = vector.extract_strided_slice %1 {offsets = [0, 1, 0], sizes = [32, 32, 4], strides = [1, 1, 1]} : vector<34x34x4xf32> to vector<32x32x4xf32>
    %9 = vector.shape_cast %8 : vector<32x32x4xf32> to vector<1024x4xf32>
    %c0_9 = arith.constant 0 : index
    %c1 = arith.constant 1 : index
    %c0_10 = arith.constant 0 : index
    %c0_11 = arith.constant 0 : index
    %10 = vector.load %arg4[%c0_9, %c1, %c0_10, %c0_11] : memref<3x3x4x128xf32, #tpu.memory_space<vmem>>, vector<1x1x4x128xf32>
    %11 = vector.shape_cast %10 : vector<1x1x4x128xf32> to vector<4x128xf32>
    %cst_12 = arith.constant dense<0.000000e+00> : vector<1024x128xf32>
    %12 = tpu.matmul %9, %11, %cst_12 {dimension_numbers = #tpu.dot_dimension_numbers<[1], [0], [0], [1], [0, 0, 1, 1], [], []>} : vector<1024x4xf32>, vector<4x128xf32>, vector<1024x128xf32> -> vector<1024x128xf32>
    %c0_13 = arith.constant 0 : index
    %c0_14 = arith.constant 0 : index
    %13 = vector.load %arg7[%c0_13, %c0_14] : memref<1024x128xf32, #tpu.memory_space<vmem>>, vector<1024x128xf32>
    %14 = arith.addf %13, %12 : vector<1024x128xf32>
    %c0_15 = arith.constant 0 : index
    %c0_16 = arith.constant 0 : index
    %15 = vector.load %arg7[%c0_15, %c0_16] : memref<1024x128xf32, #tpu.memory_space<vmem>>, vector<1024x128xf32>
    tpu.vector_store %arg7[%c0_15, %c0_16], %14 {strides = array<i32>} : memref<1024x128xf32, #tpu.memory_space<vmem>>, vector<1024x128xf32>,
    %16 = vector.extract_strided_slice %1 {offsets = [0, 2, 0], sizes = [32, 32, 4], strides = [1, 1, 1]} : vector<34x34x4xf32> to vector<32x32x4xf32>
    %17 = vector.shape_cast %16 : vector<32x32x4xf32> to vector<1024x4xf32>
    %c0_17 = arith.constant 0 : index
    %c2 = arith.constant 2 : index
    %c0_18 = arith.constant 0 : index
    %c0_19 = arith.constant 0 : index
    %18 = vector.load %arg4[%c0_17, %c2, %c0_18, %c0_19] : memref<3x3x4x128xf32, #tpu.memory_space<vmem>>, vector<1x1x4x128xf32>
    %19 = vector.shape_cast %18 : vector<1x1x4x128xf32> to vector<4x128xf32>
    %cst_20 = arith.constant dense<0.000000e+00> : vector<1024x128xf32>
    %20 = tpu.matmul %17, %19, %cst_20 {dimension_numbers = #tpu.dot_dimension_numbers<[1], [0], [0], [1], [0, 0, 1, 1], [], []>} : vector<1024x4xf32>, vector<4x128xf32>, vector<1024x128xf32> -> vector<1024x128xf32>
    %c0_21 = arith.constant 0 : index
    %c0_22 = arith.constant 0 : index
    %21 = vector.load %arg7[%c0_21, %c0_22] : memref<1024x128xf32, #tpu.memory_space<vmem>>, vector<1024x128xf32>
    %22 = arith.addf %21, %20 : vector<1024x128xf32>
    %c0_23 = arith.constant 0 : index
    %c0_24 = arith.constant 0 : index
    %23 = vector.load %arg7[%c0_23, %c0_24] : memref<1024x128xf32, #tpu.memory_space<vmem>>, vector<1024x128xf32>
    tpu.vector_store %arg7[%c0_23, %c0_24], %22 {strides = array<i32>} : memref<1024x128xf32, #tpu.memory_space<vmem>>, vector<1024x128xf32>,
    %24 = vector.extract_strided_slice %1 {offsets = [1, 0, 0], sizes = [32, 32, 4], strides = [1, 1, 1]} : vector<34x34x4xf32> to vector<32x32x4xf32>
    %25 = vector.shape_cast %24 : vector<32x32x4xf32> to vector<1024x4xf32>
    %c1_25 = arith.constant 1 : index
    %c0_26 = arith.constant 0 : index
    %c0_27 = arith.constant 0 : index
    %c0_28 = arith.constant 0 : index
    %26 = vector.load %arg4[%c1_25, %c0_26, %c0_27, %c0_28] : memref<3x3x4x128xf32, #tpu.memory_space<vmem>>, vector<1x1x4x128xf32>
    %27 = vector.shape_cast %26 : vector<1x1x4x128xf32> to vector<4x128xf32>
    %cst_29 = arith.constant dense<0.000000e+00> : vector<1024x128xf32>
    %28 = tpu.matmul %25, %27, %cst_29 {dimension_numbers = #tpu.dot_dimension_numbers<[1], [0], [0], [1], [0, 0, 1, 1], [], []>} : vector<1024x4xf32>, vector<4x128xf32>, vector<1024x128xf32> -> vector<1024x128xf32>
    %c0_30 = arith.constant 0 : index
    %c0_31 = arith.constant 0 : index
    %29 = vector.load %arg7[%c0_30, %c0_31] : memref<1024x128xf32, #tpu.memory_space<vmem>>, vector<1024x128xf32>
    %30 = arith.addf %29, %28 : vector<1024x128xf32>
    %c0_32 = arith.constant 0 : index
    %c0_33 = arith.constant 0 : index
    %31 = vector.load %arg7[%c0_32, %c0_33] : memref<1024x128xf32, #tpu.memory_space<vmem>>, vector<1024x128xf32>
    tpu.vector_store %arg7[%c0_32, %c0_33], %30 {strides = array<i32>} : memref<1024x128xf32, #tpu.memory_space<vmem>>, vector<1024x128xf32>,
    %32 = vector.extract_strided_slice %1 {offsets = [1, 1, 0], sizes = [32, 32, 4], strides = [1, 1, 1]} : vector<34x34x4xf32> to vector<32x32x4xf32>
    %33 = vector.shape_cast %32 : vector<32x32x4xf32> to vector<1024x4xf32>
    %c1_34 = arith.constant 1 : index
    %c1_35 = arith.constant 1 : index
    %c0_36 = arith.constant 0 : index
    %c0_37 = arith.constant 0 : index
    %34 = vector.load %arg4[%c1_34, %c1_35, %c0_36, %c0_37] : memref<3x3x4x128xf32, #tpu.memory_space<vmem>>, vector<1x1x4x128xf32>
    %35 = vector.shape_cast %34 : vector<1x1x4x128xf32> to vector<4x128xf32>
    %cst_38 = arith.constant dense<0.000000e+00> : vector<1024x128xf32>
    %36 = tpu.matmul %33, %35, %cst_38 {dimension_numbers = #tpu.dot_dimension_numbers<[1], [0], [0], [1], [0, 0, 1, 1], [], []>} : vector<1024x4xf32>, vector<4x128xf32>, vector<1024x128xf32> -> vector<1024x128xf32>
    %c0_39 = arith.constant 0 : index
    %c0_40 = arith.constant 0 : index
    %37 = vector.load %arg7[%c0_39, %c0_40] : memref<1024x128xf32, #tpu.memory_space<vmem>>, vector<1024x128xf32>
    %38 = arith.addf %37, %36 : vector<1024x128xf32>
    %c0_41 = arith.constant 0 : index
    %c0_42 = arith.constant 0 : index
    %39 = vector.load %arg7[%c0_41, %c0_42] : memref<1024x128xf32, #tpu.memory_space<vmem>>, vector<1024x128xf32>
    tpu.vector_store %arg7[%c0_41, %c0_42], %38 {strides = array<i32>} : memref<1024x128xf32, #tpu.memory_space<vmem>>, vector<1024x128xf32>,
    %40 = vector.extract_strided_slice %1 {offsets = [1, 2, 0], sizes = [32, 32, 4], strides = [1, 1, 1]} : vector<34x34x4xf32> to vector<32x32x4xf32>
    %41 = vector.shape_cast %40 : vector<32x32x4xf32> to vector<1024x4xf32>
    %c1_43 = arith.constant 1 : index
    %c2_44 = arith.constant 2 : index
    %c0_45 = arith.constant 0 : index
    %c0_46 = arith.constant 0 : index
    %42 = vector.load %arg4[%c1_43, %c2_44, %c0_45, %c0_46] : memref<3x3x4x128xf32, #tpu.memory_space<vmem>>, vector<1x1x4x128xf32>
    %43 = vector.shape_cast %42 : vector<1x1x4x128xf32> to vector<4x128xf32>
    %cst_47 = arith.constant dense<0.000000e+00> : vector<1024x128xf32>
    %44 = tpu.matmul %41, %43, %cst_47 {dimension_numbers = #tpu.dot_dimension_numbers<[1], [0], [0], [1], [0, 0, 1, 1], [], []>} : vector<1024x4xf32>, vector<4x128xf32>, vector<1024x128xf32> -> vector<1024x128xf32>
    %c0_48 = arith.constant 0 : index
    %c0_49 = arith.constant 0 : index
    %45 = vector.load %arg7[%c0_48, %c0_49] : memref<1024x128xf32, #tpu.memory_space<vmem>>, vector<1024x128xf32>
    %46 = arith.addf %45, %44 : vector<1024x128xf32>
    %c0_50 = arith.constant 0 : index
    %c0_51 = arith.constant 0 : index
    %47 = vector.load %arg7[%c0_50, %c0_51] : memref<1024x128xf32, #tpu.memory_space<vmem>>, vector<1024x128xf32>
    tpu.vector_store %arg7[%c0_50, %c0_51], %46 {strides = array<i32>} : memref<1024x128xf32, #tpu.memory_space<vmem>>, vector<1024x128xf32>,
    %48 = vector.extract_strided_slice %1 {offsets = [2, 0, 0], sizes = [32, 32, 4], strides = [1, 1, 1]} : vector<34x34x4xf32> to vector<32x32x4xf32>
    %49 = vector.shape_cast %48 : vector<32x32x4xf32> to vector<1024x4xf32>
    %c2_52 = arith.constant 2 : index
    %c0_53 = arith.constant 0 : index
    %c0_54 = arith.constant 0 : index
    %c0_55 = arith.constant 0 : index
    %50 = vector.load %arg4[%c2_52, %c0_53, %c0_54, %c0_55] : memref<3x3x4x128xf32, #tpu.memory_space<vmem>>, vector<1x1x4x128xf32>
    %51 = vector.shape_cast %50 : vector<1x1x4x128xf32> to vector<4x128xf32>
    %cst_56 = arith.constant dense<0.000000e+00> : vector<1024x128xf32>
    %52 = tpu.matmul %49, %51, %cst_56 {dimension_numbers = #tpu.dot_dimension_numbers<[1], [0], [0], [1], [0, 0, 1, 1], [], []>} : vector<1024x4xf32>, vector<4x128xf32>, vector<1024x128xf32> -> vector<1024x128xf32>
    %c0_57 = arith.constant 0 : index
    %c0_58 = arith.constant 0 : index
    %53 = vector.load %arg7[%c0_57, %c0_58] : memref<1024x128xf32, #tpu.memory_space<vmem>>, vector<1024x128xf32>
    %54 = arith.addf %53, %52 : vector<1024x128xf32>
    %c0_59 = arith.constant 0 : index
    %c0_60 = arith.constant 0 : index
    %55 = vector.load %arg7[%c0_59, %c0_60] : memref<1024x128xf32, #tpu.memory_space<vmem>>, vector<1024x128xf32>
    tpu.vector_store %arg7[%c0_59, %c0_60], %54 {strides = array<i32>} : memref<1024x128xf32, #tpu.memory_space<vmem>>, vector<1024x128xf32>,
    %56 = vector.extract_strided_slice %1 {offsets = [2, 1, 0], sizes = [32, 32, 4], strides = [1, 1, 1]} : vector<34x34x4xf32> to vector<32x32x4xf32>
    %57 = vector.shape_cast %56 : vector<32x32x4xf32> to vector<1024x4xf32>
    %c2_61 = arith.constant 2 : index
    %c1_62 = arith.constant 1 : index
    %c0_63 = arith.constant 0 : index
    %c0_64 = arith.constant 0 : index
    %58 = vector.load %arg4[%c2_61, %c1_62, %c0_63, %c0_64] : memref<3x3x4x128xf32, #tpu.memory_space<vmem>>, vector<1x1x4x128xf32>
    %59 = vector.shape_cast %58 : vector<1x1x4x128xf32> to vector<4x128xf32>
    %cst_65 = arith.constant dense<0.000000e+00> : vector<1024x128xf32>
    %60 = tpu.matmul %57, %59, %cst_65 {dimension_numbers = #tpu.dot_dimension_numbers<[1], [0], [0], [1], [0, 0, 1, 1], [], []>} : vector<1024x4xf32>, vector<4x128xf32>, vector<1024x128xf32> -> vector<1024x128xf32>
    %c0_66 = arith.constant 0 : index
    %c0_67 = arith.constant 0 : index
    %61 = vector.load %arg7[%c0_66, %c0_67] : memref<1024x128xf32, #tpu.memory_space<vmem>>, vector<1024x128xf32>
    %62 = arith.addf %61, %60 : vector<1024x128xf32>
    %c0_68 = arith.constant 0 : index
    %c0_69 = arith.constant 0 : index
    %63 = vector.load %arg7[%c0_68, %c0_69] : memref<1024x128xf32, #tpu.memory_space<vmem>>, vector<1024x128xf32>
    tpu.vector_store %arg7[%c0_68, %c0_69], %62 {strides = array<i32>} : memref<1024x128xf32, #tpu.memory_space<vmem>>, vector<1024x128xf32>,
    %64 = vector.extract_strided_slice %1 {offsets = [2, 2, 0], sizes = [32, 32, 4], strides = [1, 1, 1]} : vector<34x34x4xf32> to vector<32x32x4xf32>
    %65 = vector.shape_cast %64 : vector<32x32x4xf32> to vector<1024x4xf32>
    %c2_70 = arith.constant 2 : index
    %c2_71 = arith.constant 2 : index
    %c0_72 = arith.constant 0 : index
    %c0_73 = arith.constant 0 : index
    %66 = vector.load %arg4[%c2_70, %c2_71, %c0_72, %c0_73] : memref<3x3x4x128xf32, #tpu.memory_space<vmem>>, vector<1x1x4x128xf32>
    %67 = vector.shape_cast %66 : vector<1x1x4x128xf32> to vector<4x128xf32>
    %cst_74 = arith.constant dense<0.000000e+00> : vector<1024x128xf32>
    %68 = tpu.matmul %65, %67, %cst_74 {dimension_numbers = #tpu.dot_dimension_numbers<[1], [0], [0], [1], [0, 0, 1, 1], [], []>} : vector<1024x4xf32>, vector<4x128xf32>, vector<1024x128xf32> -> vector<1024x128xf32>
    %c0_75 = arith.constant 0 : index
    %c0_76 = arith.constant 0 : index
    %69 = vector.load %arg7[%c0_75, %c0_76] : memref<1024x128xf32, #tpu.memory_space<vmem>>, vector<1024x128xf32>
    %70 = arith.addf %69, %68 : vector<1024x128xf32>
    %c0_77 = arith.constant 0 : index
    %c0_78 = arith.constant 0 : index
    %71 = vector.load %arg7[%c0_77, %c0_78] : memref<1024x128xf32, #tpu.memory_space<vmem>>, vector<1024x128xf32>
    tpu.vector_store %arg7[%c0_77, %c0_78], %70 {strides = array<i32>} : memref<1024x128xf32, #tpu.memory_space<vmem>>, vector<1024x128xf32>,
    %c0_79 = arith.constant 0 : index
    %c0_80 = arith.constant 0 : index
    %72 = vector.load %arg7[%c0_79, %c0_80] : memref<1024x128xf32, #tpu.memory_space<vmem>>, vector<1024x128xf32>
    %c0_81 = arith.constant 0 : index
    %c0_82 = arith.constant 0 : index
    %73 = vector.load %arg5[%c0_81, %c0_82] : memref<1x128xf32, #tpu.memory_space<vmem>>, vector<1x128xf32>
    %74 = vector.broadcast %73 : vector<1x128xf32> to vector<1024x128xf32>
    %75 = arith.addf %72, %74 : vector<1024x128xf32>
    %76 = vector.shape_cast %75 : vector<1024x128xf32> to vector<1x32x32x128xf32>
    %c0_83 = arith.constant 0 : index
    %c0_84 = arith.constant 0 : index
    %c0_85 = arith.constant 0 : index
    %c0_86 = arith.constant 0 : index
    %77 = vector.load %arg6[%c0_83, %c0_84, %c0_85, %c0_86] : memref<1x32x32x128xf32, #tpu.memory_space<vmem>>, vector<1x32x32x128xf32>
    tpu.vector_store %arg6[%c0_83, %c0_84, %c0_85, %c0_86], %76 {strides = array<i32>} : memref<1x32x32x128xf32, #tpu.memory_space<vmem>>, vector<1x32x32x128xf32>,
    return
  }
  func.func @transform_0(%arg0: i32, %arg1: i32, %arg2: i32) -> (i32, i32, i32, i32) {
    %c0_i32 = arith.constant 0 : i32
    %c0_i32_0 = arith.constant 0 : i32
    %c0_i32_1 = arith.constant 0 : i32
    %c0_i32_2 = arith.constant 0 : i32
    return %arg0, %c0_i32, %c0_i32_0, %c0_i32_1 : i32, i32, i32, i32
  }
  func.func @transform_1(%arg0: i32, %arg1: i32, %arg2: i32) -> (i32, i32, i32, i32) {
    %c0_i32 = arith.constant 0 : i32
    %c0_i32_0 = arith.constant 0 : i32
    %c0_i32_1 = arith.constant 0 : i32
    %c0_i32_2 = arith.constant 0 : i32
    return %c0_i32, %c0_i32_0, %c0_i32_1, %arg2 : i32, i32, i32, i32
  }
  func.func @transform_2(%arg0: i32, %arg1: i32, %arg2: i32) -> (i32, i32) {
    %c0_i32 = arith.constant 0 : i32
    %c0_i32_0 = arith.constant 0 : i32
    return %c0_i32, %arg2 : i32, i32
  }
  func.func @transform_3(%arg0: i32, %arg1: i32, %arg2: i32) -> (i32, i32, i32, i32) {
    %c0_i32 = arith.constant 0 : i32
    %c0_i32_0 = arith.constant 0 : i32
    return %arg0, %arg1, %c0_i32, %arg2 : i32, i32, i32, i32
  }
}

</mosaic_0001>

<bundles_post_ra>
// kernel: tpu_custom_call.1
= control target key start
LH: loop header
LB: loop body
LE: loop exit
PB: predicated region body
PF: predicated region fallthrough
CT: control target
= control target key end

     0   :  { %8 = vsyncpa [#allocation4], 0  ;;  %s22171_s0 = inlined_call_operand.vmem [shape: f32[2,34,34,4], index: 0, kind: input, shape index: {}]   ;;  %s22172_s1 = inlined_call_operand.vmem [shape: f32[3,3,4,128], index: 1, kind: input, shape index: {}]   ;;  %s22173_s2 = inlined_call_operand.vmem [shape: f32[1,128], index: 2, kind: input, shape index: {}]   ;;  %s22174_s3 = inlined_call_operand.hbm [shape: f32[2,32,32,128], index: 3, kind: output, shape index: {}]  }
   0x1   :  { %10 = vsyncpa [#allocation4 + $0x1], 0  ;;  %s16671_s12 = smov 0   ;;  %s16673_s13 = smov 0  }
   0x2   :  { %s16675_s14 = smov 0   ;;  %s16677_s15 = smov 0  }
   0x3   :  { %s16679_s16 = smov 0   ;;  %s16681_s17 = smov 0  }
   0x4 LB: > { %s12098_s18 = sadd.s32 4294967295, %s16646_s17   ;;  %s12099_s19 = sadd.s32 4294967294, %s16646_s17   ;;  %s16646_s17 = sphi %s16681_s17, %s16_s17   ;;  %s16642_s16 = sphi %s16679_s16, %s24154_s16   ;;  %s16638_s15 = sphi %s16677_s15, %s24153_s15   ;;  %s16634_s14 = sphi %s16675_s14, %s24152_s14   ;;  %s16630_s13 = sphi %s16673_s13, %s24151_s13   ;;  %s16626_s12 = sphi %s16671_s12, %s24150_s12  }
   0x5   : > { %s35_s20 = sadd.s32 1, %s16642_s16  ;;  %s124_s21 = sadd.s32 1, %s16634_s14 }
   0x6   : > { %p37_p0 = scmp.ge.s32.totalorder %s35_s20, 2  ;;  %p134_p1 = scmp.ne.s32.totalorder %s16634_s14, %s16630_s13 }
   0x7   : > { %p135_p2 = scmp.eq.s32.totalorder %s12098_s18, 1  ;;  %p140_p3 = scmp.ne.s32.totalorder %s16630_s13, %s16626_s12 }
   0x8   : > { %s24156_s20 = smov (%p37_p0, %s35_s20), 0  ;;  %p141_p5 = scmp.eq.s32.totalorder %s12099_s19, 1 }
   0x9   : > { %p16711_p4 = por %p135_p2, %p134_p1  ;;  %s117_s23 = ssub.s32 %s16642_s16, %s24156_s20 }
   0xa   : > { %p12104_p6 = scmp.ge.s32.totalorder %s16646_s17, 1  ;;  %p122_p7 = scmp.eq.s32.totalorder %s117_s23, 0 }
   0xb   : > { %p16718_p8 = por %p141_p5, %p140_p3  ;;  %p180_p9 = scmp.lt.s32.totalorder %s16646_s17, 3 }
   0xc   : > { %s16724_s25 = scalar_select %p122_p7, %s16634_s14, %s124_s21  }
   0xd   : > { %p181_p10 = pnand %p12104_p6, %p180_p9 }
   0xf   : > { %184 = sbr.rel (%p181_p10) target bundleno = 1393 (0x571), region = 32 }
  0x14   : > { %v394_v0 = vld [vmem:[%s22172_s1] sm:$0xf]  ;;  %vm780_vm0 = vcmask 1043456   ;;  %p211_p11 = scmp.lt.s32.totalorder %s16638_s15, 1  ;;  %v12236_v1 = vld [vmem:[%s22172_s1 + $0x4] sm:$0xf] }
  0x15   : > { %16190 = vmatprep.subr.msk.mxu1 %vm780_vm0, %v394_v0  ;;  %14444 = vmatprep.subr.msk.mxu0 %vm780_vm0, %v394_v0  ;;  %v12366_v2 = vld [vmem:[%s22172_s1 + $0x8] sm:$0xf]  ;;  %vm395_vm1 = vcmask 31744   ;;  %vm1649_vm2 = vcmask 1046528   ;;  %vm3288_vm3 = vcmask 1045504   ;;  %s208_s10 = sand.u32 1, %s16630_s13  }
  0x16   : > { %16191 = vmatpush3.msk.msra.mxu1 %vm780_vm0, %v394_v0  ;;  %14445 = vmatpush3.msk.msra.mxu0 %vm780_vm0, %v394_v0  ;;  %s212_s5 = scalar_select %p211_p11, %s16638_s15, 1  ;;  %v16764_v16 = vld [vmem:[%s22172_s1 + $0xc] sm:$0xf] }
  0x17   : > { %14638 = vmatprep.subr.msk.mxu1 %vm780_vm0, %v12236_v1  ;;  %14832 = vmatprep.subr.msk.mxu0 %vm780_vm0, %v12366_v2  ;;  %s12105_s11 = sshll.u32 %s208_s10, 10  ;;  %s13282_s26 = sshll.u32 %s16638_s15, 14 }
  0x18   : > { %s16192_s6 = smul.u32 1360, %s212_s5  ;;  %s21615_s21 = scalar_lea.vmem [#allocation3], %s12105_s11 }
  0x19   : > { %s11994_s27 = sshll.u32 %s21615_s21, 4  ;;  %s22117_s30 = scalar_lea.hbm %s22174_s3, %s13282_s26  ;;  %s22119_s27 = int_to_ptr.vmem [resolvable:$true] %s11994_s27 }
  0x1a   : > { %s16746_s9 = scalar_lea.vmem %s22171_s0, %s16192_s6  ;;  %s22126_s15 = scalar_lea.sflag [#allocation4], %s208_s10 }
  0x1b   : > { %v224_v3 = vld [vmem:[%s16746_s9] sm:$0xff]  ;;  %v225_v5 = vld [vmem:[%s16746_s9 + $0x8] sm:$0xff]  ;;  %v226_v11 = vld [vmem:[%s16746_s9 + $0x10] sm:$0xff]  ;;  %s16570_s4 = scalar_lea.vmem %s22119_s27, 16384  ;;  %s16648_s5 = smov [#allocation3]  }
  0x1c   : > { %v304_v4 = vld [vmem:[%s16746_s9 + $0x280] sm:$0xff]  ;;  %14446 = vmatprep.mubr.msk.f32.mxu0 %vm395_vm1, %v224_v3  ;;  %v1650_v6 = vrot.slane %v224_v3, 1  ;;  %v3289_v7 = vrot.slane %v224_v3, 2  ;;  %v1651_v8 = vrot.slane %v225_v5, 1  ;;  %v3290_v9 = vrot.slane %v225_v5, 2  ;;  %v305_v10 = vld [vmem:[%s16746_s9 + $0x288] sm:$0xff]  ;;  %p16571_p12 = scmp.ne.s32.totalorder %s22119_s27, %s16570_s4 }
  0x1d   : > { %14542 = vmatprep.mubr.msk.f32.mxu1 %vm395_vm1, %v304_v4  ;;  %14447 = vmatmul.mubr.msk.f32.vlgmr.msra.gmra.mxu0 %vm395_vm1, %v225_v5  ;;  %v1653_v12 = vrot.slane %v226_v11, 1  ;;  %v3292_v13 = vrot.slane %v226_v11, 2  ;;  %v306_v14 = vld [vmem:[%s16746_s9 + $0x290] sm:$0xff]  ;;  %v16759_v15 = vld [vmem:[%s16746_s9 + $0x18] sm:$0xff]  ;;  %v16780_v22 = vld [vmem:[%s16746_s9 + $0x28] sm:$0xff]  ;;  %s16574_s6 = sshll.u32 %s16648_s5, 4  ;;  %s16575_s6 = int_to_ptr.vmem [resolvable:$false] %s16574_s6 }
  0x1e   : > { %14543 = vmatmul.mubr.msk.f32.vlgmr.msra.gmra.mxu1 %vm395_vm1, %v305_v10  ;;  %14833 = vmatpush3.msk.msra.mxu0 %vm780_vm0, %v12366_v2  ;;  %v22176_v17 = vrot.slane %v16759_v15, 1  ;;  %v22175_v18 = vrot.slane %v16759_v15, 2  ;;  %v307_v19 = vld [vmem:[%s16746_s9 + $0x298] sm:$0xff]  ;;  %v16772_v20 = vsel %vm1649_vm2, %v1650_v6, %v1651_v8  ;;  %v16775_v21 = vsel %vm3288_vm3, %v3289_v7, %v3290_v9  ;;  %v309_v23 = vld [vmem:[%s16746_s9 + $0x2a8] sm:$0xff]  ;;  %v16808_v28 = vld [vmem:[%s16746_s9 + $0x30] sm:$0xff]  ;;  %p16572_p13 = pnand %p16571_p12, %p16711_p4  ;;  %s16576_s7 = scalar_lea.vmem %s16575_s6, 32768 }
  0x1f   : > { %14639 = vmatpush3.msk.msra.mxu1 %vm780_vm0, %v12236_v1  ;;  %14449 = vmatprep.mubr.msk.f32.mxu0 %vm395_vm1, %v226_v11  ;;  %v16786_v24 = vsel %vm1649_vm2, %v1651_v8, %v1653_v12  ;;  %v16789_v25 = vsel %vm3288_vm3, %v3290_v9, %v3292_v13  ;;  %v310_v29 = vld [vmem:[%s16746_s9 + $0x2b0] sm:$0xff]  ;;  %v16812_v30 = vld [vmem:[%s16746_s9 + $0x38] sm:$0xff]  ;;  %v16822_v32 = vld [vmem:[%s16746_s9 + $0x40] sm:$0xff]  ;;  %p16577_p1 = scmp.lt.s32.totalorder %s22119_s27, %s16575_s6  ;;  %p16578_p2 = scmp.lt.s32.totalorder %s16576_s7, %s16570_s4 }
  0x20   : > { %14545 = vmatprep.mubr.msk.f32.mxu1 %vm395_vm1, %v306_v14  ;;  %15026 = vmatprep.subr.msk.mxu1 %vm780_vm0, %v16764_v16  ;;  %v16797_v26 = vsel %vm1649_vm2, %v1653_v12, %v22176_v17  ;;  %v16802_v27 = vsel %vm3288_vm3, %v3292_v13, %v22175_v18  ;;  %v311_v31 = vld [vmem:[%s16746_s9 + $0x2b8] sm:$0xff]  ;;  %v312_v33 = vld [vmem:[%s16746_s9 + $0x2c0] sm:$0xff]  ;;  %v16826_v34 = vld [vmem:[%s16746_s9 + $0x50] sm:$0xff]  ;;  %p16573_p0 = pneg %p16572_p13 }
  0x21   : > { %14450 = vmatmul.mubr.msk.f32.gmra.mxu0 %vm395_vm1, %v16759_v15  ;;  %v314_v35 = vld [vmem:[%s16746_s9 + $0x2d0] sm:$0xff]  ;;  %v16836_v36 = vld [vmem:[%s16746_s9 + $0x58] sm:$0xff]  ;;  %v16840_v38 = vld [vmem:[%s16746_s9 + $0x60] sm:$0xff]  ;;  %p16579_p3 = por %p16578_p2, %p16577_p1 }
  0x22   : > { %14546 = vmatmul.mubr.msk.f32.gmra.mxu1 %vm395_vm1, %v307_v19  ;;  %14452 = vmatprep.mubr.msk.f32.mxu0 %vm395_vm1, %v16780_v22  ;;  %v315_v37 = vld [vmem:[%s16746_s9 + $0x2d8] sm:$0xff]  ;;  %v316_v39 = vld [vmem:[%s16746_s9 + $0x2e0] sm:$0xff]  ;;  %v16850_v40 = vld [vmem:[%s16746_s9 + $0x68] sm:$0xff] }
  0x23   : > { %14548 = vmatprep.mubr.msk.f32.mxu1 %vm395_vm1, %v309_v23  ;;  %v317_v41 = vld [vmem:[%s16746_s9 + $0x2e8] sm:$0xff]  ;;  %v16854_v42 = vld [vmem:[%s16746_s9 + $0x78] sm:$0xff]  ;;  %v16864_v44 = vld [vmem:[%s16746_s9 + $0x80] sm:$0xff]  ;;  %p16580_p5 = pnand %p16579_p3, %p16573_p0 }
  0x24   : > { %v319_v43 = vld [vmem:[%s16746_s9 + $0x2f8] sm:$0xff]  ;;  %v320_v45 = vld [vmem:[%s16746_s9 + $0x300] sm:$0xff]  ;;  %v16868_v46 = vld [vmem:[%s16746_s9 + $0x88] sm:$0xff] }
  0x25   : > { %14453 = vmatmul.mubr.msk.f32.gmra.mxu0 %vm395_vm1, %v16808_v28  ;;  %v321_v47 = vld [vmem:[%s16746_s9 + $0x308] sm:$0xff]  ;;  %v16878_v48 = vld [vmem:[%s16746_s9 + $0x90] sm:$0xff]  ;;  %v16882_v50 = vld [vmem:[%s16746_s9 + $0xa0] sm:$0xff] }
  0x26   : > { %14549 = vmatmul.mubr.msk.f32.gmra.mxu1 %vm395_vm1, %v310_v29  ;;  %14455 = vmatprep.mubr.msk.f32.mxu0 %vm395_vm1, %v16812_v30  ;;  %v322_v49 = vld [vmem:[%s16746_s9 + $0x310] sm:$0xff]  ;;  %v324_v51 = vld [vmem:[%s16746_s9 + $0x320] sm:$0xff]  ;;  %v16892_v52 = vld [vmem:[%s16746_s9 + $0xa8] sm:$0xff] }
  0x27   : > { %14551 = vmatprep.mubr.msk.f32.mxu1 %vm395_vm1, %v311_v31  ;;  %v325_v53 = vld [vmem:[%s16746_s9 + $0x328] sm:$0xff]  ;;  %v16896_v54 = vld [vmem:[%s16746_s9 + $0xb0] sm:$0xff]  ;;  %v16906_v56 = vld [vmem:[%s16746_s9 + $0xb8] sm:$0xff] }
  0x28   : > { %v326_v55 = vld [vmem:[%s16746_s9 + $0x330] sm:$0xff]  ;;  %v327_v57 = vld [vmem:[%s16746_s9 + $0x338] sm:$0xff]  ;;  %v16910_v58 = vld [vmem:[%s16746_s9 + $0xc8] sm:$0xff] }
  0x29   : > { %14456 = vmatmul.mubr.msk.f32.gmra.mxu0 %vm395_vm1, %v16822_v32  ;;  %v329_v59 = vld [vmem:[%s16746_s9 + $0x348] sm:$0xff]  ;;  %v16920_v60 = vld [vmem:[%s16746_s9 + $0xd0] sm:$0xff]  ;;  %v16924_v62 = vld [vmem:[%s16746_s9 + $0xd8] sm:$0xff] }
  0x2a   : > { %14552 = vmatmul.mubr.msk.f32.gmra.mxu1 %vm395_vm1, %v312_v33  ;;  %14458 = vmatprep.mubr.msk.f32.mxu0 %vm395_vm1, %v16826_v34  ;;  %v330_v61 = vld [vmem:[%s16746_s9 + $0x350] sm:$0xff]  ;;  %v331_v63 = vld [vmem:[%s16746_s9 + $0x358] sm:$0xff]  ;;  %v16934_v0 = vld [vmem:[%s16746_s9 + $0xe0] sm:$0xff] }
  0x2b   : > { %14554 = vmatprep.mubr.msk.f32.mxu1 %vm395_vm1, %v314_v35  ;;  %v332_v1 = vld [vmem:[%s16746_s9 + $0x360] sm:$0xff]  ;;  %v16940_v2 = vld [vmem:[%s22172_s1 + $0x10] sm:$0xf]  ;;  %v16955_v5 = vld [vmem:[%s16746_s9 + $0xf8] sm:$0xff] }
  0x2c   : > { %v16943_v3 = vld [vmem:[%s16746_s9 + $0xf0] sm:$0xff]  ;;  %15220 = vmatprep.subr.msk.mxu0 %vm780_vm0, %v16940_v2  ;;  %v335_v6 = vld [vmem:[%s16746_s9 + $0x378] sm:$0xff]  ;;  %v16959_v7 = vld [vmem:[%s16746_s9 + $0x100] sm:$0xff] }
  0x2d   : > { %14459 = vmatmul.mubr.msk.f32.gmra.mxu0 %vm395_vm1, %v16836_v36  ;;  %v334_v4 = vld [vmem:[%s16746_s9 + $0x370] sm:$0xff]  ;;  %v336_v8 = vld [vmem:[%s16746_s9 + $0x380] sm:$0xff]  ;;  %v16969_v9 = vld [vmem:[%s16746_s9 + $0x108] sm:$0xff] }
  0x2e   : > { %14555 = vmatmul.mubr.msk.f32.gmra.mxu1 %vm395_vm1, %v315_v37  ;;  %14461 = vmatprep.mubr.msk.f32.mxu0 %vm395_vm1, %v16840_v38  ;;  %v337_v10 = vld [vmem:[%s16746_s9 + $0x388] sm:$0xff]  ;;  %v16973_v11 = vld [vmem:[%s16746_s9 + $0x118] sm:$0xff]  ;;  %v16983_v13 = vld [vmem:[%s16746_s9 + $0x120] sm:$0xff] }
  0x2f   : > { %14557 = vmatprep.mubr.msk.f32.mxu1 %vm395_vm1, %v316_v39  ;;  %v339_v12 = vld [vmem:[%s16746_s9 + $0x398] sm:$0xff]  ;;  %v340_v14 = vld [vmem:[%s16746_s9 + $0x3a0] sm:$0xff]  ;;  %v16987_v19 = vld [vmem:[%s16746_s9 + $0x128] sm:$0xff] }
  0x30   : > { %v341_v23 = vld [vmem:[%s16746_s9 + $0x3a8] sm:$0xff]  ;;  %v16997_v29 = vld [vmem:[%s16746_s9 + $0x130] sm:$0xff]  ;;  %v17001_v33 = vld [vmem:[%s16746_s9 + $0x140] sm:$0xff] }
  0x31   : > { %14462 = vmatmul.mubr.msk.f32.gmra.mxu0 %vm395_vm1, %v16850_v40  ;;  %v342_v31 = vld [vmem:[%s16746_s9 + $0x3b0] sm:$0xff]  ;;  %v344_v35 = vld [vmem:[%s16746_s9 + $0x3c0] sm:$0xff]  ;;  %v17011_v37 = vld [vmem:[%s16746_s9 + $0x148] sm:$0xff] }
  0x32   : > { %14558 = vmatmul.mubr.msk.f32.gmra.mxu1 %vm395_vm1, %v317_v41  ;;  %14464 = vmatprep.mubr.msk.f32.mxu0 %vm395_vm1, %v16854_v42  ;;  %v345_v39 = vld [vmem:[%s16746_s9 + $0x3c8] sm:$0xff]  ;;  %v17015_v41 = vld [vmem:[%s16746_s9 + $0x150] sm:$0xff]  ;;  %v17155_v18 = vld [vmem:[%s16746_s9 + $0x218] sm:$0xff] }
  0x33   : > { %14560 = vmatprep.mubr.msk.f32.mxu1 %vm395_vm1, %v319_v43  ;;  %v346_v43 = vld [vmem:[%s16746_s9 + $0x3d0] sm:$0xff]  ;;  %22669 = vst [vmem:[#allocation10_spill] sm:$0xff] %v17155_v18  ;;  %v371_v17 = vld [vmem:[%s16746_s9 + $0x498] sm:$0xff] }
  0x35   : > { %14465 = vmatmul.mubr.msk.f32.gmra.mxu0 %vm395_vm1, %v16864_v44 }
  0x36   : > { %14561 = vmatmul.mubr.msk.f32.gmra.mxu1 %vm395_vm1, %v320_v45  ;;  %14467 = vmatprep.mubr.msk.f32.mxu0 %vm395_vm1, %v16868_v46  ;;  %v17025_v45 = vld [vmem:[%s16746_s9 + $0x158] sm:$0xff] }
  0x37   : > { %14563 = vmatprep.mubr.msk.f32.mxu1 %vm395_vm1, %v321_v47  ;;  %v347_v47 = vld [vmem:[%s16746_s9 + $0x3d8] sm:$0xff] }
  0x39   : > { %14468 = vmatmul.mubr.msk.f32.gmra.mxu0 %vm395_vm1, %v16878_v48 }
  0x3a   : > { %14564 = vmatmul.mubr.msk.f32.gmra.mxu1 %vm395_vm1, %v322_v49  ;;  %14470 = vmatprep.mubr.msk.f32.mxu0 %vm395_vm1, %v16882_v50  ;;  %v17029_v49 = vld [vmem:[%s16746_s9 + $0x168] sm:$0xff] }
  0x3b   : > { %14566 = vmatprep.mubr.msk.f32.mxu1 %vm395_vm1, %v324_v51  ;;  %v349_v51 = vld [vmem:[%s16746_s9 + $0x3e8] sm:$0xff] }
  0x3d   : > { %14471 = vmatmul.mubr.msk.f32.gmra.mxu0 %vm395_vm1, %v16892_v52 }
  0x3e   : > { %14567 = vmatmul.mubr.msk.f32.gmra.mxu1 %vm395_vm1, %v325_v53  ;;  %14473 = vmatprep.mubr.msk.f32.mxu0 %vm395_vm1, %v16896_v54  ;;  %v17039_v53 = vld [vmem:[%s16746_s9 + $0x170] sm:$0xff] }
  0x3f   : > { %14569 = vmatprep.mubr.msk.f32.mxu1 %vm395_vm1, %v326_v55  ;;  %v350_v55 = vld [vmem:[%s16746_s9 + $0x3f0] sm:$0xff] }
  0x41   : > { %14474 = vmatmul.mubr.msk.f32.gmra.mxu0 %vm395_vm1, %v16906_v56 }
  0x42   : > { %14570 = vmatmul.mubr.msk.f32.gmra.mxu1 %vm395_vm1, %v327_v57  ;;  %14476 = vmatprep.mubr.msk.f32.mxu0 %vm395_vm1, %v16910_v58  ;;  %v17043_v57 = vld [vmem:[%s16746_s9 + $0x178] sm:$0xff] }
  0x43   : > { %14572 = vmatprep.mubr.msk.f32.mxu1 %vm395_vm1, %v329_v59  ;;  %v351_v59 = vld [vmem:[%s16746_s9 + $0x3f8] sm:$0xff] }
  0x45   : > { %14477 = vmatmul.mubr.msk.f32.gmra.mxu0 %vm395_vm1, %v16920_v60 }
  0x46   : > { %14573 = vmatmul.mubr.msk.f32.gmra.mxu1 %vm395_vm1, %v330_v61  ;;  %14479 = vmatprep.mubr.msk.f32.mxu0 %vm395_vm1, %v16924_v62  ;;  %v17053_v61 = vld [vmem:[%s16746_s9 + $0x180] sm:$0xff] }
  0x47   : > { %14575 = vmatprep.mubr.msk.f32.mxu1 %vm395_vm1, %v331_v63  ;;  %v352_v63 = vld [vmem:[%s16746_s9 + $0x400] sm:$0xff] }
  0x49   : > { %14480 = vmatmul.mubr.msk.f32.gmra.mxu0 %vm395_vm1, %v16934_v0 }
  0x4a   : > { %14576 = vmatmul.mubr.msk.f32.gmra.mxu1 %vm395_vm1, %v332_v1  ;;  %14482 = vmatprep.mubr.msk.f32.mxu0 %vm395_vm1, %v16943_v3  ;;  %v17057_v1 = vld [vmem:[%s16746_s9 + $0x190] sm:$0xff] }
  0x4b   : > { %14578 = vmatprep.mubr.msk.f32.mxu1 %vm395_vm1, %v334_v4  ;;  %v354_v4 = vld [vmem:[%s16746_s9 + $0x410] sm:$0xff] }
  0x4d   : > { %14483 = vmatmul.mubr.msk.f32.gmra.mxu0 %vm395_vm1, %v16955_v5 }
  0x4e   : > { %14579 = vmatmul.mubr.msk.f32.gmra.mxu1 %vm395_vm1, %v335_v6  ;;  %14485 = vmatprep.mubr.msk.f32.mxu0 %vm395_vm1, %v16959_v7  ;;  %v17067_v6 = vld [vmem:[%s16746_s9 + $0x198] sm:$0xff] }
  0x4f   : > { %14581 = vmatprep.mubr.msk.f32.mxu1 %vm395_vm1, %v336_v8  ;;  %v355_v8 = vld [vmem:[%s16746_s9 + $0x418] sm:$0xff] }
  0x51   : > { %14486 = vmatmul.mubr.msk.f32.gmra.mxu0 %vm395_vm1, %v16969_v9 }
  0x52   : > { %14582 = vmatmul.mubr.msk.f32.gmra.mxu1 %vm395_vm1, %v337_v10  ;;  %14488 = vmatprep.mubr.msk.f32.mxu0 %vm395_vm1, %v16973_v11  ;;  %v17071_v10 = vld [vmem:[%s16746_s9 + $0x1a0] sm:$0xff] }
  0x53   : > { %14584 = vmatprep.mubr.msk.f32.mxu1 %vm395_vm1, %v339_v12  ;;  %v356_v12 = vld [vmem:[%s16746_s9 + $0x420] sm:$0xff] }
  0x55   : > { %14489 = vmatmul.mubr.msk.f32.gmra.mxu0 %vm395_vm1, %v16983_v13 }
  0x56   : > { %14585 = vmatmul.mubr.msk.f32.gmra.mxu1 %vm395_vm1, %v340_v14  ;;  %14491 = vmatprep.mubr.msk.f32.mxu0 %vm395_vm1, %v16987_v19  ;;  %v17081_v14 = vld [vmem:[%s16746_s9 + $0x1a8] sm:$0xff] }
  0x57   : > { %14587 = vmatprep.mubr.msk.f32.mxu1 %vm395_vm1, %v341_v23  ;;  %v357_v23 = vld [vmem:[%s16746_s9 + $0x428] sm:$0xff] }
  0x59   : > { %14492 = vmatmul.mubr.msk.f32.gmra.mxu0 %vm395_vm1, %v16997_v29 }
  0x5a   : > { %14588 = vmatmul.mubr.msk.f32.gmra.mxu1 %vm395_vm1, %v342_v31  ;;  %14494 = vmatprep.mubr.msk.f32.mxu0 %vm395_vm1, %v17001_v33  ;;  %v17085_v31 = vld [vmem:[%s16746_s9 + $0x1b8] sm:$0xff] }
  0x5b   : > { %14590 = vmatprep.mubr.msk.f32.mxu1 %vm395_vm1, %v344_v35  ;;  %v359_v35 = vld [vmem:[%s16746_s9 + $0x438] sm:$0xff] }
  0x5d   : > { %14495 = vmatmul.mubr.msk.f32.gmra.mxu0 %vm395_vm1, %v17011_v37 }
  0x5e   : > { %14591 = vmatmul.mubr.msk.f32.gmra.mxu1 %vm395_vm1, %v345_v39  ;;  %14497 = vmatprep.mubr.msk.f32.mxu0 %vm395_vm1, %v17015_v41  ;;  %v17095_v39 = vld [vmem:[%s16746_s9 + $0x1c0] sm:$0xff] }
  0x5f   : > { %14593 = vmatprep.mubr.msk.f32.mxu1 %vm395_vm1, %v346_v43  ;;  %v360_v43 = vld [vmem:[%s16746_s9 + $0x440] sm:$0xff] }
  0x61   : > { %14498 = vmatmul.mubr.msk.f32.gmra.mxu0 %vm395_vm1, %v17025_v45 }
  0x62   : > { %14594 = vmatmul.mubr.msk.f32.gmra.mxu1 %vm395_vm1, %v347_v47  ;;  %14500 = vmatprep.mubr.msk.f32.mxu0 %vm395_vm1, %v17029_v49  ;;  %v17099_v47 = vld [vmem:[%s16746_s9 + $0x1c8] sm:$0xff] }
  0x63   : > { %14596 = vmatprep.mubr.msk.f32.mxu1 %vm395_vm1, %v349_v51  ;;  %v361_v51 = vld [vmem:[%s16746_s9 + $0x448] sm:$0xff] }
  0x65   : > { %14501 = vmatmul.mubr.msk.f32.gmra.mxu0 %vm395_vm1, %v17039_v53 }
  0x66   : > { %14597 = vmatmul.mubr.msk.f32.gmra.mxu1 %vm395_vm1, %v350_v55  ;;  %14503 = vmatprep.mubr.msk.f32.mxu0 %vm395_vm1, %v17043_v57  ;;  %v17109_v55 = vld [vmem:[%s16746_s9 + $0x1d0] sm:$0xff] }
  0x67   : > { %14599 = vmatprep.mubr.msk.f32.mxu1 %vm395_vm1, %v351_v59  ;;  %v362_v59 = vld [vmem:[%s16746_s9 + $0x450] sm:$0xff] }
  0x69   : > { %14504 = vmatmul.mubr.msk.f32.gmra.mxu0 %vm395_vm1, %v17053_v61 }
  0x6a   : > { %14600 = vmatmul.mubr.msk.f32.gmra.mxu1 %vm395_vm1, %v352_v63  ;;  %14506 = vmatprep.mubr.msk.f32.mxu0 %vm395_vm1, %v17057_v1  ;;  %v17113_v63 = vld [vmem:[%s16746_s9 + $0x1e0] sm:$0xff] }
  0x6b   : > { %14602 = vmatprep.mubr.msk.f32.mxu1 %vm395_vm1, %v354_v4  ;;  %v364_v4 = vld [vmem:[%s16746_s9 + $0x460] sm:$0xff] }
  0x6d   : > { %14507 = vmatmul.mubr.msk.f32.gmra.mxu0 %vm395_vm1, %v17067_v6 }
  0x6e   : > { %14603 = vmatmul.mubr.msk.f32.gmra.mxu1 %vm395_vm1, %v355_v8  ;;  %14509 = vmatprep.mubr.msk.f32.mxu0 %vm395_vm1, %v17071_v10  ;;  %v17123_v8 = vld [vmem:[%s16746_s9 + $0x1e8] sm:$0xff] }
  0x6f   : > { %14605 = vmatprep.mubr.msk.f32.mxu1 %vm395_vm1, %v356_v12  ;;  %v365_v12 = vld [vmem:[%s16746_s9 + $0x468] sm:$0xff] }
  0x71   : > { %14510 = vmatmul.mubr.msk.f32.gmra.mxu0 %vm395_vm1, %v17081_v14 }
  0x72   : > { %14606 = vmatmul.mubr.msk.f32.gmra.mxu1 %vm395_vm1, %v357_v23  ;;  %14512 = vmatprep.mubr.msk.f32.mxu0 %vm395_vm1, %v17085_v31  ;;  %v17127_v23 = vld [vmem:[%s16746_s9 + $0x1f0] sm:$0xff] }
  0x73   : > { %14608 = vmatprep.mubr.msk.f32.mxu1 %vm395_vm1, %v359_v35  ;;  %22665 = vst [vmem:[#allocation6_spill] sm:$0xff] %v17127_v23  ;;  %v366_v35 = vld [vmem:[%s16746_s9 + $0x470] sm:$0xff] }
  0x75   : > { %14513 = vmatmul.mubr.msk.f32.gmra.mxu0 %vm395_vm1, %v17095_v39 }
  0x76   : > { %14609 = vmatmul.mubr.msk.f32.gmra.mxu1 %vm395_vm1, %v360_v43  ;;  %14515 = vmatprep.mubr.msk.f32.mxu0 %vm395_vm1, %v17099_v47  ;;  %v17137_v43 = vld [vmem:[%s16746_s9 + $0x1f8] sm:$0xff] }
  0x77   : > { %14611 = vmatprep.mubr.msk.f32.mxu1 %vm395_vm1, %v361_v51  ;;  %22666 = vst [vmem:[#allocation7_spill] sm:$0xff] %v17137_v43  ;;  %v367_v51 = vld [vmem:[%s16746_s9 + $0x478] sm:$0xff] }
  0x79   : > { %14516 = vmatmul.mubr.msk.f32.gmra.mxu0 %vm395_vm1, %v17109_v55 }
  0x7a   : > { %14612 = vmatmul.mubr.msk.f32.gmra.mxu1 %vm395_vm1, %v362_v59  ;;  %14518 = vmatprep.mubr.msk.f32.mxu0 %vm395_vm1, %v17113_v63  ;;  %v17141_v59 = vld [vmem:[%s16746_s9 + $0x208] sm:$0xff] }
  0x7b   : > { %14614 = vmatprep.mubr.msk.f32.mxu1 %vm395_vm1, %v364_v4  ;;  %22667 = vst [vmem:[#allocation8_spill] sm:$0xff] %v17141_v59  ;;  %v369_v4 = vld [vmem:[%s16746_s9 + $0x488] sm:$0xff] }
  0x7d   : > { %14519 = vmatmul.mubr.msk.f32.gmra.mxu0 %vm395_vm1, %v17123_v8 }
  0x7e   : > { %14615 = vmatmul.mubr.msk.f32.gmra.mxu1 %vm395_vm1, %v365_v12  ;;  %14521 = vmatprep.mubr.msk.f32.mxu0 %vm395_vm1, %v17127_v23  ;;  %v17151_v12 = vld [vmem:[%s16746_s9 + $0x210] sm:$0xff]  ;;  %v3299_v23 = vrot.slane %v16808_v28, 2 }
  0x7f   : > { %14617 = vmatprep.mubr.msk.f32.mxu1 %vm395_vm1, %v366_v35  ;;  %22668 = vst [vmem:[#allocation9_spill] sm:$0xff] %v17151_v12  ;;  %v370_v35 = vld [vmem:[%s16746_s9 + $0x490] sm:$0xff] }
  0x81   : > { %14522 = vmatmul.mubr.msk.f32.gmra.mxu0 %vm395_vm1, %v17137_v43  ;;  %v374_v43 = vld [vmem:[%s16746_s9 + $0x4b0] sm:$0xff] }
  0x82   : > { %14618 = vmatmul.mubr.msk.f32.gmra.mxu1 %vm395_vm1, %v367_v51  ;;  %14524 = vmatprep.mubr.msk.f32.mxu0 %vm395_vm1, %v17141_v59  ;;  %v17165_v51 = vld [vmem:[%s16746_s9 + $0x220] sm:$0xff]  ;;  %v17169_v59 = vld [vmem:[%s16746_s9 + $0x230] sm:$0xff] }
  0x83   : > { %14620 = vmatprep.mubr.msk.f32.mxu1 %vm395_vm1, %v369_v4  ;;  %22670 = vst [vmem:[#allocation11_spill] sm:$0xff] %v17165_v51  ;;  %v372_v4 = vld [vmem:[%s16746_s9 + $0x4a0] sm:$0xff]  ;;  %22671 = vst [vmem:[#allocation12_spill] sm:$0xff] %v17169_v59 }
  0x85   : > { %14525 = vmatmul.mubr.msk.f32.gmra.mxu0 %vm395_vm1, %v17151_v12  ;;  %v376_v12 = vld [vmem:[%s16746_s9 + $0x4c0] sm:$0xff] }
  0x86   : > { %14621 = vmatmul.mubr.msk.f32.gmra.mxu1 %vm395_vm1, %v370_v35  ;;  %14527 = vmatprep.mubr.msk.f32.mxu0 %vm395_vm1, %v17155_v18  ;;  %v375_v35 = vld [vmem:[%s16746_s9 + $0x4b8] sm:$0xff]  ;;  %v17183_v18 = vld [vmem:[%s16746_s9 + $0x240] sm:$0xff] }
  0x87   : > { %14623 = vmatprep.mubr.msk.f32.mxu1 %vm395_vm1, %v371_v17  ;;  %v17179_v17 = vld [vmem:[%s16746_s9 + $0x238] sm:$0xff]  ;;  %22673 = vst [vmem:[#allocation14_spill] sm:$0xff] %v17183_v18 }
  0x88   : > { %22672 = vst [vmem:[#allocation13_spill] sm:$0xff] %v17179_v17 }
  0x89   : > { %14528 = vmatmul.mubr.msk.f32.gmra.mxu0 %vm395_vm1, %v17165_v51  ;;  %v379_v51 = vld [vmem:[%s16746_s9 + $0x4d8] sm:$0xff] }
  0x8a   : > { %14624 = vmatmul.mubr.msk.f32.gmra.mxu1 %vm395_vm1, %v372_v4  ;;  %14530 = vmatprep.mubr.msk.f32.mxu0 %vm395_vm1, %v17169_v59  ;;  %v377_v4 = vld [vmem:[%s16746_s9 + $0x4c8] sm:$0xff]  ;;  %v17197_v59 = vld [vmem:[%s16746_s9 + $0x258] sm:$0xff] }
  0x8b   : > { %14626 = vmatprep.mubr.msk.f32.mxu1 %vm395_vm1, %v374_v43  ;;  %v17193_v43 = vld [vmem:[%s16746_s9 + $0x248] sm:$0xff]  ;;  %22675 = vst [vmem:[#allocation16_spill] sm:$0xff] %v17197_v59 }
  0x8c   : > { %22674 = vst [vmem:[#allocation15_spill] sm:$0xff] %v17193_v43 }
  0x8d   : > { %14531 = vmatmul.mubr.msk.f32.gmra.mxu0 %vm395_vm1, %v17179_v17  ;;  %v381_v17 = vld [vmem:[%s16746_s9 + $0x4e8] sm:$0xff] }
  0x8e   : > { %14627 = vmatmul.mubr.msk.f32.gmra.mxu1 %vm395_vm1, %v375_v35  ;;  %14533 = vmatprep.mubr.msk.f32.mxu0 %vm395_vm1, %v17183_v18  ;;  %v380_v35 = vld [vmem:[%s16746_s9 + $0x4e0] sm:$0xff]  ;;  %v17211_v18 = vld [vmem:[%s16746_s9 + $0x268] sm:$0xff] }
  0x8f   : > { %14629 = vmatprep.mubr.msk.f32.mxu1 %vm395_vm1, %v376_v12  ;;  %v17207_v12 = vld [vmem:[%s16746_s9 + $0x260] sm:$0xff]  ;;  %22677 = vst [vmem:[#allocation18_spill] sm:$0xff] %v17211_v18 }
  0x90   : > { %22676 = vst [vmem:[#allocation17_spill] sm:$0xff] %v17207_v12 }
  0x91   : > { %14534 = vmatmul.mubr.msk.f32.gmra.mxu0 %vm395_vm1, %v17193_v43  ;;  %v1660_v43 = vrot.slane %v16808_v28, 1 }
  0x92   : > { %14630 = vmatmul.mubr.msk.f32.gmra.mxu1 %vm395_vm1, %v377_v4  ;;  %14536 = vmatprep.mubr.msk.f32.mxu0 %vm395_vm1, %v17197_v59  ;;  %v17221_v4 = vld [vmem:[%s16746_s9 + $0x270] sm:$0xff] }
  0x93   : > { %14632 = vmatprep.mubr.msk.f32.mxu1 %vm395_vm1, %v379_v51  ;;  %22678 = vst [vmem:[#allocation19_spill] sm:$0xff] %v17221_v4  ;;  %v382_v59 = vld [vmem:[%s16746_s9 + $0x4f0] sm:$0xff]  ;;  %v228_v51 = vld [vmem:[%s16746_s9 + $0x20] sm:$0x3] }
  0x95   : > { %14537 = vmatmul.mubr.msk.f32.gmra.mxu0 %vm395_vm1, %v17207_v12  ;;  %v3296_v12 = vrot.slane %v228_v51, 2 }
  0x96   : > { %14633 = vmatmul.mubr.msk.f32.gmra.mxu1 %vm395_vm1, %v380_v35  ;;  %14539 = vmatprep.mubr.msk.f32.mxu0 %vm395_vm1, %v17211_v18  ;;  %v1657_v35 = vrot.slane %v228_v51, 1  ;;  %v1659_v18 = vrot.slane %v16780_v22, 1  ;;  %v3307_v51 = vrot.slane %v16826_v34, 2 }
  0x97   : > { %14635 = vmatprep.mubr.msk.f32.mxu1 %vm395_vm1, %v381_v17  ;;  %v3298_v17 = vrot.slane %v16780_v22, 2  ;;  %v22679_v22 = vrot.slane %v16759_v15, 1 }
  0x99   : > { %14540 = vmatmul.mubr.msk.f32.gmra.mxu0 %vm395_vm1, %v17221_v4  ;;  %v1662_v4 = vrot.slane %v16812_v30, 1  ;;  %v1658_v28 = vsel %vm1649_vm2, %v22679_v22, %v1657_v35  ;;  %v3308_v35 = vrot.slane %v16836_v36, 2  ;;  %v3312_v22 = vrot.slane %v16850_v40, 2 }
  0x9a   : > { %14636 = vmatmul.mubr.msk.f32.gmra.mxu1 %vm395_vm1, %v382_v59  ;;  %14834 = vmatprep.mubr.msk.f32.mxu0 %vm395_vm1, %v16775_v21  ;;  %v3301_v59 = vrot.slane %v16812_v30, 2  ;;  %v3303_v21 = vrot.slane %v16822_v32, 2  ;;  %v22680_v30 = vrot.slane %v16759_v15, 2 }
  0x9b   : > { %14640 = vmatprep.mubr.msk.f32.mxu1 %vm395_vm1, %v16772_v20  ;;  %v1664_v20 = vrot.slane %v16822_v32, 1  ;;  %v233_v32 = vld [vmem:[%s16746_s9 + $0x48] sm:$0x3]  ;;  %v17268_v15 = vsel %vm1649_vm2, %v1660_v43, %v1662_v4 }
  0x9d   : > { %14835 = vmatmul.mubr.msk.f32.vlgmr.msra.gmra.mxu0 %vm395_vm1, %v16789_v25  ;;  %v17259_v25 = vsel %vm1649_vm2, %v1659_v18, %v1660_v43  ;;  %v17278_v18 = vsel %vm1649_vm2, %v1662_v4, %v1664_v20  ;;  %v1668_v43 = vrot.slane %v16826_v34, 1  ;;  %v1671_v4 = vrot.slane %v16840_v38, 1 }
  0x9e   : > { %14641 = vmatmul.mubr.msk.f32.vlgmr.msra.gmra.mxu1 %vm395_vm1, %v16786_v24  ;;  %15221 = vmatpush3.msk.msra.mxu0 %vm780_vm0, %v16940_v2  ;;  %v3297_v24 = vsel %vm3288_vm3, %v22680_v30, %v3296_v12  ;;  %v17271_v2 = vsel %vm3288_vm3, %v3299_v23, %v3301_v59  ;;  %v3305_v12 = vrot.slane %v233_v32, 2  ;;  %v238_v30 = vld [vmem:[%s16746_s9 + $0x70] sm:$0x3] }
  0x9f   : > { %15027 = vmatpush3.msk.msra.mxu1 %vm780_vm0, %v16764_v16  ;;  %14643 = vmatprep.mubr.msk.f32.mxu1 %vm395_vm1, %v16797_v26  ;;  %v17262_v16 = vsel %vm3288_vm3, %v3298_v17, %v3299_v23  ;;  %22682 = vst [vmem:[#allocation21_spill] sm:$0xff] %v17271_v2  ;;  %v17281_v26 = vsel %vm3288_vm3, %v3301_v59, %v3303_v21  ;;  %v1669_v23 = vrot.slane %v16836_v36, 1  ;;  %v3310_v17 = vrot.slane %v16840_v38, 2 }
  0xa0   : > { %14837 = vmatprep.mubr.msk.f32.mxu0 %vm395_vm1, %v16802_v27  ;;  %22681 = vst [vmem:[#allocation20_spill] sm:$0xff] %v17262_v16  ;;  %22683 = vst [vmem:[#allocation22_spill] sm:$0xff] %v17281_v26  ;;  %v1666_v27 = vrot.slane %v233_v32, 1  ;;  %v17301_v36 = vsel %vm3288_vm3, %v3303_v21, %v3305_v12  ;;  %v1673_v59 = vrot.slane %v16850_v40, 1  ;;  %v17309_v38 = vsel %vm3288_vm3, %v3307_v51, %v3308_v35 }
  0xa1   : > { %14838 = vmatmul.mubr.msk.f32.gmra.mxu0 %vm395_vm1, %v3297_v24  ;;  %22684 = vst [vmem:[#allocation23_spill] sm:$0xff] %v17301_v36  ;;  %22686 = vst [vmem:[#allocation25_spill] sm:$0xff] %v17309_v38  ;;  %v17320_v21 = vsel %vm3288_vm3, %v3308_v35, %v3310_v17  ;;  %v17330_v24 = vsel %vm3288_vm3, %v3310_v17, %v3312_v22  ;;  %v1675_v32 = vrot.slane %v238_v30, 1  ;;  %v1677_v12 = vrot.slane %v16854_v42, 1 }
  0xa2   : > { %14644 = vmatmul.mubr.msk.f32.gmra.mxu1 %vm395_vm1, %v1658_v28  ;;  %14840 = vmatprep.mubr.msk.f32.mxu0 %vm395_vm1, %v17262_v16  ;;  %v17298_v34 = vsel %vm1649_vm2, %v1664_v20, %v1666_v27  ;;  %v17306_v28 = vsel %vm1649_vm2, %v1668_v43, %v1669_v23  ;;  %v17317_v20 = vsel %vm1649_vm2, %v1669_v23, %v1671_v4  ;;  %v3314_v27 = vrot.slane %v238_v30, 2 }
  0xa3   : > { %14646 = vmatprep.mubr.msk.f32.mxu1 %vm395_vm1, %v17259_v25  ;;  %22685 = vst [vmem:[#allocation24_spill] sm:$0xff] %v17306_v28  ;;  %22687 = vst [vmem:[#allocation26_spill] sm:$0xff] %v17317_v20  ;;  %v17327_v40 = vsel %vm1649_vm2, %v1671_v4, %v1673_v59  ;;  %v1678_v43 = vrot.slane %v16864_v44, 1  ;;  %v3316_v23 = vrot.slane %v16854_v42, 2  ;;  %v3317_v51 = vrot.slane %v16864_v44, 2 }
  0xa4   : > { %22688 = vst [vmem:[#allocation27_spill] sm:$0xff] %v17320_v21  ;;  %22689 = vst [vmem:[#allocation28_spill] sm:$0xff] %v17327_v40  ;;  %v1680_v35 = vrot.slane %v16868_v46, 1  ;;  %v3319_v4 = vrot.slane %v16868_v46, 2  ;;  %v17347_v42 = vsel %vm1649_vm2, %v1673_v59, %v1675_v32  ;;  %v17350_v44 = vsel %vm3288_vm3, %v3312_v22, %v3314_v27 }
  0xa5   : > { %14841 = vmatmul.mubr.msk.f32.gmra.mxu0 %vm395_vm1, %v17271_v2  ;;  %22690 = vst [vmem:[#allocation29_spill] sm:$0xff] %v17330_v24  ;;  %22691 = vst [vmem:[#allocation30_spill] sm:$0xff] %v17347_v42  ;;  %v1682_v17 = vrot.slane %v16878_v48, 1  ;;  %v3321_v30 = vrot.slane %v16878_v48, 2  ;;  %v17358_v46 = vsel %vm3288_vm3, %v3316_v23, %v3317_v51  ;;  %v1687_v23 = vrot.slane %v16892_v52, 1 }
  0xa6   : > { %14647 = vmatmul.mubr.msk.f32.gmra.mxu1 %vm395_vm1, %v17268_v15  ;;  %14843 = vmatprep.mubr.msk.f32.mxu0 %vm395_vm1, %v17281_v26  ;;  %22692 = vst [vmem:[#allocation31_spill] sm:$0xff] %v17350_v44  ;;  %22694 = vst [vmem:[#allocation33_spill] sm:$0xff] %v17358_v46  ;;  %v17366_v59 = vsel %vm1649_vm2, %v1678_v43, %v1680_v35  ;;  %v17369_v22 = vsel %vm3288_vm3, %v3317_v51, %v3319_v4  ;;  %v3325_v51 = vrot.slane %v16882_v50, 2 }
  0xa7   : > { %14649 = vmatprep.mubr.msk.f32.mxu1 %vm395_vm1, %v17278_v18  ;;  %22695 = vst [vmem:[#allocation34_spill] sm:$0xff] %v17366_v59  ;;  %22696 = vst [vmem:[#allocation35_spill] sm:$0xff] %v17369_v22  ;;  %v17376_v48 = vsel %vm1649_vm2, %v1680_v35, %v1682_v17  ;;  %v17379_v32 = vsel %vm3288_vm3, %v3319_v4, %v3321_v30  ;;  %v1689_v35 = vrot.slane %v16896_v54, 1  ;;  %v3328_v4 = vrot.slane %v16896_v54, 2 }
  0xa8   : > { %22697 = vst [vmem:[#allocation36_spill] sm:$0xff] %v17376_v48  ;;  %22698 = vst [vmem:[#allocation37_spill] sm:$0xff] %v17379_v32 }
  0xa9   : > { %14844 = vmatmul.mubr.msk.f32.gmra.mxu0 %vm395_vm1, %v17301_v36 }
  0xaa   : > { %14650 = vmatmul.mubr.msk.f32.gmra.mxu1 %vm395_vm1, %v17298_v34  ;;  %14846 = vmatprep.mubr.msk.f32.mxu0 %vm395_vm1, %v17309_v38  ;;  %v243_v38 = vld [vmem:[%s16746_s9 + $0x98] sm:$0x3] }
  0xab   : > { %14652 = vmatprep.mubr.msk.f32.mxu1 %vm395_vm1, %v17306_v28  ;;  %v1684_v27 = vrot.slane %v243_v38, 1 }
  0xad   : > { %14847 = vmatmul.mubr.msk.f32.gmra.mxu0 %vm395_vm1, %v17320_v21  ;;  %v17355_v21 = vsel %vm1649_vm2, %v1677_v12, %v1678_v43  ;;  %v3323_v12 = vrot.slane %v243_v38, 2  ;;  %v1686_v43 = vrot.slane %v16882_v50, 1  ;;  %v17396_v50 = vsel %vm1649_vm2, %v1682_v17, %v1684_v27 }
  0xae   : > { %14653 = vmatmul.mubr.msk.f32.gmra.mxu1 %vm395_vm1, %v17317_v20  ;;  %14849 = vmatprep.mubr.msk.f32.mxu0 %vm395_vm1, %v17330_v24  ;;  %22693 = vst [vmem:[#allocation32_spill] sm:$0xff] %v17355_v21  ;;  %22699 = vst [vmem:[#allocation38_spill] sm:$0xff] %v17396_v50  ;;  %v1691_v38 = vrot.slane %v16906_v56, 1  ;;  %v248_v24 = vld [vmem:[%s16746_s9 + $0xc0] sm:$0x3]  ;;  %v17415_v17 = vsel %vm1649_vm2, %v1687_v23, %v1689_v35 }
  0xaf   : > { %14655 = vmatprep.mubr.msk.f32.mxu1 %vm395_vm1, %v17327_v40  ;;  %22703 = vst [vmem:[#allocation42_spill] sm:$0xff] %v17415_v17  ;;  %v16289_v40 = vld [vmem:[%s16746_s9 + $0x400] sm:$0xff] }
  0xb1   : > { %14850 = vmatmul.mubr.msk.f32.gmra.mxu0 %vm395_vm1, %v17350_v44  ;;  %v3326_v44 = vrot.slane %v16892_v52, 2  ;;  %v17399_v52 = vsel %vm3288_vm3, %v3321_v30, %v3323_v12  ;;  %v1693_v12 = vrot.slane %v248_v24, 1 }
  0xb2   : > { %14656 = vmatmul.mubr.msk.f32.gmra.mxu1 %vm395_vm1, %v17347_v42  ;;  %14852 = vmatprep.mubr.msk.f32.mxu0 %vm395_vm1, %v17358_v46  ;;  %22700 = vst [vmem:[#allocation39_spill] sm:$0xff] %v17399_v52  ;;  %v17404_v46 = vsel %vm1649_vm2, %v1686_v43, %v1687_v23  ;;  %v3332_v43 = vrot.slane %v248_v24, 2  ;;  %v1695_v23 = vrot.slane %v16910_v58, 1  ;;  %v1700_v24 = vrot.slane %v16934_v0, 1 }
  0xb3   : > { %14658 = vmatprep.mubr.msk.f32.mxu1 %vm395_vm1, %v17355_v21  ;;  %22701 = vst [vmem:[#allocation40_spill] sm:$0xff] %v17404_v46  ;;  %v17407_v54 = vsel %vm3288_vm3, %v3325_v51, %v3326_v44  ;;  %v17418_v30 = vsel %vm3288_vm3, %v3326_v44, %v3328_v4  ;;  %v1696_v44 = vrot.slane %v16920_v60, 1  ;;  %v3334_v51 = vrot.slane %v16910_v58, 2 }
  0xb4   : > { %22702 = vst [vmem:[#allocation41_spill] sm:$0xff] %v17407_v54  ;;  %22704 = vst [vmem:[#allocation43_spill] sm:$0xff] %v17418_v30  ;;  %v17445_v58 = vsel %vm1649_vm2, %v1691_v38, %v1693_v12 }
  0xb5   : > { %14853 = vmatmul.mubr.msk.f32.gmra.mxu0 %vm395_vm1, %v17369_v22  ;;  %v3330_v22 = vrot.slane %v16906_v56, 2  ;;  %v17425_v56 = vsel %vm1649_vm2, %v1689_v35, %v1691_v38  ;;  %v1698_v35 = vrot.slane %v16924_v62, 1  ;;  %22707 = vst [vmem:[#allocation46_spill] sm:$0xff] %v17445_v58 }
  0xb6   : > { %14659 = vmatmul.mubr.msk.f32.gmra.mxu1 %vm395_vm1, %v17366_v59  ;;  %14855 = vmatprep.mubr.msk.f32.mxu0 %vm395_vm1, %v17379_v32  ;;  %22705 = vst [vmem:[#allocation44_spill] sm:$0xff] %v17425_v56  ;;  %v253_v32 = vld [vmem:[%s16746_s9 + $0xe8] sm:$0x3] }
  0xb7   : > { %14661 = vmatprep.mubr.msk.f32.mxu1 %vm395_vm1, %v17376_v48  ;;  %v17428_v27 = vsel %vm3288_vm3, %v3328_v4, %v3330_v22  ;;  %v3337_v4 = vrot.slane %v16924_v62, 2  ;;  %v16259_v48 = vld [vmem:[%s16746_s9 + $0x2d8] sm:$0xff] }
  0xb8   : > { %22706 = vst [vmem:[#allocation45_spill] sm:$0xff] %v17428_v27 }
  0xb9   : > { %14856 = vmatmul.mubr.msk.f32.gmra.mxu0 %vm395_vm1, %v17399_v52  ;;  %v3335_v52 = vrot.slane %v16920_v60, 2  ;;  %v17448_v60 = vsel %vm3288_vm3, %v3330_v22, %v3332_v43  ;;  %v17464_v22 = vsel %vm1649_vm2, %v1696_v44, %v1698_v35  ;;  %v1702_v43 = vrot.slane %v253_v32, 1 }
  0xba   : > { %14662 = vmatmul.mubr.msk.f32.gmra.mxu1 %vm395_vm1, %v17396_v50  ;;  %14858 = vmatprep.mubr.msk.f32.mxu0 %vm395_vm1, %v17407_v54  ;;  %22708 = vst [vmem:[#allocation47_spill] sm:$0xff] %v17448_v60  ;;  %v17453_v54 = vsel %vm1649_vm2, %v1695_v23, %v1696_v44  ;;  %22711 = vst [vmem:[#allocation50_spill] sm:$0xff] %v17464_v22  ;;  %v3341_v23 = vrot.slane %v253_v32, 2  ;;  %v1704_v44 = vrot.slane %v16943_v3, 1  ;;  %v1709_v32 = vrot.slane %v16969_v9, 1 }
  0xbb   : > { %14664 = vmatprep.mubr.msk.f32.mxu1 %vm395_vm1, %v17404_v46  ;;  %22709 = vst [vmem:[#allocation48_spill] sm:$0xff] %v17453_v54  ;;  %v17456_v62 = vsel %vm3288_vm3, %v3334_v51, %v3335_v52  ;;  %v17467_v38 = vsel %vm3288_vm3, %v3335_v52, %v3337_v4  ;;  %v1705_v52 = vrot.slane %v16955_v5, 1  ;;  %v3343_v51 = vrot.slane %v16943_v3, 2 }
  0xbc   : > { %22710 = vst [vmem:[#allocation49_spill] sm:$0xff] %v17456_v62  ;;  %22712 = vst [vmem:[#allocation51_spill] sm:$0xff] %v17467_v38  ;;  %v17494_v3 = vsel %vm1649_vm2, %v1700_v24, %v1702_v43 }
  0xbd   : > { %14859 = vmatmul.mubr.msk.f32.gmra.mxu0 %vm395_vm1, %v17418_v30  ;;  %v3339_v30 = vrot.slane %v16934_v0, 2  ;;  %v17474_v0 = vsel %vm1649_vm2, %v1698_v35, %v1700_v24  ;;  %v1707_v35 = vrot.slane %v16959_v7, 1  ;;  %22715 = vst [vmem:[#allocation54_spill] sm:$0xff] %v17494_v3 }
  0xbe   : > { %14665 = vmatmul.mubr.msk.f32.gmra.mxu1 %vm395_vm1, %v17415_v17  ;;  %14861 = vmatprep.mubr.msk.f32.mxu0 %vm395_vm1, %v17428_v27  ;;  %22713 = vst [vmem:[#allocation52_spill] sm:$0xff] %v17474_v0  ;;  %v258_v27 = vld [vmem:[%s16746_s9 + $0x110] sm:$0x3] }
  0xbf   : > { %14667 = vmatprep.mubr.msk.f32.mxu1 %vm395_vm1, %v17425_v56  ;;  %v17477_v12 = vsel %vm3288_vm3, %v3337_v4, %v3339_v30  ;;  %v3346_v4 = vrot.slane %v16959_v7, 2 }
  0xc0   : > { %22714 = vst [vmem:[#allocation53_spill] sm:$0xff] %v17477_v12 }
  0xc1   : > { %14862 = vmatmul.mubr.msk.f32.gmra.mxu0 %vm395_vm1, %v17448_v60  ;;  %v3344_v60 = vrot.slane %v16955_v5, 2  ;;  %v17497_v5 = vsel %vm3288_vm3, %v3339_v30, %v3341_v23  ;;  %v17513_v30 = vsel %vm1649_vm2, %v1705_v52, %v1707_v35  ;;  %v1711_v23 = vrot.slane %v258_v27, 1 }
  0xc2   : > { %14668 = vmatmul.mubr.msk.f32.gmra.mxu1 %vm395_vm1, %v17445_v58  ;;  %14864 = vmatprep.mubr.msk.f32.mxu0 %vm395_vm1, %v17456_v62  ;;  %22716 = vst [vmem:[#allocation55_spill] sm:$0xff] %v17497_v5  ;;  %v17502_v62 = vsel %vm1649_vm2, %v1704_v44, %v1705_v52  ;;  %22719 = vst [vmem:[#allocation58_spill] sm:$0xff] %v17513_v30  ;;  %v3350_v44 = vrot.slane %v258_v27, 2  ;;  %v1713_v52 = vrot.slane %v16973_v11, 1  ;;  %v1718_v27 = vrot.slane %v16997_v29, 1 }
  0xc3   : > { %14670 = vmatprep.mubr.msk.f32.mxu1 %vm395_vm1, %v17453_v54  ;;  %22717 = vst [vmem:[#allocation56_spill] sm:$0xff] %v17502_v62  ;;  %v17505_v7 = vsel %vm3288_vm3, %v3343_v51, %v3344_v60  ;;  %v17516_v24 = vsel %vm3288_vm3, %v3344_v60, %v3346_v4  ;;  %v1714_v60 = vrot.slane %v16983_v13, 1  ;;  %v3352_v51 = vrot.slane %v16973_v11, 2 }
  0xc4   : > { %22718 = vst [vmem:[#allocation57_spill] sm:$0xff] %v17505_v7  ;;  %22720 = vst [vmem:[#allocation59_spill] sm:$0xff] %v17516_v24  ;;  %v17543_v11 = vsel %vm1649_vm2, %v1709_v32, %v1711_v23 }
  0xc5   : > { %14865 = vmatmul.mubr.msk.f32.gmra.mxu0 %vm395_vm1, %v17467_v38  ;;  %v3348_v38 = vrot.slane %v16969_v9, 2  ;;  %v17523_v9 = vsel %vm1649_vm2, %v1707_v35, %v1709_v32  ;;  %v1716_v35 = vrot.slane %v16987_v19, 1  ;;  %22723 = vst [vmem:[#allocation62_spill] sm:$0xff] %v17543_v11 }
  0xc6   : > { %14671 = vmatmul.mubr.msk.f32.gmra.mxu1 %vm395_vm1, %v17464_v22  ;;  %14867 = vmatprep.mubr.msk.f32.mxu0 %vm395_vm1, %v17477_v12  ;;  %22721 = vst [vmem:[#allocation60_spill] sm:$0xff] %v17523_v9  ;;  %v263_v12 = vld [vmem:[%s16746_s9 + $0x138] sm:$0x3] }
  0xc7   : > { %14673 = vmatprep.mubr.msk.f32.mxu1 %vm395_vm1, %v17474_v0  ;;  %v17526_v43 = vsel %vm3288_vm3, %v3346_v4, %v3348_v38  ;;  %v3355_v4 = vrot.slane %v16987_v19, 2 }
  0xc8   : > { %22722 = vst [vmem:[#allocation61_spill] sm:$0xff] %v17526_v43 }
  0xc9   : > { %14868 = vmatmul.mubr.msk.f32.gmra.mxu0 %vm395_vm1, %v17497_v5  ;;  %v3353_v5 = vrot.slane %v16983_v13, 2  ;;  %v17546_v13 = vsel %vm3288_vm3, %v3348_v38, %v3350_v44  ;;  %v17562_v38 = vsel %vm1649_vm2, %v1714_v60, %v1716_v35  ;;  %v1720_v44 = vrot.slane %v263_v12, 1 }
  0xca   : > { %14674 = vmatmul.mubr.msk.f32.gmra.mxu1 %vm395_vm1, %v17494_v3  ;;  %14870 = vmatprep.mubr.msk.f32.mxu0 %vm395_vm1, %v17505_v7  ;;  %22724 = vst [vmem:[#allocation63_spill] sm:$0xff] %v17546_v13  ;;  %v17551_v7 = vsel %vm1649_vm2, %v1713_v52, %v1714_v60  ;;  %22727 = vst [vmem:[#allocation66_spill] sm:$0xff] %v17562_v38  ;;  %v3359_v52 = vrot.slane %v263_v12, 2  ;;  %v1722_v60 = vrot.slane %v17001_v33, 1  ;;  %v1727_v12 = vrot.slane %v17025_v45, 1 }
  0xcb   : > { %14676 = vmatprep.mubr.msk.f32.mxu1 %vm395_vm1, %v17502_v62  ;;  %22725 = vst [vmem:[#allocation64_spill] sm:$0xff] %v17551_v7  ;;  %v17554_v19 = vsel %vm3288_vm3, %v3352_v51, %v3353_v5  ;;  %v17565_v32 = vsel %vm3288_vm3, %v3353_v5, %v3355_v4  ;;  %v1723_v5 = vrot.slane %v17011_v37, 1  ;;  %v3361_v51 = vrot.slane %v17001_v33, 2 }
  0xcc   : > { %22726 = vst [vmem:[#allocation65_spill] sm:$0xff] %v17554_v19  ;;  %22728 = vst [vmem:[#allocation67_spill] sm:$0xff] %v17565_v32  ;;  %v17592_v33 = vsel %vm1649_vm2, %v1718_v27, %v1720_v44 }
  0xcd   : > { %14871 = vmatmul.mubr.msk.f32.gmra.mxu0 %vm395_vm1, %v17516_v24  ;;  %v3357_v24 = vrot.slane %v16997_v29, 2  ;;  %v17572_v29 = vsel %vm1649_vm2, %v1716_v35, %v1718_v27  ;;  %v1725_v35 = vrot.slane %v17015_v41, 1  ;;  %22731 = vst [vmem:[#allocation70_spill] sm:$0xff] %v17592_v33 }
  0xce   : > { %14677 = vmatmul.mubr.msk.f32.gmra.mxu1 %vm395_vm1, %v17513_v30  ;;  %14873 = vmatprep.mubr.msk.f32.mxu0 %vm395_vm1, %v17526_v43  ;;  %22729 = vst [vmem:[#allocation68_spill] sm:$0xff] %v17572_v29  ;;  %v268_v43 = vld [vmem:[%s16746_s9 + $0x160] sm:$0x3] }
  0xcf   : > { %14679 = vmatprep.mubr.msk.f32.mxu1 %vm395_vm1, %v17523_v9  ;;  %v17575_v23 = vsel %vm3288_vm3, %v3355_v4, %v3357_v24  ;;  %v3364_v4 = vrot.slane %v17015_v41, 2 }
  0xd0   : > { %22730 = vst [vmem:[#allocation69_spill] sm:$0xff] %v17575_v23 }
  0xd1   : > { %14874 = vmatmul.mubr.msk.f32.gmra.mxu0 %vm395_vm1, %v17546_v13  ;;  %v3362_v13 = vrot.slane %v17011_v37, 2  ;;  %v17595_v37 = vsel %vm3288_vm3, %v3357_v24, %v3359_v52  ;;  %v17611_v24 = vsel %vm1649_vm2, %v1723_v5, %v1725_v35  ;;  %v1729_v52 = vrot.slane %v268_v43, 1 }
  0xd2   : > { %14680 = vmatmul.mubr.msk.f32.gmra.mxu1 %vm395_vm1, %v17543_v11  ;;  %14876 = vmatprep.mubr.msk.f32.mxu0 %vm395_vm1, %v17554_v19  ;;  %22732 = vst [vmem:[#allocation71_spill] sm:$0xff] %v17595_v37  ;;  %v17600_v19 = vsel %vm1649_vm2, %v1722_v60, %v1723_v5  ;;  %22735 = vst [vmem:[#allocation74_spill] sm:$0xff] %v17611_v24  ;;  %v3368_v60 = vrot.slane %v268_v43, 2  ;;  %v1731_v5 = vrot.slane %v17029_v49, 1  ;;  %v1734_v43 = vrot.slane %v17043_v57, 1 }
  0xd3   : > { %14682 = vmatprep.mubr.msk.f32.mxu1 %vm395_vm1, %v17551_v7  ;;  %22733 = vst [vmem:[#allocation72_spill] sm:$0xff] %v17600_v19  ;;  %v17603_v41 = vsel %vm3288_vm3, %v3361_v51, %v3362_v13  ;;  %v17614_v27 = vsel %vm3288_vm3, %v3362_v13, %v3364_v4  ;;  %v1732_v51 = vrot.slane %v17039_v53, 1  ;;  %v3370_v13 = vrot.slane %v17029_v49, 2 }
  0xd4   : > { %22734 = vst [vmem:[#allocation73_spill] sm:$0xff] %v17603_v41  ;;  %22736 = vst [vmem:[#allocation75_spill] sm:$0xff] %v17614_v27  ;;  %v17645_v49 = vsel %vm1649_vm2, %v1727_v12, %v1729_v52 }
  0xd5   : > { %14877 = vmatmul.mubr.msk.f32.gmra.mxu0 %vm395_vm1, %v17565_v32  ;;  %v3366_v32 = vrot.slane %v17025_v45, 2  ;;  %v17621_v45 = vsel %vm1649_vm2, %v1725_v35, %v1727_v12  ;;  %v3373_v35 = vrot.slane %v17043_v57, 2  ;;  %22740 = vst [vmem:[#allocation79_spill] sm:$0xff] %v17645_v49  ;;  %v17657_v57 = vsel %vm1649_vm2, %v1731_v5, %v1732_v51 }
  0xd6   : > { %14683 = vmatmul.mubr.msk.f32.gmra.mxu1 %vm395_vm1, %v17562_v38  ;;  %14879 = vmatprep.mubr.msk.f32.mxu0 %vm395_vm1, %v17575_v23  ;;  %22737 = vst [vmem:[#allocation76_spill] sm:$0xff] %v17621_v45  ;;  %22743 = vst [vmem:[#allocation82_spill] sm:$0xff] %v17657_v57 }
  0xd7   : > { %14685 = vmatprep.mubr.msk.f32.mxu1 %vm395_vm1, %v17572_v29  ;;  %v17624_v44 = vsel %vm3288_vm3, %v3364_v4, %v3366_v32  ;;  %v1736_v4 = vrot.slane %v17053_v61, 1 }
  0xd8   : > { %22738 = vst [vmem:[#allocation77_spill] sm:$0xff] %v17624_v44 }
  0xd9   : > { %14880 = vmatmul.mubr.msk.f32.gmra.mxu0 %vm395_vm1, %v17595_v37  ;;  %v3371_v37 = vrot.slane %v17039_v53, 2  ;;  %v17648_v53 = vsel %vm3288_vm3, %v3366_v32, %v3368_v60  ;;  %v17682_v60 = vsel %vm1649_vm2, %v1734_v43, %v1736_v4 }
  0xda   : > { %14686 = vmatmul.mubr.msk.f32.gmra.mxu1 %vm395_vm1, %v17592_v33  ;;  %14882 = vmatprep.mubr.msk.f32.mxu0 %vm395_vm1, %v17603_v41  ;;  %22741 = vst [vmem:[#allocation80_spill] sm:$0xff] %v17648_v53  ;;  %22748 = vst [vmem:[#allocation87_spill] sm:$0xff] %v17682_v60 }
  0xdb   : > { %14688 = vmatprep.mubr.msk.f32.mxu1 %vm395_vm1, %v17600_v19  ;;  %v17660_v2 = vsel %vm3288_vm3, %v3370_v13, %v3371_v37  ;;  %v17675_v32 = vsel %vm3288_vm3, %v3371_v37, %v3373_v35  ;;  %v1740_v37 = vrot.slane %v17057_v1, 1 }
  0xdc   : > { %22744 = vst [vmem:[#allocation83_spill] sm:$0xff] %v17660_v2  ;;  %22747 = vst [vmem:[#allocation86_spill] sm:$0xff] %v17675_v32 }
  0xdd   : > { %v17630_v23 = vpop.f32.mrf.mxu0  ;;  %14883 = vmatmul.mubr.msk.f32.gmra.mxu0 %vm395_vm1, %v17614_v27  ;;  %v3375_v27 = vrot.slane %v17053_v61, 2  ;;  %v17672_v61 = vsel %vm1649_vm2, %v1732_v51, %v1734_v43 }
  0xde   : > { %v17632_v41 = vpop.f32.mrf.mxu1  ;;  %14689 = vmatmul.mubr.msk.f32.gmra.mxu1 %vm395_vm1, %v17611_v24  ;;  %14885 = vmatprep.mubr.msk.f32.mxu0 %vm395_vm1, %v17624_v44  ;;  %v273_v44 = vld [vmem:[%s16746_s9 + $0x188] sm:$0x3]  ;;  %22746 = vst [vmem:[#allocation85_spill] sm:$0xff] %v17672_v61 }
  0xdf   : > { %22739 = vst [vmem:[#allocation78_spill] sm:$0xff] %v17632_v41  ;;  %14691 = vmatprep.mubr.msk.f32.mxu1 %vm395_vm1, %v17621_v45  ;;  %v17652_v36 = vpop.f32.mrf.mxu0  ;;  %v17685_v5 = vsel %vm3288_vm3, %v3373_v35, %v3375_v27  ;;  %v1738_v13 = vrot.slane %v273_v44, 1  ;;  %v3382_v35 = vrot.slane %v17071_v10, 2 }
  0xe0   : > { %v17654_v26 = vpop.f32.mrf.mxu1  ;;  %22749 = vst [vmem:[#allocation88_spill] sm:$0xff] %v17685_v5 }
  0xe1   : > { %22742 = vst [vmem:[#allocation81_spill] sm:$0xff] %v17654_v26  ;;  %v17663_v12 = vpop.f32.mrf.mxu0  ;;  %14886 = vmatmul.mubr.msk.f32.gmra.mxu0 %vm395_vm1, %v17648_v53  ;;  %v3377_v53 = vrot.slane %v273_v44, 2  ;;  %v3379_v26 = vrot.slane %v17057_v1, 2  ;;  %v1743_v44 = vrot.slane %v17071_v10, 1  ;;  %v17710_v1 = vsel %vm1649_vm2, %v1736_v4, %v1738_v13 }
  0xe2   : > { %v17665_v52 = vpop.f32.mrf.mxu1  ;;  %14692 = vmatmul.mubr.msk.f32.gmra.mxu1 %vm395_vm1, %v17645_v49  ;;  %14888 = vmatprep.mubr.msk.f32.mxu0 %vm395_vm1, %v17660_v2  ;;  %v3380_v2 = vrot.slane %v17067_v6, 2  ;;  %22752 = vst [vmem:[#allocation91_spill] sm:$0xff] %v17710_v1 }
  0xe3   : > { %22745 = vst [vmem:[#allocation84_spill] sm:$0xff] %v17665_v52  ;;  %14694 = vmatprep.mubr.msk.f32.mxu1 %vm395_vm1, %v17657_v57  ;;  %v17687_v16 = vpop.f32.mrf.mxu0  ;;  %v1741_v52 = vrot.slane %v17067_v6, 1  ;;  %v17713_v6 = vsel %vm3288_vm3, %v3375_v27, %v3377_v53 }
  0xe4   : > { %v17689_v51 = vpop.f32.mrf.mxu1  ;;  %22753 = vst [vmem:[#allocation92_spill] sm:$0xff] %v17713_v6  ;;  %v17740_v27 = vsel %vm3288_vm3, %v3380_v2, %v3382_v35 }
  0xe5   : > { %22750 = vst [vmem:[#allocation89_spill] sm:$0xff] %v17689_v51  ;;  %v17695_v41 = vpop.f32.mrf.mxu0  ;;  %14889 = vmatmul.mubr.msk.f32.gmra.mxu0 %vm395_vm1, %v17675_v32  ;;  %v3384_v32 = vrot.slane %v17081_v14, 2  ;;  %v17722_v10 = vsel %vm1649_vm2, %v1740_v37, %v1741_v52  ;;  %22759 = vst [vmem:[#allocation98_spill] sm:$0xff] %v17740_v27 }
  0xe6   : > { %v17697_v43 = vpop.f32.mrf.mxu1  ;;  %14695 = vmatmul.mubr.msk.f32.gmra.mxu1 %vm395_vm1, %v17672_v61  ;;  %14891 = vmatprep.mubr.msk.f32.mxu0 %vm395_vm1, %v17685_v5  ;;  %22755 = vst [vmem:[#allocation94_spill] sm:$0xff] %v17722_v10  ;;  %v278_v5 = vld [vmem:[%s16746_s9 + $0x1b0] sm:$0x3] }
  0xe7   : > { %22751 = vst [vmem:[#allocation90_spill] sm:$0xff] %v17697_v43  ;;  %14697 = vmatprep.mubr.msk.f32.mxu1 %vm395_vm1, %v17682_v60  ;;  %v1745_v43 = vrot.slane %v17081_v14, 1  ;;  %v17717_v51 = vpop.f32.mrf.mxu0  ;;  %v17725_v60 = vsel %vm3288_vm3, %v3379_v26, %v3380_v2  ;;  %v17737_v14 = vsel %vm1649_vm2, %v1741_v52, %v1743_v44  ;;  %v17750_v53 = vsel %vm3288_vm3, %v3382_v35, %v3384_v32 }
  0xe8   : > { %v17719_v61 = vpop.f32.mrf.mxu1  ;;  %22756 = vst [vmem:[#allocation95_spill] sm:$0xff] %v17725_v60  ;;  %22758 = vst [vmem:[#allocation97_spill] sm:$0xff] %v17737_v14  ;;  %v1747_v37 = vrot.slane %v278_v5, 1  ;;  %v1749_v2 = vrot.slane %v17085_v31, 1  ;;  %v3391_v35 = vrot.slane %v17099_v47, 2 }
  0xe9   : > { %22754 = vst [vmem:[#allocation93_spill] sm:$0xff] %v17719_v61  ;;  %v17728_v4 = vpop.f32.mrf.mxu0  ;;  %14892 = vmatmul.mubr.msk.f32.gmra.mxu0 %vm395_vm1, %v17713_v6  ;;  %v17747_v26 = vsel %vm1649_vm2, %v1743_v44, %v1745_v43  ;;  %22761 = vst [vmem:[#allocation100_spill] sm:$0xff] %v17750_v53  ;;  %v3386_v6 = vrot.slane %v278_v5, 2  ;;  %v1750_v61 = vrot.slane %v17095_v39, 1  ;;  %v1752_v5 = vrot.slane %v17099_v47, 1 }
  0xea   : > { %v17730_v13 = vpop.f32.mrf.mxu1  ;;  %14698 = vmatmul.mubr.msk.f32.gmra.mxu1 %vm395_vm1, %v17710_v1  ;;  %14894 = vmatprep.mubr.msk.f32.mxu0 %vm395_vm1, %v17725_v60  ;;  %22760 = vst [vmem:[#allocation99_spill] sm:$0xff] %v17747_v26  ;;  %v3389_v60 = vrot.slane %v17095_v39, 2 }
  0xeb   : > { %22757 = vst [vmem:[#allocation96_spill] sm:$0xff] %v17730_v13  ;;  %14700 = vmatprep.mubr.msk.f32.mxu1 %vm395_vm1, %v17722_v10  ;;  %v17752_v13 = vpop.f32.mrf.mxu0  ;;  %v3388_v10 = vrot.slane %v17085_v31, 2  ;;  %v17775_v31 = vsel %vm1649_vm2, %v1745_v43, %v1747_v37  ;;  %v17778_v39 = vsel %vm3288_vm3, %v3384_v32, %v3386_v6  ;;  %v17787_v47 = vsel %vm1649_vm2, %v1749_v2, %v1750_v61 }
  0xec   : > { %v17754_v52 = vpop.f32.mrf.mxu1  ;;  %22764 = vst [vmem:[#allocation103_spill] sm:$0xff] %v17775_v31  ;;  %22765 = vst [vmem:[#allocation104_spill] sm:$0xff] %v17778_v39  ;;  %v17805_v32 = vsel %vm3288_vm3, %v3389_v60, %v3391_v35 }
  0xed   : > { %22762 = vst [vmem:[#allocation101_spill] sm:$0xff] %v17754_v52  ;;  %v17760_v1 = vpop.f32.mrf.mxu0  ;;  %14895 = vmatmul.mubr.msk.f32.gmra.mxu0 %vm395_vm1, %v17740_v27  ;;  %v3393_v27 = vrot.slane %v17109_v55, 2  ;;  %22767 = vst [vmem:[#allocation106_spill] sm:$0xff] %v17787_v47 }
  0xee   : > { %v17762_v44 = vpop.f32.mrf.mxu1  ;;  %14701 = vmatmul.mubr.msk.f32.gmra.mxu1 %vm395_vm1, %v17737_v14  ;;  %14897 = vmatprep.mubr.msk.f32.mxu0 %vm395_vm1, %v17750_v53  ;;  %v283_v53 = vld [vmem:[%s16746_s9 + $0x1d8] sm:$0x3]  ;;  %22771 = vst [vmem:[#allocation110_spill] sm:$0xff] %v17805_v32 }
  0xef   : > { %22763 = vst [vmem:[#allocation102_spill] sm:$0xff] %v17762_v44  ;;  %14703 = vmatprep.mubr.msk.f32.mxu1 %vm395_vm1, %v17747_v26  ;;  %v1754_v44 = vrot.slane %v17109_v55, 1  ;;  %v17782_v52 = vpop.f32.mrf.mxu0  ;;  %v17790_v26 = vsel %vm3288_vm3, %v3388_v10, %v3389_v60  ;;  %v17802_v55 = vsel %vm1649_vm2, %v1750_v61, %v1752_v5  ;;  %v17815_v10 = vsel %vm3288_vm3, %v3391_v35, %v3393_v27 }
  0xf0   : > { %v17784_v14 = vpop.f32.mrf.mxu1  ;;  %22768 = vst [vmem:[#allocation107_spill] sm:$0xff] %v17790_v26  ;;  %22770 = vst [vmem:[#allocation109_spill] sm:$0xff] %v17802_v55  ;;  %v1756_v2 = vrot.slane %v283_v53, 1  ;;  %v1758_v60 = vrot.slane %v17113_v63, 1 }
  0xf1   : > { %22766 = vst [vmem:[#allocation105_spill] sm:$0xff] %v17784_v14  ;;  %v17793_v43 = vpop.f32.mrf.mxu0  ;;  %14898 = vmatmul.mubr.msk.f32.gmra.mxu0 %vm395_vm1, %v17778_v39  ;;  %v17812_v6 = vsel %vm1649_vm2, %v1752_v5, %v1754_v44  ;;  %22773 = vst [vmem:[#allocation112_spill] sm:$0xff] %v17815_v10  ;;  %v3395_v39 = vrot.slane %v283_v53, 2  ;;  %v1759_v14 = vrot.slane %v17123_v8, 1  ;;  %v22776_v53 = vld [vmem:[#allocation6_spill] sm:$0xff] }
  0xf2   : > { %v17795_v37 = vpop.f32.mrf.mxu1  ;;  %14704 = vmatmul.mubr.msk.f32.gmra.mxu1 %vm395_vm1, %v17775_v31  ;;  %14900 = vmatprep.mubr.msk.f32.mxu0 %vm395_vm1, %v17790_v26  ;;  %22772 = vst [vmem:[#allocation111_spill] sm:$0xff] %v17812_v6  ;;  %v3398_v26 = vrot.slane %v17123_v8, 2  ;;  %v1761_v35 = vrot.slane %v22776_v53, 1 }
  0xf3   : > { %22769 = vst [vmem:[#allocation108_spill] sm:$0xff] %v17795_v37  ;;  %14706 = vmatprep.mubr.msk.f32.mxu1 %vm395_vm1, %v17787_v47  ;;  %v17817_v37 = vpop.f32.mrf.mxu0  ;;  %v3397_v47 = vrot.slane %v17113_v63, 2  ;;  %v17840_v63 = vsel %vm1649_vm2, %v1754_v44, %v1756_v2  ;;  %v17843_v8 = vsel %vm3288_vm3, %v3393_v27, %v3395_v39 }
  0xf4   : > { %v17819_v61 = vpop.f32.mrf.mxu1  ;;  %22777 = vst [vmem:[#allocation6_spill] sm:$0xff] %v17840_v63  ;;  %22778 = vst [vmem:[#allocation115_spill] sm:$0xff] %v17843_v8  ;;  %v17867_v27 = vsel %vm1649_vm2, %v1759_v14, %v1761_v35 }
  0xf5   : > { %22774 = vst [vmem:[#allocation113_spill] sm:$0xff] %v17819_v61  ;;  %v17825_v31 = vpop.f32.mrf.mxu0  ;;  %14901 = vmatmul.mubr.msk.f32.gmra.mxu0 %vm395_vm1, %v17805_v32  ;;  %v3400_v61 = vrot.slane %v22776_v53, 2  ;;  %v17852_v53 = vsel %vm1649_vm2, %v1758_v60, %v1759_v14  ;;  %22784 = vst [vmem:[#allocation119_spill] sm:$0xff] %v17867_v27 }
  0xf6   : > { %v17827_v5 = vpop.f32.mrf.mxu1  ;;  %14707 = vmatmul.mubr.msk.f32.gmra.mxu1 %vm395_vm1, %v17802_v55  ;;  %14903 = vmatprep.mubr.msk.f32.mxu0 %vm395_vm1, %v17815_v10  ;;  %22781 = vst [vmem:[#allocation116_spill] sm:$0xff] %v17852_v53  ;;  %v288_v10 = vld [vmem:[%s16746_s9 + $0x200] sm:$0x3] }
  0xf7   : > { %22775 = vst [vmem:[#allocation114_spill] sm:$0xff] %v17827_v5  ;;  %14709 = vmatprep.mubr.msk.f32.mxu1 %vm395_vm1, %v17812_v6  ;;  %v22779_v5 = vld [vmem:[#allocation7_spill] sm:$0xff]  ;;  %v17847_v57 = vpop.f32.mrf.mxu0  ;;  %v17855_v6 = vsel %vm3288_vm3, %v3397_v47, %v3398_v26  ;;  %v17870_v39 = vsel %vm3288_vm3, %v3398_v26, %v3400_v61  ;;  %v22789_v26 = vld [vmem:[#allocation8_spill] sm:$0xff] }
  0xf8   : > { %v1763_v55 = vrot.slane %v22779_v5, 1  ;;  %v3402_v32 = vrot.slane %v22779_v5, 2  ;;  %v17849_v49 = vpop.f32.mrf.mxu1  ;;  %22782 = vst [vmem:[#allocation117_spill] sm:$0xff] %v17855_v6  ;;  %22785 = vst [vmem:[#allocation120_spill] sm:$0xff] %v17870_v39  ;;  %v1765_v5 = vrot.slane %v288_v10, 1 }
  0xf9   : > { %22780 = vst [vmem:[#allocation7_spill] sm:$0xff] %v17849_v49  ;;  %v17858_v44 = vpop.f32.mrf.mxu0  ;;  %14904 = vmatmul.mubr.msk.f32.gmra.mxu0 %vm395_vm1, %v17843_v8  ;;  %v3404_v8 = vrot.slane %v288_v10, 2  ;;  %v1767_v49 = vrot.slane %v22789_v26, 1  ;;  %v22792_v10 = vld [vmem:[#allocation10_spill] sm:$0xff] }
  0xfa   : > { %v17860_v2 = vpop.f32.mrf.mxu1  ;;  %14710 = vmatmul.mubr.msk.f32.gmra.mxu1 %vm395_vm1, %v17840_v63  ;;  %14906 = vmatprep.mubr.msk.f32.mxu0 %vm395_vm1, %v17855_v6  ;;  %v17877_v47 = vsel %vm1649_vm2, %v1761_v35, %v1763_v55  ;;  %v17880_v60 = vsel %vm3288_vm3, %v3400_v61, %v3402_v32  ;;  %v22790_v63 = vld [vmem:[#allocation9_spill] sm:$0xff]  ;;  %v1770_v61 = vrot.slane %v22792_v10, 1 }
  0xfb   : > { %22783 = vst [vmem:[#allocation118_spill] sm:$0xff] %v17860_v2  ;;  %14712 = vmatprep.mubr.msk.f32.mxu1 %vm395_vm1, %v17852_v53  ;;  %22786 = vst [vmem:[#allocation121_spill] sm:$0xff] %v17877_v47  ;;  %v17882_v2 = vpop.f32.mrf.mxu0  ;;  %v1768_v45 = vrot.slane %v22790_v63, 1  ;;  %v3406_v53 = vrot.slane %v22789_v26, 2  ;;  %v3407_v6 = vrot.slane %v22790_v63, 2  ;;  %v17905_v63 = vsel %vm1649_vm2, %v1763_v55, %v1765_v5 }
  0xfc   : > { %22787 = vst [vmem:[#allocation122_spill] sm:$0xff] %v17880_v60  ;;  %v17884_v14 = vpop.f32.mrf.mxu1  ;;  %22793 = vst [vmem:[#allocation9_spill] sm:$0xff] %v17905_v63  ;;  %v17908_v26 = vsel %vm3288_vm3, %v3402_v32, %v3404_v8 }
  0xfd   : > { %22788 = vst [vmem:[#allocation123_spill] sm:$0xff] %v17884_v14  ;;  %v17890_v24 = vpop.f32.mrf.mxu0  ;;  %14907 = vmatmul.mubr.msk.f32.gmra.mxu0 %vm395_vm1, %v17870_v39  ;;  %v3409_v14 = vrot.slane %v22792_v10, 2  ;;  %22794 = vst [vmem:[#allocation10_spill] sm:$0xff] %v17908_v26  ;;  %v17917_v10 = vsel %vm1649_vm2, %v1767_v49, %v1768_v45  ;;  %v17932_v32 = vsel %vm1649_vm2, %v1768_v45, %v1770_v61 }
  0xfe   : > { %v17892_v35 = vpop.f32.mrf.mxu1  ;;  %14713 = vmatmul.mubr.msk.f32.gmra.mxu1 %vm395_vm1, %v17867_v27  ;;  %14909 = vmatprep.mubr.msk.f32.mxu0 %vm395_vm1, %v17880_v60  ;;  %22797 = vst [vmem:[#allocation124_spill] sm:$0xff] %v17917_v10  ;;  %v293_v60 = vld [vmem:[%s16746_s9 + $0x228] sm:$0x3]  ;;  %22800 = vst [vmem:[#allocation127_spill] sm:$0xff] %v17932_v32 }
  0xff   : > { %22791 = vst [vmem:[#allocation8_spill] sm:$0xff] %v17892_v35  ;;  %14715 = vmatprep.mubr.msk.f32.mxu1 %vm395_vm1, %v17877_v47  ;;  %v22795_v35 = vld [vmem:[#allocation11_spill] sm:$0xff]  ;;  %v17912_v19 = vpop.f32.mrf.mxu0  ;;  %v17920_v47 = vsel %vm3288_vm3, %v3406_v53, %v3407_v6  ;;  %v17935_v49 = vsel %vm3288_vm3, %v3407_v6, %v3409_v14  ;;  %v22805_v6 = vld [vmem:[#allocation12_spill] sm:$0xff] }
 0x100   : > { %v1772_v27 = vrot.slane %v22795_v35, 1  ;;  %v3411_v39 = vrot.slane %v22795_v35, 2  ;;  %v17914_v33 = vpop.f32.mrf.mxu1  ;;  %22798 = vst [vmem:[#allocation125_spill] sm:$0xff] %v17920_v47  ;;  %22801 = vst [vmem:[#allocation128_spill] sm:$0xff] %v17935_v49  ;;  %v1774_v35 = vrot.slane %v293_v60, 1 }
 0x101   : > { %22796 = vst [vmem:[#allocation11_spill] sm:$0xff] %v17914_v33  ;;  %v17923_v55 = vpop.f32.mrf.mxu0  ;;  %14910 = vmatmul.mubr.msk.f32.gmra.mxu0 %vm395_vm1, %v17908_v26  ;;  %v3413_v26 = vrot.slane %v293_v60, 2  ;;  %v1776_v33 = vrot.slane %v22805_v6, 1  ;;  %v22808_v60 = vld [vmem:[#allocation14_spill] sm:$0xff] }
 0x102   : > { %v17925_v5 = vpop.f32.mrf.mxu1  ;;  %14716 = vmatmul.mubr.msk.f32.gmra.mxu1 %vm395_vm1, %v17905_v63  ;;  %14912 = vmatprep.mubr.msk.f32.mxu0 %vm395_vm1, %v17920_v47  ;;  %v17942_v8 = vsel %vm1649_vm2, %v1770_v61, %v1772_v27  ;;  %v17945_v53 = vsel %vm3288_vm3, %v3409_v14, %v3411_v39  ;;  %v22806_v63 = vld [vmem:[#allocation13_spill] sm:$0xff]  ;;  %v1779_v14 = vrot.slane %v22808_v60, 1 }
 0x103   : > { %22799 = vst [vmem:[#allocation126_spill] sm:$0xff] %v17925_v5  ;;  %14718 = vmatprep.mubr.msk.f32.mxu1 %vm395_vm1, %v17917_v10  ;;  %22802 = vst [vmem:[#allocation129_spill] sm:$0xff] %v17942_v8  ;;  %v17947_v5 = vpop.f32.mrf.mxu0  ;;  %v1777_v29 = vrot.slane %v22806_v63, 1  ;;  %v3415_v10 = vrot.slane %v22805_v6, 2  ;;  %v3416_v47 = vrot.slane %v22806_v63, 2  ;;  %v17970_v63 = vsel %vm1649_vm2, %v1772_v27, %v1774_v35 }
 0x104   : > { %22803 = vst [vmem:[#allocation130_spill] sm:$0xff] %v17945_v53  ;;  %v17949_v45 = vpop.f32.mrf.mxu1  ;;  %22809 = vst [vmem:[#allocation13_spill] sm:$0xff] %v17970_v63  ;;  %v17973_v6 = vsel %vm3288_vm3, %v3411_v39, %v3413_v26 }
 0x105   : > { %22804 = vst [vmem:[#allocation131_spill] sm:$0xff] %v17949_v45  ;;  %v17955_v38 = vpop.f32.mrf.mxu0  ;;  %14913 = vmatmul.mubr.msk.f32.gmra.mxu0 %vm395_vm1, %v17935_v49  ;;  %v3418_v45 = vrot.slane %v22808_v60, 2  ;;  %22810 = vst [vmem:[#allocation14_spill] sm:$0xff] %v17973_v6  ;;  %v17982_v60 = vsel %vm1649_vm2, %v1776_v33, %v1777_v29  ;;  %v17997_v39 = vsel %vm1649_vm2, %v1777_v29, %v1779_v14 }
 0x106   : > { %v17957_v61 = vpop.f32.mrf.mxu1  ;;  %14719 = vmatmul.mubr.msk.f32.gmra.mxu1 %vm395_vm1, %v17932_v32  ;;  %14915 = vmatprep.mubr.msk.f32.mxu0 %vm395_vm1, %v17945_v53  ;;  %22813 = vst [vmem:[#allocation132_spill] sm:$0xff] %v17982_v60  ;;  %v298_v53 = vld [vmem:[%s16746_s9 + $0x250] sm:$0x3]  ;;  %22816 = vst [vmem:[#allocation135_spill] sm:$0xff] %v17997_v39 }
 0x107   : > { %22807 = vst [vmem:[#allocation12_spill] sm:$0xff] %v17957_v61  ;;  %14721 = vmatprep.mubr.msk.f32.mxu1 %vm395_vm1, %v17942_v8  ;;  %v22811_v61 = vld [vmem:[#allocation15_spill] sm:$0xff]  ;;  %v17977_v7 = vpop.f32.mrf.mxu0  ;;  %v17985_v8 = vsel %vm3288_vm3, %v3415_v10, %v3416_v47  ;;  %v18000_v33 = vsel %vm3288_vm3, %v3416_v47, %v3418_v45  ;;  %v22821_v47 = vld [vmem:[#allocation16_spill] sm:$0xff] }
 0x108   : > { %v1781_v32 = vrot.slane %v22811_v61, 1  ;;  %v3420_v49 = vrot.slane %v22811_v61, 2  ;;  %v17979_v11 = vpop.f32.mrf.mxu1  ;;  %22814 = vst [vmem:[#allocation133_spill] sm:$0xff] %v17985_v8  ;;  %22817 = vst [vmem:[#allocation136_spill] sm:$0xff] %v18000_v33  ;;  %v1783_v61 = vrot.slane %v298_v53, 1 }
 0x109   : > { %22812 = vst [vmem:[#allocation15_spill] sm:$0xff] %v17979_v11  ;;  %v17988_v27 = vpop.f32.mrf.mxu0  ;;  %14916 = vmatmul.mubr.msk.f32.gmra.mxu0 %vm395_vm1, %v17973_v6  ;;  %v3422_v6 = vrot.slane %v298_v53, 2  ;;  %v1785_v11 = vrot.slane %v22821_v47, 1  ;;  %v22824_v53 = vld [vmem:[#allocation18_spill] sm:$0xff] }
 0x10a   : > { %v17990_v35 = vpop.f32.mrf.mxu1  ;;  %14722 = vmatmul.mubr.msk.f32.gmra.mxu1 %vm395_vm1, %v17970_v63  ;;  %14918 = vmatprep.mubr.msk.f32.mxu0 %vm395_vm1, %v17985_v8  ;;  %v18007_v26 = vsel %vm1649_vm2, %v1779_v14, %v1781_v32  ;;  %v18010_v10 = vsel %vm3288_vm3, %v3418_v45, %v3420_v49  ;;  %v22822_v63 = vld [vmem:[#allocation17_spill] sm:$0xff]  ;;  %v1788_v45 = vrot.slane %v22824_v53, 1 }
 0x10b   : > { %22815 = vst [vmem:[#allocation134_spill] sm:$0xff] %v17990_v35  ;;  %14724 = vmatprep.mubr.msk.f32.mxu1 %vm395_vm1, %v17982_v60  ;;  %22818 = vst [vmem:[#allocation137_spill] sm:$0xff] %v18007_v26  ;;  %v18012_v35 = vpop.f32.mrf.mxu0  ;;  %v1786_v9 = vrot.slane %v22822_v63, 1  ;;  %v3424_v60 = vrot.slane %v22821_v47, 2  ;;  %v3425_v8 = vrot.slane %v22822_v63, 2  ;;  %v18035_v63 = vsel %vm1649_vm2, %v1781_v32, %v1783_v61 }
 0x10c   : > { %22819 = vst [vmem:[#allocation138_spill] sm:$0xff] %v18010_v10  ;;  %v18014_v29 = vpop.f32.mrf.mxu1  ;;  %22825 = vst [vmem:[#allocation17_spill] sm:$0xff] %v18035_v63  ;;  %v18038_v47 = vsel %vm3288_vm3, %v3420_v49, %v3422_v6  ;;  %v303_v32 = vld [vmem:[%s16746_s9 + $0x278] sm:$0x3] }
 0x10d   : > { %22820 = vst [vmem:[#allocation139_spill] sm:$0xff] %v18014_v29  ;;  %v18020_v30 = vpop.f32.mrf.mxu0  ;;  %14919 = vmatmul.mubr.msk.f32.gmra.mxu0 %vm395_vm1, %v18000_v33  ;;  %v3427_v29 = vrot.slane %v22824_v53, 2  ;;  %22826 = vst [vmem:[#allocation18_spill] sm:$0xff] %v18038_v47  ;;  %v18047_v53 = vsel %vm1649_vm2, %v1785_v11, %v1786_v9  ;;  %v18062_v6 = vsel %vm1649_vm2, %v1786_v9, %v1788_v45 }
 0x10e   : > { %v18022_v14 = vpop.f32.mrf.mxu1  ;;  %14725 = vmatmul.mubr.msk.f32.gmra.mxu1 %vm395_vm1, %v17997_v39  ;;  %14921 = vmatprep.mubr.msk.f32.mxu0 %vm395_vm1, %v18010_v10  ;;  %22829 = vst [vmem:[#allocation140_spill] sm:$0xff] %v18047_v53  ;;  %22832 = vst [vmem:[#allocation143_spill] sm:$0xff] %v18062_v6  ;;  %v3431_v10 = vrot.slane %v303_v32, 2 }
 0x10f   : > { %22823 = vst [vmem:[#allocation16_spill] sm:$0xff] %v18022_v14  ;;  %14727 = vmatprep.mubr.msk.f32.mxu1 %vm395_vm1, %v18007_v26  ;;  %v22827_v14 = vld [vmem:[#allocation19_spill] sm:$0xff]  ;;  %v18042_v62 = vpop.f32.mrf.mxu0  ;;  %v18050_v26 = vsel %vm3288_vm3, %v3424_v60, %v3425_v8  ;;  %v18065_v11 = vsel %vm3288_vm3, %v3425_v8, %v3427_v29  ;;  %v16250_v8 = vld [vmem:[%s16746_s9 + $0x280] sm:$0xff] }
 0x110   : > { %v1790_v39 = vrot.slane %v22827_v14, 1  ;;  %v3429_v33 = vrot.slane %v22827_v14, 2  ;;  %v18044_v3 = vpop.f32.mrf.mxu1  ;;  %22830 = vst [vmem:[#allocation141_spill] sm:$0xff] %v18050_v26  ;;  %22833 = vst [vmem:[#allocation144_spill] sm:$0xff] %v18065_v11  ;;  %v3433_v0 = vrot.slane %v16250_v8, 2 }
 0x111   : > { %22828 = vst [vmem:[#allocation19_spill] sm:$0xff] %v18044_v3  ;;  %v18053_v61 = vpop.f32.mrf.mxu0  ;;  %14922 = vmatmul.mubr.msk.f32.gmra.mxu0 %vm395_vm1, %v18038_v47  ;;  %v1792_v47 = vrot.slane %v303_v32, 1  ;;  %v1794_v3 = vrot.slane %v16250_v8, 1 }
 0x112   : > { %v18055_v49 = vpop.f32.mrf.mxu1  ;;  %14728 = vmatmul.mubr.msk.f32.gmra.mxu1 %vm395_vm1, %v18035_v63  ;;  %14924 = vmatprep.mubr.msk.f32.mxu0 %vm395_vm1, %v18050_v26  ;;  %v18072_v60 = vsel %vm1649_vm2, %v1788_v45, %v1790_v39  ;;  %v18075_v14 = vsel %vm3288_vm3, %v3427_v29, %v3429_v33  ;;  %v16252_v29 = vld [vmem:[%s16746_s9 + $0x290] sm:$0xff]  ;;  %v18100_v8 = vsel %vm3288_vm3, %v3429_v33, %v3431_v10 }
 0x113   : > { %22831 = vst [vmem:[#allocation142_spill] sm:$0xff] %v18055_v49  ;;  %14730 = vmatprep.mubr.msk.f32.mxu1 %vm395_vm1, %v18047_v53  ;;  %22834 = vst [vmem:[#allocation145_spill] sm:$0xff] %v18072_v60  ;;  %v18077_v9 = vpop.f32.mrf.mxu0  ;;  %v16251_v53 = vld [vmem:[%s16746_s9 + $0x288] sm:$0xff]  ;;  %v1797_v32 = vrot.slane %v16252_v29, 1 }
 0x114   : > { %22835 = vst [vmem:[#allocation146_spill] sm:$0xff] %v18075_v14  ;;  %v18079_v49 = vpop.f32.mrf.mxu1  ;;  %v1795_v63 = vrot.slane %v16251_v53, 1  ;;  %v3434_v26 = vrot.slane %v16251_v53, 2  ;;  %v18097_v53 = vsel %vm1649_vm2, %v1790_v39, %v1792_v47  ;;  %22839 = vst [vmem:[#allocation150_spill] sm:$0xff] %v18100_v8 }
 0x115   : > { %22836 = vst [vmem:[#allocation147_spill] sm:$0xff] %v18079_v49  ;;  %v18083_v22 = vpop.f32.mrf.mxu0  ;;  %14925 = vmatmul.mubr.msk.f32.gmra.mxu0 %vm395_vm1, %v18065_v11  ;;  %v3436_v49 = vrot.slane %v16252_v29, 2  ;;  %22838 = vst [vmem:[#allocation149_spill] sm:$0xff] %v18097_v53 }
 0x116   : > { %v18085_v45 = vpop.f32.mrf.mxu1  ;;  %14731 = vmatmul.mubr.msk.f32.gmra.mxu1 %vm395_vm1, %v18062_v6  ;;  %14927 = vmatprep.mubr.msk.f32.mxu0 %vm395_vm1, %v18075_v14  ;;  %v18108_v29 = vsel %vm1649_vm2, %v1794_v3, %v1795_v63  ;;  %v308_v14 = vld [vmem:[%s16746_s9 + $0x2a0] sm:$0x3]  ;;  %v18123_v10 = vsel %vm1649_vm2, %v1795_v63, %v1797_v32 }
 0x117   : > { %22837 = vst [vmem:[#allocation148_spill] sm:$0xff] %v18085_v45  ;;  %14733 = vmatprep.mubr.msk.f32.mxu1 %vm395_vm1, %v18072_v60  ;;  %v16253_v45 = vld [vmem:[%s16746_s9 + $0x298] sm:$0xff]  ;;  %v18103_v58 = vpop.f32.mrf.mxu0  ;;  %22841 = vst [vmem:[#allocation152_spill] sm:$0xff] %v18108_v29  ;;  %v18111_v60 = vsel %vm3288_vm3, %v3433_v0, %v3434_v26  ;;  %v18126_v3 = vsel %vm3288_vm3, %v3434_v26, %v3436_v49  ;;  %v16254_v26 = vld [vmem:[%s16746_s9 + $0x2a8] sm:$0xff] }
 0x118   : > { %v1799_v6 = vrot.slane %v16253_v45, 1  ;;  %v3438_v54 = vrot.slane %v16253_v45, 2  ;;  %v18105_v11 = vpop.f32.mrf.mxu1  ;;  %22842 = vst [vmem:[#allocation153_spill] sm:$0xff] %v18111_v60  ;;  %22844 = vst [vmem:[#allocation155_spill] sm:$0xff] %v18123_v10  ;;  %v1801_v45 = vrot.slane %v308_v14, 1  ;;  %v3442_v56 = vrot.slane %v16254_v26, 2 }
 0x119   : > { %22840 = vst [vmem:[#allocation151_spill] sm:$0xff] %v18105_v11  ;;  %v18114_v39 = vpop.f32.mrf.mxu0  ;;  %14928 = vmatmul.mubr.msk.f32.gmra.mxu0 %vm395_vm1, %v18100_v8  ;;  %22845 = vst [vmem:[#allocation156_spill] sm:$0xff] %v18126_v3  ;;  %v3440_v8 = vrot.slane %v308_v14, 2  ;;  %v1803_v11 = vrot.slane %v16254_v26, 1 }
 0x11a   : > { %v18116_v33 = vpop.f32.mrf.mxu1  ;;  %14734 = vmatmul.mubr.msk.f32.gmra.mxu1 %vm395_vm1, %v18097_v53  ;;  %14930 = vmatprep.mubr.msk.f32.mxu0 %vm395_vm1, %v18111_v60  ;;  %v18133_v0 = vsel %vm1649_vm2, %v1797_v32, %v1799_v6  ;;  %v18136_v47 = vsel %vm3288_vm3, %v3436_v49, %v3438_v54  ;;  %v16256_v49 = vld [vmem:[%s16746_s9 + $0x2b8] sm:$0xff] }
 0x11b   : > { %22843 = vst [vmem:[#allocation154_spill] sm:$0xff] %v18116_v33  ;;  %14736 = vmatprep.mubr.msk.f32.mxu1 %vm395_vm1, %v18108_v29  ;;  %22846 = vst [vmem:[#allocation157_spill] sm:$0xff] %v18133_v0  ;;  %v18138_v63 = vpop.f32.mrf.mxu0  ;;  %v16255_v29 = vld [vmem:[%s16746_s9 + $0x2b0] sm:$0xff]  ;;  %v1806_v14 = vrot.slane %v16256_v49, 1  ;;  %v18161_v26 = vsel %vm3288_vm3, %v3438_v54, %v3440_v8  ;;  %v12886_v54 = vld [vmem:[%s22172_s1 + $0x18] sm:$0xf] }
 0x11c   : > { %22847 = vst [vmem:[#allocation158_spill] sm:$0xff] %v18136_v47  ;;  %v18140_v33 = vpop.f32.mrf.mxu1  ;;  %v1804_v53 = vrot.slane %v16255_v29, 1  ;;  %v3443_v60 = vrot.slane %v16255_v29, 2  ;;  %v18158_v29 = vsel %vm1649_vm2, %v1799_v6, %v1801_v45  ;;  %22851 = vst [vmem:[#allocation162_spill] sm:$0xff] %v18161_v26  ;;  %v313_v45 = vld [vmem:[%s16746_s9 + $0x2c8] sm:$0x3]  ;;  %15608 = vmatprep.subr.msk.mxu0 %vm780_vm0, %v12886_v54 }
 0x11d   : > { %22848 = vst [vmem:[#allocation159_spill] sm:$0xff] %v18140_v33  ;;  %v18144_v17 = vpop.f32.mrf.mxu0  ;;  %14931 = vmatmul.mubr.msk.f32.gmra.mxu0 %vm395_vm1, %v18126_v3  ;;  %v3445_v33 = vrot.slane %v16256_v49, 2  ;;  %22850 = vst [vmem:[#allocation161_spill] sm:$0xff] %v18158_v29  ;;  %v12756_v3 = vld [vmem:[%s22172_s1 + $0x14] sm:$0xf] }
 0x11e   : > { %v18146_v32 = vpop.f32.mrf.mxu1  ;;  %14737 = vmatmul.mubr.msk.f32.gmra.mxu1 %vm395_vm1, %v18123_v10  ;;  %14933 = vmatprep.mubr.msk.f32.mxu0 %vm395_vm1, %v18136_v47  ;;  %v18175_v6 = vsel %vm3288_vm3, %v3442_v56, %v3443_v60  ;;  %v18191_v56 = vsel %vm1649_vm2, %v1804_v53, %v1806_v14 }
 0x11f   : > { %22849 = vst [vmem:[#allocation160_spill] sm:$0xff] %v18146_v32  ;;  %14739 = vmatprep.mubr.msk.f32.mxu1 %vm395_vm1, %v18133_v0  ;;  %v16257_v32 = vld [vmem:[%s16746_s9 + $0x2c0] sm:$0xff]  ;;  %v18167_v49 = vpop.f32.mrf.mxu0  ;;  %v18172_v0 = vsel %vm1649_vm2, %v1803_v11, %v1804_v53  ;;  %22854 = vst [vmem:[#allocation165_spill] sm:$0xff] %v18175_v6  ;;  %15414 = vmatprep.subr.msk.mxu1 %vm780_vm0, %v12756_v3  ;;  %v18194_v11 = vsel %vm3288_vm3, %v3443_v60, %v3445_v33  ;;  %v16258_v60 = vld [vmem:[%s16746_s9 + $0x2d0] sm:$0xff] }
 0x120   : > { %v1808_v10 = vrot.slane %v16257_v32, 1  ;;  %v3447_v46 = vrot.slane %v16257_v32, 2  ;;  %v18169_v50 = vpop.f32.mrf.mxu1  ;;  %22853 = vst [vmem:[#allocation164_spill] sm:$0xff] %v18172_v0  ;;  %22856 = vst [vmem:[#allocation167_spill] sm:$0xff] %v18191_v56  ;;  %v3451_v59 = vrot.slane %v16258_v60, 2 }
 0x121   : > { %22852 = vst [vmem:[#allocation163_spill] sm:$0xff] %v18169_v50  ;;  %v18182_v8 = vpop.f32.mrf.mxu0  ;;  %14934 = vmatmul.mubr.msk.f32.gmra.mxu0 %vm395_vm1, %v18161_v26  ;;  %22857 = vst [vmem:[#allocation168_spill] sm:$0xff] %v18194_v11  ;;  %v1810_v26 = vrot.slane %v313_v45, 1 }
 0x122   : > { %v18184_v32 = vpop.f32.mrf.mxu1  ;;  %14740 = vmatmul.mubr.msk.f32.gmra.mxu1 %vm395_vm1, %v18158_v29  ;;  %14936 = vmatprep.mubr.msk.f32.mxu0 %vm395_vm1, %v18175_v6  ;;  %v18201_v3 = vsel %vm1649_vm2, %v1806_v14, %v1808_v10  ;;  %v18204_v47 = vsel %vm3288_vm3, %v3445_v33, %v3447_v46  ;;  %v1812_v29 = vrot.slane %v16258_v60, 1  ;;  %v3452_v6 = vrot.slane %v16259_v48, 2  ;;  %v16261_v60 = vld [vmem:[%s16746_s9 + $0x2e8] sm:$0xff] }
 0x123   : > { %22855 = vst [vmem:[#allocation166_spill] sm:$0xff] %v18184_v32  ;;  %14742 = vmatprep.mubr.msk.f32.mxu1 %vm395_vm1, %v18172_v0  ;;  %22858 = vst [vmem:[#allocation169_spill] sm:$0xff] %v18201_v3  ;;  %v3449_v32 = vrot.slane %v313_v45, 2  ;;  %v18206_v53 = vpop.f32.mrf.mxu0  ;;  %v1813_v0 = vrot.slane %v16259_v48, 1  ;;  %v16260_v45 = vld [vmem:[%s16746_s9 + $0x2e0] sm:$0xff]  ;;  %v18227_v48 = vsel %vm1649_vm2, %v1808_v10, %v1810_v26 }
 0x124   : > { %22859 = vst [vmem:[#allocation170_spill] sm:$0xff] %v18204_v47  ;;  %22860 = vst [vmem:[#allocation171_spill] sm:$0xff] %v18206_v53  ;;  %v18208_v50 = vpop.f32.mrf.mxu1  ;;  %v3454_v21 = vrot.slane %v16260_v45, 2 }
 0x125   : > { %22861 = vst [vmem:[#allocation172_spill] sm:$0xff] %v18208_v50  ;;  %v18213_v14 = vpop.f32.mrf.mxu0  ;;  %14937 = vmatmul.mubr.msk.f32.gmra.mxu0 %vm395_vm1, %v18194_v11  ;;  %v1815_v50 = vrot.slane %v16260_v45, 1  ;;  %22864 = vst [vmem:[#allocation175_spill] sm:$0xff] %v18227_v48  ;;  %v18230_v54 = vsel %vm3288_vm3, %v3447_v46, %v3449_v32  ;;  %v18238_v45 = vsel %vm1649_vm2, %v1812_v29, %v1813_v0 }
 0x126   : > { %22862 = vst [vmem:[#allocation173_spill] sm:$0xff] %v18213_v14  ;;  %v18215_v33 = vpop.f32.mrf.mxu1  ;;  %14743 = vmatmul.mubr.msk.f32.gmra.mxu1 %vm395_vm1, %v18191_v56  ;;  %14939 = vmatprep.mubr.msk.f32.mxu0 %vm395_vm1, %v18204_v47  ;;  %22865 = vst [vmem:[#allocation176_spill] sm:$0xff] %v18230_v54  ;;  %v3456_v56 = vrot.slane %v16261_v60, 2  ;;  %v318_v47 = vld [vmem:[%s16746_s9 + $0x2f0] sm:$0x3]  ;;  %v18256_v29 = vsel %vm3288_vm3, %v3452_v6, %v3454_v21 }
 0x127   : > { %22863 = vst [vmem:[#allocation174_spill] sm:$0xff] %v18215_v33  ;;  %14745 = vmatprep.mubr.msk.f32.mxu1 %vm395_vm1, %v18201_v3  ;;  %v1817_v33 = vrot.slane %v16261_v60, 1  ;;  %v18233_v42 = vpop.f32.mrf.mxu0  ;;  %22868 = vst [vmem:[#allocation179_spill] sm:$0xff] %v18238_v45  ;;  %v18241_v3 = vsel %vm3288_vm3, %v3451_v59, %v3452_v6  ;;  %v18253_v26 = vsel %vm1649_vm2, %v1813_v0, %v1815_v50  ;;  %v1819_v60 = vrot.slane %v318_v47, 1  ;;  %v16262_v6 = vld [vmem:[%s16746_s9 + $0x2f8] sm:$0xff] }
 0x128   : > { %22866 = vst [vmem:[#allocation177_spill] sm:$0xff] %v18233_v42  ;;  %v18235_v11 = vpop.f32.mrf.mxu1  ;;  %22869 = vst [vmem:[#allocation180_spill] sm:$0xff] %v18241_v3  ;;  %v18266_v32 = vsel %vm3288_vm3, %v3454_v21, %v3456_v56  ;;  %v16264_v21 = vld [vmem:[%s16746_s9 + $0x308] sm:$0xff] }
 0x129   : > { %22867 = vst [vmem:[#allocation178_spill] sm:$0xff] %v18235_v11  ;;  %v18244_v10 = vpop.f32.mrf.mxu0  ;;  %14940 = vmatmul.mubr.msk.f32.gmra.mxu0 %vm395_vm1, %v18230_v54  ;;  %22872 = vst [vmem:[#allocation183_spill] sm:$0xff] %v18253_v26  ;;  %v18263_v59 = vsel %vm1649_vm2, %v1815_v50, %v1817_v33  ;;  %v3458_v54 = vrot.slane %v318_v47, 2  ;;  %v1821_v11 = vrot.slane %v16262_v6, 1  ;;  %v1824_v47 = vrot.slane %v16264_v21, 1 }
 0x12a   : > { %22870 = vst [vmem:[#allocation181_spill] sm:$0xff] %v18244_v10  ;;  %v18246_v46 = vpop.f32.mrf.mxu1  ;;  %14746 = vmatmul.mubr.msk.f32.gmra.mxu1 %vm395_vm1, %v18227_v48  ;;  %22873 = vst [vmem:[#allocation184_spill] sm:$0xff] %v18256_v29  ;;  %14942 = vmatprep.mubr.msk.f32.mxu0 %vm395_vm1, %v18241_v3  ;;  %v3460_v10 = vrot.slane %v16262_v6, 2 }
 0x12b   : > { %22871 = vst [vmem:[#allocation182_spill] sm:$0xff] %v18246_v46  ;;  %14748 = vmatprep.mubr.msk.f32.mxu1 %vm395_vm1, %v18238_v45  ;;  %22874 = vst [vmem:[#allocation185_spill] sm:$0xff] %v18263_v59  ;;  %v18268_v0 = vpop.f32.mrf.mxu0  ;;  %v16263_v45 = vld [vmem:[%s16746_s9 + $0x300] sm:$0xff]  ;;  %v18291_v6 = vsel %vm3288_vm3, %v3456_v56, %v3458_v54 }
 0x12c   : > { %22875 = vst [vmem:[#allocation186_spill] sm:$0xff] %v18266_v32  ;;  %22876 = vst [vmem:[#allocation187_spill] sm:$0xff] %v18268_v0  ;;  %v18270_v46 = vpop.f32.mrf.mxu1  ;;  %v1822_v48 = vrot.slane %v16263_v45, 1  ;;  %v3461_v3 = vrot.slane %v16263_v45, 2  ;;  %v18288_v45 = vsel %vm1649_vm2, %v1817_v33, %v1819_v60 }
 0x12d   : > { %22877 = vst [vmem:[#allocation188_spill] sm:$0xff] %v18270_v46  ;;  %v18274_v42 = vpop.f32.mrf.mxu0  ;;  %14943 = vmatmul.mubr.msk.f32.gmra.mxu0 %vm395_vm1, %v18256_v29  ;;  %v3463_v46 = vrot.slane %v16264_v21, 2  ;;  %22880 = vst [vmem:[#allocation191_spill] sm:$0xff] %v18288_v45 }
 0x12e   : > { %22878 = vst [vmem:[#allocation189_spill] sm:$0xff] %v18274_v42  ;;  %v18276_v50 = vpop.f32.mrf.mxu1  ;;  %14749 = vmatmul.mubr.msk.f32.gmra.mxu1 %vm395_vm1, %v18253_v26  ;;  %14945 = vmatprep.mubr.msk.f32.mxu0 %vm395_vm1, %v18266_v32  ;;  %22881 = vst [vmem:[#allocation192_spill] sm:$0xff] %v18291_v6  ;;  %v18299_v21 = vsel %vm1649_vm2, %v1821_v11, %v1822_v48  ;;  %v323_v32 = vld [vmem:[%s16746_s9 + $0x318] sm:$0x3]  ;;  %v18314_v54 = vsel %vm1649_vm2, %v1822_v48, %v1824_v47 }
 0x12f   : > { %22879 = vst [vmem:[#allocation190_spill] sm:$0xff] %v18276_v50  ;;  %14751 = vmatprep.mubr.msk.f32.mxu1 %vm395_vm1, %v18263_v59  ;;  %v16265_v50 = vld [vmem:[%s16746_s9 + $0x310] sm:$0xff]  ;;  %v18294_v0 = vpop.f32.mrf.mxu0  ;;  %22884 = vst [vmem:[#allocation195_spill] sm:$0xff] %v18299_v21  ;;  %v18302_v59 = vsel %vm3288_vm3, %v3460_v10, %v3461_v3  ;;  %v18317_v11 = vsel %vm3288_vm3, %v3461_v3, %v3463_v46  ;;  %v16266_v3 = vld [vmem:[%s16746_s9 + $0x320] sm:$0xff] }
 0x130   : > { %v1826_v26 = vrot.slane %v16265_v50, 1  ;;  %v3465_v42 = vrot.slane %v16265_v50, 2  ;;  %22882 = vst [vmem:[#allocation193_spill] sm:$0xff] %v18294_v0  ;;  %v18296_v29 = vpop.f32.mrf.mxu1  ;;  %22885 = vst [vmem:[#allocation196_spill] sm:$0xff] %v18302_v59  ;;  %v1828_v50 = vrot.slane %v323_v32, 1 }
 0x131   : > { %22883 = vst [vmem:[#allocation194_spill] sm:$0xff] %v18296_v29  ;;  %v18305_v33 = vpop.f32.mrf.mxu0  ;;  %14946 = vmatmul.mubr.msk.f32.gmra.mxu0 %vm395_vm1, %v18291_v6  ;;  %22888 = vst [vmem:[#allocation199_spill] sm:$0xff] %v18314_v54  ;;  %v3467_v6 = vrot.slane %v323_v32, 2  ;;  %v1830_v29 = vrot.slane %v16266_v3, 1 }
 0x132   : > { %22886 = vst [vmem:[#allocation197_spill] sm:$0xff] %v18305_v33  ;;  %v18307_v56 = vpop.f32.mrf.mxu1  ;;  %14752 = vmatmul.mubr.msk.f32.gmra.mxu1 %vm395_vm1, %v18288_v45  ;;  %22889 = vst [vmem:[#allocation200_spill] sm:$0xff] %v18317_v11  ;;  %14948 = vmatprep.mubr.msk.f32.mxu0 %vm395_vm1, %v18302_v59  ;;  %v18324_v10 = vsel %vm1649_vm2, %v1824_v47, %v1826_v26  ;;  %v18327_v60 = vsel %vm3288_vm3, %v3463_v46, %v3465_v42  ;;  %v3469_v33 = vrot.slane %v16266_v3, 2  ;;  %v16268_v46 = vld [vmem:[%s16746_s9 + $0x330] sm:$0xff] }
 0x133   : > { %22887 = vst [vmem:[#allocation198_spill] sm:$0xff] %v18307_v56  ;;  %14754 = vmatprep.mubr.msk.f32.mxu1 %vm395_vm1, %v18299_v21  ;;  %22890 = vst [vmem:[#allocation201_spill] sm:$0xff] %v18324_v10  ;;  %v18329_v48 = vpop.f32.mrf.mxu0  ;;  %v16267_v21 = vld [vmem:[%s16746_s9 + $0x328] sm:$0xff]  ;;  %v1833_v32 = vrot.slane %v16268_v46, 1  ;;  %v18352_v3 = vsel %vm3288_vm3, %v3465_v42, %v3467_v6 }
 0x134   : > { %22891 = vst [vmem:[#allocation202_spill] sm:$0xff] %v18327_v60  ;;  %22892 = vst [vmem:[#allocation203_spill] sm:$0xff] %v18329_v48  ;;  %v18331_v56 = vpop.f32.mrf.mxu1  ;;  %v1831_v45 = vrot.slane %v16267_v21, 1  ;;  %v3470_v59 = vrot.slane %v16267_v21, 2  ;;  %v18349_v21 = vsel %vm1649_vm2, %v1826_v26, %v1828_v50 }
 0x135   : > { %22893 = vst [vmem:[#allocation204_spill] sm:$0xff] %v18331_v56  ;;  %v18335_v0 = vpop.f32.mrf.mxu0  ;;  %14949 = vmatmul.mubr.msk.f32.gmra.mxu0 %vm395_vm1, %v18317_v11  ;;  %v3472_v56 = vrot.slane %v16268_v46, 2  ;;  %22896 = vst [vmem:[#allocation207_spill] sm:$0xff] %v18349_v21 }
 0x136   : > { %22894 = vst [vmem:[#allocation205_spill] sm:$0xff] %v18335_v0  ;;  %v18337_v47 = vpop.f32.mrf.mxu1  ;;  %14755 = vmatmul.mubr.msk.f32.gmra.mxu1 %vm395_vm1, %v18314_v54  ;;  %14951 = vmatprep.mubr.msk.f32.mxu0 %vm395_vm1, %v18327_v60  ;;  %22897 = vst [vmem:[#allocation208_spill] sm:$0xff] %v18352_v3  ;;  %v18360_v46 = vsel %vm1649_vm2, %v1830_v29, %v1831_v45  ;;  %v328_v60 = vld [vmem:[%s16746_s9 + $0x340] sm:$0x3]  ;;  %v18375_v6 = vsel %vm1649_vm2, %v1831_v45, %v1833_v32 }
 0x137   : > { %22895 = vst [vmem:[#allocation206_spill] sm:$0xff] %v18337_v47  ;;  %14757 = vmatprep.mubr.msk.f32.mxu1 %vm395_vm1, %v18324_v10  ;;  %v16269_v47 = vld [vmem:[%s16746_s9 + $0x338] sm:$0xff]  ;;  %v18355_v48 = vpop.f32.mrf.mxu0  ;;  %22900 = vst [vmem:[#allocation211_spill] sm:$0xff] %v18360_v46  ;;  %v18363_v10 = vsel %vm3288_vm3, %v3469_v33, %v3470_v59  ;;  %v18378_v29 = vsel %vm3288_vm3, %v3470_v59, %v3472_v56  ;;  %v16270_v59 = vld [vmem:[%s16746_s9 + $0x348] sm:$0xff] }
 0x138   : > { %v1835_v54 = vrot.slane %v16269_v47, 1  ;;  %v3474_v0 = vrot.slane %v16269_v47, 2  ;;  %22898 = vst [vmem:[#allocation209_spill] sm:$0xff] %v18355_v48  ;;  %v18357_v11 = vpop.f32.mrf.mxu1  ;;  %22901 = vst [vmem:[#allocation212_spill] sm:$0xff] %v18363_v10  ;;  %v1837_v47 = vrot.slane %v328_v60, 1 }
 0x139   : > { %22899 = vst [vmem:[#allocation210_spill] sm:$0xff] %v18357_v11  ;;  %v18366_v26 = vpop.f32.mrf.mxu0  ;;  %14952 = vmatmul.mubr.msk.f32.gmra.mxu0 %vm395_vm1, %v18352_v3  ;;  %22904 = vst [vmem:[#allocation215_spill] sm:$0xff] %v18375_v6  ;;  %v3476_v3 = vrot.slane %v328_v60, 2  ;;  %v1839_v11 = vrot.slane %v16270_v59, 1 }
 0x13a   : > { %22902 = vst [vmem:[#allocation213_spill] sm:$0xff] %v18366_v26  ;;  %v18368_v42 = vpop.f32.mrf.mxu1  ;;  %14758 = vmatmul.mubr.msk.f32.gmra.mxu1 %vm395_vm1, %v18349_v21  ;;  %22905 = vst [vmem:[#allocation216_spill] sm:$0xff] %v18378_v29  ;;  %14954 = vmatprep.mubr.msk.f32.mxu0 %vm395_vm1, %v18363_v10  ;;  %v18385_v33 = vsel %vm1649_vm2, %v1833_v32, %v1835_v54  ;;  %v18388_v50 = vsel %vm3288_vm3, %v3472_v56, %v3474_v0  ;;  %v3478_v26 = vrot.slane %v16270_v59, 2  ;;  %v16272_v56 = vld [vmem:[%s16746_s9 + $0x358] sm:$0xff] }
 0x13b   : > { %22903 = vst [vmem:[#allocation214_spill] sm:$0xff] %v18368_v42  ;;  %14760 = vmatprep.mubr.msk.f32.mxu1 %vm395_vm1, %v18360_v46  ;;  %22906 = vst [vmem:[#allocation217_spill] sm:$0xff] %v18385_v33  ;;  %v18390_v45 = vpop.f32.mrf.mxu0  ;;  %v16271_v46 = vld [vmem:[%s16746_s9 + $0x350] sm:$0xff]  ;;  %v1842_v60 = vrot.slane %v16272_v56, 1  ;;  %v18413_v59 = vsel %vm3288_vm3, %v3474_v0, %v3476_v3 }
 0x13c   : > { %22907 = vst [vmem:[#allocation218_spill] sm:$0xff] %v18388_v50  ;;  %22908 = vst [vmem:[#allocation219_spill] sm:$0xff] %v18390_v45  ;;  %v18392_v42 = vpop.f32.mrf.mxu1  ;;  %v1840_v21 = vrot.slane %v16271_v46, 1  ;;  %v3479_v10 = vrot.slane %v16271_v46, 2  ;;  %v18410_v46 = vsel %vm1649_vm2, %v1835_v54, %v1837_v47 }
 0x13d   : > { %22909 = vst [vmem:[#allocation220_spill] sm:$0xff] %v18392_v42  ;;  %v18396_v48 = vpop.f32.mrf.mxu0  ;;  %14955 = vmatmul.mubr.msk.f32.gmra.mxu0 %vm395_vm1, %v18378_v29  ;;  %v3481_v42 = vrot.slane %v16272_v56, 2  ;;  %22912 = vst [vmem:[#allocation223_spill] sm:$0xff] %v18410_v46 }
 0x13e   : > { %22910 = vst [vmem:[#allocation221_spill] sm:$0xff] %v18396_v48  ;;  %v18398_v32 = vpop.f32.mrf.mxu1  ;;  %14761 = vmatmul.mubr.msk.f32.gmra.mxu1 %vm395_vm1, %v18375_v6  ;;  %14957 = vmatprep.mubr.msk.f32.mxu0 %vm395_vm1, %v18388_v50  ;;  %22913 = vst [vmem:[#allocation224_spill] sm:$0xff] %v18413_v59  ;;  %v18421_v56 = vsel %vm1649_vm2, %v1839_v11, %v1840_v21  ;;  %v333_v50 = vld [vmem:[%s16746_s9 + $0x368] sm:$0x3]  ;;  %v18436_v3 = vsel %vm1649_vm2, %v1840_v21, %v1842_v60 }
 0x13f   : > { %22911 = vst [vmem:[#allocation222_spill] sm:$0xff] %v18398_v32  ;;  %14763 = vmatprep.mubr.msk.f32.mxu1 %vm395_vm1, %v18385_v33  ;;  %v16273_v32 = vld [vmem:[%s16746_s9 + $0x360] sm:$0xff]  ;;  %v18416_v45 = vpop.f32.mrf.mxu0  ;;  %22916 = vst [vmem:[#allocation227_spill] sm:$0xff] %v18421_v56  ;;  %v18424_v33 = vsel %vm3288_vm3, %v3478_v26, %v3479_v10  ;;  %v18439_v11 = vsel %vm3288_vm3, %v3479_v10, %v3481_v42  ;;  %v16274_v10 = vld [vmem:[%s16746_s9 + $0x370] sm:$0xff] }
 0x140   : > { %v1844_v6 = vrot.slane %v16273_v32, 1  ;;  %v3483_v48 = vrot.slane %v16273_v32, 2  ;;  %22914 = vst [vmem:[#allocation225_spill] sm:$0xff] %v18416_v45  ;;  %v18418_v29 = vpop.f32.mrf.mxu1  ;;  %22917 = vst [vmem:[#allocation228_spill] sm:$0xff] %v18424_v33  ;;  %v1846_v32 = vrot.slane %v333_v50, 1 }
 0x141   : > { %22915 = vst [vmem:[#allocation226_spill] sm:$0xff] %v18418_v29  ;;  %v18427_v54 = vpop.f32.mrf.mxu0  ;;  %14958 = vmatmul.mubr.msk.f32.gmra.mxu0 %vm395_vm1, %v18413_v59  ;;  %22920 = vst [vmem:[#allocation231_spill] sm:$0xff] %v18436_v3  ;;  %v3485_v59 = vrot.slane %v333_v50, 2  ;;  %v1848_v29 = vrot.slane %v16274_v10, 1 }
 0x142   : > { %22918 = vst [vmem:[#allocation229_spill] sm:$0xff] %v18427_v54  ;;  %v18429_v0 = vpop.f32.mrf.mxu1  ;;  %14764 = vmatmul.mubr.msk.f32.gmra.mxu1 %vm395_vm1, %v18410_v46  ;;  %22921 = vst [vmem:[#allocation232_spill] sm:$0xff] %v18439_v11  ;;  %14960 = vmatprep.mubr.msk.f32.mxu0 %vm395_vm1, %v18424_v33  ;;  %v18446_v26 = vsel %vm1649_vm2, %v1842_v60, %v1844_v6  ;;  %v18449_v47 = vsel %vm3288_vm3, %v3481_v42, %v3483_v48  ;;  %v3487_v54 = vrot.slane %v16274_v10, 2  ;;  %v16276_v42 = vld [vmem:[%s16746_s9 + $0x380] sm:$0xff] }
 0x143   : > { %22919 = vst [vmem:[#allocation230_spill] sm:$0xff] %v18429_v0  ;;  %14766 = vmatprep.mubr.msk.f32.mxu1 %vm395_vm1, %v18421_v56  ;;  %22922 = vst [vmem:[#allocation233_spill] sm:$0xff] %v18446_v26  ;;  %v18451_v21 = vpop.f32.mrf.mxu0  ;;  %v16275_v56 = vld [vmem:[%s16746_s9 + $0x378] sm:$0xff]  ;;  %v1851_v50 = vrot.slane %v16276_v42, 1  ;;  %v18474_v10 = vsel %vm3288_vm3, %v3483_v48, %v3485_v59 }
 0x144   : > { %22923 = vst [vmem:[#allocation234_spill] sm:$0xff] %v18449_v47  ;;  %22924 = vst [vmem:[#allocation235_spill] sm:$0xff] %v18451_v21  ;;  %v18453_v0 = vpop.f32.mrf.mxu1  ;;  %v1849_v46 = vrot.slane %v16275_v56, 1  ;;  %v3488_v33 = vrot.slane %v16275_v56, 2  ;;  %v18471_v56 = vsel %vm1649_vm2, %v1844_v6, %v1846_v32 }
 0x145   : > { %22925 = vst [vmem:[#allocation236_spill] sm:$0xff] %v18453_v0  ;;  %v18457_v45 = vpop.f32.mrf.mxu0  ;;  %14961 = vmatmul.mubr.msk.f32.gmra.mxu0 %vm395_vm1, %v18439_v11  ;;  %v3490_v0 = vrot.slane %v16276_v42, 2  ;;  %22928 = vst [vmem:[#allocation239_spill] sm:$0xff] %v18471_v56 }
 0x146   : > { %22926 = vst [vmem:[#allocation237_spill] sm:$0xff] %v18457_v45  ;;  %v18459_v60 = vpop.f32.mrf.mxu1  ;;  %14767 = vmatmul.mubr.msk.f32.gmra.mxu1 %vm395_vm1, %v18436_v3  ;;  %14963 = vmatprep.mubr.msk.f32.mxu0 %vm395_vm1, %v18449_v47  ;;  %22929 = vst [vmem:[#allocation240_spill] sm:$0xff] %v18474_v10  ;;  %v18482_v42 = vsel %vm1649_vm2, %v1848_v29, %v1849_v46  ;;  %v338_v47 = vld [vmem:[%s16746_s9 + $0x390] sm:$0x3]  ;;  %v18497_v59 = vsel %vm1649_vm2, %v1849_v46, %v1851_v50 }
 0x147   : > { %22927 = vst [vmem:[#allocation238_spill] sm:$0xff] %v18459_v60  ;;  %14769 = vmatprep.mubr.msk.f32.mxu1 %vm395_vm1, %v18446_v26  ;;  %v16277_v60 = vld [vmem:[%s16746_s9 + $0x388] sm:$0xff]  ;;  %v18477_v21 = vpop.f32.mrf.mxu0  ;;  %22932 = vst [vmem:[#allocation243_spill] sm:$0xff] %v18482_v42  ;;  %v18485_v26 = vsel %vm3288_vm3, %v3487_v54, %v3488_v33  ;;  %v18500_v29 = vsel %vm3288_vm3, %v3488_v33, %v3490_v0  ;;  %v16278_v33 = vld [vmem:[%s16746_s9 + $0x398] sm:$0xff] }
 0x148   : > { %v1853_v3 = vrot.slane %v16277_v60, 1  ;;  %v3492_v45 = vrot.slane %v16277_v60, 2  ;;  %22930 = vst [vmem:[#allocation241_spill] sm:$0xff] %v18477_v21  ;;  %v18479_v11 = vpop.f32.mrf.mxu1  ;;  %22933 = vst [vmem:[#allocation244_spill] sm:$0xff] %v18485_v26  ;;  %v1855_v60 = vrot.slane %v338_v47, 1 }
 0x149   : > { %22931 = vst [vmem:[#allocation242_spill] sm:$0xff] %v18479_v11  ;;  %v18488_v6 = vpop.f32.mrf.mxu0  ;;  %14964 = vmatmul.mubr.msk.f32.gmra.mxu0 %vm395_vm1, %v18474_v10  ;;  %22936 = vst [vmem:[#allocation247_spill] sm:$0xff] %v18497_v59  ;;  %v3494_v10 = vrot.slane %v338_v47, 2  ;;  %v1857_v11 = vrot.slane %v16278_v33, 1 }
 0x14a   : > { %22934 = vst [vmem:[#allocation245_spill] sm:$0xff] %v18488_v6  ;;  %v18490_v48 = vpop.f32.mrf.mxu1  ;;  %14770 = vmatmul.mubr.msk.f32.gmra.mxu1 %vm395_vm1, %v18471_v56  ;;  %22937 = vst [vmem:[#allocation248_spill] sm:$0xff] %v18500_v29  ;;  %14966 = vmatprep.mubr.msk.f32.mxu0 %vm395_vm1, %v18485_v26  ;;  %v18507_v54 = vsel %vm1649_vm2, %v1851_v50, %v1853_v3  ;;  %v18510_v32 = vsel %vm3288_vm3, %v3490_v0, %v3492_v45  ;;  %v3496_v6 = vrot.slane %v16278_v33, 2  ;;  %v16280_v0 = vld [vmem:[%s16746_s9 + $0x3a8] sm:$0xff] }
 0x14b   : > { %22935 = vst [vmem:[#allocation246_spill] sm:$0xff] %v18490_v48  ;;  %14772 = vmatprep.mubr.msk.f32.mxu1 %vm395_vm1, %v18482_v42  ;;  %22938 = vst [vmem:[#allocation249_spill] sm:$0xff] %v18507_v54  ;;  %v18512_v46 = vpop.f32.mrf.mxu0  ;;  %v16279_v42 = vld [vmem:[%s16746_s9 + $0x3a0] sm:$0xff]  ;;  %v1860_v47 = vrot.slane %v16280_v0, 1  ;;  %v18535_v33 = vsel %vm3288_vm3, %v3492_v45, %v3494_v10 }
 0x14c   : > { %22939 = vst [vmem:[#allocation250_spill] sm:$0xff] %v18510_v32  ;;  %22940 = vst [vmem:[#allocation251_spill] sm:$0xff] %v18512_v46  ;;  %v18514_v48 = vpop.f32.mrf.mxu1  ;;  %v1858_v56 = vrot.slane %v16279_v42, 1  ;;  %v3497_v26 = vrot.slane %v16279_v42, 2  ;;  %v18532_v42 = vsel %vm1649_vm2, %v1853_v3, %v1855_v60 }
 0x14d   : > { %22941 = vst [vmem:[#allocation252_spill] sm:$0xff] %v18514_v48  ;;  %v18518_v21 = vpop.f32.mrf.mxu0  ;;  %14967 = vmatmul.mubr.msk.f32.gmra.mxu0 %vm395_vm1, %v18500_v29  ;;  %v3499_v48 = vrot.slane %v16280_v0, 2  ;;  %22944 = vst [vmem:[#allocation255_spill] sm:$0xff] %v18532_v42 }
 0x14e   : > { %22942 = vst [vmem:[#allocation253_spill] sm:$0xff] %v18518_v21  ;;  %v18520_v50 = vpop.f32.mrf.mxu1  ;;  %14773 = vmatmul.mubr.msk.f32.gmra.mxu1 %vm395_vm1, %v18497_v59  ;;  %14969 = vmatprep.mubr.msk.f32.mxu0 %vm395_vm1, %v18510_v32  ;;  %22945 = vst [vmem:[#allocation256_spill] sm:$0xff] %v18535_v33  ;;  %v18543_v0 = vsel %vm1649_vm2, %v1857_v11, %v1858_v56  ;;  %v343_v32 = vld [vmem:[%s16746_s9 + $0x3b8] sm:$0x3]  ;;  %v18558_v10 = vsel %vm1649_vm2, %v1858_v56, %v1860_v47 }
 0x14f   : > { %22943 = vst [vmem:[#allocation254_spill] sm:$0xff] %v18520_v50  ;;  %14775 = vmatprep.mubr.msk.f32.mxu1 %vm395_vm1, %v18507_v54  ;;  %v16281_v50 = vld [vmem:[%s16746_s9 + $0x3b0] sm:$0xff]  ;;  %v18538_v46 = vpop.f32.mrf.mxu0  ;;  %22948 = vst [vmem:[#allocation259_spill] sm:$0xff] %v18543_v0  ;;  %v18546_v54 = vsel %vm3288_vm3, %v3496_v6, %v3497_v26  ;;  %v18561_v11 = vsel %vm3288_vm3, %v3497_v26, %v3499_v48  ;;  %v16282_v26 = vld [vmem:[%s16746_s9 + $0x3c0] sm:$0xff] }
 0x150   : > { %v1862_v59 = vrot.slane %v16281_v50, 1  ;;  %v3501_v21 = vrot.slane %v16281_v50, 2  ;;  %22946 = vst [vmem:[#allocation257_spill] sm:$0xff] %v18538_v46  ;;  %v18540_v29 = vpop.f32.mrf.mxu1  ;;  %22949 = vst [vmem:[#allocation260_spill] sm:$0xff] %v18546_v54  ;;  %v1864_v50 = vrot.slane %v343_v32, 1 }
 0x151   : > { %22947 = vst [vmem:[#allocation258_spill] sm:$0xff] %v18540_v29  ;;  %v18549_v3 = vpop.f32.mrf.mxu0  ;;  %14970 = vmatmul.mubr.msk.f32.gmra.mxu0 %vm395_vm1, %v18535_v33  ;;  %22952 = vst [vmem:[#allocation263_spill] sm:$0xff] %v18558_v10  ;;  %v3503_v33 = vrot.slane %v343_v32, 2  ;;  %v1866_v29 = vrot.slane %v16282_v26, 1 }
 0x152   : > { %22950 = vst [vmem:[#allocation261_spill] sm:$0xff] %v18549_v3  ;;  %v18551_v45 = vpop.f32.mrf.mxu1  ;;  %14776 = vmatmul.mubr.msk.f32.gmra.mxu1 %vm395_vm1, %v18532_v42  ;;  %22953 = vst [vmem:[#allocation264_spill] sm:$0xff] %v18561_v11  ;;  %14972 = vmatprep.mubr.msk.f32.mxu0 %vm395_vm1, %v18546_v54  ;;  %v18568_v6 = vsel %vm1649_vm2, %v1860_v47, %v1862_v59  ;;  %v18571_v60 = vsel %vm3288_vm3, %v3499_v48, %v3501_v21  ;;  %v3505_v3 = vrot.slane %v16282_v26, 2  ;;  %v16284_v48 = vld [vmem:[%s16746_s9 + $0x3d0] sm:$0xff] }
 0x153   : > { %22951 = vst [vmem:[#allocation262_spill] sm:$0xff] %v18551_v45  ;;  %14778 = vmatprep.mubr.msk.f32.mxu1 %vm395_vm1, %v18543_v0  ;;  %22954 = vst [vmem:[#allocation265_spill] sm:$0xff] %v18568_v6  ;;  %v18573_v56 = vpop.f32.mrf.mxu0  ;;  %v16283_v0 = vld [vmem:[%s16746_s9 + $0x3c8] sm:$0xff]  ;;  %v1869_v32 = vrot.slane %v16284_v48, 1  ;;  %v18596_v26 = vsel %vm3288_vm3, %v3501_v21, %v3503_v33 }
 0x154   : > { %22955 = vst [vmem:[#allocation266_spill] sm:$0xff] %v18571_v60  ;;  %22956 = vst [vmem:[#allocation267_spill] sm:$0xff] %v18573_v56  ;;  %v18575_v45 = vpop.f32.mrf.mxu1  ;;  %v1867_v42 = vrot.slane %v16283_v0, 1  ;;  %v3506_v54 = vrot.slane %v16283_v0, 2  ;;  %v18593_v0 = vsel %vm1649_vm2, %v1862_v59, %v1864_v50 }
 0x155   : > { %22957 = vst [vmem:[#allocation268_spill] sm:$0xff] %v18575_v45  ;;  %v18579_v46 = vpop.f32.mrf.mxu0  ;;  %14973 = vmatmul.mubr.msk.f32.gmra.mxu0 %vm395_vm1, %v18561_v11  ;;  %v3508_v45 = vrot.slane %v16284_v48, 2  ;;  %22960 = vst [vmem:[#allocation271_spill] sm:$0xff] %v18593_v0 }
 0x156   : > { %22958 = vst [vmem:[#allocation269_spill] sm:$0xff] %v18579_v46  ;;  %v18581_v47 = vpop.f32.mrf.mxu1  ;;  %14779 = vmatmul.mubr.msk.f32.gmra.mxu1 %vm395_vm1, %v18558_v10  ;;  %14975 = vmatprep.mubr.msk.f32.mxu0 %vm395_vm1, %v18571_v60  ;;  %22961 = vst [vmem:[#allocation272_spill] sm:$0xff] %v18596_v26  ;;  %v18604_v48 = vsel %vm1649_vm2, %v1866_v29, %v1867_v42  ;;  %v348_v60 = vld [vmem:[%s16746_s9 + $0x3e0] sm:$0x3]  ;;  %v18619_v33 = vsel %vm1649_vm2, %v1867_v42, %v1869_v32 }
 0x157   : > { %22959 = vst [vmem:[#allocation270_spill] sm:$0xff] %v18581_v47  ;;  %14781 = vmatprep.mubr.msk.f32.mxu1 %vm395_vm1, %v18568_v6  ;;  %v16285_v47 = vld [vmem:[%s16746_s9 + $0x3d8] sm:$0xff]  ;;  %v18599_v56 = vpop.f32.mrf.mxu0  ;;  %22964 = vst [vmem:[#allocation275_spill] sm:$0xff] %v18604_v48  ;;  %v18607_v6 = vsel %vm3288_vm3, %v3505_v3, %v3506_v54  ;;  %v18622_v29 = vsel %vm3288_vm3, %v3506_v54, %v3508_v45 }
 0x158   : > { %v1871_v10 = vrot.slane %v16285_v47, 1  ;;  %v3510_v46 = vrot.slane %v16285_v47, 2  ;;  %22962 = vst [vmem:[#allocation273_spill] sm:$0xff] %v18599_v56  ;;  %v18601_v11 = vpop.f32.mrf.mxu1  ;;  %22965 = vst [vmem:[#allocation276_spill] sm:$0xff] %v18607_v6  ;;  %v1873_v47 = vrot.slane %v348_v60, 1 }
 0x159   : > { %22963 = vst [vmem:[#allocation274_spill] sm:$0xff] %v18601_v11  ;;  %v18610_v59 = vpop.f32.mrf.mxu0  ;;  %14976 = vmatmul.mubr.msk.f32.gmra.mxu0 %vm395_vm1, %v18596_v26  ;;  %22968 = vst [vmem:[#allocation279_spill] sm:$0xff] %v18619_v33  ;;  %v3512_v26 = vrot.slane %v348_v60, 2  ;;  %v16288_v60 = vld [vmem:[%s16746_s9 + $0x3f8] sm:$0xff] }
 0x15a   : > { %22966 = vst [vmem:[#allocation277_spill] sm:$0xff] %v18610_v59  ;;  %v18612_v21 = vpop.f32.mrf.mxu1  ;;  %14782 = vmatmul.mubr.msk.f32.gmra.mxu1 %vm395_vm1, %v18593_v0  ;;  %22969 = vst [vmem:[#allocation280_spill] sm:$0xff] %v18622_v29  ;;  %14978 = vmatprep.mubr.msk.f32.mxu0 %vm395_vm1, %v18607_v6  ;;  %v18629_v3 = vsel %vm1649_vm2, %v1869_v32, %v1871_v10  ;;  %v18632_v50 = vsel %vm3288_vm3, %v3508_v45, %v3510_v46  ;;  %v1878_v56 = vrot.slane %v16288_v60, 1 }
 0x15b   : > { %22967 = vst [vmem:[#allocation278_spill] sm:$0xff] %v18612_v21  ;;  %14784 = vmatprep.mubr.msk.f32.mxu1 %vm395_vm1, %v18604_v48  ;;  %22970 = vst [vmem:[#allocation281_spill] sm:$0xff] %v18629_v3  ;;  %v18634_v42 = vpop.f32.mrf.mxu0  ;;  %v16286_v21 = vld [vmem:[%s16746_s9 + $0x3e8] sm:$0xff]  ;;  %v16287_v48 = vld [vmem:[%s16746_s9 + $0x3f0] sm:$0xff] }
 0x15c   : > { %22971 = vst [vmem:[#allocation282_spill] sm:$0xff] %v18632_v50  ;;  %22972 = vst [vmem:[#allocation283_spill] sm:$0xff] %v18634_v42  ;;  %v18636_v54 = vpop.f32.mrf.mxu1  ;;  %v1875_v11 = vrot.slane %v16286_v21, 1  ;;  %v1876_v0 = vrot.slane %v16287_v48, 1  ;;  %v3514_v59 = vrot.slane %v16286_v21, 2  ;;  %v3515_v6 = vrot.slane %v16287_v48, 2 }
 0x15d   : > { %22973 = vst [vmem:[#allocation284_spill] sm:$0xff] %v18636_v54  ;;  %v14836_v45 = vpop.f32.mrf.mxu0  ;;  %14979 = vmatmul.mubr.msk.f32.gmra.mxu0 %vm395_vm1, %v18622_v29  ;;  %v3517_v42 = vrot.slane %v16288_v60, 2  ;;  %v1880_v54 = vrot.slane %v16289_v40, 1  ;;  %v18652_v48 = vsel %vm1649_vm2, %v1871_v10, %v1873_v47  ;;  %v18655_v21 = vsel %vm3288_vm3, %v3510_v46, %v3512_v26 }
 0x15e   : > { %v14642_v32 = vpop.f32.mrf.mxu1  ;;  %14785 = vmatmul.mubr.msk.f32.gmra.mxu1 %vm395_vm1, %v18619_v33  ;;  %14981 = vmatprep.mubr.msk.f32.mxu0 %vm395_vm1, %v18632_v50  ;;  %22974 = vst [vmem:[#allocation285_spill] sm:$0xff] %v18652_v48  ;;  %22975 = vst [vmem:[#allocation286_spill] sm:$0xff] %v18655_v21  ;;  %v3519_v29 = vrot.slane %v16289_v40, 2  ;;  %v353_v33 = vld [vmem:[%s16746_s9 + $0x408] sm:$0x3]  ;;  %v18659_v53 = vsel %vm1649_vm2, %v1875_v11, %v1876_v0  ;;  %v18672_v40 = vsel %vm1649_vm2, %v1876_v0, %v1878_v56 }
 0x15f   : > { %v3033_v14 = vadd.f32 %v14642_v32, %v17630_v23  ;;  %14787 = vmatprep.mubr.msk.f32.mxu1 %vm395_vm1, %v18629_v3  ;;  %v3904_v60 = vpop.f32.mrf.mxu0  ;;  %22976 = vst [vmem:[#allocation287_spill] sm:$0xff] %v18659_v53  ;;  %v18662_v23 = vsel %vm3288_vm3, %v3514_v59, %v3515_v6  ;;  %22979 = vst [vmem:[#allocation290_spill] sm:$0xff] %v18672_v40  ;;  %v18675_v10 = vsel %vm3288_vm3, %v3515_v6, %v3517_v42 }
 0x160   : > { %v2265_v20 = vpop.f32.mrf.mxu1  ;;  %22977 = vst [vmem:[#allocation288_spill] sm:$0xff] %v18662_v23  ;;  %22980 = vst [vmem:[#allocation291_spill] sm:$0xff] %v18675_v10  ;;  %v18688_v0 = vsel %vm3288_vm3, %v3517_v42, %v3519_v29  ;;  %v3521_v26 = vrot.slane %v353_v33, 2 }
 0x161   : > { %v18664_v32 = vadd.f32 %v14836_v45, %v3033_v14  ;;  %v3032_v50 = vadd.f32 %v2265_v20, %v17652_v36  ;;  %v14839_v46 = vpop.f32.mrf.mxu0  ;;  %14982 = vmatmul.mubr.msk.f32.gmra.mxu0 %vm395_vm1, %v18655_v21  ;;  %v18678_v14 = vsel %vm1649_vm2, %v1878_v56, %v1880_v54  ;;  %v1882_v36 = vrot.slane %v353_v33, 1  ;;  %22983 = vst [vmem:[#allocation294_spill] sm:$0xff] %v18688_v0  ;;  %v16290_v56 = vld [vmem:[%s16746_s9 + $0x410] sm:$0xff] }
 0x162   : > { %v14645_v3 = vpop.f32.mrf.mxu1  ;;  %14788 = vmatmul.mubr.msk.f32.gmra.mxu1 %vm395_vm1, %v18652_v48  ;;  %22981 = vst [vmem:[#allocation292_spill] sm:$0xff] %v18678_v14  ;;  %14984 = vmatprep.mubr.msk.f32.mxu0 %vm395_vm1, %v18662_v23  ;;  %v1884_v47 = vrot.slane %v16290_v56, 1  ;;  %v16292_v23 = vld [vmem:[%s16746_s9 + $0x420] sm:$0xff] }
 0x163   : > { %22978 = vst [vmem:[#allocation289_spill] sm:$0xff] %v18664_v32  ;;  %v18680_v20 = vadd.f32 %v3904_v60, %v3032_v50  ;;  %v3035_v11 = vadd.f32 %v14645_v3, %v17663_v12  ;;  %14790 = vmatprep.mubr.msk.f32.mxu1 %vm395_vm1, %v18659_v53  ;;  %v3914_v59 = vpop.f32.mrf.mxu0  ;;  %v16291_v50 = vld [vmem:[%s16746_s9 + $0x418] sm:$0xff]  ;;  %v3523_v60 = vrot.slane %v16290_v56, 2  ;;  %v18700_v42 = vsel %vm1649_vm2, %v1880_v54, %v1882_v36  ;;  %v358_v36 = vld [vmem:[%s16746_s9 + $0x430] sm:$0x3] }
 0x164   : > { %v2275_v6 = vpop.f32.mrf.mxu1  ;;  %v1885_v45 = vrot.slane %v16291_v50, 1  ;;  %v3524_v12 = vrot.slane %v16291_v50, 2  ;;  %22985 = vst [vmem:[#allocation296_spill] sm:$0xff] %v18700_v42  ;;  %v1887_v32 = vrot.slane %v16292_v23, 1  ;;  %v3526_v56 = vrot.slane %v16292_v23, 2  ;;  %v16293_v50 = vld [vmem:[%s16746_s9 + $0x428] sm:$0xff] }
 0x165   : > { %22982 = vst [vmem:[#allocation293_spill] sm:$0xff] %v18680_v20  ;;  %v18692_v3 = vadd.f32 %v14839_v46, %v3035_v11  ;;  %v3034_v21 = vadd.f32 %v2275_v6, %v17687_v16  ;;  %v14842_v33 = vpop.f32.mrf.mxu0  ;;  %14985 = vmatmul.mubr.msk.f32.gmra.mxu0 %vm395_vm1, %v18675_v10  ;;  %v1889_v46 = vrot.slane %v16293_v50, 1  ;;  %v18712_v6 = vsel %vm3288_vm3, %v3519_v29, %v3521_v26 }
 0x166   : > { %v14648_v20 = vpop.f32.mrf.mxu1  ;;  %14791 = vmatmul.mubr.msk.f32.gmra.mxu1 %vm395_vm1, %v18672_v40  ;;  %14987 = vmatprep.mubr.msk.f32.mxu0 %vm395_vm1, %v18688_v0  ;;  %22987 = vst [vmem:[#allocation298_spill] sm:$0xff] %v18712_v6  ;;  %v3528_v54 = vrot.slane %v16293_v50, 2  ;;  %v18716_v23 = vsel %vm1649_vm2, %v1884_v47, %v1885_v45  ;;  %v18729_v26 = vsel %vm1649_vm2, %v1885_v45, %v1887_v32  ;;  %v3530_v50 = vrot.slane %v358_v36, 2 }
 0x167   : > { %22984 = vst [vmem:[#allocation295_spill] sm:$0xff] %v18692_v3  ;;  %v18704_v11 = vadd.f32 %v3914_v59, %v3034_v21  ;;  %v3037_v16 = vadd.f32 %v14648_v20, %v17695_v41  ;;  %14793 = vmatprep.mubr.msk.f32.mxu1 %vm395_vm1, %v18678_v14  ;;  %v3924_v3 = vpop.f32.mrf.mxu0  ;;  %22988 = vst [vmem:[#allocation299_spill] sm:$0xff] %v18716_v23  ;;  %v18719_v21 = vsel %vm3288_vm3, %v3523_v60, %v3524_v12 }
 0x168   : > { %v2285_v10 = vpop.f32.mrf.mxu1  ;;  %22989 = vst [vmem:[#allocation300_spill] sm:$0xff] %v18719_v21  ;;  %22991 = vst [vmem:[#allocation302_spill] sm:$0xff] %v18729_v26  ;;  %v18732_v47 = vsel %vm3288_vm3, %v3524_v12, %v3526_v56  ;;  %v18735_v60 = vsel %vm1649_vm2, %v1887_v32, %v1889_v46  ;;  %v18745_v45 = vsel %vm3288_vm3, %v3526_v56, %v3528_v54  ;;  %v16294_v32 = vld [vmem:[%s16746_s9 + $0x438] sm:$0xff] }
 0x169   : > { %22986 = vst [vmem:[#allocation297_spill] sm:$0xff] %v18704_v11  ;;  %v18721_v41 = vadd.f32 %v14842_v33, %v3037_v16  ;;  %v3036_v20 = vadd.f32 %v2285_v10, %v17717_v51  ;;  %v14845_v29 = vpop.f32.mrf.mxu0  ;;  %14988 = vmatmul.mubr.msk.f32.gmra.mxu0 %vm395_vm1, %v18712_v6  ;;  %22992 = vst [vmem:[#allocation303_spill] sm:$0xff] %v18732_v47  ;;  %v1891_v51 = vrot.slane %v358_v36, 1  ;;  %v1893_v6 = vrot.slane %v16294_v32, 1 }
 0x16a   : > { %v14651_v59 = vpop.f32.mrf.mxu1  ;;  %14794 = vmatmul.mubr.msk.f32.gmra.mxu1 %vm395_vm1, %v18700_v42  ;;  %22993 = vst [vmem:[#allocation304_spill] sm:$0xff] %v18735_v60  ;;  %14990 = vmatprep.mubr.msk.f32.mxu0 %vm395_vm1, %v18719_v21  ;;  %22995 = vst [vmem:[#allocation306_spill] sm:$0xff] %v18745_v45  ;;  %v3532_v0 = vrot.slane %v16294_v32, 2  ;;  %v16296_v21 = vld [vmem:[%s16746_s9 + $0x448] sm:$0xff] }
 0x16b   : > { %22990 = vst [vmem:[#allocation301_spill] sm:$0xff] %v18721_v41  ;;  %v18737_v10 = vadd.f32 %v3924_v3, %v3036_v20  ;;  %v3039_v33 = vadd.f32 %v14651_v59, %v17728_v4  ;;  %14796 = vmatprep.mubr.msk.f32.mxu1 %vm395_vm1, %v18716_v23  ;;  %v3934_v16 = vpop.f32.mrf.mxu0  ;;  %v16295_v3 = vld [vmem:[%s16746_s9 + $0x440] sm:$0xff]  ;;  %v18757_v36 = vsel %vm1649_vm2, %v1889_v46, %v1891_v51  ;;  %v1896_v11 = vrot.slane %v16296_v21, 1  ;;  %v363_v51 = vld [vmem:[%s16746_s9 + $0x458] sm:$0x3] }
 0x16c   : > { %v2295_v12 = vpop.f32.mrf.mxu1  ;;  %v1894_v20 = vrot.slane %v16295_v3, 1  ;;  %v3533_v4 = vrot.slane %v16295_v3, 2  ;;  %22997 = vst [vmem:[#allocation308_spill] sm:$0xff] %v18757_v36  ;;  %v3535_v32 = vrot.slane %v16296_v21, 2  ;;  %v16297_v3 = vld [vmem:[%s16746_s9 + $0x450] sm:$0xff] }
 0x16d   : > { %22994 = vst [vmem:[#allocation305_spill] sm:$0xff] %v18737_v10  ;;  %v18749_v59 = vadd.f32 %v14845_v29, %v3039_v33  ;;  %v3038_v10 = vadd.f32 %v2295_v12, %v17752_v13  ;;  %v14848_v56 = vpop.f32.mrf.mxu0  ;;  %14991 = vmatmul.mubr.msk.f32.gmra.mxu0 %vm395_vm1, %v18732_v47  ;;  %v1898_v29 = vrot.slane %v16297_v3, 1  ;;  %v18769_v12 = vsel %vm3288_vm3, %v3528_v54, %v3530_v50 }
 0x16e   : > { %v14654_v41 = vpop.f32.mrf.mxu1  ;;  %14797 = vmatmul.mubr.msk.f32.gmra.mxu1 %vm395_vm1, %v18729_v26  ;;  %14993 = vmatprep.mubr.msk.f32.mxu0 %vm395_vm1, %v18745_v45  ;;  %22999 = vst [vmem:[#allocation310_spill] sm:$0xff] %v18769_v12  ;;  %v3537_v46 = vrot.slane %v16297_v3, 2  ;;  %v18773_v21 = vsel %vm1649_vm2, %v1893_v6, %v1894_v20  ;;  %v18786_v6 = vsel %vm1649_vm2, %v1894_v20, %v1896_v11  ;;  %v3539_v3 = vrot.slane %v363_v51, 2 }
 0x16f   : > { %22996 = vst [vmem:[#allocation307_spill] sm:$0xff] %v18749_v59  ;;  %v18761_v33 = vadd.f32 %v3934_v16, %v3038_v10  ;;  %v3041_v13 = vadd.f32 %v14654_v41, %v17760_v1  ;;  %14799 = vmatprep.mubr.msk.f32.mxu1 %vm395_vm1, %v18735_v60  ;;  %v3944_v59 = vpop.f32.mrf.mxu0  ;;  %23000 = vst [vmem:[#allocation311_spill] sm:$0xff] %v18773_v21  ;;  %v18776_v10 = vsel %vm3288_vm3, %v3532_v0, %v3533_v4 }
 0x170   : > { %v2305_v47 = vpop.f32.mrf.mxu1  ;;  %23001 = vst [vmem:[#allocation312_spill] sm:$0xff] %v18776_v10  ;;  %23003 = vst [vmem:[#allocation314_spill] sm:$0xff] %v18786_v6  ;;  %v18789_v0 = vsel %vm3288_vm3, %v3533_v4, %v3535_v32  ;;  %v18792_v50 = vsel %vm1649_vm2, %v1896_v11, %v1898_v29  ;;  %v18802_v20 = vsel %vm3288_vm3, %v3535_v32, %v3537_v46  ;;  %v16298_v11 = vld [vmem:[%s16746_s9 + $0x460] sm:$0xff] }
 0x171   : > { %22998 = vst [vmem:[#allocation309_spill] sm:$0xff] %v18761_v33  ;;  %v18778_v1 = vadd.f32 %v14848_v56, %v3041_v13  ;;  %v3040_v41 = vadd.f32 %v2305_v47, %v17782_v52  ;;  %v14851_v54 = vpop.f32.mrf.mxu0  ;;  %14994 = vmatmul.mubr.msk.f32.gmra.mxu0 %vm395_vm1, %v18769_v12  ;;  %23004 = vst [vmem:[#allocation315_spill] sm:$0xff] %v18789_v0  ;;  %v1900_v52 = vrot.slane %v363_v51, 1  ;;  %v1902_v12 = vrot.slane %v16298_v11, 1 }
 0x172   : > { %v14657_v16 = vpop.f32.mrf.mxu1  ;;  %14800 = vmatmul.mubr.msk.f32.gmra.mxu1 %vm395_vm1, %v18757_v36  ;;  %23005 = vst [vmem:[#allocation316_spill] sm:$0xff] %v18792_v50  ;;  %14996 = vmatprep.mubr.msk.f32.mxu0 %vm395_vm1, %v18776_v10  ;;  %23007 = vst [vmem:[#allocation318_spill] sm:$0xff] %v18802_v20  ;;  %v3541_v45 = vrot.slane %v16298_v11, 2  ;;  %v16300_v10 = vld [vmem:[%s16746_s9 + $0x470] sm:$0xff] }
 0x173   : > { %23002 = vst [vmem:[#allocation313_spill] sm:$0xff] %v18778_v1  ;;  %v18794_v47 = vadd.f32 %v3944_v59, %v3040_v41  ;;  %v3043_v56 = vadd.f32 %v14657_v16, %v17793_v43  ;;  %14802 = vmatprep.mubr.msk.f32.mxu1 %vm395_vm1, %v18773_v21  ;;  %v3954_v13 = vpop.f32.mrf.mxu0  ;;  %v16299_v59 = vld [vmem:[%s16746_s9 + $0x468] sm:$0xff]  ;;  %v18814_v51 = vsel %vm1649_vm2, %v1898_v29, %v1900_v52  ;;  %v1905_v33 = vrot.slane %v16300_v10, 1  ;;  %v368_v52 = vld [vmem:[%s16746_s9 + $0x480] sm:$0x3] }
 0x174   : > { %v2315_v4 = vpop.f32.mrf.mxu1  ;;  %v1903_v41 = vrot.slane %v16299_v59, 1  ;;  %v3542_v43 = vrot.slane %v16299_v59, 2  ;;  %23009 = vst [vmem:[#allocation320_spill] sm:$0xff] %v18814_v51  ;;  %v3544_v11 = vrot.slane %v16300_v10, 2  ;;  %v16301_v59 = vld [vmem:[%s16746_s9 + $0x478] sm:$0xff] }
 0x175   : > { %23006 = vst [vmem:[#allocation317_spill] sm:$0xff] %v18794_v47  ;;  %v18806_v16 = vadd.f32 %v14851_v54, %v3043_v56  ;;  %v3042_v47 = vadd.f32 %v2315_v4, %v17817_v37  ;;  %v14854_v32 = vpop.f32.mrf.mxu0  ;;  %14997 = vmatmul.mubr.msk.f32.gmra.mxu0 %vm395_vm1, %v18789_v0  ;;  %v1907_v54 = vrot.slane %v16301_v59, 1  ;;  %v18826_v4 = vsel %vm3288_vm3, %v3537_v46, %v3539_v3 }
 0x176   : > { %v14660_v1 = vpop.f32.mrf.mxu1  ;;  %14803 = vmatmul.mubr.msk.f32.gmra.mxu1 %vm395_vm1, %v18786_v6  ;;  %14999 = vmatprep.mubr.msk.f32.mxu0 %vm395_vm1, %v18802_v20  ;;  %23011 = vst [vmem:[#allocation322_spill] sm:$0xff] %v18826_v4  ;;  %v3546_v29 = vrot.slane %v16301_v59, 2  ;;  %v18830_v10 = vsel %vm1649_vm2, %v1902_v12, %v1903_v41  ;;  %v18843_v12 = vsel %vm1649_vm2, %v1903_v41, %v1905_v33  ;;  %v3548_v59 = vrot.slane %v368_v52, 2 }
 0x177   : > { %23008 = vst [vmem:[#allocation319_spill] sm:$0xff] %v18806_v16  ;;  %v18818_v56 = vadd.f32 %v3954_v13, %v3042_v47  ;;  %v3045_v37 = vadd.f32 %v14660_v1, %v17825_v31  ;;  %14805 = vmatprep.mubr.msk.f32.mxu1 %vm395_vm1, %v18792_v50  ;;  %v3964_v16 = vpop.f32.mrf.mxu0  ;;  %23012 = vst [vmem:[#allocation323_spill] sm:$0xff] %v18830_v10  ;;  %v18833_v47 = vsel %vm3288_vm3, %v3541_v45, %v3542_v43 }
 0x178   : > { %v2325_v0 = vpop.f32.mrf.mxu1  ;;  %23013 = vst [vmem:[#allocation324_spill] sm:$0xff] %v18833_v47  ;;  %23015 = vst [vmem:[#allocation326_spill] sm:$0xff] %v18843_v12  ;;  %v18846_v45 = vsel %vm3288_vm3, %v3542_v43, %v3544_v11  ;;  %v18849_v3 = vsel %vm1649_vm2, %v1905_v33, %v1907_v54  ;;  %v18859_v41 = vsel %vm3288_vm3, %v3544_v11, %v3546_v29  ;;  %v16302_v33 = vld [vmem:[%s16746_s9 + $0x488] sm:$0xff] }
 0x179   : > { %23010 = vst [vmem:[#allocation321_spill] sm:$0xff] %v18818_v56  ;;  %v18835_v31 = vadd.f32 %v14854_v32, %v3045_v37  ;;  %v3044_v1 = vadd.f32 %v2325_v0, %v17847_v57  ;;  %v14857_v46 = vpop.f32.mrf.mxu0  ;;  %15000 = vmatmul.mubr.msk.f32.gmra.mxu0 %vm395_vm1, %v18826_v4  ;;  %23016 = vst [vmem:[#allocation327_spill] sm:$0xff] %v18846_v45  ;;  %v1909_v57 = vrot.slane %v368_v52, 1  ;;  %v1911_v4 = vrot.slane %v16302_v33, 1 }
 0x17a   : > { %v14663_v13 = vpop.f32.mrf.mxu1  ;;  %14806 = vmatmul.mubr.msk.f32.gmra.mxu1 %vm395_vm1, %v18814_v51  ;;  %23017 = vst [vmem:[#allocation328_spill] sm:$0xff] %v18849_v3  ;;  %15002 = vmatprep.mubr.msk.f32.mxu0 %vm395_vm1, %v18833_v47  ;;  %23019 = vst [vmem:[#allocation330_spill] sm:$0xff] %v18859_v41  ;;  %v3550_v20 = vrot.slane %v16302_v33, 2  ;;  %v16304_v47 = vld [vmem:[%s16746_s9 + $0x498] sm:$0xff] }
 0x17b   : > { %23014 = vst [vmem:[#allocation325_spill] sm:$0xff] %v18835_v31  ;;  %v18851_v0 = vadd.f32 %v3964_v16, %v3044_v1  ;;  %v3047_v32 = vadd.f32 %v14663_v13, %v17858_v44  ;;  %14808 = vmatprep.mubr.msk.f32.mxu1 %vm395_vm1, %v18830_v10  ;;  %v3974_v37 = vpop.f32.mrf.mxu0  ;;  %v16303_v16 = vld [vmem:[%s16746_s9 + $0x490] sm:$0xff]  ;;  %v18871_v52 = vsel %vm1649_vm2, %v1907_v54, %v1909_v57  ;;  %v1914_v56 = vrot.slane %v16304_v47, 1  ;;  %v373_v57 = vld [vmem:[%s16746_s9 + $0x4a8] sm:$0x3] }
 0x17c   : > { %v2335_v43 = vpop.f32.mrf.mxu1  ;;  %v1912_v1 = vrot.slane %v16303_v16, 1  ;;  %v3551_v44 = vrot.slane %v16303_v16, 2  ;;  %23021 = vst [vmem:[#allocation332_spill] sm:$0xff] %v18871_v52  ;;  %v3553_v33 = vrot.slane %v16304_v47, 2  ;;  %v16305_v16 = vld [vmem:[%s16746_s9 + $0x4a0] sm:$0xff] }
 0x17d   : > { %23018 = vst [vmem:[#allocation329_spill] sm:$0xff] %v18851_v0  ;;  %v18863_v13 = vadd.f32 %v14857_v46, %v3047_v32  ;;  %v3046_v0 = vadd.f32 %v2335_v43, %v17882_v2  ;;  %v14860_v11 = vpop.f32.mrf.mxu0  ;;  %15003 = vmatmul.mubr.msk.f32.gmra.mxu0 %vm395_vm1, %v18846_v45  ;;  %v1916_v46 = vrot.slane %v16305_v16, 1  ;;  %v18883_v43 = vsel %vm3288_vm3, %v3546_v29, %v3548_v59 }
 0x17e   : > { %v14666_v31 = vpop.f32.mrf.mxu1  ;;  %14809 = vmatmul.mubr.msk.f32.gmra.mxu1 %vm395_vm1, %v18843_v12  ;;  %15005 = vmatprep.mubr.msk.f32.mxu0 %vm395_vm1, %v18859_v41  ;;  %23023 = vst [vmem:[#allocation334_spill] sm:$0xff] %v18883_v43  ;;  %v3555_v54 = vrot.slane %v16305_v16, 2  ;;  %v18887_v47 = vsel %vm1649_vm2, %v1911_v4, %v1912_v1  ;;  %v18900_v4 = vsel %vm1649_vm2, %v1912_v1, %v1914_v56  ;;  %v3557_v16 = vrot.slane %v373_v57, 2 }
 0x17f   : > { %23020 = vst [vmem:[#allocation331_spill] sm:$0xff] %v18863_v13  ;;  %v18875_v32 = vadd.f32 %v3974_v37, %v3046_v0  ;;  %v3049_v2 = vadd.f32 %v14666_v31, %v17890_v24  ;;  %14811 = vmatprep.mubr.msk.f32.mxu1 %vm395_vm1, %v18849_v3  ;;  %v3984_v13 = vpop.f32.mrf.mxu0  ;;  %23024 = vst [vmem:[#allocation335_spill] sm:$0xff] %v18887_v47  ;;  %v18890_v0 = vsel %vm3288_vm3, %v3550_v20, %v3551_v44 }
 0x180   : > { %v2345_v45 = vpop.f32.mrf.mxu1  ;;  %23025 = vst [vmem:[#allocation336_spill] sm:$0xff] %v18890_v0  ;;  %23027 = vst [vmem:[#allocation338_spill] sm:$0xff] %v18900_v4  ;;  %v18903_v20 = vsel %vm3288_vm3, %v3551_v44, %v3553_v33  ;;  %v18906_v59 = vsel %vm1649_vm2, %v1914_v56, %v1916_v46  ;;  %v18916_v1 = vsel %vm3288_vm3, %v3553_v33, %v3555_v54  ;;  %v16306_v56 = vld [vmem:[%s16746_s9 + $0x4b0] sm:$0xff] }
 0x181   : > { %23022 = vst [vmem:[#allocation333_spill] sm:$0xff] %v18875_v32  ;;  %v18892_v24 = vadd.f32 %v14860_v11, %v3049_v2  ;;  %v3048_v31 = vadd.f32 %v2345_v45, %v17912_v19  ;;  %v14863_v29 = vpop.f32.mrf.mxu0  ;;  %15006 = vmatmul.mubr.msk.f32.gmra.mxu0 %vm395_vm1, %v18883_v43  ;;  %23028 = vst [vmem:[#allocation339_spill] sm:$0xff] %v18903_v20  ;;  %v1918_v19 = vrot.slane %v373_v57, 1  ;;  %v1920_v43 = vrot.slane %v16306_v56, 1 }
 0x182   : > { %v14669_v37 = vpop.f32.mrf.mxu1  ;;  %14812 = vmatmul.mubr.msk.f32.gmra.mxu1 %vm395_vm1, %v18871_v52  ;;  %23029 = vst [vmem:[#allocation340_spill] sm:$0xff] %v18906_v59  ;;  %15008 = vmatprep.mubr.msk.f32.mxu0 %vm395_vm1, %v18890_v0  ;;  %23031 = vst [vmem:[#allocation342_spill] sm:$0xff] %v18916_v1  ;;  %v3559_v41 = vrot.slane %v16306_v56, 2  ;;  %v16308_v0 = vld [vmem:[%s16746_s9 + $0x4c0] sm:$0xff] }
 0x183   : > { %23026 = vst [vmem:[#allocation337_spill] sm:$0xff] %v18892_v24  ;;  %v18908_v45 = vadd.f32 %v3984_v13, %v3048_v31  ;;  %v3051_v11 = vadd.f32 %v14669_v37, %v17923_v55  ;;  %14814 = vmatprep.mubr.msk.f32.mxu1 %vm395_vm1, %v18887_v47  ;;  %v3994_v2 = vpop.f32.mrf.mxu0  ;;  %v16307_v13 = vld [vmem:[%s16746_s9 + $0x4b8] sm:$0xff]  ;;  %v18928_v57 = vsel %vm1649_vm2, %v1916_v46, %v1918_v19  ;;  %v1923_v32 = vrot.slane %v16308_v0, 1  ;;  %v378_v19 = vld [vmem:[%s16746_s9 + $0x4d0] sm:$0x3] }
 0x184   : > { %v2355_v44 = vpop.f32.mrf.mxu1  ;;  %v1921_v31 = vrot.slane %v16307_v13, 1  ;;  %v3560_v55 = vrot.slane %v16307_v13, 2  ;;  %23033 = vst [vmem:[#allocation344_spill] sm:$0xff] %v18928_v57  ;;  %v3562_v56 = vrot.slane %v16308_v0, 2  ;;  %v16309_v13 = vld [vmem:[%s16746_s9 + $0x4c8] sm:$0xff] }
 0x185   : > { %23030 = vst [vmem:[#allocation341_spill] sm:$0xff] %v18908_v45  ;;  %v18920_v37 = vadd.f32 %v14863_v29, %v3051_v11  ;;  %v3050_v45 = vadd.f32 %v2355_v44, %v17947_v5  ;;  %v14866_v33 = vpop.f32.mrf.mxu0  ;;  %15009 = vmatmul.mubr.msk.f32.gmra.mxu0 %vm395_vm1, %v18903_v20  ;;  %v1925_v29 = vrot.slane %v16309_v13, 1  ;;  %v18940_v44 = vsel %vm3288_vm3, %v3555_v54, %v3557_v16 }
 0x186   : > { %v14672_v24 = vpop.f32.mrf.mxu1  ;;  %14815 = vmatmul.mubr.msk.f32.gmra.mxu1 %vm395_vm1, %v18900_v4  ;;  %15011 = vmatprep.mubr.msk.f32.mxu0 %vm395_vm1, %v18916_v1  ;;  %23034 = vst [vmem:[#allocation345_spill] sm:$0xff] %v18940_v44  ;;  %v3564_v46 = vrot.slane %v16309_v13, 2  ;;  %v18944_v0 = vsel %vm1649_vm2, %v1920_v43, %v1921_v31  ;;  %v18957_v43 = vsel %vm1649_vm2, %v1921_v31, %v1923_v32  ;;  %v3566_v13 = vrot.slane %v378_v19, 2  ;;  %v16311_v1 = vld [vmem:[%s16746_s9 + $0x4e0] sm:$0xff] }
 0x187   : > { %23032 = vst [vmem:[#allocation343_spill] sm:$0xff] %v18920_v37  ;;  %v18932_v11 = vadd.f32 %v3994_v2, %v3050_v45  ;;  %v3053_v5 = vadd.f32 %v14672_v24, %v17955_v38  ;;  %14817 = vmatprep.mubr.msk.f32.mxu1 %vm395_vm1, %v18906_v59  ;;  %v4004_v37 = vpop.f32.mrf.mxu0  ;;  %23035 = vst [vmem:[#allocation346_spill] sm:$0xff] %v18944_v0  ;;  %v18947_v45 = vsel %vm3288_vm3, %v3559_v41, %v3560_v55 }
 0x188   : > { %v2365_v20 = vpop.f32.mrf.mxu1  ;;  %23036 = vst [vmem:[#allocation347_spill] sm:$0xff] %v18947_v45  ;;  %23038 = vst [vmem:[#allocation349_spill] sm:$0xff] %v18957_v43  ;;  %v18960_v41 = vsel %vm3288_vm3, %v3560_v55, %v3562_v56  ;;  %v18963_v16 = vsel %vm1649_vm2, %v1923_v32, %v1925_v29  ;;  %v18973_v31 = vsel %vm3288_vm3, %v3562_v56, %v3564_v46  ;;  %v16310_v32 = vld [vmem:[%s16746_s9 + $0x4d8] sm:$0xff] }
 0x189   : > { %v18949_v38 = vadd.f32 %v14866_v33, %v3053_v5  ;;  %v3052_v24 = vadd.f32 %v2365_v20, %v17977_v7  ;;  %v14869_v54 = vpop.f32.mrf.mxu0  ;;  %15012 = vmatmul.mubr.msk.f32.gmra.mxu0 %vm395_vm1, %v18940_v44  ;;  %23039 = vst [vmem:[#allocation350_spill] sm:$0xff] %v18960_v41  ;;  %23040 = vst [vmem:[#allocation351_spill] sm:$0xff] %v18963_v16  ;;  %v1927_v7 = vrot.slane %v378_v19, 1  ;;  %v1929_v44 = vrot.slane %v16310_v32, 1 }
 0x18a   : > { %v14675_v2 = vpop.f32.mrf.mxu1  ;;  %14818 = vmatmul.mubr.msk.f32.gmra.mxu1 %vm395_vm1, %v18928_v57  ;;  %15014 = vmatprep.mubr.msk.f32.mxu0 %vm395_vm1, %v18947_v45  ;;  %23042 = vst [vmem:[#allocation353_spill] sm:$0xff] %v18973_v31  ;;  %v16312_v45 = vld [vmem:[%s16746_s9 + $0x4e8] sm:$0xff] }
 0x18b   : > { %23037 = vst [vmem:[#allocation348_spill] sm:$0xff] %v18949_v38  ;;  %v18965_v20 = vadd.f32 %v4004_v37, %v3052_v24  ;;  %v3055_v33 = vadd.f32 %v14675_v2, %v17988_v27  ;;  %14820 = vmatprep.mubr.msk.f32.mxu1 %vm395_vm1, %v18944_v0  ;;  %v4014_v5 = vpop.f32.mrf.mxu0  ;;  %v1930_v37 = vrot.slane %v16311_v1, 1  ;;  %v3568_v24 = vrot.slane %v16310_v32, 2 }
 0x18c   : > { %v2375_v55 = vpop.f32.mrf.mxu1  ;;  %v18985_v19 = vsel %vm1649_vm2, %v1925_v29, %v1927_v7  ;;  %v1932_v32 = vrot.slane %v16312_v45, 1 }
 0x18d   : > { %23041 = vst [vmem:[#allocation352_spill] sm:$0xff] %v18965_v20  ;;  %v3569_v20 = vrot.slane %v16311_v1, 2  ;;  %v18977_v27 = vadd.f32 %v14869_v54, %v3055_v33  ;;  %v3054_v2 = vadd.f32 %v2375_v55, %v18012_v35  ;;  %v14872_v56 = vpop.f32.mrf.mxu0  ;;  %15015 = vmatmul.mubr.msk.f32.gmra.mxu0 %vm395_vm1, %v18960_v41  ;;  %23044 = vst [vmem:[#allocation355_spill] sm:$0xff] %v18985_v19  ;;  %v3571_v33 = vrot.slane %v16312_v45, 2  ;;  %v383_v55 = vld [vmem:[%s16746_s9 + $0x4f8] sm:$0x3] }
 0x18e   : > { %v14678_v38 = vpop.f32.mrf.mxu1  ;;  %14821 = vmatmul.mubr.msk.f32.gmra.mxu1 %vm395_vm1, %v18957_v43  ;;  %15017 = vmatprep.mubr.msk.f32.mxu0 %vm395_vm1, %v18973_v31  ;;  %v18996_v35 = vsel %vm3288_vm3, %v3564_v46, %v3566_v13  ;;  %v19000_v7 = vsel %vm1649_vm2, %v1929_v44, %v1930_v37  ;;  %v19014_v44 = vsel %vm1649_vm2, %v1930_v37, %v1932_v32  ;;  %v1936_v45 = vrot.slane %v383_v55, 1 }
 0x18f   : > { %23043 = vst [vmem:[#allocation354_spill] sm:$0xff] %v18977_v27  ;;  %v18988_v1 = vadd.f32 %v4014_v5, %v3054_v2  ;;  %v3057_v54 = vadd.f32 %v14678_v38, %v18020_v30  ;;  %14823 = vmatprep.mubr.msk.f32.mxu1 %vm395_vm1, %v18963_v16  ;;  %23046 = vst [vmem:[#allocation357_spill] sm:$0xff] %v18996_v35  ;;  %v4024_v29 = vpop.f32.mrf.mxu0  ;;  %v19003_v5 = vsel %vm3288_vm3, %v3568_v24, %v3569_v20  ;;  %v16313_v30 = vld [vmem:[%s16746_s9 + $0x4f0] sm:$0xff] }
 0x190   : > { %v2385_v41 = vpop.f32.mrf.mxu1  ;;  %23047 = vst [vmem:[#allocation358_spill] sm:$0xff] %v19000_v7  ;;  %23048 = vst [vmem:[#allocation359_spill] sm:$0xff] %v19003_v5  ;;  %v1934_v38 = vrot.slane %v16313_v30, 1  ;;  %v3573_v2 = vrot.slane %v16313_v30, 2 }
 0x191   : > { %23045 = vst [vmem:[#allocation356_spill] sm:$0xff] %v18988_v1  ;;  %v19006_v1 = vadd.f32 %v14872_v56, %v3057_v54  ;;  %v3056_v31 = vadd.f32 %v2385_v41, %v18042_v62  ;;  %v14875_v46 = vpop.f32.mrf.mxu0  ;;  %15018 = vmatmul.mubr.msk.f32.gmra.mxu0 %vm395_vm1, %v18996_v35  ;;  %23049 = vst [vmem:[#allocation360_spill] sm:$0xff] %v19014_v44  ;;  %v19024_v62 = vsel %vm3288_vm3, %v3569_v20, %v3571_v33  ;;  %v23080_v35 = vld [vmem:[#allocation209_spill] sm:$0xff] }
 0x192   : > { %v14681_v27 = vpop.f32.mrf.mxu1  ;;  %14824 = vmatmul.mubr.msk.f32.gmra.mxu1 %vm395_vm1, %v18985_v19  ;;  %15020 = vmatprep.mubr.msk.f32.mxu0 %vm395_vm1, %v19003_v5  ;;  %23050 = vst [vmem:[#allocation361_spill] sm:$0xff] %v19024_v62  ;;  %v3575_v41 = vrot.slane %v383_v55, 2  ;;  %v19027_v37 = vsel %vm1649_vm2, %v1932_v32, %v1934_v38  ;;  %v19040_v20 = vsel %vm1649_vm2, %v1934_v38, %v1936_v45 }
 0x193   : > { %v19016_v13 = vadd.f32 %v4024_v29, %v3056_v31  ;;  %v3059_v24 = vadd.f32 %v14681_v27, %v18053_v61  ;;  %14826 = vmatprep.mubr.msk.f32.mxu1 %vm395_vm1, %v19000_v7  ;;  %v4034_v54 = vpop.f32.mrf.mxu0  ;;  %23051 = vst [vmem:[#allocation362_spill] sm:$0xff] %v19027_v37  ;;  %v19030_v31 = vsel %vm3288_vm3, %v3571_v33, %v3573_v2  ;;  %23053 = vst [vmem:[#allocation364_spill] sm:$0xff] %v19040_v20 }
 0x194   : > { %v2395_v56 = vpop.f32.mrf.mxu1  ;;  %23052 = vst [vmem:[#allocation363_spill] sm:$0xff] %v19030_v31 }
 0x195   : > { %v19032_v29 = vadd.f32 %v14875_v46, %v3059_v24  ;;  %v3058_v61 = vadd.f32 %v2395_v56, %v18077_v9  ;;  %v14878_v30 = vpop.f32.mrf.mxu0  ;;  %15021 = vmatmul.mubr.msk.f32.gmra.mxu0 %vm395_vm1, %v19024_v62  ;;  %v19050_v9 = vsel %vm3288_vm3, %v3573_v2, %v3575_v41  ;;  %v16314_v41 = vld [vmem:[%s16746_s9 + $0x28] sm:$0xff] }
 0x196   : > { %v14684_v27 = vpop.f32.mrf.mxu1  ;;  %14827 = vmatmul.mubr.msk.f32.gmra.mxu1 %vm395_vm1, %v19014_v44  ;;  %15023 = vmatprep.mubr.msk.f32.mxu0 %vm395_vm1, %v19030_v31  ;;  %23054 = vst [vmem:[#allocation365_spill] sm:$0xff] %v19050_v9  ;;  %v23074_v62 = vld [vmem:[#allocation203_spill] sm:$0xff] }
 0x197   : > { %v19042_v32 = vadd.f32 %v4034_v54, %v3058_v61  ;;  %v3061_v33 = vadd.f32 %v14684_v27, %v18083_v22  ;;  %14829 = vmatprep.mubr.msk.f32.mxu1 %vm395_vm1, %v19027_v37  ;;  %v4044_v46 = vpop.f32.mrf.mxu0 }
 0x198   : > { %v2405_v55 = vpop.f32.mrf.mxu1 }
 0x199   : > { %v19052_v24 = vadd.f32 %v14878_v30, %v3061_v33  ;;  %v3060_v38 = vadd.f32 %v2405_v55, %v18103_v58  ;;  %v14881_v22 = vpop.f32.mrf.mxu0  ;;  %15024 = vmatmul.mubr.msk.f32.gmra.mxu0 %vm395_vm1, %v19050_v9  ;;  %v16315_v55 = vld [vmem:[%s16746_s9 + $0x30] sm:$0xff]  ;;  %v23068_v9 = vld [vmem:[#allocation193_spill] sm:$0xff] }
 0x19a   : > { %v14687_v45 = vpop.f32.mrf.mxu1  ;;  %14830 = vmatmul.mubr.msk.f32.gmra.mxu1 %vm395_vm1, %v19040_v20  ;;  %15222 = vmatprep.mubr.msk.f32.mxu0 %vm395_vm1, %v17259_v25 }
 0x19b   : > { %v19059_v56 = vadd.f32 %v4044_v46, %v3060_v38  ;;  %v3063_v2 = vadd.f32 %v14687_v45, %v18114_v39  ;;  %15028 = vmatprep.mubr.msk.f32.mxu1 %vm395_vm1, %v16314_v41  ;;  %v4054_v54 = vpop.f32.mrf.mxu0  ;;  %v16316_v46 = vld [vmem:[%s22172_s1 + $0x14] sm:$0xf]  ;;  %v16318_v45 = vld [vmem:[%s16746_s9 + $0x38] sm:$0xff] }
 0x19c   : > { %v2415_v58 = vpop.f32.mrf.mxu1 }
 0x19d   : > { %v19066_v61 = vadd.f32 %v14881_v22, %v3063_v2  ;;  %v3062_v27 = vadd.f32 %v2415_v58, %v18138_v63  ;;  %v14884_v33 = vpop.f32.mrf.mxu0  ;;  %15223 = vmatmul.mubr.msk.f32.vlgmr.msra.gmra.mxu0 %vm395_vm1, %v17268_v15  ;;  %v16317_v63 = vld [vmem:[%s22172_s1 + $0x18] sm:$0xf]  ;;  %v16319_v58 = vld [vmem:[%s16746_s9 + $0x40] sm:$0xff] }
 0x19e   : > { %v14690_v30 = vpop.f32.mrf.mxu1  ;;  %15029 = vmatmul.mubr.msk.f32.vlgmr.msra.gmra.mxu1 %vm395_vm1, %v16315_v55  ;;  %15609 = vmatpush3.msk.msra.mxu0 %vm780_vm0, %v16317_v63  ;;  %v23055_v55 = vld [vmem:[#allocation171_spill] sm:$0xff]  ;;  %v16321_v63 = vld [vmem:[%s16746_s9 + $0x58] sm:$0xff] }
 0x19f   : > { %v19073_v39 = vadd.f32 %v4054_v54, %v3062_v27  ;;  %v3065_v25 = vadd.f32 %v14690_v30, %v18144_v17  ;;  %15415 = vmatpush3.msk.msra.mxu1 %vm780_vm0, %v16316_v46  ;;  %v4064_v15 = vpop.f32.mrf.mxu0  ;;  %15031 = vmatprep.mubr.msk.f32.mxu1 %vm395_vm1, %v16318_v45  ;;  %v16320_v30 = vld [vmem:[%s16746_s9 + $0x50] sm:$0xff] }
 0x1a0   : > { %v2425_v38 = vpop.f32.mrf.mxu1  ;;  %15225 = vmatprep.mubr.msk.f32.mxu0 %vm395_vm1, %v17278_v18 }
 0x1a1   : > { %v19088_v17 = vadd.f32 %v14884_v33, %v3065_v25  ;;  %v3064_v22 = vadd.f32 %v2425_v38, %v18167_v49  ;;  %v14887_v41 = vpop.f32.mrf.mxu0  ;;  %15226 = vmatmul.mubr.msk.f32.gmra.mxu0 %vm395_vm1, %v17298_v34  ;;  %v23056_v38 = vld [vmem:[#allocation26_spill] sm:$0xff] }
 0x1a2   : > { %v14693_v2 = vpop.f32.mrf.mxu1  ;;  %15032 = vmatmul.mubr.msk.f32.gmra.mxu1 %vm395_vm1, %v16319_v58  ;;  %15228 = vmatprep.mubr.msk.f32.mxu0 %vm395_vm1, %v17306_v28 }
 0x1a3   : > { %v19095_v54 = vadd.f32 %v4064_v15, %v3064_v22  ;;  %v3067_v27 = vadd.f32 %v14693_v2, %v18182_v8  ;;  %15034 = vmatprep.mubr.msk.f32.mxu1 %vm395_vm1, %v16320_v30  ;;  %v4074_v49 = vpop.f32.mrf.mxu0  ;;  %v23057_v15 = vld [vmem:[#allocation173_spill] sm:$0xff]  ;;  %v16322_v22 = vld [vmem:[%s16746_s9 + $0x60] sm:$0xff]  ;;  %v23058_v2 = vld [vmem:[#allocation28_spill] sm:$0xff] }
 0x1a4   : > { %v2435_v18 = vpop.f32.mrf.mxu1  ;;  %v23059_v30 = vld [vmem:[#allocation177_spill] sm:$0xff] }
 0x1a5   : > { %v19102_v33 = vadd.f32 %v14887_v41, %v3067_v27  ;;  %v3066_v25 = vadd.f32 %v2435_v18, %v23055_v55  ;;  %v14890_v34 = vpop.f32.mrf.mxu0  ;;  %15229 = vmatmul.mubr.msk.f32.gmra.mxu0 %vm395_vm1, %v23056_v38  ;;  %v23063_v38 = vld [vmem:[#allocation187_spill] sm:$0xff] }
 0x1a6   : > { %v14696_v46 = vpop.f32.mrf.mxu1  ;;  %15035 = vmatmul.mubr.msk.f32.gmra.mxu1 %vm395_vm1, %v16321_v63  ;;  %15231 = vmatprep.mubr.msk.f32.mxu0 %vm395_vm1, %v23058_v2  ;;  %v16324_v2 = vld [vmem:[%s16746_s9 + $0x78] sm:$0xff] }
 0x1a7   : > { %v19109_v8 = vadd.f32 %v4074_v49, %v3066_v25  ;;  %v3069_v45 = vadd.f32 %v14696_v46, %v23057_v15  ;;  %15037 = vmatprep.mubr.msk.f32.mxu1 %vm395_vm1, %v16322_v22  ;;  %v4084_v58 = vpop.f32.mrf.mxu0  ;;  %v16323_v49 = vld [vmem:[%s16746_s9 + $0x68] sm:$0xff]  ;;  %v23060_v25 = vld [vmem:[#allocation30_spill] sm:$0xff]  ;;  %v23061_v15 = vld [vmem:[#allocation181_spill] sm:$0xff] }
 0x1a8   : > { %v2445_v41 = vpop.f32.mrf.mxu1 }
 0x1a9   : > { %v19116_v27 = vadd.f32 %v14890_v34, %v3069_v45  ;;  %v3068_v18 = vadd.f32 %v2445_v41, %v23059_v30  ;;  %v14893_v63 = vpop.f32.mrf.mxu0  ;;  %15232 = vmatmul.mubr.msk.f32.gmra.mxu0 %vm395_vm1, %v23060_v25  ;;  %v23062_v34 = vld [vmem:[#allocation32_spill] sm:$0xff] }
 0x1aa   : > { %v14699_v55 = vpop.f32.mrf.mxu1  ;;  %15038 = vmatmul.mubr.msk.f32.gmra.mxu1 %vm395_vm1, %v16323_v49  ;;  %15234 = vmatprep.mubr.msk.f32.mxu0 %vm395_vm1, %v23062_v34  ;;  %v16326_v34 = vld [vmem:[%s16746_s9 + $0x88] sm:$0xff] }
 0x1ab   : > { %v19123_v46 = vadd.f32 %v4084_v58, %v3068_v18  ;;  %v3071_v22 = vadd.f32 %v14699_v55, %v23061_v15  ;;  %15040 = vmatprep.mubr.msk.f32.mxu1 %vm395_vm1, %v16324_v2  ;;  %v4094_v41 = vpop.f32.mrf.mxu0  ;;  %v16325_v58 = vld [vmem:[%s16746_s9 + $0x80] sm:$0xff]  ;;  %v23065_v2 = vld [vmem:[#allocation189_spill] sm:$0xff] }
 0x1ac   : > { %v2455_v45 = vpop.f32.mrf.mxu1  ;;  %v23064_v18 = vld [vmem:[#allocation34_spill] sm:$0xff] }
 0x1ad   : > { %v19130_v30 = vadd.f32 %v14893_v63, %v3071_v22  ;;  %v3070_v49 = vadd.f32 %v2455_v45, %v23063_v38  ;;  %v14896_v25 = vpop.f32.mrf.mxu0  ;;  %15235 = vmatmul.mubr.msk.f32.gmra.mxu0 %vm395_vm1, %v23064_v18  ;;  %v23066_v63 = vld [vmem:[#allocation36_spill] sm:$0xff] }
 0x1ae   : > { %v14702_v28 = vpop.f32.mrf.mxu1  ;;  %15041 = vmatmul.mubr.msk.f32.gmra.mxu1 %vm395_vm1, %v16325_v58  ;;  %15237 = vmatprep.mubr.msk.f32.mxu0 %vm395_vm1, %v23066_v63  ;;  %v16328_v63 = vld [vmem:[%s16746_s9 + $0xa0] sm:$0xff] }
 0x1af   : > { %v19137_v55 = vadd.f32 %v4094_v41, %v3070_v49  ;;  %v3073_v15 = vadd.f32 %v14702_v28, %v23065_v2  ;;  %15043 = vmatprep.mubr.msk.f32.mxu1 %vm395_vm1, %v16326_v34  ;;  %v4104_v22 = vpop.f32.mrf.mxu0  ;;  %v16327_v41 = vld [vmem:[%s16746_s9 + $0x90] sm:$0xff]  ;;  %v23069_v49 = vld [vmem:[#allocation38_spill] sm:$0xff]  ;;  %v23071_v34 = vld [vmem:[#allocation197_spill] sm:$0xff] }
 0x1b0   : > { %v2465_v38 = vpop.f32.mrf.mxu1 }
 0x1b1   : > { %v19144_v45 = vadd.f32 %v14896_v25, %v3073_v15  ;;  %v3072_v58 = vadd.f32 %v2465_v38, %v23068_v9  ;;  %v14899_v18 = vpop.f32.mrf.mxu0  ;;  %15238 = vmatmul.mubr.msk.f32.gmra.mxu0 %vm395_vm1, %v23069_v49  ;;  %v23072_v25 = vld [vmem:[#allocation40_spill] sm:$0xff] }
 0x1b2   : > { %v14705_v31 = vpop.f32.mrf.mxu1  ;;  %15044 = vmatmul.mubr.msk.f32.gmra.mxu1 %vm395_vm1, %v16327_v41  ;;  %15240 = vmatprep.mubr.msk.f32.mxu0 %vm395_vm1, %v23072_v25  ;;  %v16330_v25 = vld [vmem:[%s16746_s9 + $0xb0] sm:$0xff] }
 0x1b3   : > { %23067 = vst [vmem:[#allocation171_spill] sm:$0xff] %v19144_v45  ;;  %v19151_v28 = vadd.f32 %v4104_v22, %v3072_v58  ;;  %v3075_v2 = vadd.f32 %v14705_v31, %v23071_v34  ;;  %15046 = vmatprep.mubr.msk.f32.mxu1 %vm395_vm1, %v16328_v63  ;;  %v4114_v15 = vpop.f32.mrf.mxu0  ;;  %v16329_v22 = vld [vmem:[%s16746_s9 + $0xa8] sm:$0xff]  ;;  %v23075_v58 = vld [vmem:[#allocation42_spill] sm:$0xff]  ;;  %v23077_v63 = vld [vmem:[#allocation205_spill] sm:$0xff] }
 0x1b4   : > { %v2475_v9 = vpop.f32.mrf.mxu1 }
 0x1b5   : > { %23070 = vst [vmem:[#allocation173_spill] sm:$0xff] %v19151_v28  ;;  %v19158_v38 = vadd.f32 %v14899_v18, %v3075_v2  ;;  %v3074_v41 = vadd.f32 %v2475_v9, %v23074_v62  ;;  %v14902_v49 = vpop.f32.mrf.mxu0  ;;  %15241 = vmatmul.mubr.msk.f32.gmra.mxu0 %vm395_vm1, %v23075_v58  ;;  %v23078_v18 = vld [vmem:[#allocation44_spill] sm:$0xff] }
 0x1b6   : > { %v14708_v5 = vpop.f32.mrf.mxu1  ;;  %15047 = vmatmul.mubr.msk.f32.gmra.mxu1 %vm395_vm1, %v16329_v22  ;;  %15243 = vmatprep.mubr.msk.f32.mxu0 %vm395_vm1, %v23078_v18  ;;  %v16332_v18 = vld [vmem:[%s16746_s9 + $0xc8] sm:$0xff] }
 0x1b7   : > { %23073 = vst [vmem:[#allocation177_spill] sm:$0xff] %v19158_v38  ;;  %v19165_v31 = vadd.f32 %v4114_v15, %v3074_v41  ;;  %v3077_v34 = vadd.f32 %v14708_v5, %v23077_v63  ;;  %15049 = vmatprep.mubr.msk.f32.mxu1 %vm395_vm1, %v16330_v25  ;;  %v4124_v2 = vpop.f32.mrf.mxu0  ;;  %v16331_v15 = vld [vmem:[%s16746_s9 + $0xb8] sm:$0xff]  ;;  %v23081_v41 = vld [vmem:[#allocation46_spill] sm:$0xff] }
 0x1b8   : > { %v2485_v62 = vpop.f32.mrf.mxu1  ;;  %v23083_v25 = vld [vmem:[#allocation213_spill] sm:$0xff] }
 0x1b9   : > { %23076 = vst [vmem:[#allocation181_spill] sm:$0xff] %v19165_v31  ;;  %v19172_v9 = vadd.f32 %v14902_v49, %v3077_v34  ;;  %v3076_v22 = vadd.f32 %v2485_v62, %v23080_v35  ;;  %v14905_v58 = vpop.f32.mrf.mxu0  ;;  %15244 = vmatmul.mubr.msk.f32.gmra.mxu0 %vm395_vm1, %v23081_v41  ;;  %v23084_v49 = vld [vmem:[#allocation48_spill] sm:$0xff] }
 0x1ba   : > { %v14711_v38 = vpop.f32.mrf.mxu1  ;;  %15050 = vmatmul.mubr.msk.f32.gmra.mxu1 %vm395_vm1, %v16331_v15  ;;  %15246 = vmatprep.mubr.msk.f32.mxu0 %vm395_vm1, %v23084_v49  ;;  %v16334_v49 = vld [vmem:[%s16746_s9 + $0xd8] sm:$0xff] }
 0x1bb   : > { %23079 = vst [vmem:[#allocation187_spill] sm:$0xff] %v19172_v9  ;;  %v19179_v5 = vadd.f32 %v4124_v2, %v3076_v22  ;;  %v3079_v63 = vadd.f32 %v14711_v38, %v23083_v25  ;;  %15052 = vmatprep.mubr.msk.f32.mxu1 %vm395_vm1, %v16332_v18  ;;  %v4134_v34 = vpop.f32.mrf.mxu0  ;;  %v23086_v9 = vld [vmem:[#allocation219_spill] sm:$0xff]  ;;  %v16333_v2 = vld [vmem:[%s16746_s9 + $0xd0] sm:$0xff]  ;;  %v23087_v22 = vld [vmem:[#allocation50_spill] sm:$0xff] }
 0x1bc   : > { %v2495_v35 = vpop.f32.mrf.mxu1  ;;  %v23089_v18 = vld [vmem:[#allocation221_spill] sm:$0xff] }
 0x1bd   : > { %23082 = vst [vmem:[#allocation189_spill] sm:$0xff] %v19179_v5  ;;  %v19186_v62 = vadd.f32 %v14905_v58, %v3079_v63  ;;  %v3078_v15 = vadd.f32 %v2495_v35, %v23086_v9  ;;  %v14908_v41 = vpop.f32.mrf.mxu0  ;;  %15247 = vmatmul.mubr.msk.f32.gmra.mxu0 %vm395_vm1, %v23087_v22  ;;  %v23090_v58 = vld [vmem:[#allocation52_spill] sm:$0xff] }
 0x1be   : > { %v14714_v31 = vpop.f32.mrf.mxu1  ;;  %15053 = vmatmul.mubr.msk.f32.gmra.mxu1 %vm395_vm1, %v16333_v2  ;;  %15249 = vmatprep.mubr.msk.f32.mxu0 %vm395_vm1, %v23090_v58  ;;  %v16336_v58 = vld [vmem:[%s16746_s9 + $0xf0] sm:$0xff] }
 0x1bf   : > { %23085 = vst [vmem:[#allocation193_spill] sm:$0xff] %v19186_v62  ;;  %v19193_v38 = vadd.f32 %v4134_v34, %v3078_v15  ;;  %v3081_v25 = vadd.f32 %v14714_v31, %v23089_v18  ;;  %15055 = vmatprep.mubr.msk.f32.mxu1 %vm395_vm1, %v16334_v49  ;;  %v4144_v63 = vpop.f32.mrf.mxu0  ;;  %v23092_v62 = vld [vmem:[#allocation225_spill] sm:$0xff]  ;;  %v16335_v34 = vld [vmem:[%s16746_s9 + $0xe0] sm:$0xff] }
 0x1c0   : > { %v2505_v9 = vpop.f32.mrf.mxu1  ;;  %v23093_v15 = vld [vmem:[#allocation54_spill] sm:$0xff]  ;;  %v23095_v49 = vld [vmem:[#allocation229_spill] sm:$0xff] }
 0x1c1   : > { %23088 = vst [vmem:[#allocation197_spill] sm:$0xff] %v19193_v38  ;;  %v19200_v35 = vadd.f32 %v14908_v41, %v3081_v25  ;;  %v3080_v2 = vadd.f32 %v2505_v9, %v23092_v62  ;;  %v14911_v22 = vpop.f32.mrf.mxu0  ;;  %15250 = vmatmul.mubr.msk.f32.gmra.mxu0 %vm395_vm1, %v23093_v15  ;;  %v23096_v41 = vld [vmem:[#allocation56_spill] sm:$0xff] }
 0x1c2   : > { %v14717_v5 = vpop.f32.mrf.mxu1  ;;  %15056 = vmatmul.mubr.msk.f32.gmra.mxu1 %vm395_vm1, %v16335_v34  ;;  %15252 = vmatprep.mubr.msk.f32.mxu0 %vm395_vm1, %v23096_v41  ;;  %v16338_v41 = vld [vmem:[%s16746_s9 + $0x100] sm:$0xff] }
 0x1c3   : > { %23091 = vst [vmem:[#allocation203_spill] sm:$0xff] %v19200_v35  ;;  %v19207_v31 = vadd.f32 %v4144_v63, %v3080_v2  ;;  %v3083_v18 = vadd.f32 %v14717_v5, %v23095_v49  ;;  %15058 = vmatprep.mubr.msk.f32.mxu1 %vm395_vm1, %v16336_v58  ;;  %v4154_v25 = vpop.f32.mrf.mxu0  ;;  %v23098_v35 = vld [vmem:[#allocation235_spill] sm:$0xff]  ;;  %v16337_v63 = vld [vmem:[%s16746_s9 + $0xf8] sm:$0xff]  ;;  %v23099_v2 = vld [vmem:[#allocation58_spill] sm:$0xff] }
 0x1c4   : > { %v2515_v62 = vpop.f32.mrf.mxu1  ;;  %v23101_v58 = vld [vmem:[#allocation237_spill] sm:$0xff] }
 0x1c5   : > { %23094 = vst [vmem:[#allocation205_spill] sm:$0xff] %v19207_v31  ;;  %v19214_v9 = vadd.f32 %v14911_v22, %v3083_v18  ;;  %v3082_v34 = vadd.f32 %v2515_v62, %v23098_v35  ;;  %v14914_v15 = vpop.f32.mrf.mxu0  ;;  %15253 = vmatmul.mubr.msk.f32.gmra.mxu0 %vm395_vm1, %v23099_v2  ;;  %v23102_v22 = vld [vmem:[#allocation60_spill] sm:$0xff] }
 0x1c6   : > { %v14720_v38 = vpop.f32.mrf.mxu1  ;;  %15059 = vmatmul.mubr.msk.f32.gmra.mxu1 %vm395_vm1, %v16337_v63  ;;  %15255 = vmatprep.mubr.msk.f32.mxu0 %vm395_vm1, %v23102_v22  ;;  %v16340_v22 = vld [vmem:[%s16746_s9 + $0x118] sm:$0xff] }
 0x1c7   : > { %23097 = vst [vmem:[#allocation209_spill] sm:$0xff] %v19214_v9  ;;  %v19221_v5 = vadd.f32 %v4154_v25, %v3082_v34  ;;  %v3085_v49 = vadd.f32 %v14720_v38, %v23101_v58  ;;  %15061 = vmatprep.mubr.msk.f32.mxu1 %vm395_vm1, %v16338_v41  ;;  %v4164_v18 = vpop.f32.mrf.mxu0  ;;  %v23104_v9 = vld [vmem:[#allocation241_spill] sm:$0xff]  ;;  %v16339_v25 = vld [vmem:[%s16746_s9 + $0x108] sm:$0xff]  ;;  %v23105_v34 = vld [vmem:[#allocation62_spill] sm:$0xff] }
 0x1c8   : > { %v2525_v35 = vpop.f32.mrf.mxu1  ;;  %v23107_v41 = vld [vmem:[#allocation245_spill] sm:$0xff] }
 0x1c9   : > { %23100 = vst [vmem:[#allocation213_spill] sm:$0xff] %v19221_v5  ;;  %v19228_v62 = vadd.f32 %v14914_v15, %v3085_v49  ;;  %v3084_v63 = vadd.f32 %v2525_v35, %v23104_v9  ;;  %v14917_v2 = vpop.f32.mrf.mxu0  ;;  %15256 = vmatmul.mubr.msk.f32.gmra.mxu0 %vm395_vm1, %v23105_v34  ;;  %v23108_v15 = vld [vmem:[#allocation64_spill] sm:$0xff] }
 0x1ca   : > { %v14723_v31 = vpop.f32.mrf.mxu1  ;;  %15062 = vmatmul.mubr.msk.f32.gmra.mxu1 %vm395_vm1, %v16339_v25  ;;  %15258 = vmatprep.mubr.msk.f32.mxu0 %vm395_vm1, %v23108_v15  ;;  %v16342_v15 = vld [vmem:[%s16746_s9 + $0x128] sm:$0xff] }
 0x1cb   : > { %23103 = vst [vmem:[#allocation219_spill] sm:$0xff] %v19228_v62  ;;  %v19235_v38 = vadd.f32 %v4164_v18, %v3084_v63  ;;  %v3087_v58 = vadd.f32 %v14723_v31, %v23107_v41  ;;  %15064 = vmatprep.mubr.msk.f32.mxu1 %vm395_vm1, %v16340_v22  ;;  %v4174_v49 = vpop.f32.mrf.mxu0  ;;  %v23110_v62 = vld [vmem:[#allocation251_spill] sm:$0xff]  ;;  %v16341_v18 = vld [vmem:[%s16746_s9 + $0x120] sm:$0xff]  ;;  %v23113_v22 = vld [vmem:[#allocation253_spill] sm:$0xff] }
 0x1cc   : > { %v2535_v9 = vpop.f32.mrf.mxu1  ;;  %v23111_v63 = vld [vmem:[#allocation66_spill] sm:$0xff] }
 0x1cd   : > { %23106 = vst [vmem:[#allocation221_spill] sm:$0xff] %v19235_v38  ;;  %v19242_v35 = vadd.f32 %v14917_v2, %v3087_v58  ;;  %v3086_v25 = vadd.f32 %v2535_v9, %v23110_v62  ;;  %v14920_v34 = vpop.f32.mrf.mxu0  ;;  %15259 = vmatmul.mubr.msk.f32.gmra.mxu0 %vm395_vm1, %v23111_v63  ;;  %v23114_v2 = vld [vmem:[#allocation68_spill] sm:$0xff] }
 0x1ce   : > { %v14726_v5 = vpop.f32.mrf.mxu1  ;;  %15065 = vmatmul.mubr.msk.f32.gmra.mxu1 %vm395_vm1, %v16341_v18  ;;  %15261 = vmatprep.mubr.msk.f32.mxu0 %vm395_vm1, %v23114_v2  ;;  %v16344_v2 = vld [vmem:[%s16746_s9 + $0x140] sm:$0xff] }
 0x1cf   : > { %23109 = vst [vmem:[#allocation225_spill] sm:$0xff] %v19242_v35  ;;  %v19249_v31 = vadd.f32 %v4174_v49, %v3086_v25  ;;  %v3089_v41 = vadd.f32 %v14726_v5, %v23113_v22  ;;  %15067 = vmatprep.mubr.msk.f32.mxu1 %vm395_vm1, %v16342_v15  ;;  %v4184_v58 = vpop.f32.mrf.mxu0  ;;  %v23116_v35 = vld [vmem:[#allocation257_spill] sm:$0xff]  ;;  %v16343_v49 = vld [vmem:[%s16746_s9 + $0x130] sm:$0xff]  ;;  %v23117_v25 = vld [vmem:[#allocation70_spill] sm:$0xff] }
 0x1d0   : > { %v2545_v62 = vpop.f32.mrf.mxu1  ;;  %v23119_v15 = vld [vmem:[#allocation261_spill] sm:$0xff] }
 0x1d1   : > { %23112 = vst [vmem:[#allocation229_spill] sm:$0xff] %v19249_v31  ;;  %v19256_v9 = vadd.f32 %v14920_v34, %v3089_v41  ;;  %v3088_v18 = vadd.f32 %v2545_v62, %v23116_v35  ;;  %v14923_v63 = vpop.f32.mrf.mxu0  ;;  %15262 = vmatmul.mubr.msk.f32.gmra.mxu0 %vm395_vm1, %v23117_v25  ;;  %v23120_v34 = vld [vmem:[#allocation72_spill] sm:$0xff] }
 0x1d2   : > { %v14729_v38 = vpop.f32.mrf.mxu1  ;;  %15068 = vmatmul.mubr.msk.f32.gmra.mxu1 %vm395_vm1, %v16343_v49  ;;  %15264 = vmatprep.mubr.msk.f32.mxu0 %vm395_vm1, %v23120_v34  ;;  %v16346_v34 = vld [vmem:[%s16746_s9 + $0x150] sm:$0xff] }
 0x1d3   : > { %23115 = vst [vmem:[#allocation235_spill] sm:$0xff] %v19256_v9  ;;  %v19263_v5 = vadd.f32 %v4184_v58, %v3088_v18  ;;  %v3091_v22 = vadd.f32 %v14729_v38, %v23119_v15  ;;  %15070 = vmatprep.mubr.msk.f32.mxu1 %vm395_vm1, %v16344_v2  ;;  %v4194_v41 = vpop.f32.mrf.mxu0  ;;  %v23122_v9 = vld [vmem:[#allocation267_spill] sm:$0xff]  ;;  %v23123_v18 = vld [vmem:[#allocation74_spill] sm:$0xff]  ;;  %v23125_v2 = vld [vmem:[#allocation269_spill] sm:$0xff] }
 0x1d4   : > { %v2555_v35 = vpop.f32.mrf.mxu1  ;;  %v16345_v58 = vld [vmem:[%s16746_s9 + $0x148] sm:$0xff] }
 0x1d5   : > { %23118 = vst [vmem:[#allocation237_spill] sm:$0xff] %v19263_v5  ;;  %v19270_v62 = vadd.f32 %v14923_v63, %v3091_v22  ;;  %v3090_v49 = vadd.f32 %v2555_v35, %v23122_v9  ;;  %v14926_v25 = vpop.f32.mrf.mxu0  ;;  %15265 = vmatmul.mubr.msk.f32.gmra.mxu0 %vm395_vm1, %v23123_v18  ;;  %v23126_v63 = vld [vmem:[#allocation76_spill] sm:$0xff] }
 0x1d6   : > { %v14732_v31 = vpop.f32.mrf.mxu1  ;;  %15071 = vmatmul.mubr.msk.f32.gmra.mxu1 %vm395_vm1, %v16345_v58  ;;  %15267 = vmatprep.mubr.msk.f32.mxu0 %vm395_vm1, %v23126_v63  ;;  %v16348_v63 = vld [vmem:[%s16746_s9 + $0x168] sm:$0xff] }
 0x1d7   : > { %23121 = vst [vmem:[#allocation241_spill] sm:$0xff] %v19270_v62  ;;  %v19277_v38 = vadd.f32 %v4194_v41, %v3090_v49  ;;  %v3093_v15 = vadd.f32 %v14732_v31, %v23125_v2  ;;  %15073 = vmatprep.mubr.msk.f32.mxu1 %vm395_vm1, %v16346_v34  ;;  %v4204_v22 = vpop.f32.mrf.mxu0  ;;  %v23128_v62 = vld [vmem:[#allocation273_spill] sm:$0xff]  ;;  %v23129_v49 = vld [vmem:[#allocation79_spill] sm:$0xff] }
 0x1d8   : > { %v2565_v9 = vpop.f32.mrf.mxu1  ;;  %v16347_v41 = vld [vmem:[%s16746_s9 + $0x158] sm:$0xff] }
 0x1d9   : > { %23124 = vst [vmem:[#allocation245_spill] sm:$0xff] %v19277_v38  ;;  %v19284_v35 = vadd.f32 %v14926_v25, %v3093_v15  ;;  %v3092_v58 = vadd.f32 %v2565_v9, %v23128_v62  ;;  %v14929_v18 = vpop.f32.mrf.mxu0  ;;  %15268 = vmatmul.mubr.msk.f32.gmra.mxu0 %vm395_vm1, %v23129_v49  ;;  %v23131_v34 = vld [vmem:[#allocation277_spill] sm:$0xff]  ;;  %v23132_v25 = vld [vmem:[#allocation82_spill] sm:$0xff] }
 0x1da   : > { %v14735_v5 = vpop.f32.mrf.mxu1  ;;  %15074 = vmatmul.mubr.msk.f32.gmra.mxu1 %vm395_vm1, %v16347_v41  ;;  %15270 = vmatprep.mubr.msk.f32.mxu0 %vm395_vm1, %v23132_v25  ;;  %v16350_v25 = vld [vmem:[%s16746_s9 + $0x178] sm:$0xff] }
 0x1db   : > { %23127 = vst [vmem:[#allocation251_spill] sm:$0xff] %v19284_v35  ;;  %v19291_v31 = vadd.f32 %v4204_v22, %v3092_v58  ;;  %v3095_v2 = vadd.f32 %v14735_v5, %v23131_v34  ;;  %15076 = vmatprep.mubr.msk.f32.mxu1 %vm395_vm1, %v16348_v63  ;;  %v4214_v15 = vpop.f32.mrf.mxu0  ;;  %v23134_v35 = vld [vmem:[#allocation283_spill] sm:$0xff]  ;;  %v16349_v22 = vld [vmem:[%s16746_s9 + $0x170] sm:$0xff]  ;;  %v23135_v58 = vld [vmem:[#allocation85_spill] sm:$0xff] }
 0x1dc   : > { %v2575_v62 = vpop.f32.mrf.mxu1  ;;  %v23137_v63 = vld [vmem:[#allocation78_spill] sm:$0xff] }
 0x1dd   : > { %23130 = vst [vmem:[#allocation253_spill] sm:$0xff] %v19291_v31  ;;  %v19298_v9 = vadd.f32 %v14929_v18, %v3095_v2  ;;  %v3094_v41 = vadd.f32 %v2575_v62, %v23134_v35  ;;  %v14932_v49 = vpop.f32.mrf.mxu0  ;;  %15271 = vmatmul.mubr.msk.f32.gmra.mxu0 %vm395_vm1, %v23135_v58  ;;  %v23138_v18 = vld [vmem:[#allocation87_spill] sm:$0xff] }
 0x1de   : > { %v14738_v38 = vpop.f32.mrf.mxu1  ;;  %15077 = vmatmul.mubr.msk.f32.gmra.mxu1 %vm395_vm1, %v16349_v22  ;;  %15273 = vmatprep.mubr.msk.f32.mxu0 %vm395_vm1, %v23138_v18  ;;  %v16352_v18 = vld [vmem:[%s16746_s9 + $0x190] sm:$0xff] }
 0x1df   : > { %23133 = vst [vmem:[#allocation257_spill] sm:$0xff] %v19298_v9  ;;  %v19305_v5 = vadd.f32 %v4214_v15, %v3094_v41  ;;  %v3097_v34 = vadd.f32 %v14738_v38, %v23137_v63  ;;  %15079 = vmatprep.mubr.msk.f32.mxu1 %vm395_vm1, %v16350_v25  ;;  %v4224_v2 = vpop.f32.mrf.mxu0  ;;  %v23140_v9 = vld [vmem:[#allocation81_spill] sm:$0xff]  ;;  %v16351_v15 = vld [vmem:[%s16746_s9 + $0x180] sm:$0xff]  ;;  %v23141_v41 = vld [vmem:[#allocation91_spill] sm:$0xff] }
 0x1e0   : > { %v2585_v35 = vpop.f32.mrf.mxu1  ;;  %v23143_v25 = vld [vmem:[#allocation84_spill] sm:$0xff] }
 0x1e1   : > { %23136 = vst [vmem:[#allocation261_spill] sm:$0xff] %v19305_v5  ;;  %v19312_v62 = vadd.f32 %v14932_v49, %v3097_v34  ;;  %v3096_v22 = vadd.f32 %v2585_v35, %v23140_v9  ;;  %v14935_v58 = vpop.f32.mrf.mxu0  ;;  %15274 = vmatmul.mubr.msk.f32.gmra.mxu0 %vm395_vm1, %v23141_v41  ;;  %v23144_v49 = vld [vmem:[#allocation94_spill] sm:$0xff] }
 0x1e2   : > { %v14741_v31 = vpop.f32.mrf.mxu1  ;;  %15080 = vmatmul.mubr.msk.f32.gmra.mxu1 %vm395_vm1, %v16351_v15  ;;  %15276 = vmatprep.mubr.msk.f32.mxu0 %vm395_vm1, %v23144_v49  ;;  %v16354_v49 = vld [vmem:[%s16746_s9 + $0x1a0] sm:$0xff] }
 0x1e3   : > { %23139 = vst [vmem:[#allocation267_spill] sm:$0xff] %v19312_v62  ;;  %v19319_v38 = vadd.f32 %v4224_v2, %v3096_v22  ;;  %v3099_v63 = vadd.f32 %v14741_v31, %v23143_v25  ;;  %15082 = vmatprep.mubr.msk.f32.mxu1 %vm395_vm1, %v16352_v18  ;;  %v4234_v34 = vpop.f32.mrf.mxu0  ;;  %v23146_v62 = vld [vmem:[#allocation89_spill] sm:$0xff]  ;;  %v23149_v18 = vld [vmem:[#allocation90_spill] sm:$0xff] }
 0x1e4   : > { %v2595_v9 = vpop.f32.mrf.mxu1  ;;  %v16353_v2 = vld [vmem:[%s16746_s9 + $0x198] sm:$0xff] }
 0x1e5   : > { %23142 = vst [vmem:[#allocation269_spill] sm:$0xff] %v19319_v38  ;;  %v19326_v35 = vadd.f32 %v14935_v58, %v3099_v63  ;;  %v3098_v15 = vadd.f32 %v2595_v9, %v23146_v62  ;;  %v14938_v41 = vpop.f32.mrf.mxu0  ;;  %v23147_v22 = vld [vmem:[#allocation97_spill] sm:$0xff]  ;;  %v23150_v58 = vld [vmem:[#allocation99_spill] sm:$0xff] }
 0x1e6   : > { %v14744_v5 = vpop.f32.mrf.mxu1  ;;  %15083 = vmatmul.mubr.msk.f32.gmra.mxu1 %vm395_vm1, %v16353_v2  ;;  %15277 = vmatmul.mubr.msk.f32.gmra.mxu0 %vm395_vm1, %v23147_v22 }
 0x1e7   : > { %23145 = vst [vmem:[#allocation273_spill] sm:$0xff] %v19326_v35  ;;  %v19333_v31 = vadd.f32 %v4234_v34, %v3098_v15  ;;  %v3101_v25 = vadd.f32 %v14744_v5, %v23149_v18  ;;  %15085 = vmatprep.mubr.msk.f32.mxu1 %vm395_vm1, %v16354_v49  ;;  %15279 = vmatprep.mubr.msk.f32.mxu0 %vm395_vm1, %v23150_v58  ;;  %v4244_v63 = vpop.f32.mrf.mxu0  ;;  %v23152_v35 = vld [vmem:[#allocation93_spill] sm:$0xff]  ;;  %v16355_v34 = vld [vmem:[%s16746_s9 + $0x1a8] sm:$0xff]  ;;  %v23155_v49 = vld [vmem:[#allocation96_spill] sm:$0xff] }
 0x1e8   : > { %v2605_v62 = vpop.f32.mrf.mxu1  ;;  %v23153_v15 = vld [vmem:[#allocation103_spill] sm:$0xff]  ;;  %v16356_v58 = vld [vmem:[%s16746_s9 + $0x1b8] sm:$0xff] }
 0x1e9   : > { %23148 = vst [vmem:[#allocation277_spill] sm:$0xff] %v19333_v31  ;;  %v19340_v9 = vadd.f32 %v14938_v41, %v3101_v25  ;;  %v3100_v2 = vadd.f32 %v2605_v62, %v23152_v35  ;;  %v14941_v22 = vpop.f32.mrf.mxu0  ;;  %v23156_v41 = vld [vmem:[#allocation106_spill] sm:$0xff] }
 0x1ea   : > { %v14747_v38 = vpop.f32.mrf.mxu1  ;;  %15086 = vmatmul.mubr.msk.f32.gmra.mxu1 %vm395_vm1, %v16355_v34  ;;  %15280 = vmatmul.mubr.msk.f32.gmra.mxu0 %vm395_vm1, %v23153_v15 }
 0x1eb   : > { %23151 = vst [vmem:[#allocation283_spill] sm:$0xff] %v19340_v9  ;;  %v19347_v5 = vadd.f32 %v4244_v63, %v3100_v2  ;;  %v3103_v18 = vadd.f32 %v14747_v38, %v23155_v49  ;;  %15088 = vmatprep.mubr.msk.f32.mxu1 %vm395_vm1, %v16356_v58  ;;  %15282 = vmatprep.mubr.msk.f32.mxu0 %vm395_vm1, %v23156_v41  ;;  %v4254_v25 = vpop.f32.mrf.mxu0  ;;  %v23158_v9 = vld [vmem:[#allocation101_spill] sm:$0xff]  ;;  %v16357_v63 = vld [vmem:[%s16746_s9 + $0x1c0] sm:$0xff]  ;;  %v16358_v41 = vld [vmem:[%s16746_s9 + $0x1c8] sm:$0xff] }
 0x1ec   : > { %v2615_v35 = vpop.f32.mrf.mxu1  ;;  %v23159_v2 = vld [vmem:[#allocation109_spill] sm:$0xff]  ;;  %v23161_v58 = vld [vmem:[#allocation102_spill] sm:$0xff] }
 0x1ed   : > { %23154 = vst [vmem:[#allocation78_spill] sm:$0xff] %v19347_v5  ;;  %v19354_v62 = vadd.f32 %v14941_v22, %v3103_v18  ;;  %v3102_v34 = vadd.f32 %v2615_v35, %v23158_v9  ;;  %v14944_v15 = vpop.f32.mrf.mxu0  ;;  %v23162_v22 = vld [vmem:[#allocation111_spill] sm:$0xff] }
 0x1ee   : > { %v14750_v31 = vpop.f32.mrf.mxu1  ;;  %15089 = vmatmul.mubr.msk.f32.gmra.mxu1 %vm395_vm1, %v16357_v63  ;;  %15283 = vmatmul.mubr.msk.f32.gmra.mxu0 %vm395_vm1, %v23159_v2 }
 0x1ef   : > { %23157 = vst [vmem:[#allocation81_spill] sm:$0xff] %v19354_v62  ;;  %v19361_v38 = vadd.f32 %v4254_v25, %v3102_v34  ;;  %v3105_v49 = vadd.f32 %v14750_v31, %v23161_v58  ;;  %15091 = vmatprep.mubr.msk.f32.mxu1 %vm395_vm1, %v16358_v41  ;;  %15285 = vmatprep.mubr.msk.f32.mxu0 %vm395_vm1, %v23162_v22  ;;  %v4264_v18 = vpop.f32.mrf.mxu0  ;;  %v23164_v62 = vld [vmem:[#allocation105_spill] sm:$0xff]  ;;  %v16359_v25 = vld [vmem:[%s16746_s9 + $0x1d0] sm:$0xff]  ;;  %v23165_v34 = vld [vmem:[#allocation6_spill] sm:$0xff] }
 0x1f0   : > { %v2625_v9 = vpop.f32.mrf.mxu1  ;;  %v23167_v41 = vld [vmem:[#allocation108_spill] sm:$0xff]  ;;  %v16360_v22 = vld [vmem:[%s16746_s9 + $0x1e0] sm:$0xff] }
 0x1f1   : > { %23160 = vst [vmem:[#allocation84_spill] sm:$0xff] %v19361_v38  ;;  %v19368_v35 = vadd.f32 %v14944_v15, %v3105_v49  ;;  %v3104_v63 = vadd.f32 %v2625_v9, %v23164_v62  ;;  %v14947_v2 = vpop.f32.mrf.mxu0  ;;  %v23168_v15 = vld [vmem:[#allocation116_spill] sm:$0xff] }
 0x1f2   : > { %v14753_v5 = vpop.f32.mrf.mxu1  ;;  %15092 = vmatmul.mubr.msk.f32.gmra.mxu1 %vm395_vm1, %v16359_v25  ;;  %15286 = vmatmul.mubr.msk.f32.gmra.mxu0 %vm395_vm1, %v23165_v34 }
 0x1f3   : > { %23163 = vst [vmem:[#allocation89_spill] sm:$0xff] %v19368_v35  ;;  %v19375_v31 = vadd.f32 %v4264_v18, %v3104_v63  ;;  %v3107_v58 = vadd.f32 %v14753_v5, %v23167_v41  ;;  %15094 = vmatprep.mubr.msk.f32.mxu1 %vm395_vm1, %v16360_v22  ;;  %15288 = vmatprep.mubr.msk.f32.mxu0 %vm395_vm1, %v23168_v15  ;;  %v4274_v49 = vpop.f32.mrf.mxu0  ;;  %v23170_v35 = vld [vmem:[#allocation113_spill] sm:$0xff]  ;;  %v16361_v18 = vld [vmem:[%s16746_s9 + $0x1e8] sm:$0xff]  ;;  %v23173_v22 = vld [vmem:[#allocation114_spill] sm:$0xff] }
 0x1f4   : > { %v2635_v62 = vpop.f32.mrf.mxu1  ;;  %v23171_v63 = vld [vmem:[#allocation119_spill] sm:$0xff]  ;;  %v16362_v15 = vld [vmem:[%s16746_s9 + $0x1f0] sm:$0xff] }
 0x1f5   : > { %23166 = vst [vmem:[#allocation90_spill] sm:$0xff] %v19375_v31  ;;  %v19382_v9 = vadd.f32 %v14947_v2, %v3107_v58  ;;  %v3106_v25 = vadd.f32 %v2635_v62, %v23170_v35  ;;  %v14950_v34 = vpop.f32.mrf.mxu0  ;;  %v23174_v2 = vld [vmem:[#allocation121_spill] sm:$0xff] }
 0x1f6   : > { %v14756_v38 = vpop.f32.mrf.mxu1  ;;  %15095 = vmatmul.mubr.msk.f32.gmra.mxu1 %vm395_vm1, %v16361_v18  ;;  %15289 = vmatmul.mubr.msk.f32.gmra.mxu0 %vm395_vm1, %v23171_v63 }
 0x1f7   : > { %23169 = vst [vmem:[#allocation93_spill] sm:$0xff] %v19382_v9  ;;  %v19389_v5 = vadd.f32 %v4274_v49, %v3106_v25  ;;  %v3109_v41 = vadd.f32 %v14756_v38, %v23173_v22  ;;  %15097 = vmatprep.mubr.msk.f32.mxu1 %vm395_vm1, %v16362_v15  ;;  %15291 = vmatprep.mubr.msk.f32.mxu0 %vm395_vm1, %v23174_v2  ;;  %v4284_v58 = vpop.f32.mrf.mxu0  ;;  %v23176_v9 = vld [vmem:[#allocation7_spill] sm:$0xff]  ;;  %v16363_v49 = vld [vmem:[%s16746_s9 + $0x1f8] sm:$0xff]  ;;  %v23179_v15 = vld [vmem:[#allocation118_spill] sm:$0xff] }
 0x1f8   : > { %v2645_v35 = vpop.f32.mrf.mxu1  ;;  %v23177_v25 = vld [vmem:[#allocation9_spill] sm:$0xff]  ;;  %v16364_v2 = vld [vmem:[%s16746_s9 + $0x208] sm:$0xff] }
 0x1f9   : > { %23172 = vst [vmem:[#allocation96_spill] sm:$0xff] %v19389_v5  ;;  %v19396_v62 = vadd.f32 %v14950_v34, %v3109_v41  ;;  %v3108_v18 = vadd.f32 %v2645_v35, %v23176_v9  ;;  %v14953_v63 = vpop.f32.mrf.mxu0  ;;  %v23180_v34 = vld [vmem:[#allocation124_spill] sm:$0xff] }
 0x1fa   : > { %v14759_v31 = vpop.f32.mrf.mxu1  ;;  %15098 = vmatmul.mubr.msk.f32.gmra.mxu1 %vm395_vm1, %v16363_v49  ;;  %15292 = vmatmul.mubr.msk.f32.gmra.mxu0 %vm395_vm1, %v23177_v25 }
 0x1fb   : > { %23175 = vst [vmem:[#allocation101_spill] sm:$0xff] %v19396_v62  ;;  %v19403_v38 = vadd.f32 %v4284_v58, %v3108_v18  ;;  %v3111_v22 = vadd.f32 %v14759_v31, %v23179_v15  ;;  %15100 = vmatprep.mubr.msk.f32.mxu1 %vm395_vm1, %v16364_v2  ;;  %15294 = vmatprep.mubr.msk.f32.mxu0 %vm395_vm1, %v23180_v34  ;;  %v4294_v41 = vpop.f32.mrf.mxu0  ;;  %v23182_v62 = vld [vmem:[#allocation123_spill] sm:$0xff]  ;;  %v16365_v58 = vld [vmem:[%s16746_s9 + $0x210] sm:$0xff]  ;;  %v16366_v34 = vld [vmem:[%s16746_s9 + $0x218] sm:$0xff] }
 0x1fc   : > { %v2655_v9 = vpop.f32.mrf.mxu1  ;;  %v23183_v18 = vld [vmem:[#allocation127_spill] sm:$0xff]  ;;  %v23185_v2 = vld [vmem:[#allocation8_spill] sm:$0xff] }
 0x1fd   : > { %23178 = vst [vmem:[#allocation102_spill] sm:$0xff] %v19403_v38  ;;  %v19410_v35 = vadd.f32 %v14953_v63, %v3111_v22  ;;  %v3110_v49 = vadd.f32 %v2655_v9, %v23182_v62  ;;  %v14956_v25 = vpop.f32.mrf.mxu0  ;;  %v23186_v63 = vld [vmem:[#allocation129_spill] sm:$0xff] }
 0x1fe   : > { %v14762_v5 = vpop.f32.mrf.mxu1  ;;  %15101 = vmatmul.mubr.msk.f32.gmra.mxu1 %vm395_vm1, %v16365_v58  ;;  %15295 = vmatmul.mubr.msk.f32.gmra.mxu0 %vm395_vm1, %v23183_v18 }
 0x1ff   : > { %23181 = vst [vmem:[#allocation105_spill] sm:$0xff] %v19410_v35  ;;  %v19417_v31 = vadd.f32 %v4294_v41, %v3110_v49  ;;  %v3113_v15 = vadd.f32 %v14762_v5, %v23185_v2  ;;  %15103 = vmatprep.mubr.msk.f32.mxu1 %vm395_vm1, %v16366_v34  ;;  %15297 = vmatprep.mubr.msk.f32.mxu0 %vm395_vm1, %v23186_v63  ;;  %v4304_v22 = vpop.f32.mrf.mxu0  ;;  %v23188_v35 = vld [vmem:[#allocation11_spill] sm:$0xff]  ;;  %v16367_v41 = vld [vmem:[%s16746_s9 + $0x220] sm:$0xff]  ;;  %v23189_v49 = vld [vmem:[#allocation13_spill] sm:$0xff] }
 0x200   : > { %v2665_v62 = vpop.f32.mrf.mxu1  ;;  %v23191_v34 = vld [vmem:[#allocation126_spill] sm:$0xff]  ;;  %v16368_v63 = vld [vmem:[%s16746_s9 + $0x230] sm:$0xff] }
 0x201   : > { %23184 = vst [vmem:[#allocation108_spill] sm:$0xff] %v19417_v31  ;;  %v19424_v9 = vadd.f32 %v14956_v25, %v3113_v15  ;;  %v3112_v58 = vadd.f32 %v2665_v62, %v23188_v35  ;;  %v14959_v18 = vpop.f32.mrf.mxu0  ;;  %v23192_v25 = vld [vmem:[#allocation132_spill] sm:$0xff] }
 0x202   : > { %v14765_v38 = vpop.f32.mrf.mxu1  ;;  %15104 = vmatmul.mubr.msk.f32.gmra.mxu1 %vm395_vm1, %v16367_v41  ;;  %15298 = vmatmul.mubr.msk.f32.gmra.mxu0 %vm395_vm1, %v23189_v49 }
 0x203   : > { %23187 = vst [vmem:[#allocation113_spill] sm:$0xff] %v19424_v9  ;;  %v19431_v5 = vadd.f32 %v4304_v22, %v3112_v58  ;;  %v3115_v2 = vadd.f32 %v14765_v38, %v23191_v34  ;;  %15106 = vmatprep.mubr.msk.f32.mxu1 %vm395_vm1, %v16368_v63  ;;  %15300 = vmatprep.mubr.msk.f32.mxu0 %vm395_vm1, %v23192_v25  ;;  %v4314_v15 = vpop.f32.mrf.mxu0  ;;  %v23194_v9 = vld [vmem:[#allocation131_spill] sm:$0xff]  ;;  %v16369_v22 = vld [vmem:[%s16746_s9 + $0x238] sm:$0xff]  ;;  %v23197_v63 = vld [vmem:[#allocation12_spill] sm:$0xff] }
 0x204   : > { %v2675_v35 = vpop.f32.mrf.mxu1  ;;  %v23195_v58 = vld [vmem:[#allocation135_spill] sm:$0xff]  ;;  %v16370_v25 = vld [vmem:[%s16746_s9 + $0x240] sm:$0xff] }
 0x205   : > { %23190 = vst [vmem:[#allocation114_spill] sm:$0xff] %v19431_v5  ;;  %v19438_v62 = vadd.f32 %v14959_v18, %v3115_v2  ;;  %v3114_v41 = vadd.f32 %v2675_v35, %v23194_v9  ;;  %v14962_v49 = vpop.f32.mrf.mxu0  ;;  %v23198_v18 = vld [vmem:[#allocation137_spill] sm:$0xff] }
 0x206   : > { %v14768_v31 = vpop.f32.mrf.mxu1  ;;  %15107 = vmatmul.mubr.msk.f32.gmra.mxu1 %vm395_vm1, %v16369_v22  ;;  %15301 = vmatmul.mubr.msk.f32.gmra.mxu0 %vm395_vm1, %v23195_v58 }
 0x207   : > { %23193 = vst [vmem:[#allocation7_spill] sm:$0xff] %v19438_v62  ;;  %v19445_v38 = vadd.f32 %v4314_v15, %v3114_v41  ;;  %v3117_v34 = vadd.f32 %v14768_v31, %v23197_v63  ;;  %15109 = vmatprep.mubr.msk.f32.mxu1 %vm395_vm1, %v16370_v25  ;;  %15303 = vmatprep.mubr.msk.f32.mxu0 %vm395_vm1, %v23198_v18  ;;  %v4324_v2 = vpop.f32.mrf.mxu0  ;;  %v23200_v62 = vld [vmem:[#allocation15_spill] sm:$0xff]  ;;  %v23201_v41 = vld [vmem:[#allocation17_spill] sm:$0xff]  ;;  %v23203_v25 = vld [vmem:[#allocation134_spill] sm:$0xff] }
 0x208   : > { %v2685_v9 = vpop.f32.mrf.mxu1  ;;  %v16371_v15 = vld [vmem:[%s16746_s9 + $0x248] sm:$0xff]  ;;  %v16372_v18 = vld [vmem:[%s16746_s9 + $0x258] sm:$0xff] }
 0x209   : > { %23196 = vst [vmem:[#allocation118_spill] sm:$0xff] %v19445_v38  ;;  %v19452_v35 = vadd.f32 %v14962_v49, %v3117_v34  ;;  %v3116_v22 = vadd.f32 %v2685_v9, %v23200_v62  ;;  %v14965_v58 = vpop.f32.mrf.mxu0  ;;  %v23204_v49 = vld [vmem:[#allocation140_spill] sm:$0xff] }
 0x20a   : > { %v14771_v5 = vpop.f32.mrf.mxu1  ;;  %15110 = vmatmul.mubr.msk.f32.gmra.mxu1 %vm395_vm1, %v16371_v15  ;;  %15304 = vmatmul.mubr.msk.f32.gmra.mxu0 %vm395_vm1, %v23201_v41 }
 0x20b   : > { %23199 = vst [vmem:[#allocation123_spill] sm:$0xff] %v19452_v35  ;;  %v19459_v31 = vadd.f32 %v4324_v2, %v3116_v22  ;;  %v3119_v63 = vadd.f32 %v14771_v5, %v23203_v25  ;;  %15112 = vmatprep.mubr.msk.f32.mxu1 %vm395_vm1, %v16372_v18  ;;  %15306 = vmatprep.mubr.msk.f32.mxu0 %vm395_vm1, %v23204_v49  ;;  %v4334_v34 = vpop.f32.mrf.mxu0  ;;  %v23206_v35 = vld [vmem:[#allocation139_spill] sm:$0xff]  ;;  %v16373_v2 = vld [vmem:[%s16746_s9 + $0x260] sm:$0xff]  ;;  %v23209_v18 = vld [vmem:[#allocation16_spill] sm:$0xff] }
 0x20c   : > { %v2695_v62 = vpop.f32.mrf.mxu1  ;;  %v23207_v22 = vld [vmem:[#allocation143_spill] sm:$0xff] }
 0x20d   : > { %23202 = vst [vmem:[#allocation8_spill] sm:$0xff] %v19459_v31  ;;  %v19466_v9 = vadd.f32 %v14965_v58, %v3119_v63  ;;  %v3118_v15 = vadd.f32 %v2695_v62, %v23206_v35  ;;  %v14968_v41 = vpop.f32.mrf.mxu0  ;;  %v16374_v49 = vld [vmem:[%s16746_s9 + $0x268] sm:$0xff]  ;;  %v23210_v58 = vld [vmem:[#allocation145_spill] sm:$0xff] }
 0x20e   : > { %v14774_v38 = vpop.f32.mrf.mxu1  ;;  %15113 = vmatmul.mubr.msk.f32.gmra.mxu1 %vm395_vm1, %v16373_v2  ;;  %15307 = vmatmul.mubr.msk.f32.gmra.mxu0 %vm395_vm1, %v23207_v22 }
 0x20f   : > { %23205 = vst [vmem:[#allocation11_spill] sm:$0xff] %v19466_v9  ;;  %v19473_v5 = vadd.f32 %v4334_v34, %v3118_v15  ;;  %v3121_v25 = vadd.f32 %v14774_v38, %v23209_v18  ;;  %15115 = vmatprep.mubr.msk.f32.mxu1 %vm395_vm1, %v16374_v49  ;;  %15309 = vmatprep.mubr.msk.f32.mxu0 %vm395_vm1, %v23210_v58  ;;  %v4344_v63 = vpop.f32.mrf.mxu0  ;;  %v23212_v9 = vld [vmem:[#allocation19_spill] sm:$0xff]  ;;  %v16375_v34 = vld [vmem:[%s16746_s9 + $0x270] sm:$0xff]  ;;  %v23213_v15 = vld [vmem:[#allocation149_spill] sm:$0xff] }
 0x210   : > { %v2705_v35 = vpop.f32.mrf.mxu1  ;;  %v23215_v49 = vld [vmem:[#allocation142_spill] sm:$0xff] }
 0x211   : > { %23208 = vst [vmem:[#allocation126_spill] sm:$0xff] %v19473_v5  ;;  %v19480_v62 = vadd.f32 %v14968_v41, %v3121_v25  ;;  %v3120_v2 = vadd.f32 %v2705_v35, %v23212_v9  ;;  %v14971_v22 = vpop.f32.mrf.mxu0  ;;  %v16376_v58 = vld [vmem:[%s16746_s9 + $0x280] sm:$0xff]  ;;  %v23216_v41 = vld [vmem:[#allocation152_spill] sm:$0xff] }
 0x212   : > { %v14777_v31 = vpop.f32.mrf.mxu1  ;;  %15116 = vmatmul.mubr.msk.f32.gmra.mxu1 %vm395_vm1, %v16375_v34  ;;  %15310 = vmatmul.mubr.msk.f32.gmra.mxu0 %vm395_vm1, %v23213_v15 }
 0x213   : > { %23211 = vst [vmem:[#allocation131_spill] sm:$0xff] %v19480_v62  ;;  %v19487_v38 = vadd.f32 %v4344_v63, %v3120_v2  ;;  %v3123_v18 = vadd.f32 %v14777_v31, %v23215_v49  ;;  %15118 = vmatprep.mubr.msk.f32.mxu1 %vm395_vm1, %v16376_v58  ;;  %15312 = vmatprep.mubr.msk.f32.mxu0 %vm395_vm1, %v23216_v41  ;;  %v4354_v25 = vpop.f32.mrf.mxu0  ;;  %v23218_v62 = vld [vmem:[#allocation147_spill] sm:$0xff]  ;;  %v23221_v58 = vld [vmem:[#allocation148_spill] sm:$0xff] }
 0x214   : > { %v2715_v9 = vpop.f32.mrf.mxu1  ;;  %v16377_v63 = vld [vmem:[%s16746_s9 + $0x288] sm:$0xff]  ;;  %v16378_v41 = vld [vmem:[%s16746_s9 + $0x290] sm:$0xff] }
 0x215   : > { %23214 = vst [vmem:[#allocation12_spill] sm:$0xff] %v19487_v38  ;;  %v19494_v35 = vadd.f32 %v14971_v22, %v3123_v18  ;;  %v3122_v34 = vadd.f32 %v2715_v9, %v23218_v62  ;;  %v14974_v15 = vpop.f32.mrf.mxu0  ;;  %v23219_v2 = vld [vmem:[#allocation155_spill] sm:$0xff]  ;;  %v23222_v22 = vld [vmem:[#allocation157_spill] sm:$0xff] }
 0x216   : > { %v14780_v5 = vpop.f32.mrf.mxu1  ;;  %15119 = vmatmul.mubr.msk.f32.gmra.mxu1 %vm395_vm1, %v16377_v63  ;;  %15313 = vmatmul.mubr.msk.f32.gmra.mxu0 %vm395_vm1, %v23219_v2 }
 0x217   : > { %23217 = vst [vmem:[#allocation15_spill] sm:$0xff] %v19494_v35  ;;  %v19501_v31 = vadd.f32 %v4354_v25, %v3122_v34  ;;  %v3125_v49 = vadd.f32 %v14780_v5, %v23221_v58  ;;  %15121 = vmatprep.mubr.msk.f32.mxu1 %vm395_vm1, %v16378_v41  ;;  %15315 = vmatprep.mubr.msk.f32.mxu0 %vm395_vm1, %v23222_v22  ;;  %v4364_v18 = vpop.f32.mrf.mxu0  ;;  %v23224_v35 = vld [vmem:[#allocation151_spill] sm:$0xff]  ;;  %v16379_v25 = vld [vmem:[%s16746_s9 + $0x298] sm:$0xff]  ;;  %v23227_v41 = vld [vmem:[#allocation154_spill] sm:$0xff] }
 0x218   : > { %v2725_v62 = vpop.f32.mrf.mxu1  ;;  %v23225_v34 = vld [vmem:[#allocation161_spill] sm:$0xff]  ;;  %v16380_v22 = vld [vmem:[%s16746_s9 + $0x2a8] sm:$0xff] }
 0x219   : > { %23220 = vst [vmem:[#allocation134_spill] sm:$0xff] %v19501_v31  ;;  %v19508_v9 = vadd.f32 %v14974_v15, %v3125_v49  ;;  %v3124_v63 = vadd.f32 %v2725_v62, %v23224_v35  ;;  %v14977_v2 = vpop.f32.mrf.mxu0  ;;  %v23228_v15 = vld [vmem:[#allocation164_spill] sm:$0xff] }
 0x21a   : > { %v14783_v38 = vpop.f32.mrf.mxu1  ;;  %15122 = vmatmul.mubr.msk.f32.gmra.mxu1 %vm395_vm1, %v16379_v25  ;;  %15316 = vmatmul.mubr.msk.f32.gmra.mxu0 %vm395_vm1, %v23225_v34  ;;  %v16381_v34 = vld [vmem:[%s16746_s9 + $0x2b0] sm:$0xff] }
 0x21b   : > { %23223 = vst [vmem:[#allocation139_spill] sm:$0xff] %v19508_v9  ;;  %v19515_v5 = vadd.f32 %v4364_v18, %v3124_v63  ;;  %v3127_v58 = vadd.f32 %v14783_v38, %v23227_v41  ;;  %15124 = vmatprep.mubr.msk.f32.mxu1 %vm395_vm1, %v16380_v22  ;;  %15318 = vmatprep.mubr.msk.f32.mxu0 %vm395_vm1, %v23228_v15  ;;  %v4374_v49 = vpop.f32.mrf.mxu0  ;;  %v23230_v9 = vld [vmem:[#allocation159_spill] sm:$0xff]  ;;  %v23233_v22 = vld [vmem:[#allocation160_spill] sm:$0xff]  ;;  %v16382_v41 = vld [vmem:[%s16746_s9 + $0x2b8] sm:$0xff] }
 0x21c   : > { %v2735_v35 = vpop.f32.mrf.mxu1  ;;  %v23231_v18 = vld [vmem:[#allocation167_spill] sm:$0xff] }
 0x21d   : > { %23226 = vst [vmem:[#allocation16_spill] sm:$0xff] %v19515_v5  ;;  %v19522_v62 = vadd.f32 %v14977_v2, %v3127_v58  ;;  %v3126_v25 = vadd.f32 %v2735_v35, %v23230_v9  ;;  %v14980_v28 = vpop.f32.mrf.mxu0  ;;  %v23234_v2 = vld [vmem:[#allocation169_spill] sm:$0xff]  ;;  %v16386_v5 = vld [vmem:[%s16746_s9 + $0x2e0] sm:$0xff] }
 0x21e   : > { %v14786_v31 = vpop.f32.mrf.mxu1  ;;  %15125 = vmatmul.mubr.msk.f32.gmra.mxu1 %vm395_vm1, %v16381_v34  ;;  %15319 = vmatmul.mubr.msk.f32.gmra.mxu0 %vm395_vm1, %v23231_v18  ;;  %v19539_v9 = vld [vmem:[%s22172_s1 + $0x1c] sm:$0xf]  ;;  %v23237_v18 = vld [vmem:[#allocation175_spill] sm:$0xff] }
 0x21f   : > { %23229 = vst [vmem:[#allocation19_spill] sm:$0xff] %v19522_v62  ;;  %v19529_v38 = vadd.f32 %v4374_v49, %v3126_v25  ;;  %v3129_v63 = vadd.f32 %v14786_v31, %v23233_v22  ;;  %15127 = vmatprep.mubr.msk.f32.mxu1 %vm395_vm1, %v16382_v41  ;;  %15321 = vmatprep.mubr.msk.f32.mxu0 %vm395_vm1, %v23234_v2  ;;  %v4384_v58 = vpop.f32.mrf.mxu0  ;;  %v23236_v31 = vld [vmem:[#allocation163_spill] sm:$0xff]  ;;  %v19549_v25 = vld [vmem:[%s22172_s1 + $0x20] sm:$0xf]  ;;  %v23242_v62 = vld [vmem:[#allocation172_spill] sm:$0xff] }
 0x220   : > { %v2745_v34 = vpop.f32.mrf.mxu1  ;;  %15802 = vmatprep.subr.msk.mxu1 %vm780_vm0, %v19539_v9  ;;  %v16383_v2 = vld [vmem:[%s16746_s9 + $0x2c0] sm:$0xff]  ;;  %15996 = vmatprep.subr.msk.mxu0 %vm780_vm0, %v19549_v25 }
 0x221   : > { %23232 = vst [vmem:[#allocation142_spill] sm:$0xff] %v19529_v38  ;;  %v19543_v35 = vadd.f32 %v14980_v28, %v3129_v63  ;;  %v3128_v49 = vadd.f32 %v2745_v34, %v23236_v31  ;;  %v14983_v41 = vpop.f32.mrf.mxu0  ;;  %v23239_v28 = vld [vmem:[#allocation166_spill] sm:$0xff]  ;;  %v16384_v34 = vld [vmem:[%s16746_s9 + $0x2d0] sm:$0xff]  ;;  %v23240_v31 = vld [vmem:[#allocation179_spill] sm:$0xff] }
 0x222   : > { %v14789_v22 = vpop.f32.mrf.mxu1  ;;  %15128 = vmatmul.mubr.msk.f32.gmra.mxu1 %vm395_vm1, %v16383_v2  ;;  %15322 = vmatmul.mubr.msk.f32.gmra.mxu0 %vm395_vm1, %v23237_v18 }
 0x223   : > { %23235 = vst [vmem:[#allocation147_spill] sm:$0xff] %v19543_v35  ;;  %v19555_v15 = vadd.f32 %v4384_v58, %v3128_v49  ;;  %v3131_v63 = vadd.f32 %v14789_v22, %v23239_v28  ;;  %15130 = vmatprep.mubr.msk.f32.mxu1 %vm395_vm1, %v16384_v34  ;;  %15324 = vmatprep.mubr.msk.f32.mxu0 %vm395_vm1, %v23240_v31  ;;  %v4394_v38 = vpop.f32.mrf.mxu0  ;;  %v16385_v22 = vld [vmem:[%s16746_s9 + $0x2d8] sm:$0xff]  ;;  %v23243_v28 = vld [vmem:[#allocation183_spill] sm:$0xff]  ;;  %v23245_v31 = vld [vmem:[#allocation174_spill] sm:$0xff] }
 0x224   : > { %v2755_v35 = vpop.f32.mrf.mxu1 }
 0x225   : > { %23238 = vst [vmem:[#allocation148_spill] sm:$0xff] %v19555_v15  ;;  %v19564_v2 = vadd.f32 %v14983_v41, %v3131_v63  ;;  %v3130_v18 = vadd.f32 %v2755_v35, %v23242_v62  ;;  %v14986_v49 = vpop.f32.mrf.mxu0  ;;  %v23246_v41 = vld [vmem:[#allocation185_spill] sm:$0xff] }
 0x226   : > { %v14792_v58 = vpop.f32.mrf.mxu1  ;;  %15131 = vmatmul.mubr.msk.f32.gmra.mxu1 %vm395_vm1, %v16385_v22  ;;  %15325 = vmatmul.mubr.msk.f32.gmra.mxu0 %vm395_vm1, %v23243_v28 }
 0x227   : > { %23241 = vst [vmem:[#allocation151_spill] sm:$0xff] %v19564_v2  ;;  %v19571_v34 = vadd.f32 %v4394_v38, %v3130_v18  ;;  %v3133_v15 = vadd.f32 %v14792_v58, %v23245_v31  ;;  %15133 = vmatprep.mubr.msk.f32.mxu1 %vm395_vm1, %v16386_v5  ;;  %15327 = vmatprep.mubr.msk.f32.mxu0 %vm395_vm1, %v23246_v41  ;;  %v4404_v35 = vpop.f32.mrf.mxu0  ;;  %v23248_v2 = vld [vmem:[#allocation178_spill] sm:$0xff]  ;;  %v16387_v18 = vld [vmem:[%s16746_s9 + $0x2e8] sm:$0xff]  ;;  %v16388_v41 = vld [vmem:[%s16746_s9 + $0x2f8] sm:$0xff] }
 0x228   : > { %v2765_v62 = vpop.f32.mrf.mxu1  ;;  %v23249_v38 = vld [vmem:[#allocation191_spill] sm:$0xff]  ;;  %v23251_v5 = vld [vmem:[#allocation182_spill] sm:$0xff] }
 0x229   : > { %23244 = vst [vmem:[#allocation154_spill] sm:$0xff] %v19571_v34  ;;  %v19578_v63 = vadd.f32 %v14986_v49, %v3133_v15  ;;  %v3132_v22 = vadd.f32 %v2765_v62, %v23248_v2  ;;  %v14989_v28 = vpop.f32.mrf.mxu0  ;;  %v23252_v15 = vld [vmem:[#allocation195_spill] sm:$0xff] }
 0x22a   : > { %v14795_v45 = vpop.f32.mrf.mxu1  ;;  %15134 = vmatmul.mubr.msk.f32.gmra.mxu1 %vm395_vm1, %v16387_v18  ;;  %15328 = vmatmul.mubr.msk.f32.gmra.mxu0 %vm395_vm1, %v23249_v38 }
 0x22b   : > { %23247 = vst [vmem:[#allocation159_spill] sm:$0xff] %v19578_v63  ;;  %v19585_v31 = vadd.f32 %v4404_v35, %v3132_v22  ;;  %v3135_v58 = vadd.f32 %v14795_v45, %v23251_v5  ;;  %15136 = vmatprep.mubr.msk.f32.mxu1 %vm395_vm1, %v16388_v41  ;;  %15330 = vmatprep.mubr.msk.f32.mxu0 %vm395_vm1, %v23252_v15  ;;  %v4414_v49 = vpop.f32.mrf.mxu0  ;;  %v23254_v63 = vld [vmem:[#allocation188_spill] sm:$0xff]  ;;  %v16389_v35 = vld [vmem:[%s16746_s9 + $0x300] sm:$0xff]  ;;  %v23255_v22 = vld [vmem:[#allocation199_spill] sm:$0xff] }
 0x22c   : > { %v2775_v2 = vpop.f32.mrf.mxu1  ;;  %v23257_v41 = vld [vmem:[#allocation190_spill] sm:$0xff]  ;;  %v16390_v15 = vld [vmem:[%s16746_s9 + $0x308] sm:$0xff] }
 0x22d   : > { %23250 = vst [vmem:[#allocation160_spill] sm:$0xff] %v19585_v31  ;;  %v19592_v62 = vadd.f32 %v14989_v28, %v3135_v58  ;;  %v3134_v18 = vadd.f32 %v2775_v2, %v23254_v63  ;;  %v14992_v38 = vpop.f32.mrf.mxu0  ;;  %v23258_v28 = vld [vmem:[#allocation201_spill] sm:$0xff] }
 0x22e   : > { %v14798_v34 = vpop.f32.mrf.mxu1  ;;  %15137 = vmatmul.mubr.msk.f32.gmra.mxu1 %vm395_vm1, %v16389_v35  ;;  %15331 = vmatmul.mubr.msk.f32.gmra.mxu0 %vm395_vm1, %v23255_v22 }
 0x22f   : > { %23253 = vst [vmem:[#allocation163_spill] sm:$0xff] %v19592_v62  ;;  %v19599_v45 = vadd.f32 %v4414_v49, %v3134_v18  ;;  %v3137_v5 = vadd.f32 %v14798_v34, %v23257_v41  ;;  %15139 = vmatprep.mubr.msk.f32.mxu1 %vm395_vm1, %v16390_v15  ;;  %15333 = vmatprep.mubr.msk.f32.mxu0 %vm395_vm1, %v23258_v28  ;;  %v4424_v58 = vpop.f32.mrf.mxu0  ;;  %v23260_v62 = vld [vmem:[#allocation194_spill] sm:$0xff]  ;;  %v16391_v49 = vld [vmem:[%s16746_s9 + $0x310] sm:$0xff]  ;;  %v23261_v18 = vld [vmem:[#allocation207_spill] sm:$0xff] }
 0x230   : > { %v2785_v63 = vpop.f32.mrf.mxu1  ;;  %v23263_v15 = vld [vmem:[#allocation198_spill] sm:$0xff] }
 0x231   : > { %23256 = vst [vmem:[#allocation166_spill] sm:$0xff] %v19599_v45  ;;  %v19606_v2 = vadd.f32 %v14992_v38, %v3137_v5  ;;  %v3136_v35 = vadd.f32 %v2785_v63, %v23260_v62  ;;  %v14995_v22 = vpop.f32.mrf.mxu0  ;;  %v16392_v28 = vld [vmem:[%s16746_s9 + $0x320] sm:$0xff]  ;;  %v23264_v38 = vld [vmem:[#allocation211_spill] sm:$0xff] }
 0x232   : > { %v14801_v31 = vpop.f32.mrf.mxu1  ;;  %15140 = vmatmul.mubr.msk.f32.gmra.mxu1 %vm395_vm1, %v16391_v49  ;;  %15334 = vmatmul.mubr.msk.f32.gmra.mxu0 %vm395_vm1, %v23261_v18 }
 0x233   : > { %23259 = vst [vmem:[#allocation172_spill] sm:$0xff] %v19606_v2  ;;  %v19613_v34 = vadd.f32 %v4424_v58, %v3136_v35  ;;  %v3139_v41 = vadd.f32 %v14801_v31, %v23263_v15  ;;  %15142 = vmatprep.mubr.msk.f32.mxu1 %vm395_vm1, %v16392_v28  ;;  %15336 = vmatprep.mubr.msk.f32.mxu0 %vm395_vm1, %v23264_v38  ;;  %v4434_v5 = vpop.f32.mrf.mxu0  ;;  %v23266_v2 = vld [vmem:[#allocation204_spill] sm:$0xff]  ;;  %v16393_v58 = vld [vmem:[%s16746_s9 + $0x328] sm:$0xff]  ;;  %v23269_v28 = vld [vmem:[#allocation206_spill] sm:$0xff] }
 0x234   : > { %v2795_v62 = vpop.f32.mrf.mxu1  ;;  %v23267_v35 = vld [vmem:[#allocation215_spill] sm:$0xff]  ;;  %v16394_v38 = vld [vmem:[%s16746_s9 + $0x330] sm:$0xff] }
 0x235   : > { %23262 = vst [vmem:[#allocation174_spill] sm:$0xff] %v19613_v34  ;;  %v19620_v63 = vadd.f32 %v14995_v22, %v3139_v41  ;;  %v3138_v49 = vadd.f32 %v2795_v62, %v23266_v2  ;;  %v14998_v18 = vpop.f32.mrf.mxu0  ;;  %v23270_v22 = vld [vmem:[#allocation217_spill] sm:$0xff] }
 0x236   : > { %v14804_v45 = vpop.f32.mrf.mxu1  ;;  %15143 = vmatmul.mubr.msk.f32.gmra.mxu1 %vm395_vm1, %v16393_v58  ;;  %15337 = vmatmul.mubr.msk.f32.gmra.mxu0 %vm395_vm1, %v23267_v35 }
 0x237   : > { %23265 = vst [vmem:[#allocation178_spill] sm:$0xff] %v19620_v63  ;;  %v19627_v31 = vadd.f32 %v4434_v5, %v3138_v49  ;;  %v3141_v15 = vadd.f32 %v14804_v45, %v23269_v28  ;;  %15145 = vmatprep.mubr.msk.f32.mxu1 %vm395_vm1, %v16394_v38  ;;  %15339 = vmatprep.mubr.msk.f32.mxu0 %vm395_vm1, %v23270_v22  ;;  %v4444_v41 = vpop.f32.mrf.mxu0  ;;  %v23272_v63 = vld [vmem:[#allocation210_spill] sm:$0xff]  ;;  %v16395_v5 = vld [vmem:[%s16746_s9 + $0x338] sm:$0xff]  ;;  %v23273_v49 = vld [vmem:[#allocation223_spill] sm:$0xff] }
 0x238   : > { %v2805_v2 = vpop.f32.mrf.mxu1  ;;  %v23275_v38 = vld [vmem:[#allocation214_spill] sm:$0xff]  ;;  %v16396_v22 = vld [vmem:[%s16746_s9 + $0x348] sm:$0xff] }
 0x239   : > { %23268 = vst [vmem:[#allocation182_spill] sm:$0xff] %v19627_v31  ;;  %v19634_v62 = vadd.f32 %v14998_v18, %v3141_v15  ;;  %v3140_v58 = vadd.f32 %v2805_v2, %v23272_v63  ;;  %v15001_v35 = vpop.f32.mrf.mxu0  ;;  %v23276_v18 = vld [vmem:[#allocation227_spill] sm:$0xff] }
 0x23a   : > { %v14807_v34 = vpop.f32.mrf.mxu1  ;;  %15146 = vmatmul.mubr.msk.f32.gmra.mxu1 %vm395_vm1, %v16395_v5  ;;  %15340 = vmatmul.mubr.msk.f32.gmra.mxu0 %vm395_vm1, %v23273_v49 }
 0x23b   : > { %23271 = vst [vmem:[#allocation188_spill] sm:$0xff] %v19634_v62  ;;  %v19641_v45 = vadd.f32 %v4444_v41, %v3140_v58  ;;  %v3143_v28 = vadd.f32 %v14807_v34, %v23275_v38  ;;  %15148 = vmatprep.mubr.msk.f32.mxu1 %vm395_vm1, %v16396_v22  ;;  %15342 = vmatprep.mubr.msk.f32.mxu0 %vm395_vm1, %v23276_v18  ;;  %v4454_v15 = vpop.f32.mrf.mxu0  ;;  %v23278_v62 = vld [vmem:[#allocation220_spill] sm:$0xff]  ;;  %v23279_v58 = vld [vmem:[#allocation231_spill] sm:$0xff]  ;;  %v23281_v22 = vld [vmem:[#allocation222_spill] sm:$0xff] }
 0x23c   : > { %v2815_v63 = vpop.f32.mrf.mxu1  ;;  %v16397_v41 = vld [vmem:[%s16746_s9 + $0x350] sm:$0xff]  ;;  %v16398_v18 = vld [vmem:[%s16746_s9 + $0x358] sm:$0xff] }
 0x23d   : > { %23274 = vst [vmem:[#allocation190_spill] sm:$0xff] %v19641_v45  ;;  %v19648_v2 = vadd.f32 %v15001_v35, %v3143_v28  ;;  %v3142_v5 = vadd.f32 %v2815_v63, %v23278_v62  ;;  %v15004_v49 = vpop.f32.mrf.mxu0  ;;  %v23282_v35 = vld [vmem:[#allocation233_spill] sm:$0xff] }
 0x23e   : > { %v14810_v31 = vpop.f32.mrf.mxu1  ;;  %15149 = vmatmul.mubr.msk.f32.gmra.mxu1 %vm395_vm1, %v16397_v41  ;;  %15343 = vmatmul.mubr.msk.f32.gmra.mxu0 %vm395_vm1, %v23279_v58 }
 0x23f   : > { %23277 = vst [vmem:[#allocation194_spill] sm:$0xff] %v19648_v2  ;;  %v19655_v34 = vadd.f32 %v4454_v15, %v3142_v5  ;;  %v3145_v38 = vadd.f32 %v14810_v31, %v23281_v22  ;;  %15151 = vmatprep.mubr.msk.f32.mxu1 %vm395_vm1, %v16398_v18  ;;  %15345 = vmatprep.mubr.msk.f32.mxu0 %vm395_vm1, %v23282_v35  ;;  %v4464_v28 = vpop.f32.mrf.mxu0  ;;  %v23284_v2 = vld [vmem:[#allocation226_spill] sm:$0xff]  ;;  %v23285_v5 = vld [vmem:[#allocation239_spill] sm:$0xff]  ;;  %v16400_v35 = vld [vmem:[%s16746_s9 + $0x370] sm:$0xff] }
 0x240   : > { %v2825_v62 = vpop.f32.mrf.mxu1  ;;  %v16399_v15 = vld [vmem:[%s16746_s9 + $0x360] sm:$0xff] }
 0x241   : > { %23280 = vst [vmem:[#allocation198_spill] sm:$0xff] %v19655_v34  ;;  %v19662_v63 = vadd.f32 %v15004_v49, %v3145_v38  ;;  %v3144_v41 = vadd.f32 %v2825_v62, %v23284_v2  ;;  %v15007_v58 = vpop.f32.mrf.mxu0  ;;  %v23287_v18 = vld [vmem:[#allocation230_spill] sm:$0xff]  ;;  %v23288_v49 = vld [vmem:[#allocation243_spill] sm:$0xff] }
 0x242   : > { %v14813_v45 = vpop.f32.mrf.mxu1  ;;  %15152 = vmatmul.mubr.msk.f32.gmra.mxu1 %vm395_vm1, %v16399_v15  ;;  %15346 = vmatmul.mubr.msk.f32.gmra.mxu0 %vm395_vm1, %v23285_v5 }
 0x243   : > { %23283 = vst [vmem:[#allocation204_spill] sm:$0xff] %v19662_v63  ;;  %v19669_v31 = vadd.f32 %v4464_v28, %v3144_v41  ;;  %v3147_v22 = vadd.f32 %v14813_v45, %v23287_v18  ;;  %15154 = vmatprep.mubr.msk.f32.mxu1 %vm395_vm1, %v16400_v35  ;;  %15348 = vmatprep.mubr.msk.f32.mxu0 %vm395_vm1, %v23288_v49  ;;  %v4474_v38 = vpop.f32.mrf.mxu0  ;;  %v23290_v63 = vld [vmem:[#allocation236_spill] sm:$0xff]  ;;  %v16401_v28 = vld [vmem:[%s16746_s9 + $0x378] sm:$0xff]  ;;  %v23291_v41 = vld [vmem:[#allocation247_spill] sm:$0xff] }
 0x244   : > { %v2835_v2 = vpop.f32.mrf.mxu1  ;;  %v23293_v35 = vld [vmem:[#allocation238_spill] sm:$0xff] }
 0x245   : > { %23286 = vst [vmem:[#allocation206_spill] sm:$0xff] %v19669_v31  ;;  %v19676_v62 = vadd.f32 %v15007_v58, %v3147_v22  ;;  %v3146_v15 = vadd.f32 %v2835_v2, %v23290_v63  ;;  %v15010_v5 = vpop.f32.mrf.mxu0  ;;  %v16402_v49 = vld [vmem:[%s16746_s9 + $0x380] sm:$0xff]  ;;  %v23294_v58 = vld [vmem:[#allocation249_spill] sm:$0xff] }
 0x246   : > { %v14816_v34 = vpop.f32.mrf.mxu1  ;;  %15155 = vmatmul.mubr.msk.f32.gmra.mxu1 %vm395_vm1, %v16401_v28  ;;  %15349 = vmatmul.mubr.msk.f32.gmra.mxu0 %vm395_vm1, %v23291_v41 }
 0x247   : > { %23289 = vst [vmem:[#allocation210_spill] sm:$0xff] %v19676_v62  ;;  %v19683_v45 = vadd.f32 %v4474_v38, %v3146_v15  ;;  %v3149_v18 = vadd.f32 %v14816_v34, %v23293_v35  ;;  %15157 = vmatprep.mubr.msk.f32.mxu1 %vm395_vm1, %v16402_v49  ;;  %15351 = vmatprep.mubr.msk.f32.mxu0 %vm395_vm1, %v23294_v58  ;;  %v4484_v22 = vpop.f32.mrf.mxu0  ;;  %v23296_v62 = vld [vmem:[#allocation242_spill] sm:$0xff]  ;;  %v16403_v38 = vld [vmem:[%s16746_s9 + $0x388] sm:$0xff]  ;;  %v16404_v58 = vld [vmem:[%s16746_s9 + $0x398] sm:$0xff] }
 0x248   : > { %v2845_v63 = vpop.f32.mrf.mxu1  ;;  %v23297_v15 = vld [vmem:[#allocation255_spill] sm:$0xff]  ;;  %v23299_v49 = vld [vmem:[#allocation246_spill] sm:$0xff] }
 0x249   : > { %23292 = vst [vmem:[#allocation214_spill] sm:$0xff] %v19683_v45  ;;  %v19690_v2 = vadd.f32 %v15010_v5, %v3149_v18  ;;  %v3148_v28 = vadd.f32 %v2845_v63, %v23296_v62  ;;  %v15013_v41 = vpop.f32.mrf.mxu0  ;;  %v23300_v5 = vld [vmem:[#allocation259_spill] sm:$0xff] }
 0x24a   : > { %v14819_v31 = vpop.f32.mrf.mxu1  ;;  %15158 = vmatmul.mubr.msk.f32.gmra.mxu1 %vm395_vm1, %v16403_v38  ;;  %15352 = vmatmul.mubr.msk.f32.gmra.mxu0 %vm395_vm1, %v23297_v15 }
 0x24b   : > { %23295 = vst [vmem:[#allocation220_spill] sm:$0xff] %v19690_v2  ;;  %v19697_v34 = vadd.f32 %v4484_v22, %v3148_v28  ;;  %v3151_v35 = vadd.f32 %v14819_v31, %v23299_v49  ;;  %15160 = vmatprep.mubr.msk.f32.mxu1 %vm395_vm1, %v16404_v58  ;;  %15354 = vmatprep.mubr.msk.f32.mxu0 %vm395_vm1, %v23300_v5  ;;  %v4494_v18 = vpop.f32.mrf.mxu0  ;;  %v23302_v2 = vld [vmem:[#allocation252_spill] sm:$0xff]  ;;  %v16405_v22 = vld [vmem:[%s16746_s9 + $0x3a0] sm:$0xff]  ;;  %v23303_v28 = vld [vmem:[#allocation263_spill] sm:$0xff] }
 0x24c   : > { %v2855_v62 = vpop.f32.mrf.mxu1  ;;  %v23305_v58 = vld [vmem:[#allocation254_spill] sm:$0xff]  ;;  %v16406_v5 = vld [vmem:[%s16746_s9 + $0x3a8] sm:$0xff] }
 0x24d   : > { %23298 = vst [vmem:[#allocation222_spill] sm:$0xff] %v19697_v34  ;;  %v19704_v63 = vadd.f32 %v15013_v41, %v3151_v35  ;;  %v3150_v38 = vadd.f32 %v2855_v62, %v23302_v2  ;;  %v15016_v15 = vpop.f32.mrf.mxu0  ;;  %v23306_v41 = vld [vmem:[#allocation265_spill] sm:$0xff] }
 0x24e   : > { %v14822_v45 = vpop.f32.mrf.mxu1  ;;  %15161 = vmatmul.mubr.msk.f32.gmra.mxu1 %vm395_vm1, %v16405_v22  ;;  %15355 = vmatmul.mubr.msk.f32.gmra.mxu0 %vm395_vm1, %v23303_v28 }
 0x24f   : > { %23301 = vst [vmem:[#allocation226_spill] sm:$0xff] %v19704_v63  ;;  %v19711_v31 = vadd.f32 %v4494_v18, %v3150_v38  ;;  %v3153_v49 = vadd.f32 %v14822_v45, %v23305_v58  ;;  %15163 = vmatprep.mubr.msk.f32.mxu1 %vm395_vm1, %v16406_v5  ;;  %15357 = vmatprep.mubr.msk.f32.mxu0 %vm395_vm1, %v23306_v41  ;;  %v4504_v35 = vpop.f32.mrf.mxu0  ;;  %v23308_v63 = vld [vmem:[#allocation258_spill] sm:$0xff]  ;;  %v16407_v18 = vld [vmem:[%s16746_s9 + $0x3b0] sm:$0xff]  ;;  %v23309_v38 = vld [vmem:[#allocation271_spill] sm:$0xff] }
 0x250   : > { %v2865_v2 = vpop.f32.mrf.mxu1  ;;  %v23311_v5 = vld [vmem:[#allocation262_spill] sm:$0xff] }
 0x251   : > { %23304 = vst [vmem:[#allocation230_spill] sm:$0xff] %v19711_v31  ;;  %v19718_v62 = vadd.f32 %v15016_v15, %v3153_v49  ;;  %v3152_v22 = vadd.f32 %v2865_v2, %v23308_v63  ;;  %v15019_v28 = vpop.f32.mrf.mxu0  ;;  %v16408_v41 = vld [vmem:[%s16746_s9 + $0x3c0] sm:$0xff]  ;;  %v23312_v15 = vld [vmem:[#allocation275_spill] sm:$0xff] }
 0x252   : > { %v14825_v34 = vpop.f32.mrf.mxu1  ;;  %15164 = vmatmul.mubr.msk.f32.gmra.mxu1 %vm395_vm1, %v16407_v18  ;;  %15358 = vmatmul.mubr.msk.f32.gmra.mxu0 %vm395_vm1, %v23309_v38 }
 0x253   : > { %23307 = vst [vmem:[#allocation236_spill] sm:$0xff] %v19718_v62  ;;  %v19725_v45 = vadd.f32 %v4504_v35, %v3152_v22  ;;  %v3155_v58 = vadd.f32 %v14825_v34, %v23311_v5  ;;  %15166 = vmatprep.mubr.msk.f32.mxu1 %vm395_vm1, %v16408_v41  ;;  %15360 = vmatprep.mubr.msk.f32.mxu0 %vm395_vm1, %v23312_v15  ;;  %v4514_v49 = vpop.f32.mrf.mxu0  ;;  %v23314_v62 = vld [vmem:[#allocation268_spill] sm:$0xff]  ;;  %v16409_v35 = vld [vmem:[%s16746_s9 + $0x3c8] sm:$0xff]  ;;  %v23316_v41 = vld [vmem:[#allocation270_spill] sm:$0xff] }
 0x254   : > { %v2875_v63 = vpop.f32.mrf.mxu1  ;;  %v23315_v22 = vld [vmem:[#allocation279_spill] sm:$0xff]  ;;  %v16410_v15 = vld [vmem:[%s16746_s9 + $0x3d0] sm:$0xff] }
 0x255   : > { %23310 = vst [vmem:[#allocation238_spill] sm:$0xff] %v19725_v45  ;;  %v19732_v2 = vadd.f32 %v15019_v28, %v3155_v58  ;;  %v3154_v18 = vadd.f32 %v2875_v63, %v23314_v62  ;;  %v15022_v38 = vpop.f32.mrf.mxu0  ;;  %v23317_v28 = vld [vmem:[#allocation281_spill] sm:$0xff] }
 0x256   : > { %v14828_v31 = vpop.f32.mrf.mxu1  ;;  %15167 = vmatmul.mubr.msk.f32.gmra.mxu1 %vm395_vm1, %v16409_v35  ;;  %15361 = vmatmul.mubr.msk.f32.gmra.mxu0 %vm395_vm1, %v23315_v22 }
 0x257   : > { %23313 = vst [vmem:[#allocation242_spill] sm:$0xff] %v19732_v2  ;;  %v19739_v34 = vadd.f32 %v4514_v49, %v3154_v18  ;;  %v3157_v5 = vadd.f32 %v14828_v31, %v23316_v41  ;;  %15169 = vmatprep.mubr.msk.f32.mxu1 %vm395_vm1, %v16410_v15  ;;  %15363 = vmatprep.mubr.msk.f32.mxu0 %vm395_vm1, %v23317_v28  ;;  %v4524_v58 = vpop.f32.mrf.mxu0  ;;  %v23318_v2 = vld [vmem:[#allocation274_spill] sm:$0xff]  ;;  %v16411_v49 = vld [vmem:[%s16746_s9 + $0x3d8] sm:$0xff]  ;;  %v16412_v41 = vld [vmem:[%s16746_s9 + $0x3e8] sm:$0xff] }
 0x258   : > { %v2885_v62 = vpop.f32.mrf.mxu1  ;;  %v23319_v15 = vld [vmem:[#allocation278_spill] sm:$0xff] }
 0x259   : > { %v19746_v63 = vadd.f32 %v15022_v38, %v3157_v5  ;;  %v3156_v35 = vadd.f32 %v2885_v62, %v23318_v2  ;;  %v15025_v22 = vpop.f32.mrf.mxu0  ;;  %v23320_v62 = vld [vmem:[#allocation284_spill] sm:$0xff] }
 0x25a   : > { %v14831_v45 = vpop.f32.mrf.mxu1  ;;  %15170 = vmatmul.mubr.msk.f32.gmra.mxu1 %vm395_vm1, %v16411_v49  ;;  %15364 = vmatmul.mubr.msk.f32.gmra.mxu0 %vm395_vm1, %v18652_v48  ;;  %v16413_v48 = vld [vmem:[%s16746_s9 + $0x3f0] sm:$0xff] }
 0x25b   : > { %v19753_v31 = vadd.f32 %v4524_v58, %v3156_v35  ;;  %v3159_v18 = vadd.f32 %v14831_v45, %v23319_v15  ;;  %15172 = vmatprep.mubr.msk.f32.mxu1 %vm395_vm1, %v16412_v41  ;;  %15366 = vmatprep.mubr.msk.f32.mxu0 %vm395_vm1, %v18659_v53  ;;  %v4534_v2 = vpop.f32.mrf.mxu0  ;;  %v23321_v35 = vld [vmem:[#allocation289_spill] sm:$0xff] }
 0x25c   : > { %v2895_v38 = vpop.f32.mrf.mxu1  ;;  %v16414_v41 = vld [vmem:[%s16746_s9 + $0x3f8] sm:$0xff] }
 0x25d   : > { %v19760_v5 = vadd.f32 %v15025_v22, %v3159_v18  ;;  %v3158_v49 = vadd.f32 %v2895_v38, %v23320_v62  ;;  %v15224_v58 = vpop.f32.mrf.mxu0 }
 0x25e   : > { %v15030_v28 = vpop.f32.mrf.mxu1  ;;  %15173 = vmatmul.mubr.msk.f32.gmra.mxu1 %vm395_vm1, %v16413_v48  ;;  %15367 = vmatmul.mubr.msk.f32.gmra.mxu0 %vm395_vm1, %v18672_v40  ;;  %v23322_v48 = vld [vmem:[#allocation293_spill] sm:$0xff]  ;;  %v16415_v40 = vld [vmem:[%s16746_s9 + $0x400] sm:$0xff] }
 0x25f   : > { %v19767_v45 = vadd.f32 %v4534_v2, %v3158_v49  ;;  %v5778_v15 = vadd.f32 %v15030_v28, %v23321_v35  ;;  %15175 = vmatprep.mubr.msk.f32.mxu1 %vm395_vm1, %v16414_v41  ;;  %15369 = vmatprep.mubr.msk.f32.mxu0 %vm395_vm1, %v18678_v14  ;;  %v6122_v18 = vpop.f32.mrf.mxu0  ;;  %v23323_v49 = vld [vmem:[#allocation295_spill] sm:$0xff]  ;;  %v16416_v41 = vld [vmem:[%s16746_s9 + $0x410] sm:$0xff] }
 0x260   : > { %v5010_v22 = vpop.f32.mrf.mxu1 }
 0x261   : > { %v19774_v38 = vadd.f32 %v15224_v58, %v5778_v15  ;;  %v5777_v62 = vadd.f32 %v5010_v22, %v23322_v48  ;;  %v15227_v2 = vpop.f32.mrf.mxu0 }
 0x262   : > { %v15033_v53 = vpop.f32.mrf.mxu1  ;;  %15176 = vmatmul.mubr.msk.f32.gmra.mxu1 %vm395_vm1, %v16415_v40  ;;  %15370 = vmatmul.mubr.msk.f32.gmra.mxu0 %vm395_vm1, %v18700_v42  ;;  %v23324_v40 = vld [vmem:[#allocation297_spill] sm:$0xff] }
 0x263   : > { %v19781_v28 = vadd.f32 %v6122_v18, %v5777_v62  ;;  %v5780_v35 = vadd.f32 %v15033_v53, %v23323_v49  ;;  %15178 = vmatprep.mubr.msk.f32.mxu1 %vm395_vm1, %v16416_v41  ;;  %15372 = vmatprep.mubr.msk.f32.mxu0 %vm395_vm1, %v18716_v23  ;;  %v6132_v15 = vpop.f32.mrf.mxu0  ;;  %v16417_v42 = vld [vmem:[%s16746_s9 + $0x418] sm:$0xff]  ;;  %v16418_v41 = vld [vmem:[%s16746_s9 + $0x420] sm:$0xff] }
 0x264   : > { %v5020_v58 = vpop.f32.mrf.mxu1  ;;  %v23325_v62 = vld [vmem:[#allocation301_spill] sm:$0xff] }
 0x265   : > { %v19788_v22 = vadd.f32 %v15227_v2, %v5780_v35  ;;  %v5779_v48 = vadd.f32 %v5020_v58, %v23324_v40  ;;  %v15230_v18 = vpop.f32.mrf.mxu0 }
 0x266   : > { %v15036_v14 = vpop.f32.mrf.mxu1  ;;  %15179 = vmatmul.mubr.msk.f32.gmra.mxu1 %vm395_vm1, %v16417_v42  ;;  %15373 = vmatmul.mubr.msk.f32.gmra.mxu0 %vm395_vm1, %v18729_v26  ;;  %v23326_v42 = vld [vmem:[#allocation305_spill] sm:$0xff]  ;;  %v16419_v26 = vld [vmem:[%s16746_s9 + $0x428] sm:$0xff] }
 0x267   : > { %v19795_v53 = vadd.f32 %v6132_v15, %v5779_v48  ;;  %v5782_v49 = vadd.f32 %v15036_v14, %v23325_v62  ;;  %15181 = vmatprep.mubr.msk.f32.mxu1 %vm395_vm1, %v16418_v41  ;;  %15375 = vmatprep.mubr.msk.f32.mxu0 %vm395_vm1, %v18735_v60  ;;  %v6142_v35 = vpop.f32.mrf.mxu0  ;;  %v23327_v48 = vld [vmem:[#allocation307_spill] sm:$0xff]  ;;  %v16420_v41 = vld [vmem:[%s16746_s9 + $0x438] sm:$0xff] }
 0x268   : > { %v5030_v2 = vpop.f32.mrf.mxu1 }
 0x269   : > { %v19802_v58 = vadd.f32 %v15230_v18, %v5782_v49  ;;  %v5781_v40 = vadd.f32 %v5030_v2, %v23326_v42  ;;  %v15233_v15 = vpop.f32.mrf.mxu0 }
 0x26a   : > { %v15039_v23 = vpop.f32.mrf.mxu1  ;;  %15182 = vmatmul.mubr.msk.f32.gmra.mxu1 %vm395_vm1, %v16419_v26  ;;  %15376 = vmatmul.mubr.msk.f32.gmra.mxu0 %vm395_vm1, %v18757_v36  ;;  %v23328_v26 = vld [vmem:[#allocation309_spill] sm:$0xff]  ;;  %v16421_v36 = vld [vmem:[%s16746_s9 + $0x440] sm:$0xff] }
 0x26b   : > { %v19809_v14 = vadd.f32 %v6142_v35, %v5781_v40  ;;  %v5784_v62 = vadd.f32 %v15039_v23, %v23327_v48  ;;  %15184 = vmatprep.mubr.msk.f32.mxu1 %vm395_vm1, %v16420_v41  ;;  %15378 = vmatprep.mubr.msk.f32.mxu0 %vm395_vm1, %v18773_v21  ;;  %v6152_v49 = vpop.f32.mrf.mxu0  ;;  %v23329_v40 = vld [vmem:[#allocation313_spill] sm:$0xff]  ;;  %v16422_v41 = vld [vmem:[%s16746_s9 + $0x448] sm:$0xff] }
 0x26c   : > { %v5040_v18 = vpop.f32.mrf.mxu1 }
 0x26d   : > { %v19816_v2 = vadd.f32 %v15233_v15, %v5784_v62  ;;  %v5783_v42 = vadd.f32 %v5040_v18, %v23328_v26  ;;  %v15236_v35 = vpop.f32.mrf.mxu0 }
 0x26e   : > { %v15042_v60 = vpop.f32.mrf.mxu1  ;;  %15185 = vmatmul.mubr.msk.f32.gmra.mxu1 %vm395_vm1, %v16421_v36  ;;  %15379 = vmatmul.mubr.msk.f32.gmra.mxu0 %vm395_vm1, %v18786_v6  ;;  %v23330_v36 = vld [vmem:[#allocation317_spill] sm:$0xff]  ;;  %v16423_v6 = vld [vmem:[%s16746_s9 + $0x450] sm:$0xff] }
 0x26f   : > { %v19823_v23 = vadd.f32 %v6152_v49, %v5783_v42  ;;  %v5786_v48 = vadd.f32 %v15042_v60, %v23329_v40  ;;  %15187 = vmatprep.mubr.msk.f32.mxu1 %vm395_vm1, %v16422_v41  ;;  %15381 = vmatprep.mubr.msk.f32.mxu0 %vm395_vm1, %v18792_v50  ;;  %v6162_v62 = vpop.f32.mrf.mxu0  ;;  %v23331_v42 = vld [vmem:[#allocation319_spill] sm:$0xff]  ;;  %v16424_v41 = vld [vmem:[%s16746_s9 + $0x460] sm:$0xff] }
 0x270   : > { %v5050_v15 = vpop.f32.mrf.mxu1 }
 0x271   : > { %v19830_v18 = vadd.f32 %v15236_v35, %v5786_v48  ;;  %v5785_v26 = vadd.f32 %v5050_v15, %v23330_v36  ;;  %v15239_v49 = vpop.f32.mrf.mxu0 }
 0x272   : > { %v15045_v21 = vpop.f32.mrf.mxu1  ;;  %15188 = vmatmul.mubr.msk.f32.gmra.mxu1 %vm395_vm1, %v16423_v6  ;;  %15382 = vmatmul.mubr.msk.f32.gmra.mxu0 %vm395_vm1, %v18814_v51  ;;  %v23332_v6 = vld [vmem:[#allocation321_spill] sm:$0xff]  ;;  %v16425_v51 = vld [vmem:[%s16746_s9 + $0x468] sm:$0xff] }
 0x273   : > { %v19837_v60 = vadd.f32 %v6162_v62, %v5785_v26  ;;  %v5788_v40 = vadd.f32 %v15045_v21, %v23331_v42  ;;  %15190 = vmatprep.mubr.msk.f32.mxu1 %vm395_vm1, %v16424_v41  ;;  %15384 = vmatprep.mubr.msk.f32.mxu0 %vm395_vm1, %v18830_v10  ;;  %v6172_v48 = vpop.f32.mrf.mxu0  ;;  %v23333_v26 = vld [vmem:[#allocation325_spill] sm:$0xff]  ;;  %v16426_v41 = vld [vmem:[%s16746_s9 + $0x470] sm:$0xff] }
 0x274   : > { %v5060_v35 = vpop.f32.mrf.mxu1 }
 0x275   : > { %v19844_v15 = vadd.f32 %v15239_v49, %v5788_v40  ;;  %v5787_v36 = vadd.f32 %v5060_v35, %v23332_v6  ;;  %v15242_v62 = vpop.f32.mrf.mxu0 }
 0x276   : > { %v15048_v50 = vpop.f32.mrf.mxu1  ;;  %15191 = vmatmul.mubr.msk.f32.gmra.mxu1 %vm395_vm1, %v16425_v51  ;;  %15385 = vmatmul.mubr.msk.f32.gmra.mxu0 %vm395_vm1, %v18843_v12  ;;  %v23334_v51 = vld [vmem:[#allocation329_spill] sm:$0xff] }
 0x277   : > { %v19851_v21 = vadd.f32 %v6172_v48, %v5787_v36  ;;  %v5790_v42 = vadd.f32 %v15048_v50, %v23333_v26  ;;  %15193 = vmatprep.mubr.msk.f32.mxu1 %vm395_vm1, %v16426_v41  ;;  %15387 = vmatprep.mubr.msk.f32.mxu0 %vm395_vm1, %v18849_v3  ;;  %v6182_v40 = vpop.f32.mrf.mxu0  ;;  %v16427_v12 = vld [vmem:[%s16746_s9 + $0x478] sm:$0xff]  ;;  %v23335_v36 = vld [vmem:[#allocation331_spill] sm:$0xff] }
 0x278   : > { %v5070_v49 = vpop.f32.mrf.mxu1  ;;  %v16428_v41 = vld [vmem:[%s16746_s9 + $0x488] sm:$0xff] }
 0x279   : > { %v19858_v35 = vadd.f32 %v15242_v62, %v5790_v42  ;;  %v5789_v6 = vadd.f32 %v5070_v49, %v23334_v51  ;;  %v15245_v48 = vpop.f32.mrf.mxu0 }
 0x27a   : > { %v15051_v10 = vpop.f32.mrf.mxu1  ;;  %15194 = vmatmul.mubr.msk.f32.gmra.mxu1 %vm395_vm1, %v16427_v12  ;;  %15388 = vmatmul.mubr.msk.f32.gmra.mxu0 %vm395_vm1, %v18871_v52  ;;  %v23336_v12 = vld [vmem:[#allocation333_spill] sm:$0xff]  ;;  %v16429_v52 = vld [vmem:[%s16746_s9 + $0x490] sm:$0xff] }
 0x27b   : > { %v19865_v50 = vadd.f32 %v6182_v40, %v5789_v6  ;;  %v5792_v26 = vadd.f32 %v15051_v10, %v23335_v36  ;;  %15196 = vmatprep.mubr.msk.f32.mxu1 %vm395_vm1, %v16428_v41  ;;  %15390 = vmatprep.mubr.msk.f32.mxu0 %vm395_vm1, %v18887_v47  ;;  %v6192_v42 = vpop.f32.mrf.mxu0  ;;  %v23337_v6 = vld [vmem:[#allocation337_spill] sm:$0xff] }
 0x27c   : > { %v5080_v62 = vpop.f32.mrf.mxu1  ;;  %v16430_v41 = vld [vmem:[%s16746_s9 + $0x498] sm:$0xff] }
 0x27d   : > { %v19872_v49 = vadd.f32 %v15245_v48, %v5792_v26  ;;  %v5791_v51 = vadd.f32 %v5080_v62, %v23336_v12  ;;  %v15248_v40 = vpop.f32.mrf.mxu0 }
 0x27e   : > { %v15054_v3 = vpop.f32.mrf.mxu1  ;;  %15197 = vmatmul.mubr.msk.f32.gmra.mxu1 %vm395_vm1, %v16429_v52  ;;  %15391 = vmatmul.mubr.msk.f32.gmra.mxu0 %vm395_vm1, %v18900_v4  ;;  %v23338_v52 = vld [vmem:[#allocation341_spill] sm:$0xff]  ;;  %v16431_v4 = vld [vmem:[%s16746_s9 + $0x4a0] sm:$0xff] }
 0x27f   : > { %v19879_v10 = vadd.f32 %v6192_v42, %v5791_v51  ;;  %v5794_v36 = vadd.f32 %v15054_v3, %v23337_v6  ;;  %15199 = vmatprep.mubr.msk.f32.mxu1 %vm395_vm1, %v16430_v41  ;;  %15393 = vmatprep.mubr.msk.f32.mxu0 %vm395_vm1, %v18906_v59  ;;  %v6202_v26 = vpop.f32.mrf.mxu0  ;;  %v23339_v51 = vld [vmem:[#allocation343_spill] sm:$0xff]  ;;  %v16432_v41 = vld [vmem:[%s16746_s9 + $0x4b0] sm:$0xff] }
 0x280   : > { %v5090_v48 = vpop.f32.mrf.mxu1  ;;  %v386_v59 = vld [vmem:[%s16746_s9 + $0x510] sm:$0xff] }
 0x281   : > { %v19886_v62 = vadd.f32 %v15248_v40, %v5794_v36  ;;  %v5793_v12 = vadd.f32 %v5090_v48, %v23338_v52  ;;  %v15251_v42 = vpop.f32.mrf.mxu0 }
 0x282   : > { %v15057_v47 = vpop.f32.mrf.mxu1  ;;  %15200 = vmatmul.mubr.msk.f32.gmra.mxu1 %vm395_vm1, %v16431_v4  ;;  %15394 = vmatmul.mubr.msk.f32.gmra.mxu0 %vm395_vm1, %v18928_v57  ;;  %v384_v57 = vld [vmem:[%s16746_s9 + $0x500] sm:$0xff] }
 0x283   : > { %v19893_v3 = vadd.f32 %v6202_v26, %v5793_v12  ;;  %v5796_v6 = vadd.f32 %v15057_v47, %v23339_v51  ;;  %15202 = vmatprep.mubr.msk.f32.mxu1 %vm395_vm1, %v16432_v41  ;;  %15396 = vmatprep.mubr.msk.f32.mxu0 %vm395_vm1, %v18944_v0  ;;  %v6212_v36 = vpop.f32.mrf.mxu0  ;;  %v16433_v26 = vld [vmem:[%s16746_s9 + $0x4b8] sm:$0xff]  ;;  %v23342_v51 = vld [vmem:[#allocation348_spill] sm:$0xff]  ;;  %v16434_v0 = vld [vmem:[%s16746_s9 + $0x4c0] sm:$0xff] }
 0x284   : > { %v5100_v40 = vpop.f32.mrf.mxu1 }
 0x285   : > { %v19900_v48 = vadd.f32 %v15251_v42, %v5796_v6  ;;  %v5795_v4 = vadd.f32 %v5100_v40, %v18932_v11  ;;  %v15254_v47 = vpop.f32.mrf.mxu0  ;;  %v23344_v40 = vld [vmem:[#allocation352_spill] sm:$0xff] }
 0x286   : > { %v15060_v52 = vpop.f32.mrf.mxu1  ;;  %15203 = vmatmul.mubr.msk.f32.gmra.mxu1 %vm395_vm1, %v16433_v26  ;;  %15397 = vmatmul.mubr.msk.f32.gmra.mxu0 %vm395_vm1, %v18957_v43  ;;  %v385_v43 = vld [vmem:[%s16746_s9 + $0x508] sm:$0xff] }
 0x287   : > { %23340 = vst [vmem:[#allocation246_spill] sm:$0xff] %v19900_v48  ;;  %v19907_v12 = vadd.f32 %v6212_v36, %v5795_v4  ;;  %v5798_v41 = vadd.f32 %v15060_v52, %v23342_v51  ;;  %15205 = vmatprep.mubr.msk.f32.mxu1 %vm395_vm1, %v16434_v0  ;;  %15399 = vmatprep.mubr.msk.f32.mxu0 %vm395_vm1, %v18963_v16  ;;  %v6222_v42 = vpop.f32.mrf.mxu0  ;;  %v16435_v4 = vld [vmem:[%s16746_s9 + $0x4c8] sm:$0xff]  ;;  %v23346_v51 = vld [vmem:[#allocation354_spill] sm:$0xff]  ;;  %v6034_v16 = vrot.slane %v384_v57, 1 }
 0x288   : > { %v5110_v11 = vpop.f32.mrf.mxu1 }
 0x289   : > { %23341 = vst [vmem:[#allocation252_spill] sm:$0xff] %v19907_v12  ;;  %v19914_v6 = vadd.f32 %v15254_v47, %v5798_v41  ;;  %v5797_v26 = vadd.f32 %v5110_v11, %v23344_v40  ;;  %v15257_v52 = vpop.f32.mrf.mxu0  ;;  %v16436_v41 = vld [vmem:[%s16746_s9 + $0x4d8] sm:$0xff]  ;;  %v23348_v12 = vld [vmem:[#allocation356_spill] sm:$0xff] }
 0x28a   : > { %v15063_v36 = vpop.f32.mrf.mxu1  ;;  %15206 = vmatmul.mubr.msk.f32.gmra.mxu1 %vm395_vm1, %v16435_v4  ;;  %15400 = vmatmul.mubr.msk.f32.gmra.mxu0 %vm395_vm1, %v18985_v19  ;;  %v6035_v4 = vrot.slane %v385_v43, 1 }
 0x28b   : > { %23343 = vst [vmem:[#allocation254_spill] sm:$0xff] %v19914_v6  ;;  %v19923_v0 = vadd.f32 %v6222_v42, %v5797_v26  ;;  %v5800_v47 = vadd.f32 %v15063_v36, %v23346_v51  ;;  %15208 = vmatprep.mubr.msk.f32.mxu1 %vm395_vm1, %v16436_v41  ;;  %15402 = vmatprep.mubr.msk.f32.mxu0 %vm395_vm1, %v19000_v7  ;;  %v6232_v40 = vpop.f32.mrf.mxu0  ;;  %v387_v42 = vld [vmem:[%s16746_s9 + $0x518] sm:$0xff]  ;;  %v16437_v36 = vld [vmem:[%s16746_s9 + $0x4e0] sm:$0xff] }
 0x28c   : > { %v5120_v11 = vpop.f32.mrf.mxu1 }
 0x28d   : > { %23345 = vst [vmem:[#allocation258_spill] sm:$0xff] %v19923_v0  ;;  %v19931_v6 = vadd.f32 %v15257_v52, %v5800_v47  ;;  %v5799_v19 = vadd.f32 %v5120_v11, %v23348_v12  ;;  %v15260_v51 = vpop.f32.mrf.mxu0  ;;  %v16438_v0 = vld [vmem:[%s16746_s9 + $0x4e8] sm:$0xff]  ;;  %v6037_v12 = vrot.slane %v386_v59, 1  ;;  %v19947_v11 = vsel %vm1649_vm2, %v6034_v16, %v6035_v4 }
 0x28e   : > { %v15066_v26 = vpop.f32.mrf.mxu1  ;;  %15209 = vmatmul.mubr.msk.f32.gmra.mxu1 %vm395_vm1, %v16437_v36  ;;  %15403 = vmatmul.mubr.msk.f32.gmra.mxu0 %vm395_vm1, %v19014_v44  ;;  %23349 = vst [vmem:[#allocation268_spill] sm:$0xff] %v19947_v11  ;;  %v6039_v36 = vrot.slane %v387_v42, 1 }
 0x28f   : > { %23347 = vst [vmem:[#allocation262_spill] sm:$0xff] %v19931_v6  ;;  %v19939_v41 = vadd.f32 %v6232_v40, %v5799_v19  ;;  %v5802_v7 = vadd.f32 %v15066_v26, %v19006_v1  ;;  %15211 = vmatprep.mubr.msk.f32.mxu1 %vm395_vm1, %v16438_v0  ;;  %15405 = vmatprep.mubr.msk.f32.mxu0 %vm395_vm1, %v19027_v37  ;;  %v6242_v47 = vpop.f32.mrf.mxu0  ;;  %v388_v6 = vld [vmem:[%s16746_s9 + $0x520] sm:$0x3]  ;;  %v16439_v1 = vld [vmem:[%s16746_s9 + $0x4f0] sm:$0xff] }
 0x290   : > { %v5130_v52 = vpop.f32.mrf.mxu1  ;;  %v19964_v16 = vsel %vm1649_vm2, %v6035_v4, %v6037_v12 }
 0x291   : > { %v19950_v48 = vadd.f32 %v15260_v51, %v5802_v7  ;;  %v5801_v19 = vadd.f32 %v5130_v52, %v19016_v13  ;;  %v15263_v0 = vpop.f32.mrf.mxu0  ;;  %23350 = vst [vmem:[#allocation270_spill] sm:$0xff] %v19964_v16  ;;  %v6041_v7 = vrot.slane %v388_v6, 1  ;;  %v19967_v52 = vsel %vm1649_vm2, %v6037_v12, %v6039_v36 }
 0x292   : > { %v15069_v40 = vpop.f32.mrf.mxu1  ;;  %15212 = vmatmul.mubr.msk.f32.gmra.mxu1 %vm395_vm1, %v16439_v1  ;;  %15406 = vmatmul.mubr.msk.f32.gmra.mxu0 %vm395_vm1, %v19040_v20  ;;  %23351 = vst [vmem:[#allocation274_spill] sm:$0xff] %v19967_v52  ;;  %v23373_v20 = vld [vmem:[#allocation181_spill] sm:$0xff] }
 0x293   : > { %v19957_v26 = vadd.f32 %v6242_v47, %v5801_v19  ;;  %v5804_v37 = vadd.f32 %v15069_v40, %v19032_v29  ;;  %15214 = vmatprep.mubr.msk.f32.mxu1 %vm395_vm1, %v384_v57  ;;  %15408 = vmatprep.mubr.msk.f32.mxu0 %vm395_vm1, %v19947_v11  ;;  %v6252_v51 = vpop.f32.mrf.mxu0 }
 0x294   : > { %v5140_v13 = vpop.f32.mrf.mxu1 }
 0x295   : > { %v19969_v1 = vadd.f32 %v15263_v0, %v5804_v37  ;;  %v5803_v47 = vadd.f32 %v5140_v13, %v19042_v32  ;;  %v15266_v57 = vpop.f32.mrf.mxu0  ;;  %v19982_v37 = vsel %vm1649_vm2, %v6039_v36, %v6041_v7  ;;  %v23353_v36 = vld [vmem:[#allocation20_spill] sm:$0xff] }
 0x296   : > { %v15072_v19 = vpop.f32.mrf.mxu1  ;;  %15215 = vmatmul.mubr.msk.f32.gmra.mxu1 %vm395_vm1, %v385_v43  ;;  %15409 = vmatmul.mubr.msk.f32.gmra.mxu0 %vm395_vm1, %v19964_v16  ;;  %23352 = vst [vmem:[#allocation278_spill] sm:$0xff] %v19982_v37  ;;  %v16440_v7 = vld [vmem:[%s16746_s9 + $0x50] sm:$0xff] }
 0x297   : > { %v19975_v29 = vadd.f32 %v6252_v51, %v5803_v47  ;;  %v5806_v6 = vadd.f32 %v15072_v19, %v19052_v24  ;;  %15217 = vmatprep.mubr.msk.f32.mxu1 %vm395_vm1, %v386_v59  ;;  %15411 = vmatprep.mubr.msk.f32.mxu0 %vm395_vm1, %v19967_v52  ;;  %v6262_v4 = vpop.f32.mrf.mxu0 }
 0x298   : > { %v5150_v32 = vpop.f32.mrf.mxu1 }
 0x299   : > { %v19984_v43 = vadd.f32 %v15266_v57, %v5806_v6  ;;  %v5805_v12 = vadd.f32 %v5150_v32, %v19059_v56  ;;  %v15269_v0 = vpop.f32.mrf.mxu0  ;;  %v23354_v57 = vld [vmem:[#allocation21_spill] sm:$0xff] }
 0x29a   : > { %v15075_v40 = vpop.f32.mrf.mxu1  ;;  %15218 = vmatmul.mubr.msk.f32.gmra.mxu1 %vm395_vm1, %v387_v42  ;;  %15412 = vmatmul.mubr.msk.f32.gmra.mxu0 %vm395_vm1, %v19982_v37  ;;  %v16441_v6 = vld [vmem:[%s16746_s9 + $0x58] sm:$0xff] }
 0x29b   : > { %v19990_v59 = vadd.f32 %v6262_v4, %v5805_v12  ;;  %v5808_v24 = vadd.f32 %v15075_v40, %v19066_v61  ;;  %15416 = vmatprep.mubr.msk.f32.mxu1 %vm395_vm1, %v23353_v36  ;;  %15610 = vmatprep.mubr.msk.f32.mxu0 %vm395_vm1, %v16440_v7  ;;  %v6272_v56 = vpop.f32.mrf.mxu0  ;;  %v23355_v12 = vld [vmem:[#allocation22_spill] sm:$0xff]  ;;  %v23356_v7 = vld [vmem:[#allocation23_spill] sm:$0xff]  ;;  %v23367_v37 = vld [vmem:[#allocation173_spill] sm:$0xff] }
 0x29c   : > { %v5160_v13 = vpop.f32.mrf.mxu1  ;;  %v16442_v40 = vld [vmem:[%s16746_s9 + $0x60] sm:$0xff] }
 0x29d   : > { %v19997_v51 = vadd.f32 %v15269_v0, %v5808_v24  ;;  %v5807_v42 = vadd.f32 %v5160_v13, %v19073_v39  ;;  %v15272_v19 = vpop.f32.mrf.mxu0 }
 0x29e   : > { %v15078_v47 = vpop.f32.mrf.mxu1  ;;  %15417 = vmatmul.mubr.msk.f32.vlgmr.msra.gmra.mxu1 %vm395_vm1, %v23354_v57  ;;  %15611 = vmatmul.mubr.msk.f32.vlgmr.msra.gmra.mxu0 %vm395_vm1, %v16441_v6 }
 0x29f   : > { %v20004_v61 = vadd.f32 %v6272_v56, %v5807_v42  ;;  %v5810_v32 = vadd.f32 %v15078_v47, %v19088_v17  ;;  %15803 = vmatpush3.msk.msra.mxu1 %vm780_vm0, %v19539_v9  ;;  %15997 = vmatpush3.msk.msra.mxu0 %vm780_vm0, %v19549_v25  ;;  %v6282_v4 = vpop.f32.mrf.mxu0  ;;  %v16443_v9 = vld [vmem:[%s16746_s9 + $0x68] sm:$0xff]  ;;  %v23357_v56 = vld [vmem:[#allocation25_spill] sm:$0xff] }
 0x2a0   : > { %v5170_v39 = vpop.f32.mrf.mxu1  ;;  %15419 = vmatprep.mubr.msk.f32.mxu1 %vm395_vm1, %v23355_v12  ;;  %15613 = vmatprep.mubr.msk.f32.mxu0 %vm395_vm1, %v16442_v40  ;;  %v16444_v42 = vld [vmem:[%s16746_s9 + $0x78] sm:$0xff] }
 0x2a1   : > { %v20015_v0 = vadd.f32 %v15272_v19, %v5810_v32  ;;  %v5809_v24 = vadd.f32 %v5170_v39, %v19095_v54  ;;  %v15275_v36 = vpop.f32.mrf.mxu0  ;;  %v23358_v39 = vld [vmem:[#allocation27_spill] sm:$0xff]  ;;  %v23359_v40 = vld [vmem:[#allocation29_spill] sm:$0xff] }
 0x2a2   : > { %v15081_v17 = vpop.f32.mrf.mxu1  ;;  %15420 = vmatmul.mubr.msk.f32.gmra.mxu1 %vm395_vm1, %v23356_v7  ;;  %15614 = vmatmul.mubr.msk.f32.gmra.mxu0 %vm395_vm1, %v16443_v9 }
 0x2a3   : > { %v20022_v25 = vadd.f32 %v6282_v4, %v5809_v24  ;;  %v5812_v13 = vadd.f32 %v15081_v17, %v19102_v33  ;;  %15422 = vmatprep.mubr.msk.f32.mxu1 %vm395_vm1, %v23357_v56  ;;  %15616 = vmatprep.mubr.msk.f32.mxu0 %vm395_vm1, %v16444_v42  ;;  %v6292_v47 = vpop.f32.mrf.mxu0  ;;  %v16445_v33 = vld [vmem:[%s16746_s9 + $0x80] sm:$0xff]  ;;  %v16446_v24 = vld [vmem:[%s16746_s9 + $0x88] sm:$0xff] }
 0x2a4   : > { %v5180_v54 = vpop.f32.mrf.mxu1  ;;  %v23360_v42 = vld [vmem:[#allocation31_spill] sm:$0xff] }
 0x2a5   : > { %v20029_v19 = vadd.f32 %v15275_v36, %v5812_v13  ;;  %v5811_v57 = vadd.f32 %v5180_v54, %v19109_v8 }
 0x2a6   : > { %v15084_v6 = vpop.f32.mrf.mxu1  ;;  %v15278_v32 = vpop.f32.mrf.mxu0  ;;  %15423 = vmatmul.mubr.msk.f32.gmra.mxu1 %vm395_vm1, %v23358_v39  ;;  %15617 = vmatmul.mubr.msk.f32.gmra.mxu0 %vm395_vm1, %v16445_v33 }
 0x2a7   : > { %v20036_v4 = vadd.f32 %v6292_v47, %v5811_v57  ;;  %v5814_v12 = vadd.f32 %v15084_v6, %v19116_v27  ;;  %15425 = vmatprep.mubr.msk.f32.mxu1 %vm395_vm1, %v23359_v40  ;;  %15619 = vmatprep.mubr.msk.f32.mxu0 %vm395_vm1, %v16446_v24  ;;  %v16447_v27 = vld [vmem:[%s16746_s9 + $0x90] sm:$0xff]  ;;  %v23361_v57 = vld [vmem:[#allocation33_spill] sm:$0xff]  ;;  %v16448_v6 = vld [vmem:[%s16746_s9 + $0xa0] sm:$0xff] }
 0x2a8   : > { %v5190_v8 = vpop.f32.mrf.mxu1  ;;  %v6302_v17 = vpop.f32.mrf.mxu0 }
 0x2a9   : > { %v20043_v36 = vadd.f32 %v15278_v32, %v5814_v12  ;;  %v5813_v7 = vadd.f32 %v5190_v8, %v19123_v46 }
 0x2aa   : > { %v15087_v9 = vpop.f32.mrf.mxu1  ;;  %v15281_v13 = vpop.f32.mrf.mxu0  ;;  %15426 = vmatmul.mubr.msk.f32.gmra.mxu1 %vm395_vm1, %v23360_v42  ;;  %15620 = vmatmul.mubr.msk.f32.gmra.mxu0 %vm395_vm1, %v16447_v27  ;;  %v23362_v27 = vld [vmem:[#allocation35_spill] sm:$0xff] }
 0x2ab   : > { %v20050_v54 = vadd.f32 %v6302_v17, %v5813_v7  ;;  %v5816_v47 = vadd.f32 %v15087_v9, %v19130_v30  ;;  %15428 = vmatprep.mubr.msk.f32.mxu1 %vm395_vm1, %v23361_v57  ;;  %15622 = vmatprep.mubr.msk.f32.mxu0 %vm395_vm1, %v16448_v6  ;;  %v16449_v30 = vld [vmem:[%s16746_s9 + $0xa8] sm:$0xff]  ;;  %v23365_v6 = vld [vmem:[#allocation37_spill] sm:$0xff] }
 0x2ac   : > { %v5200_v46 = vpop.f32.mrf.mxu1  ;;  %v6312_v32 = vpop.f32.mrf.mxu0  ;;  %v23364_v7 = vld [vmem:[#allocation171_spill] sm:$0xff] }
 0x2ad   : > { %v20057_v33 = vadd.f32 %v15281_v13, %v5816_v47  ;;  %v5815_v12 = vadd.f32 %v5200_v46, %v19137_v55  ;;  %v16450_v13 = vld [vmem:[%s16746_s9 + $0xb0] sm:$0xff] }
 0x2ae   : > { %v15090_v24 = vpop.f32.mrf.mxu1  ;;  %v15284_v8 = vpop.f32.mrf.mxu0  ;;  %15429 = vmatmul.mubr.msk.f32.gmra.mxu1 %vm395_vm1, %v23362_v27  ;;  %15623 = vmatmul.mubr.msk.f32.gmra.mxu0 %vm395_vm1, %v16449_v30  ;;  %v23368_v30 = vld [vmem:[#allocation39_spill] sm:$0xff] }
 0x2af   : > { %v20064_v17 = vadd.f32 %v6312_v32, %v5815_v12  ;;  %v5818_v9 = vadd.f32 %v15090_v24, %v23364_v7  ;;  %15431 = vmatprep.mubr.msk.f32.mxu1 %vm395_vm1, %v23365_v6  ;;  %15625 = vmatprep.mubr.msk.f32.mxu0 %vm395_vm1, %v16450_v13  ;;  %v16451_v32 = vld [vmem:[%s16746_s9 + $0xb8] sm:$0xff] }
 0x2b0   : > { %v5210_v55 = vpop.f32.mrf.mxu1  ;;  %v6322_v47 = vpop.f32.mrf.mxu0  ;;  %v23370_v24 = vld [vmem:[#allocation177_spill] sm:$0xff] }
 0x2b1   : > { %23363 = vst [vmem:[#allocation284_spill] sm:$0xff] %v20064_v17  ;;  %v20071_v46 = vadd.f32 %v15284_v8, %v5818_v9  ;;  %v5817_v52 = vadd.f32 %v5210_v55, %v23367_v37  ;;  %v23371_v13 = vld [vmem:[#allocation41_spill] sm:$0xff]  ;;  %v16452_v8 = vld [vmem:[%s16746_s9 + $0xc8] sm:$0xff] }
 0x2b2   : > { %v15093_v16 = vpop.f32.mrf.mxu1  ;;  %v15287_v11 = vpop.f32.mrf.mxu0  ;;  %15432 = vmatmul.mubr.msk.f32.gmra.mxu1 %vm395_vm1, %v23368_v30  ;;  %15626 = vmatmul.mubr.msk.f32.gmra.mxu0 %vm395_vm1, %v16451_v32  ;;  %v23374_v32 = vld [vmem:[#allocation43_spill] sm:$0xff] }
 0x2b3   : > { %23366 = vst [vmem:[#allocation289_spill] sm:$0xff] %v20071_v46  ;;  %v20078_v12 = vadd.f32 %v6322_v47, %v5817_v52  ;;  %v5820_v7 = vadd.f32 %v15093_v16, %v23370_v24  ;;  %15434 = vmatprep.mubr.msk.f32.mxu1 %vm395_vm1, %v23371_v13  ;;  %15628 = vmatprep.mubr.msk.f32.mxu0 %vm395_vm1, %v16452_v8  ;;  %v16453_v16 = vld [vmem:[%s16746_s9 + $0xd0] sm:$0xff]  ;;  %v23376_v47 = vld [vmem:[#allocation187_spill] sm:$0xff]  ;;  %v23377_v8 = vld [vmem:[#allocation45_spill] sm:$0xff] }
 0x2b4   : > { %v5220_v37 = vpop.f32.mrf.mxu1  ;;  %v6332_v9 = vpop.f32.mrf.mxu0 }
 0x2b5   : > { %23369 = vst [vmem:[#allocation293_spill] sm:$0xff] %v20078_v12  ;;  %v20085_v55 = vadd.f32 %v15287_v11, %v5820_v7  ;;  %v5819_v44 = vadd.f32 %v5220_v37, %v23373_v20  ;;  %v16454_v11 = vld [vmem:[%s16746_s9 + $0xd8] sm:$0xff] }
 0x2b6   : > { %v15096_v46 = vpop.f32.mrf.mxu1  ;;  %v15290_v17 = vpop.f32.mrf.mxu0  ;;  %15435 = vmatmul.mubr.msk.f32.gmra.mxu1 %vm395_vm1, %v23374_v32  ;;  %15629 = vmatmul.mubr.msk.f32.gmra.mxu0 %vm395_vm1, %v16453_v16  ;;  %v23380_v16 = vld [vmem:[#allocation47_spill] sm:$0xff] }
 0x2b7   : > { %23372 = vst [vmem:[#allocation295_spill] sm:$0xff] %v20085_v55  ;;  %v20092_v52 = vadd.f32 %v6332_v9, %v5819_v44  ;;  %v5822_v24 = vadd.f32 %v15096_v46, %v23376_v47  ;;  %15437 = vmatprep.mubr.msk.f32.mxu1 %vm395_vm1, %v23377_v8  ;;  %15631 = vmatprep.mubr.msk.f32.mxu0 %vm395_vm1, %v16454_v11  ;;  %v23379_v55 = vld [vmem:[#allocation189_spill] sm:$0xff]  ;;  %v16455_v44 = vld [vmem:[%s16746_s9 + $0xe0] sm:$0xff] }
 0x2b8   : > { %v5230_v20 = vpop.f32.mrf.mxu1  ;;  %v6342_v7 = vpop.f32.mrf.mxu0  ;;  %v23382_v9 = vld [vmem:[#allocation193_spill] sm:$0xff] }
 0x2b9   : > { %23375 = vst [vmem:[#allocation297_spill] sm:$0xff] %v20092_v52  ;;  %v20099_v37 = vadd.f32 %v15290_v17, %v5822_v24  ;;  %v5821_v12 = vadd.f32 %v5230_v20, %v23379_v55  ;;  %v23383_v11 = vld [vmem:[#allocation49_spill] sm:$0xff]  ;;  %v16456_v17 = vld [vmem:[%s16746_s9 + $0xf0] sm:$0xff] }
 0x2ba   : > { %v15099_v32 = vpop.f32.mrf.mxu1  ;;  %v15293_v13 = vpop.f32.mrf.mxu0  ;;  %15438 = vmatmul.mubr.msk.f32.gmra.mxu1 %vm395_vm1, %v23380_v16  ;;  %15632 = vmatmul.mubr.msk.f32.gmra.mxu0 %vm395_vm1, %v16455_v44  ;;  %v23386_v44 = vld [vmem:[#allocation51_spill] sm:$0xff] }
 0x2bb   : > { %23378 = vst [vmem:[#allocation301_spill] sm:$0xff] %v20099_v37  ;;  %v20106_v46 = vadd.f32 %v6342_v7, %v5821_v12  ;;  %v5824_v47 = vadd.f32 %v15099_v32, %v23382_v9  ;;  %15440 = vmatprep.mubr.msk.f32.mxu1 %vm395_vm1, %v23383_v11  ;;  %15634 = vmatprep.mubr.msk.f32.mxu0 %vm395_vm1, %v16456_v17  ;;  %v23385_v37 = vld [vmem:[#allocation197_spill] sm:$0xff]  ;;  %v23388_v7 = vld [vmem:[#allocation203_spill] sm:$0xff] }
 0x2bc   : > { %v5240_v55 = vpop.f32.mrf.mxu1  ;;  %v6352_v24 = vpop.f32.mrf.mxu0  ;;  %v16457_v12 = vld [vmem:[%s16746_s9 + $0xf8] sm:$0xff] }
 0x2bd   : > { %23381 = vst [vmem:[#allocation305_spill] sm:$0xff] %v20106_v46  ;;  %v20113_v20 = vadd.f32 %v15293_v13, %v5824_v47  ;;  %v5823_v52 = vadd.f32 %v5240_v55, %v23385_v37  ;;  %v23389_v17 = vld [vmem:[#allocation53_spill] sm:$0xff]  ;;  %v16458_v13 = vld [vmem:[%s16746_s9 + $0x100] sm:$0xff] }
 0x2be   : > { %v15102_v16 = vpop.f32.mrf.mxu1  ;;  %v15296_v8 = vpop.f32.mrf.mxu0  ;;  %15441 = vmatmul.mubr.msk.f32.gmra.mxu1 %vm395_vm1, %v23386_v44  ;;  %15635 = vmatmul.mubr.msk.f32.gmra.mxu0 %vm395_vm1, %v16457_v12  ;;  %v23392_v12 = vld [vmem:[#allocation55_spill] sm:$0xff] }
 0x2bf   : > { %23384 = vst [vmem:[#allocation307_spill] sm:$0xff] %v20113_v20  ;;  %v20120_v32 = vadd.f32 %v6352_v24, %v5823_v52  ;;  %v5826_v9 = vadd.f32 %v15102_v16, %v23388_v7  ;;  %15443 = vmatprep.mubr.msk.f32.mxu1 %vm395_vm1, %v23389_v17  ;;  %15637 = vmatprep.mubr.msk.f32.mxu0 %vm395_vm1, %v16458_v13  ;;  %v23391_v20 = vld [vmem:[#allocation205_spill] sm:$0xff]  ;;  %v16459_v52 = vld [vmem:[%s16746_s9 + $0x108] sm:$0xff] }
 0x2c0   : > { %v5250_v37 = vpop.f32.mrf.mxu1  ;;  %v6362_v47 = vpop.f32.mrf.mxu0  ;;  %v23394_v24 = vld [vmem:[#allocation209_spill] sm:$0xff] }
 0x2c1   : > { %23387 = vst [vmem:[#allocation309_spill] sm:$0xff] %v20120_v32  ;;  %v20127_v55 = vadd.f32 %v15296_v8, %v5826_v9  ;;  %v5825_v46 = vadd.f32 %v5250_v37, %v23391_v20  ;;  %v23395_v13 = vld [vmem:[#allocation57_spill] sm:$0xff] }
 0x2c2   : > { %v15105_v44 = vpop.f32.mrf.mxu1  ;;  %v15299_v11 = vpop.f32.mrf.mxu0  ;;  %15444 = vmatmul.mubr.msk.f32.gmra.mxu1 %vm395_vm1, %v23392_v12  ;;  %15638 = vmatmul.mubr.msk.f32.gmra.mxu0 %vm395_vm1, %v16459_v52  ;;  %v16460_v8 = vld [vmem:[%s16746_s9 + $0x118] sm:$0xff]  ;;  %v23398_v52 = vld [vmem:[#allocation59_spill] sm:$0xff] }
 0x2c3   : > { %23390 = vst [vmem:[#allocation313_spill] sm:$0xff] %v20127_v55  ;;  %v20134_v16 = vadd.f32 %v6362_v47, %v5825_v46  ;;  %v5828_v7 = vadd.f32 %v15105_v44, %v23394_v24  ;;  %15446 = vmatprep.mubr.msk.f32.mxu1 %vm395_vm1, %v23395_v13  ;;  %15640 = vmatprep.mubr.msk.f32.mxu0 %vm395_vm1, %v16460_v8  ;;  %v23397_v55 = vld [vmem:[#allocation213_spill] sm:$0xff]  ;;  %v16461_v46 = vld [vmem:[%s16746_s9 + $0x120] sm:$0xff]  ;;  %v23400_v47 = vld [vmem:[#allocation219_spill] sm:$0xff] }
 0x2c4   : > { %v5260_v20 = vpop.f32.mrf.mxu1  ;;  %v6372_v9 = vpop.f32.mrf.mxu0  ;;  %v23401_v8 = vld [vmem:[#allocation61_spill] sm:$0xff] }
 0x2c5   : > { %23393 = vst [vmem:[#allocation317_spill] sm:$0xff] %v20134_v16  ;;  %v20141_v37 = vadd.f32 %v15299_v11, %v5828_v7  ;;  %v5827_v32 = vadd.f32 %v5260_v20, %v23397_v55  ;;  %v16462_v11 = vld [vmem:[%s16746_s9 + $0x128] sm:$0xff] }
 0x2c6   : > { %v15108_v12 = vpop.f32.mrf.mxu1  ;;  %v15302_v17 = vpop.f32.mrf.mxu0  ;;  %15447 = vmatmul.mubr.msk.f32.gmra.mxu1 %vm395_vm1, %v23398_v52  ;;  %15641 = vmatmul.mubr.msk.f32.gmra.mxu0 %vm395_vm1, %v16461_v46  ;;  %v23404_v46 = vld [vmem:[#allocation63_spill] sm:$0xff] }
 0x2c7   : > { %23396 = vst [vmem:[#allocation319_spill] sm:$0xff] %v20141_v37  ;;  %v20148_v44 = vadd.f32 %v6372_v9, %v5827_v32  ;;  %v5830_v24 = vadd.f32 %v15108_v12, %v23400_v47  ;;  %15449 = vmatprep.mubr.msk.f32.mxu1 %vm395_vm1, %v23401_v8  ;;  %15643 = vmatprep.mubr.msk.f32.mxu0 %vm395_vm1, %v16462_v11  ;;  %v23403_v37 = vld [vmem:[#allocation221_spill] sm:$0xff]  ;;  %v16463_v32 = vld [vmem:[%s16746_s9 + $0x130] sm:$0xff] }
 0x2c8   : > { %v5270_v55 = vpop.f32.mrf.mxu1  ;;  %v6382_v7 = vpop.f32.mrf.mxu0  ;;  %v23406_v9 = vld [vmem:[#allocation225_spill] sm:$0xff] }
 0x2c9   : > { %23399 = vst [vmem:[#allocation321_spill] sm:$0xff] %v20148_v44  ;;  %v20155_v20 = vadd.f32 %v15302_v17, %v5830_v24  ;;  %v5829_v16 = vadd.f32 %v5270_v55, %v23403_v37  ;;  %v23407_v11 = vld [vmem:[#allocation65_spill] sm:$0xff]  ;;  %v16464_v17 = vld [vmem:[%s16746_s9 + $0x140] sm:$0xff] }
 0x2ca   : > { %v15111_v52 = vpop.f32.mrf.mxu1  ;;  %v15305_v13 = vpop.f32.mrf.mxu0  ;;  %15450 = vmatmul.mubr.msk.f32.gmra.mxu1 %vm395_vm1, %v23404_v46  ;;  %15644 = vmatmul.mubr.msk.f32.gmra.mxu0 %vm395_vm1, %v16463_v32  ;;  %v23410_v32 = vld [vmem:[#allocation67_spill] sm:$0xff] }
 0x2cb   : > { %23402 = vst [vmem:[#allocation325_spill] sm:$0xff] %v20155_v20  ;;  %v20162_v12 = vadd.f32 %v6382_v7, %v5829_v16  ;;  %v5832_v47 = vadd.f32 %v15111_v52, %v23406_v9  ;;  %15452 = vmatprep.mubr.msk.f32.mxu1 %vm395_vm1, %v23407_v11  ;;  %15646 = vmatprep.mubr.msk.f32.mxu0 %vm395_vm1, %v16464_v17  ;;  %v23409_v20 = vld [vmem:[#allocation229_spill] sm:$0xff]  ;;  %v16465_v16 = vld [vmem:[%s16746_s9 + $0x148] sm:$0xff] }
 0x2cc   : > { %v5280_v37 = vpop.f32.mrf.mxu1  ;;  %v6392_v24 = vpop.f32.mrf.mxu0  ;;  %v23412_v7 = vld [vmem:[#allocation235_spill] sm:$0xff]  ;;  %v23413_v17 = vld [vmem:[#allocation69_spill] sm:$0xff] }
 0x2cd   : > { %23405 = vst [vmem:[#allocation329_spill] sm:$0xff] %v20162_v12  ;;  %v20169_v55 = vadd.f32 %v15305_v13, %v5832_v47  ;;  %v5831_v44 = vadd.f32 %v5280_v37, %v23409_v20  ;;  %v16466_v13 = vld [vmem:[%s16746_s9 + $0x150] sm:$0xff] }
 0x2ce   : > { %v15114_v46 = vpop.f32.mrf.mxu1  ;;  %v15308_v8 = vpop.f32.mrf.mxu0  ;;  %15453 = vmatmul.mubr.msk.f32.gmra.mxu1 %vm395_vm1, %v23410_v32  ;;  %15647 = vmatmul.mubr.msk.f32.gmra.mxu0 %vm395_vm1, %v16465_v16  ;;  %v23416_v16 = vld [vmem:[#allocation71_spill] sm:$0xff] }
 0x2cf   : > { %23408 = vst [vmem:[#allocation331_spill] sm:$0xff] %v20169_v55  ;;  %v20176_v52 = vadd.f32 %v6392_v24, %v5831_v44  ;;  %v5834_v9 = vadd.f32 %v15114_v46, %v23412_v7  ;;  %15455 = vmatprep.mubr.msk.f32.mxu1 %vm395_vm1, %v23413_v17  ;;  %15649 = vmatprep.mubr.msk.f32.mxu0 %vm395_vm1, %v16466_v13  ;;  %v23415_v55 = vld [vmem:[#allocation237_spill] sm:$0xff] }
 0x2d0   : > { %v5290_v20 = vpop.f32.mrf.mxu1  ;;  %v6402_v47 = vpop.f32.mrf.mxu0  ;;  %v16467_v44 = vld [vmem:[%s16746_s9 + $0x158] sm:$0xff] }
 0x2d1   : > { %23411 = vst [vmem:[#allocation333_spill] sm:$0xff] %v20176_v52  ;;  %v20183_v37 = vadd.f32 %v15308_v8, %v5834_v9  ;;  %v5833_v12 = vadd.f32 %v5290_v20, %v23415_v55  ;;  %v23418_v24 = vld [vmem:[#allocation241_spill] sm:$0xff]  ;;  %v16468_v8 = vld [vmem:[%s16746_s9 + $0x168] sm:$0xff] }
 0x2d2   : > { %v15117_v32 = vpop.f32.mrf.mxu1  ;;  %v15311_v11 = vpop.f32.mrf.mxu0  ;;  %15456 = vmatmul.mubr.msk.f32.gmra.mxu1 %vm395_vm1, %v23416_v16  ;;  %15650 = vmatmul.mubr.msk.f32.gmra.mxu0 %vm395_vm1, %v16467_v44  ;;  %v23419_v13 = vld [vmem:[#allocation73_spill] sm:$0xff]  ;;  %v23422_v44 = vld [vmem:[#allocation75_spill] sm:$0xff] }
 0x2d3   : > { %23414 = vst [vmem:[#allocation337_spill] sm:$0xff] %v20183_v37  ;;  %v20190_v46 = vadd.f32 %v6402_v47, %v5833_v12  ;;  %v5836_v7 = vadd.f32 %v15117_v32, %v23418_v24  ;;  %15458 = vmatprep.mubr.msk.f32.mxu1 %vm395_vm1, %v23419_v13  ;;  %15652 = vmatprep.mubr.msk.f32.mxu0 %vm395_vm1, %v16468_v8  ;;  %v23421_v37 = vld [vmem:[#allocation245_spill] sm:$0xff]  ;;  %v16469_v12 = vld [vmem:[%s16746_s9 + $0x170] sm:$0xff]  ;;  %v23424_v47 = vld [vmem:[#allocation251_spill] sm:$0xff] }
 0x2d4   : > { %v5300_v55 = vpop.f32.mrf.mxu1  ;;  %v6412_v9 = vpop.f32.mrf.mxu0  ;;  %v23425_v8 = vld [vmem:[#allocation77_spill] sm:$0xff] }
 0x2d5   : > { %23417 = vst [vmem:[#allocation341_spill] sm:$0xff] %v20190_v46  ;;  %v20197_v20 = vadd.f32 %v15311_v11, %v5836_v7  ;;  %v5835_v52 = vadd.f32 %v5300_v55, %v23421_v37  ;;  %v16470_v11 = vld [vmem:[%s16746_s9 + $0x178] sm:$0xff] }
 0x2d6   : > { %v15120_v16 = vpop.f32.mrf.mxu1  ;;  %v15314_v17 = vpop.f32.mrf.mxu0  ;;  %15459 = vmatmul.mubr.msk.f32.gmra.mxu1 %vm395_vm1, %v23422_v44  ;;  %15653 = vmatmul.mubr.msk.f32.gmra.mxu0 %vm395_vm1, %v16469_v12  ;;  %v23428_v12 = vld [vmem:[#allocation80_spill] sm:$0xff] }
 0x2d7   : > { %23420 = vst [vmem:[#allocation343_spill] sm:$0xff] %v20197_v20  ;;  %v20204_v32 = vadd.f32 %v6412_v9, %v5835_v52  ;;  %v5838_v24 = vadd.f32 %v15120_v16, %v23424_v47  ;;  %15461 = vmatprep.mubr.msk.f32.mxu1 %vm395_vm1, %v23425_v8  ;;  %15655 = vmatprep.mubr.msk.f32.mxu0 %vm395_vm1, %v16470_v11  ;;  %v23427_v20 = vld [vmem:[#allocation253_spill] sm:$0xff]  ;;  %v16471_v52 = vld [vmem:[%s16746_s9 + $0x180] sm:$0xff]  ;;  %v23431_v11 = vld [vmem:[#allocation83_spill] sm:$0xff] }
 0x2d8   : > { %v5310_v37 = vpop.f32.mrf.mxu1  ;;  %v6422_v7 = vpop.f32.mrf.mxu0  ;;  %v23430_v9 = vld [vmem:[#allocation257_spill] sm:$0xff] }
 0x2d9   : > { %23423 = vst [vmem:[#allocation348_spill] sm:$0xff] %v20204_v32  ;;  %v20211_v55 = vadd.f32 %v15314_v17, %v5838_v24  ;;  %v5837_v46 = vadd.f32 %v5310_v37, %v23427_v20  ;;  %v16472_v17 = vld [vmem:[%s16746_s9 + $0x190] sm:$0xff] }
 0x2da   : > { %v15123_v44 = vpop.f32.mrf.mxu1  ;;  %v15317_v13 = vpop.f32.mrf.mxu0  ;;  %15462 = vmatmul.mubr.msk.f32.gmra.mxu1 %vm395_vm1, %v23428_v12  ;;  %15656 = vmatmul.mubr.msk.f32.gmra.mxu0 %vm395_vm1, %v16471_v52  ;;  %v23434_v52 = vld [vmem:[#allocation86_spill] sm:$0xff] }
 0x2db   : > { %23426 = vst [vmem:[#allocation352_spill] sm:$0xff] %v20211_v55  ;;  %v20218_v16 = vadd.f32 %v6422_v7, %v5837_v46  ;;  %v5840_v47 = vadd.f32 %v15123_v44, %v23430_v9  ;;  %15464 = vmatprep.mubr.msk.f32.mxu1 %vm395_vm1, %v23431_v11  ;;  %15658 = vmatprep.mubr.msk.f32.mxu0 %vm395_vm1, %v16472_v17  ;;  %v23433_v55 = vld [vmem:[#allocation261_spill] sm:$0xff]  ;;  %v23436_v7 = vld [vmem:[#allocation267_spill] sm:$0xff]  ;;  %v23437_v17 = vld [vmem:[#allocation88_spill] sm:$0xff] }
 0x2dc   : > { %v5320_v20 = vpop.f32.mrf.mxu1  ;;  %v6432_v24 = vpop.f32.mrf.mxu0  ;;  %v16473_v46 = vld [vmem:[%s16746_s9 + $0x198] sm:$0xff] }
 0x2dd   : > { %23429 = vst [vmem:[#allocation354_spill] sm:$0xff] %v20218_v16  ;;  %v20225_v37 = vadd.f32 %v15317_v13, %v5840_v47  ;;  %v5839_v32 = vadd.f32 %v5320_v20, %v23433_v55  ;;  %v16474_v13 = vld [vmem:[%s16746_s9 + $0x1a0] sm:$0xff] }
 0x2de   : > { %v15126_v12 = vpop.f32.mrf.mxu1  ;;  %v15320_v8 = vpop.f32.mrf.mxu0  ;;  %15465 = vmatmul.mubr.msk.f32.gmra.mxu1 %vm395_vm1, %v23434_v52  ;;  %15659 = vmatmul.mubr.msk.f32.gmra.mxu0 %vm395_vm1, %v16473_v46  ;;  %v23440_v46 = vld [vmem:[#allocation92_spill] sm:$0xff] }
 0x2df   : > { %23432 = vst [vmem:[#allocation356_spill] sm:$0xff] %v20225_v37  ;;  %v20232_v44 = vadd.f32 %v6432_v24, %v5839_v32  ;;  %v5842_v9 = vadd.f32 %v15126_v12, %v23436_v7  ;;  %15467 = vmatprep.mubr.msk.f32.mxu1 %vm395_vm1, %v23437_v17  ;;  %15661 = vmatprep.mubr.msk.f32.mxu0 %vm395_vm1, %v16474_v13  ;;  %v23439_v37 = vld [vmem:[#allocation269_spill] sm:$0xff]  ;;  %v16475_v32 = vld [vmem:[%s16746_s9 + $0x1a8] sm:$0xff] }
 0x2e0   : > { %v5330_v55 = vpop.f32.mrf.mxu1  ;;  %v6442_v47 = vpop.f32.mrf.mxu0  ;;  %v23442_v24 = vld [vmem:[#allocation273_spill] sm:$0xff]  ;;  %v23443_v13 = vld [vmem:[#allocation95_spill] sm:$0xff] }
 0x2e1   : > { %23435 = vst [vmem:[#allocation20_spill] sm:$0xff] %v20232_v44  ;;  %v20239_v20 = vadd.f32 %v15320_v8, %v5842_v9  ;;  %v5841_v16 = vadd.f32 %v5330_v55, %v23439_v37  ;;  %v16476_v8 = vld [vmem:[%s16746_s9 + $0x1b8] sm:$0xff] }
 0x2e2   : > { %v15129_v52 = vpop.f32.mrf.mxu1  ;;  %v15323_v11 = vpop.f32.mrf.mxu0  ;;  %15468 = vmatmul.mubr.msk.f32.gmra.mxu1 %vm395_vm1, %v23440_v46  ;;  %15662 = vmatmul.mubr.msk.f32.gmra.mxu0 %vm395_vm1, %v16475_v32  ;;  %v23446_v32 = vld [vmem:[#allocation98_spill] sm:$0xff] }
 0x2e3   : > { %23438 = vst [vmem:[#allocation21_spill] sm:$0xff] %v20239_v20  ;;  %v20246_v12 = vadd.f32 %v6442_v47, %v5841_v16  ;;  %v5844_v7 = vadd.f32 %v15129_v52, %v23442_v24  ;;  %15470 = vmatprep.mubr.msk.f32.mxu1 %vm395_vm1, %v23443_v13  ;;  %15664 = vmatprep.mubr.msk.f32.mxu0 %vm395_vm1, %v16476_v8  ;;  %v23445_v20 = vld [vmem:[#allocation277_spill] sm:$0xff]  ;;  %v16477_v16 = vld [vmem:[%s16746_s9 + $0x1c0] sm:$0xff]  ;;  %v23448_v47 = vld [vmem:[#allocation283_spill] sm:$0xff] }
 0x2e4   : > { %v5340_v37 = vpop.f32.mrf.mxu1  ;;  %v6452_v9 = vpop.f32.mrf.mxu0  ;;  %v23449_v8 = vld [vmem:[#allocation100_spill] sm:$0xff] }
 0x2e5   : > { %23441 = vst [vmem:[#allocation22_spill] sm:$0xff] %v20246_v12  ;;  %v20253_v55 = vadd.f32 %v15323_v11, %v5844_v7  ;;  %v5843_v44 = vadd.f32 %v5340_v37, %v23445_v20  ;;  %v16478_v11 = vld [vmem:[%s16746_s9 + $0x1c8] sm:$0xff] }
 0x2e6   : > { %v15132_v46 = vpop.f32.mrf.mxu1  ;;  %v15326_v17 = vpop.f32.mrf.mxu0  ;;  %15471 = vmatmul.mubr.msk.f32.gmra.mxu1 %vm395_vm1, %v23446_v32  ;;  %15665 = vmatmul.mubr.msk.f32.gmra.mxu0 %vm395_vm1, %v16477_v16  ;;  %v23452_v16 = vld [vmem:[#allocation104_spill] sm:$0xff] }
 0x2e7   : > { %23444 = vst [vmem:[#allocation23_spill] sm:$0xff] %v20253_v55  ;;  %v20260_v52 = vadd.f32 %v6452_v9, %v5843_v44  ;;  %v5846_v24 = vadd.f32 %v15132_v46, %v23448_v47  ;;  %15473 = vmatprep.mubr.msk.f32.mxu1 %vm395_vm1, %v23449_v8  ;;  %15667 = vmatprep.mubr.msk.f32.mxu0 %vm395_vm1, %v16478_v11  ;;  %v23451_v55 = vld [vmem:[#allocation78_spill] sm:$0xff]  ;;  %v16479_v44 = vld [vmem:[%s16746_s9 + $0x1d0] sm:$0xff]  ;;  %v23454_v9 = vld [vmem:[#allocation81_spill] sm:$0xff] }
 0x2e8   : > { %v5350_v20 = vpop.f32.mrf.mxu1  ;;  %v6462_v7 = vpop.f32.mrf.mxu0  ;;  %v23455_v11 = vld [vmem:[#allocation107_spill] sm:$0xff] }
 0x2e9   : > { %23447 = vst [vmem:[#allocation25_spill] sm:$0xff] %v20260_v52  ;;  %v20267_v37 = vadd.f32 %v15326_v17, %v5846_v24  ;;  %v5845_v12 = vadd.f32 %v5350_v20, %v23451_v55  ;;  %v16480_v17 = vld [vmem:[%s16746_s9 + $0x1e0] sm:$0xff] }
 0x2ea   : > { %v15135_v32 = vpop.f32.mrf.mxu1  ;;  %v15329_v13 = vpop.f32.mrf.mxu0  ;;  %15474 = vmatmul.mubr.msk.f32.gmra.mxu1 %vm395_vm1, %v23452_v16  ;;  %15668 = vmatmul.mubr.msk.f32.gmra.mxu0 %vm395_vm1, %v16479_v44  ;;  %v23458_v44 = vld [vmem:[#allocation110_spill] sm:$0xff] }
 0x2eb   : > { %23450 = vst [vmem:[#allocation27_spill] sm:$0xff] %v20267_v37  ;;  %v20274_v46 = vadd.f32 %v6462_v7, %v5845_v12  ;;  %v5848_v47 = vadd.f32 %v15135_v32, %v23454_v9  ;;  %15476 = vmatprep.mubr.msk.f32.mxu1 %vm395_vm1, %v23455_v11  ;;  %15670 = vmatprep.mubr.msk.f32.mxu0 %vm395_vm1, %v16480_v17  ;;  %v23457_v37 = vld [vmem:[#allocation84_spill] sm:$0xff]  ;;  %v16481_v12 = vld [vmem:[%s16746_s9 + $0x1e8] sm:$0xff]  ;;  %v23460_v7 = vld [vmem:[#allocation89_spill] sm:$0xff] }
 0x2ec   : > { %v5360_v55 = vpop.f32.mrf.mxu1  ;;  %v6472_v24 = vpop.f32.mrf.mxu0  ;;  %v23461_v17 = vld [vmem:[#allocation112_spill] sm:$0xff] }
 0x2ed   : > { %23453 = vst [vmem:[#allocation29_spill] sm:$0xff] %v20274_v46  ;;  %v20281_v20 = vadd.f32 %v15329_v13, %v5848_v47  ;;  %v5847_v52 = vadd.f32 %v5360_v55, %v23457_v37  ;;  %v16482_v13 = vld [vmem:[%s16746_s9 + $0x1f0] sm:$0xff] }
 0x2ee   : > { %v15138_v16 = vpop.f32.mrf.mxu1  ;;  %v15332_v8 = vpop.f32.mrf.mxu0  ;;  %15477 = vmatmul.mubr.msk.f32.gmra.mxu1 %vm395_vm1, %v23458_v44  ;;  %15671 = vmatmul.mubr.msk.f32.gmra.mxu0 %vm395_vm1, %v16481_v12  ;;  %v23464_v12 = vld [vmem:[#allocation115_spill] sm:$0xff] }
 0x2ef   : > { %23456 = vst [vmem:[#allocation31_spill] sm:$0xff] %v20281_v20  ;;  %v20288_v32 = vadd.f32 %v6472_v24, %v5847_v52  ;;  %v5850_v9 = vadd.f32 %v15138_v16, %v23460_v7  ;;  %15479 = vmatprep.mubr.msk.f32.mxu1 %vm395_vm1, %v23461_v17  ;;  %15673 = vmatprep.mubr.msk.f32.mxu0 %vm395_vm1, %v16482_v13  ;;  %v23463_v20 = vld [vmem:[#allocation90_spill] sm:$0xff]  ;;  %v16483_v52 = vld [vmem:[%s16746_s9 + $0x1f8] sm:$0xff] }
 0x2f0   : > { %v5370_v37 = vpop.f32.mrf.mxu1  ;;  %v6482_v47 = vpop.f32.mrf.mxu0  ;;  %v23466_v24 = vld [vmem:[#allocation93_spill] sm:$0xff] }
 0x2f1   : > { %23459 = vst [vmem:[#allocation33_spill] sm:$0xff] %v20288_v32  ;;  %v20295_v55 = vadd.f32 %v15332_v8, %v5850_v9  ;;  %v5849_v46 = vadd.f32 %v5370_v37, %v23463_v20  ;;  %v23467_v13 = vld [vmem:[#allocation117_spill] sm:$0xff]  ;;  %v16484_v8 = vld [vmem:[%s16746_s9 + $0x208] sm:$0xff] }
 0x2f2   : > { %v15141_v44 = vpop.f32.mrf.mxu1  ;;  %v15335_v11 = vpop.f32.mrf.mxu0  ;;  %15480 = vmatmul.mubr.msk.f32.gmra.mxu1 %vm395_vm1, %v23464_v12  ;;  %15674 = vmatmul.mubr.msk.f32.gmra.mxu0 %vm395_vm1, %v16483_v52  ;;  %v23470_v52 = vld [vmem:[#allocation120_spill] sm:$0xff] }
 0x2f3   : > { %23462 = vst [vmem:[#allocation35_spill] sm:$0xff] %v20295_v55  ;;  %v20302_v16 = vadd.f32 %v6482_v47, %v5849_v46  ;;  %v5852_v7 = vadd.f32 %v15141_v44, %v23466_v24  ;;  %15482 = vmatprep.mubr.msk.f32.mxu1 %vm395_vm1, %v23467_v13  ;;  %15676 = vmatprep.mubr.msk.f32.mxu0 %vm395_vm1, %v16484_v8  ;;  %v23469_v55 = vld [vmem:[#allocation96_spill] sm:$0xff]  ;;  %v23472_v47 = vld [vmem:[#allocation101_spill] sm:$0xff]  ;;  %v23473_v8 = vld [vmem:[#allocation122_spill] sm:$0xff] }
 0x2f4   : > { %v5380_v20 = vpop.f32.mrf.mxu1  ;;  %v6492_v9 = vpop.f32.mrf.mxu0  ;;  %v16485_v46 = vld [vmem:[%s16746_s9 + $0x210] sm:$0xff] }
 0x2f5   : > { %23465 = vst [vmem:[#allocation171_spill] sm:$0xff] %v20302_v16  ;;  %v20309_v37 = vadd.f32 %v15335_v11, %v5852_v7  ;;  %v5851_v32 = vadd.f32 %v5380_v20, %v23469_v55  ;;  %v16486_v11 = vld [vmem:[%s16746_s9 + $0x218] sm:$0xff] }
 0x2f6   : > { %v15144_v12 = vpop.f32.mrf.mxu1  ;;  %v15338_v17 = vpop.f32.mrf.mxu0  ;;  %15483 = vmatmul.mubr.msk.f32.gmra.mxu1 %vm395_vm1, %v23470_v52  ;;  %15677 = vmatmul.mubr.msk.f32.gmra.mxu0 %vm395_vm1, %v16485_v46  ;;  %v23476_v46 = vld [vmem:[#allocation10_spill] sm:$0xff] }
 0x2f7   : > { %23468 = vst [vmem:[#allocation37_spill] sm:$0xff] %v20309_v37  ;;  %v20316_v44 = vadd.f32 %v6492_v9, %v5851_v32  ;;  %v5854_v24 = vadd.f32 %v15144_v12, %v23472_v47  ;;  %15485 = vmatprep.mubr.msk.f32.mxu1 %vm395_vm1, %v23473_v8  ;;  %15679 = vmatprep.mubr.msk.f32.mxu0 %vm395_vm1, %v16486_v11  ;;  %v23475_v37 = vld [vmem:[#allocation102_spill] sm:$0xff]  ;;  %v23478_v9 = vld [vmem:[#allocation105_spill] sm:$0xff] }
 0x2f8   : > { %v5390_v55 = vpop.f32.mrf.mxu1  ;;  %v6502_v7 = vpop.f32.mrf.mxu0  ;;  %v16487_v32 = vld [vmem:[%s16746_s9 + $0x220] sm:$0xff]  ;;  %v23479_v11 = vld [vmem:[#allocation125_spill] sm:$0xff] }
 0x2f9   : > { %23471 = vst [vmem:[#allocation173_spill] sm:$0xff] %v20316_v44  ;;  %v20323_v20 = vadd.f32 %v15338_v17, %v5854_v24  ;;  %v5853_v16 = vadd.f32 %v5390_v55, %v23475_v37  ;;  %v16488_v17 = vld [vmem:[%s16746_s9 + $0x230] sm:$0xff] }
 0x2fa   : > { %v15147_v52 = vpop.f32.mrf.mxu1  ;;  %v15341_v13 = vpop.f32.mrf.mxu0  ;;  %15486 = vmatmul.mubr.msk.f32.gmra.mxu1 %vm395_vm1, %v23476_v46  ;;  %15680 = vmatmul.mubr.msk.f32.gmra.mxu0 %vm395_vm1, %v16487_v32  ;;  %v23482_v32 = vld [vmem:[#allocation128_spill] sm:$0xff] }
 0x2fb   : > { %23474 = vst [vmem:[#allocation39_spill] sm:$0xff] %v20323_v20  ;;  %v20330_v12 = vadd.f32 %v6502_v7, %v5853_v16  ;;  %v5856_v47 = vadd.f32 %v15147_v52, %v23478_v9  ;;  %15488 = vmatprep.mubr.msk.f32.mxu1 %vm395_vm1, %v23479_v11  ;;  %15682 = vmatprep.mubr.msk.f32.mxu0 %vm395_vm1, %v16488_v17  ;;  %v23481_v20 = vld [vmem:[#allocation108_spill] sm:$0xff]  ;;  %v16489_v16 = vld [vmem:[%s16746_s9 + $0x238] sm:$0xff]  ;;  %v23485_v17 = vld [vmem:[#allocation130_spill] sm:$0xff] }
 0x2fc   : > { %v5400_v37 = vpop.f32.mrf.mxu1  ;;  %v6512_v24 = vpop.f32.mrf.mxu0  ;;  %v23484_v7 = vld [vmem:[#allocation113_spill] sm:$0xff] }
 0x2fd   : > { %23477 = vst [vmem:[#allocation177_spill] sm:$0xff] %v20330_v12  ;;  %v20337_v55 = vadd.f32 %v15341_v13, %v5856_v47  ;;  %v5855_v44 = vadd.f32 %v5400_v37, %v23481_v20  ;;  %v16490_v13 = vld [vmem:[%s16746_s9 + $0x240] sm:$0xff] }
 0x2fe   : > { %v15150_v46 = vpop.f32.mrf.mxu1  ;;  %v15344_v8 = vpop.f32.mrf.mxu0  ;;  %15489 = vmatmul.mubr.msk.f32.gmra.mxu1 %vm395_vm1, %v23482_v32  ;;  %15683 = vmatmul.mubr.msk.f32.gmra.mxu0 %vm395_vm1, %v16489_v16  ;;  %v23488_v16 = vld [vmem:[#allocation14_spill] sm:$0xff] }
 0x2ff   : > { %23480 = vst [vmem:[#allocation181_spill] sm:$0xff] %v20337_v55  ;;  %v20344_v52 = vadd.f32 %v6512_v24, %v5855_v44  ;;  %v5858_v9 = vadd.f32 %v15150_v46, %v23484_v7  ;;  %15491 = vmatprep.mubr.msk.f32.mxu1 %vm395_vm1, %v23485_v17  ;;  %15685 = vmatprep.mubr.msk.f32.mxu0 %vm395_vm1, %v16490_v13  ;;  %v23487_v55 = vld [vmem:[#allocation114_spill] sm:$0xff]  ;;  %v16491_v44 = vld [vmem:[%s16746_s9 + $0x248] sm:$0xff]  ;;  %v23491_v13 = vld [vmem:[#allocation133_spill] sm:$0xff] }
 0x300   : > { %v5410_v20 = vpop.f32.mrf.mxu1  ;;  %v6522_v47 = vpop.f32.mrf.mxu0  ;;  %v23490_v24 = vld [vmem:[#allocation7_spill] sm:$0xff] }
 0x301   : > { %23483 = vst [vmem:[#allocation187_spill] sm:$0xff] %v20344_v52  ;;  %v20351_v37 = vadd.f32 %v15344_v8, %v5858_v9  ;;  %v5857_v12 = vadd.f32 %v5410_v20, %v23487_v55  ;;  %v16492_v8 = vld [vmem:[%s16746_s9 + $0x258] sm:$0xff] }
 0x302   : > { %v15153_v32 = vpop.f32.mrf.mxu1  ;;  %v15347_v11 = vpop.f32.mrf.mxu0  ;;  %15492 = vmatmul.mubr.msk.f32.gmra.mxu1 %vm395_vm1, %v23488_v16  ;;  %15686 = vmatmul.mubr.msk.f32.gmra.mxu0 %vm395_vm1, %v16491_v44  ;;  %v23494_v44 = vld [vmem:[#allocation136_spill] sm:$0xff] }
 0x303   : > { %23486 = vst [vmem:[#allocation189_spill] sm:$0xff] %v20351_v37  ;;  %v20358_v46 = vadd.f32 %v6522_v47, %v5857_v12  ;;  %v5860_v7 = vadd.f32 %v15153_v32, %v23490_v24  ;;  %15494 = vmatprep.mubr.msk.f32.mxu1 %vm395_vm1, %v23491_v13  ;;  %15688 = vmatprep.mubr.msk.f32.mxu0 %vm395_vm1, %v16492_v8  ;;  %v23493_v37 = vld [vmem:[#allocation118_spill] sm:$0xff]  ;;  %v23496_v47 = vld [vmem:[#allocation123_spill] sm:$0xff] }
 0x304   : > { %v5420_v55 = vpop.f32.mrf.mxu1  ;;  %v6532_v9 = vpop.f32.mrf.mxu0  ;;  %v16493_v12 = vld [vmem:[%s16746_s9 + $0x260] sm:$0xff] }
 0x305   : > { %23489 = vst [vmem:[#allocation193_spill] sm:$0xff] %v20358_v46  ;;  %v20365_v20 = vadd.f32 %v15347_v11, %v5860_v7  ;;  %v5859_v52 = vadd.f32 %v5420_v55, %v23493_v37  ;;  %v23497_v8 = vld [vmem:[#allocation138_spill] sm:$0xff]  ;;  %v16494_v11 = vld [vmem:[%s16746_s9 + $0x268] sm:$0xff] }
 0x306   : > { %v15156_v16 = vpop.f32.mrf.mxu1  ;;  %v15350_v17 = vpop.f32.mrf.mxu0  ;;  %15495 = vmatmul.mubr.msk.f32.gmra.mxu1 %vm395_vm1, %v23494_v44  ;;  %15689 = vmatmul.mubr.msk.f32.gmra.mxu0 %vm395_vm1, %v16493_v12  ;;  %v23500_v12 = vld [vmem:[#allocation18_spill] sm:$0xff] }
 0x307   : > { %23492 = vst [vmem:[#allocation197_spill] sm:$0xff] %v20365_v20  ;;  %v20372_v32 = vadd.f32 %v6532_v9, %v5859_v52  ;;  %v5862_v24 = vadd.f32 %v15156_v16, %v23496_v47  ;;  %15497 = vmatprep.mubr.msk.f32.mxu1 %vm395_vm1, %v23497_v8  ;;  %15691 = vmatprep.mubr.msk.f32.mxu0 %vm395_vm1, %v16494_v11  ;;  %v23499_v20 = vld [vmem:[#allocation8_spill] sm:$0xff]  ;;  %v23502_v9 = vld [vmem:[#allocation11_spill] sm:$0xff]  ;;  %v23503_v11 = vld [vmem:[#allocation141_spill] sm:$0xff] }
 0x308   : > { %v5430_v37 = vpop.f32.mrf.mxu1  ;;  %v6542_v7 = vpop.f32.mrf.mxu0  ;;  %v16495_v52 = vld [vmem:[%s16746_s9 + $0x270] sm:$0xff] }
 0x309   : > { %23495 = vst [vmem:[#allocation203_spill] sm:$0xff] %v20372_v32  ;;  %v20379_v55 = vadd.f32 %v15350_v17, %v5862_v24  ;;  %v5861_v46 = vadd.f32 %v5430_v37, %v23499_v20  ;;  %v16496_v17 = vld [vmem:[%s16746_s9 + $0x280] sm:$0xff] }
 0x30a   : > { %v15159_v44 = vpop.f32.mrf.mxu1  ;;  %v15353_v13 = vpop.f32.mrf.mxu0  ;;  %15498 = vmatmul.mubr.msk.f32.gmra.mxu1 %vm395_vm1, %v23500_v12  ;;  %15692 = vmatmul.mubr.msk.f32.gmra.mxu0 %vm395_vm1, %v16495_v52  ;;  %v23506_v52 = vld [vmem:[#allocation144_spill] sm:$0xff] }
 0x30b   : > { %23498 = vst [vmem:[#allocation205_spill] sm:$0xff] %v20379_v55  ;;  %v20386_v16 = vadd.f32 %v6542_v7, %v5861_v46  ;;  %v5864_v47 = vadd.f32 %v15159_v44, %v23502_v9  ;;  %15500 = vmatprep.mubr.msk.f32.mxu1 %vm395_vm1, %v23503_v11  ;;  %15694 = vmatprep.mubr.msk.f32.mxu0 %vm395_vm1, %v16496_v17  ;;  %v23505_v55 = vld [vmem:[#allocation126_spill] sm:$0xff]  ;;  %v16497_v46 = vld [vmem:[%s16746_s9 + $0x288] sm:$0xff] }
 0x30c   : > { %v5440_v20 = vpop.f32.mrf.mxu1  ;;  %v6552_v24 = vpop.f32.mrf.mxu0  ;;  %v23508_v7 = vld [vmem:[#allocation131_spill] sm:$0xff]  ;;  %v23509_v17 = vld [vmem:[#allocation146_spill] sm:$0xff] }
 0x30d   : > { %23501 = vst [vmem:[#allocation209_spill] sm:$0xff] %v20386_v16  ;;  %v20393_v37 = vadd.f32 %v15353_v13, %v5864_v47  ;;  %v5863_v32 = vadd.f32 %v5440_v20, %v23505_v55  ;;  %v16498_v13 = vld [vmem:[%s16746_s9 + $0x290] sm:$0xff] }
 0x30e   : > { %v15162_v12 = vpop.f32.mrf.mxu1  ;;  %v15356_v8 = vpop.f32.mrf.mxu0  ;;  %15501 = vmatmul.mubr.msk.f32.gmra.mxu1 %vm395_vm1, %v23506_v52  ;;  %15695 = vmatmul.mubr.msk.f32.gmra.mxu0 %vm395_vm1, %v16497_v46  ;;  %v23512_v46 = vld [vmem:[#allocation150_spill] sm:$0xff] }
 0x30f   : > { %23504 = vst [vmem:[#allocation213_spill] sm:$0xff] %v20393_v37  ;;  %v20400_v44 = vadd.f32 %v6552_v24, %v5863_v32  ;;  %v5866_v9 = vadd.f32 %v15162_v12, %v23508_v7  ;;  %15503 = vmatprep.mubr.msk.f32.mxu1 %vm395_vm1, %v23509_v17  ;;  %15697 = vmatprep.mubr.msk.f32.mxu0 %vm395_vm1, %v16498_v13  ;;  %v23511_v37 = vld [vmem:[#allocation12_spill] sm:$0xff]  ;;  %v16499_v32 = vld [vmem:[%s16746_s9 + $0x298] sm:$0xff]  ;;  %v23514_v24 = vld [vmem:[#allocation15_spill] sm:$0xff] }
 0x310   : > { %v5450_v55 = vpop.f32.mrf.mxu1  ;;  %v6562_v47 = vpop.f32.mrf.mxu0  ;;  %v23515_v13 = vld [vmem:[#allocation153_spill] sm:$0xff] }
 0x311   : > { %23507 = vst [vmem:[#allocation219_spill] sm:$0xff] %v20400_v44  ;;  %v20407_v20 = vadd.f32 %v15356_v8, %v5866_v9  ;;  %v5865_v16 = vadd.f32 %v5450_v55, %v23511_v37  ;;  %v16500_v8 = vld [vmem:[%s16746_s9 + $0x2a8] sm:$0xff] }
 0x312   : > { %v15165_v52 = vpop.f32.mrf.mxu1  ;;  %v15359_v11 = vpop.f32.mrf.mxu0  ;;  %15504 = vmatmul.mubr.msk.f32.gmra.mxu1 %vm395_vm1, %v23512_v46  ;;  %15698 = vmatmul.mubr.msk.f32.gmra.mxu0 %vm395_vm1, %v16499_v32  ;;  %v23518_v32 = vld [vmem:[#allocation156_spill] sm:$0xff] }
 0x313   : > { %23510 = vst [vmem:[#allocation221_spill] sm:$0xff] %v20407_v20  ;;  %v20414_v12 = vadd.f32 %v6562_v47, %v5865_v16  ;;  %v5868_v7 = vadd.f32 %v15165_v52, %v23514_v24  ;;  %15506 = vmatprep.mubr.msk.f32.mxu1 %vm395_vm1, %v23515_v13  ;;  %15700 = vmatprep.mubr.msk.f32.mxu0 %vm395_vm1, %v16500_v8  ;;  %v23517_v20 = vld [vmem:[#allocation134_spill] sm:$0xff]  ;;  %v16501_v16 = vld [vmem:[%s16746_s9 + $0x2b0] sm:$0xff]  ;;  %v23520_v47 = vld [vmem:[#allocation139_spill] sm:$0xff] }
 0x314   : > { %v5460_v37 = vpop.f32.mrf.mxu1  ;;  %v6572_v9 = vpop.f32.mrf.mxu0  ;;  %v23521_v8 = vld [vmem:[#allocation158_spill] sm:$0xff] }
 0x315   : > { %23513 = vst [vmem:[#allocation225_spill] sm:$0xff] %v20414_v12  ;;  %v20421_v55 = vadd.f32 %v15359_v11, %v5868_v7  ;;  %v5867_v44 = vadd.f32 %v5460_v37, %v23517_v20  ;;  %v16502_v11 = vld [vmem:[%s16746_s9 + $0x2b8] sm:$0xff] }
 0x316   : > { %v15168_v46 = vpop.f32.mrf.mxu1  ;;  %v15362_v17 = vpop.f32.mrf.mxu0  ;;  %15507 = vmatmul.mubr.msk.f32.gmra.mxu1 %vm395_vm1, %v23518_v32  ;;  %15701 = vmatmul.mubr.msk.f32.gmra.mxu0 %vm395_vm1, %v16501_v16  ;;  %v23524_v16 = vld [vmem:[#allocation162_spill] sm:$0xff] }
 0x317   : > { %23516 = vst [vmem:[#allocation229_spill] sm:$0xff] %v20421_v55  ;;  %v20428_v52 = vadd.f32 %v6572_v9, %v5867_v44  ;;  %v5870_v24 = vadd.f32 %v15168_v46, %v23520_v47  ;;  %15509 = vmatprep.mubr.msk.f32.mxu1 %vm395_vm1, %v23521_v8  ;;  %15703 = vmatprep.mubr.msk.f32.mxu0 %vm395_vm1, %v16502_v11  ;;  %v23523_v55 = vld [vmem:[#allocation16_spill] sm:$0xff]  ;;  %v16503_v44 = vld [vmem:[%s16746_s9 + $0x2c0] sm:$0xff]  ;;  %v23526_v9 = vld [vmem:[#allocation19_spill] sm:$0xff] }
 0x318   : > { %v5470_v20 = vpop.f32.mrf.mxu1  ;;  %v6582_v7 = vpop.f32.mrf.mxu0  ;;  %v23527_v11 = vld [vmem:[#allocation165_spill] sm:$0xff] }
 0x319   : > { %23519 = vst [vmem:[#allocation235_spill] sm:$0xff] %v20428_v52  ;;  %v20435_v37 = vadd.f32 %v15362_v17, %v5870_v24  ;;  %v5869_v12 = vadd.f32 %v5470_v20, %v23523_v55  ;;  %v16504_v17 = vld [vmem:[%s16746_s9 + $0x2d0] sm:$0xff] }
 0x31a   : > { %v15171_v32 = vpop.f32.mrf.mxu1  ;;  %v15365_v13 = vpop.f32.mrf.mxu0  ;;  %15510 = vmatmul.mubr.msk.f32.gmra.mxu1 %vm395_vm1, %v23524_v16  ;;  %15704 = vmatmul.mubr.msk.f32.gmra.mxu0 %vm395_vm1, %v16503_v44  ;;  %v23530_v44 = vld [vmem:[#allocation168_spill] sm:$0xff] }
 0x31b   : > { %23522 = vst [vmem:[#allocation237_spill] sm:$0xff] %v20435_v37  ;;  %v20442_v46 = vadd.f32 %v6582_v7, %v5869_v12  ;;  %v5872_v47 = vadd.f32 %v15171_v32, %v23526_v9  ;;  %15512 = vmatprep.mubr.msk.f32.mxu1 %vm395_vm1, %v23527_v11  ;;  %15706 = vmatprep.mubr.msk.f32.mxu0 %vm395_vm1, %v16504_v17  ;;  %v23529_v37 = vld [vmem:[#allocation142_spill] sm:$0xff]  ;;  %v16505_v12 = vld [vmem:[%s16746_s9 + $0x2d8] sm:$0xff]  ;;  %v23532_v7 = vld [vmem:[#allocation147_spill] sm:$0xff] }
 0x31c   : > { %v5480_v55 = vpop.f32.mrf.mxu1  ;;  %v6592_v24 = vpop.f32.mrf.mxu0  ;;  %v23533_v17 = vld [vmem:[#allocation170_spill] sm:$0xff] }
 0x31d   : > { %23525 = vst [vmem:[#allocation241_spill] sm:$0xff] %v20442_v46  ;;  %v20449_v20 = vadd.f32 %v15365_v13, %v5872_v47  ;;  %v5871_v52 = vadd.f32 %v5480_v55, %v23529_v37  ;;  %v16506_v13 = vld [vmem:[%s16746_s9 + $0x2e0] sm:$0xff] }
 0x31e   : > { %v15174_v16 = vpop.f32.mrf.mxu1  ;;  %v15368_v8 = vpop.f32.mrf.mxu0  ;;  %15513 = vmatmul.mubr.msk.f32.gmra.mxu1 %vm395_vm1, %v23530_v44  ;;  %15707 = vmatmul.mubr.msk.f32.gmra.mxu0 %vm395_vm1, %v16505_v12  ;;  %v23536_v12 = vld [vmem:[#allocation176_spill] sm:$0xff] }
 0x31f   : > { %23528 = vst [vmem:[#allocation245_spill] sm:$0xff] %v20449_v20  ;;  %v20456_v32 = vadd.f32 %v6592_v24, %v5871_v52  ;;  %v5874_v9 = vadd.f32 %v15174_v16, %v23532_v7  ;;  %15515 = vmatprep.mubr.msk.f32.mxu1 %vm395_vm1, %v23533_v17  ;;  %15709 = vmatprep.mubr.msk.f32.mxu0 %vm395_vm1, %v16506_v13  ;;  %v23535_v20 = vld [vmem:[#allocation148_spill] sm:$0xff]  ;;  %v16507_v52 = vld [vmem:[%s16746_s9 + $0x2e8] sm:$0xff] }
 0x320   : > { %v5490_v37 = vpop.f32.mrf.mxu1  ;;  %v6602_v47 = vpop.f32.mrf.mxu0  ;;  %v23538_v24 = vld [vmem:[#allocation151_spill] sm:$0xff]  ;;  %v23539_v13 = vld [vmem:[#allocation180_spill] sm:$0xff] }
 0x321   : > { %23531 = vst [vmem:[#allocation251_spill] sm:$0xff] %v20456_v32  ;;  %v20463_v55 = vadd.f32 %v15368_v8, %v5874_v9  ;;  %v5873_v46 = vadd.f32 %v5490_v37, %v23535_v20  ;;  %v16508_v8 = vld [vmem:[%s16746_s9 + $0x2f8] sm:$0xff] }
 0x322   : > { %v15177_v44 = vpop.f32.mrf.mxu1  ;;  %v15371_v11 = vpop.f32.mrf.mxu0  ;;  %15516 = vmatmul.mubr.msk.f32.gmra.mxu1 %vm395_vm1, %v23536_v12  ;;  %15710 = vmatmul.mubr.msk.f32.gmra.mxu0 %vm395_vm1, %v16507_v52  ;;  %v23542_v52 = vld [vmem:[#allocation184_spill] sm:$0xff] }
 0x323   : > { %23534 = vst [vmem:[#allocation253_spill] sm:$0xff] %v20463_v55  ;;  %v20470_v16 = vadd.f32 %v6602_v47, %v5873_v46  ;;  %v5876_v7 = vadd.f32 %v15177_v44, %v23538_v24  ;;  %15518 = vmatprep.mubr.msk.f32.mxu1 %vm395_vm1, %v23539_v13  ;;  %15712 = vmatprep.mubr.msk.f32.mxu0 %vm395_vm1, %v16508_v8  ;;  %v23541_v55 = vld [vmem:[#allocation154_spill] sm:$0xff]  ;;  %v23544_v47 = vld [vmem:[#allocation159_spill] sm:$0xff] }
 0x324   : > { %v5500_v20 = vpop.f32.mrf.mxu1  ;;  %v6612_v9 = vpop.f32.mrf.mxu0  ;;  %v16509_v46 = vld [vmem:[%s16746_s9 + $0x300] sm:$0xff] }
 0x325   : > { %23537 = vst [vmem:[#allocation257_spill] sm:$0xff] %v20470_v16  ;;  %v20477_v37 = vadd.f32 %v15371_v11, %v5876_v7  ;;  %v5875_v32 = vadd.f32 %v5500_v20, %v23541_v55  ;;  %v23545_v8 = vld [vmem:[#allocation186_spill] sm:$0xff]  ;;  %v16510_v11 = vld [vmem:[%s16746_s9 + $0x308] sm:$0xff] }
 0x326   : > { %v15180_v12 = vpop.f32.mrf.mxu1  ;;  %v15374_v17 = vpop.f32.mrf.mxu0  ;;  %15519 = vmatmul.mubr.msk.f32.gmra.mxu1 %vm395_vm1, %v23542_v52  ;;  %15713 = vmatmul.mubr.msk.f32.gmra.mxu0 %vm395_vm1, %v16509_v46  ;;  %v23548_v46 = vld [vmem:[#allocation192_spill] sm:$0xff] }
 0x327   : > { %23540 = vst [vmem:[#allocation261_spill] sm:$0xff] %v20477_v37  ;;  %v20484_v44 = vadd.f32 %v6612_v9, %v5875_v32  ;;  %v5878_v24 = vadd.f32 %v15180_v12, %v23544_v47  ;;  %15521 = vmatprep.mubr.msk.f32.mxu1 %vm395_vm1, %v23545_v8  ;;  %15715 = vmatprep.mubr.msk.f32.mxu0 %vm395_vm1, %v16510_v11  ;;  %v23547_v37 = vld [vmem:[#allocation160_spill] sm:$0xff]  ;;  %v23550_v9 = vld [vmem:[#allocation163_spill] sm:$0xff] }
 0x328   : > { %v5510_v55 = vpop.f32.mrf.mxu1  ;;  %v6622_v7 = vpop.f32.mrf.mxu0  ;;  %v16511_v32 = vld [vmem:[%s16746_s9 + $0x310] sm:$0xff] }
 0x329   : > { %23543 = vst [vmem:[#allocation267_spill] sm:$0xff] %v20484_v44  ;;  %v20491_v20 = vadd.f32 %v15374_v17, %v5878_v24  ;;  %v5877_v16 = vadd.f32 %v5510_v55, %v23547_v37  ;;  %v23551_v11 = vld [vmem:[#allocation196_spill] sm:$0xff]  ;;  %v16512_v17 = vld [vmem:[%s16746_s9 + $0x320] sm:$0xff] }
 0x32a   : > { %v15183_v52 = vpop.f32.mrf.mxu1  ;;  %v15377_v13 = vpop.f32.mrf.mxu0  ;;  %15522 = vmatmul.mubr.msk.f32.gmra.mxu1 %vm395_vm1, %v23548_v46  ;;  %15716 = vmatmul.mubr.msk.f32.gmra.mxu0 %vm395_vm1, %v16511_v32  ;;  %v23554_v32 = vld [vmem:[#allocation200_spill] sm:$0xff] }
 0x32b   : > { %23546 = vst [vmem:[#allocation269_spill] sm:$0xff] %v20491_v20  ;;  %v20498_v12 = vadd.f32 %v6622_v7, %v5877_v16  ;;  %v5880_v47 = vadd.f32 %v15183_v52, %v23550_v9  ;;  %15524 = vmatprep.mubr.msk.f32.mxu1 %vm395_vm1, %v23551_v11  ;;  %15718 = vmatprep.mubr.msk.f32.mxu0 %vm395_vm1, %v16512_v17  ;;  %v23553_v20 = vld [vmem:[#allocation166_spill] sm:$0xff]  ;;  %v16513_v16 = vld [vmem:[%s16746_s9 + $0x328] sm:$0xff]  ;;  %v23556_v7 = vld [vmem:[#allocation172_spill] sm:$0xff] }
 0x32c   : > { %v5520_v37 = vpop.f32.mrf.mxu1  ;;  %v6632_v24 = vpop.f32.mrf.mxu0  ;;  %v23557_v17 = vld [vmem:[#allocation202_spill] sm:$0xff] }
 0x32d   : > { %23549 = vst [vmem:[#allocation273_spill] sm:$0xff] %v20498_v12  ;;  %v20505_v55 = vadd.f32 %v15377_v13, %v5880_v47  ;;  %v5879_v44 = vadd.f32 %v5520_v37, %v23553_v20  ;;  %v16514_v13 = vld [vmem:[%s16746_s9 + $0x330] sm:$0xff] }
 0x32e   : > { %v15186_v46 = vpop.f32.mrf.mxu1  ;;  %v15380_v8 = vpop.f32.mrf.mxu0  ;;  %15525 = vmatmul.mubr.msk.f32.gmra.mxu1 %vm395_vm1, %v23554_v32  ;;  %15719 = vmatmul.mubr.msk.f32.gmra.mxu0 %vm395_vm1, %v16513_v16  ;;  %v23560_v16 = vld [vmem:[#allocation208_spill] sm:$0xff] }
 0x32f   : > { %23552 = vst [vmem:[#allocation277_spill] sm:$0xff] %v20505_v55  ;;  %v20512_v52 = vadd.f32 %v6632_v24, %v5879_v44  ;;  %v5882_v9 = vadd.f32 %v15186_v46, %v23556_v7  ;;  %15527 = vmatprep.mubr.msk.f32.mxu1 %vm395_vm1, %v23557_v17  ;;  %15721 = vmatprep.mubr.msk.f32.mxu0 %vm395_vm1, %v16514_v13  ;;  %v23559_v55 = vld [vmem:[#allocation174_spill] sm:$0xff]  ;;  %v16515_v44 = vld [vmem:[%s16746_s9 + $0x338] sm:$0xff]  ;;  %v23563_v13 = vld [vmem:[#allocation212_spill] sm:$0xff] }
 0x330   : > { %v5530_v20 = vpop.f32.mrf.mxu1  ;;  %v6642_v47 = vpop.f32.mrf.mxu0  ;;  %v23562_v24 = vld [vmem:[#allocation178_spill] sm:$0xff] }
 0x331   : > { %23555 = vst [vmem:[#allocation283_spill] sm:$0xff] %v20512_v52  ;;  %v20519_v37 = vadd.f32 %v15380_v8, %v5882_v9  ;;  %v5881_v12 = vadd.f32 %v5530_v20, %v23559_v55  ;;  %v16516_v8 = vld [vmem:[%s16746_s9 + $0x348] sm:$0xff] }
 0x332   : > { %v15189_v32 = vpop.f32.mrf.mxu1  ;;  %v15383_v11 = vpop.f32.mrf.mxu0  ;;  %15528 = vmatmul.mubr.msk.f32.gmra.mxu1 %vm395_vm1, %v23560_v16  ;;  %15722 = vmatmul.mubr.msk.f32.gmra.mxu0 %vm395_vm1, %v16515_v44  ;;  %v23566_v44 = vld [vmem:[#allocation216_spill] sm:$0xff] }
 0x333   : > { %23558 = vst [vmem:[#allocation78_spill] sm:$0xff] %v20519_v37  ;;  %v20526_v46 = vadd.f32 %v6642_v47, %v5881_v12  ;;  %v5884_v7 = vadd.f32 %v15189_v32, %v23562_v24  ;;  %15530 = vmatprep.mubr.msk.f32.mxu1 %vm395_vm1, %v23563_v13  ;;  %15724 = vmatprep.mubr.msk.f32.mxu0 %vm395_vm1, %v16516_v8  ;;  %v23565_v37 = vld [vmem:[#allocation182_spill] sm:$0xff]  ;;  %v16517_v12 = vld [vmem:[%s16746_s9 + $0x350] sm:$0xff] }
 0x334   : > { %v5540_v55 = vpop.f32.mrf.mxu1  ;;  %v6652_v9 = vpop.f32.mrf.mxu0  ;;  %v23568_v47 = vld [vmem:[#allocation188_spill] sm:$0xff]  ;;  %v23569_v8 = vld [vmem:[#allocation218_spill] sm:$0xff] }
 0x335   : > { %23561 = vst [vmem:[#allocation81_spill] sm:$0xff] %v20526_v46  ;;  %v20533_v20 = vadd.f32 %v15383_v11, %v5884_v7  ;;  %v5883_v52 = vadd.f32 %v5540_v55, %v23565_v37  ;;  %v16518_v11 = vld [vmem:[%s16746_s9 + $0x358] sm:$0xff] }
 0x336   : > { %v15192_v16 = vpop.f32.mrf.mxu1  ;;  %v15386_v17 = vpop.f32.mrf.mxu0  ;;  %15531 = vmatmul.mubr.msk.f32.gmra.mxu1 %vm395_vm1, %v23566_v44  ;;  %15725 = vmatmul.mubr.msk.f32.gmra.mxu0 %vm395_vm1, %v16517_v12  ;;  %v23572_v12 = vld [vmem:[#allocation224_spill] sm:$0xff] }
 0x337   : > { %23564 = vst [vmem:[#allocation84_spill] sm:$0xff] %v20533_v20  ;;  %v20540_v32 = vadd.f32 %v6652_v9, %v5883_v52  ;;  %v5886_v24 = vadd.f32 %v15192_v16, %v23568_v47  ;;  %15533 = vmatprep.mubr.msk.f32.mxu1 %vm395_vm1, %v23569_v8  ;;  %15727 = vmatprep.mubr.msk.f32.mxu0 %vm395_vm1, %v16518_v11  ;;  %v23571_v20 = vld [vmem:[#allocation190_spill] sm:$0xff]  ;;  %v23575_v11 = vld [vmem:[#allocation228_spill] sm:$0xff] }
 0x338   : > { %v5550_v37 = vpop.f32.mrf.mxu1  ;;  %v6662_v7 = vpop.f32.mrf.mxu0  ;;  %v16519_v52 = vld [vmem:[%s16746_s9 + $0x360] sm:$0xff] }
 0x339   : > { %23567 = vst [vmem:[#allocation89_spill] sm:$0xff] %v20540_v32  ;;  %v20547_v55 = vadd.f32 %v15386_v17, %v5886_v24  ;;  %v5885_v46 = vadd.f32 %v5550_v37, %v23571_v20  ;;  %v23574_v9 = vld [vmem:[#allocation194_spill] sm:$0xff]  ;;  %v16520_v17 = vld [vmem:[%s16746_s9 + $0x370] sm:$0xff] }
 0x33a   : > { %v15195_v44 = vpop.f32.mrf.mxu1  ;;  %v15389_v13 = vpop.f32.mrf.mxu0  ;;  %15534 = vmatmul.mubr.msk.f32.gmra.mxu1 %vm395_vm1, %v23572_v12  ;;  %15728 = vmatmul.mubr.msk.f32.gmra.mxu0 %vm395_vm1, %v16519_v52  ;;  %v23578_v52 = vld [vmem:[#allocation232_spill] sm:$0xff] }
 0x33b   : > { %23570 = vst [vmem:[#allocation90_spill] sm:$0xff] %v20547_v55  ;;  %v20554_v16 = vadd.f32 %v6662_v7, %v5885_v46  ;;  %v5888_v47 = vadd.f32 %v15195_v44, %v23574_v9  ;;  %15536 = vmatprep.mubr.msk.f32.mxu1 %vm395_vm1, %v23575_v11  ;;  %15730 = vmatprep.mubr.msk.f32.mxu0 %vm395_vm1, %v16520_v17  ;;  %v23577_v55 = vld [vmem:[#allocation198_spill] sm:$0xff]  ;;  %v16521_v46 = vld [vmem:[%s16746_s9 + $0x378] sm:$0xff]  ;;  %v23580_v7 = vld [vmem:[#allocation204_spill] sm:$0xff] }
 0x33c   : > { %v5560_v20 = vpop.f32.mrf.mxu1  ;;  %v6672_v24 = vpop.f32.mrf.mxu0  ;;  %v23581_v17 = vld [vmem:[#allocation234_spill] sm:$0xff] }
 0x33d   : > { %23573 = vst [vmem:[#allocation93_spill] sm:$0xff] %v20554_v16  ;;  %v20561_v37 = vadd.f32 %v15389_v13, %v5888_v47  ;;  %v5887_v32 = vadd.f32 %v5560_v20, %v23577_v55  ;;  %v16522_v13 = vld [vmem:[%s16746_s9 + $0x380] sm:$0xff] }
 0x33e   : > { %v15198_v12 = vpop.f32.mrf.mxu1  ;;  %v15392_v8 = vpop.f32.mrf.mxu0  ;;  %15537 = vmatmul.mubr.msk.f32.gmra.mxu1 %vm395_vm1, %v23578_v52  ;;  %15731 = vmatmul.mubr.msk.f32.gmra.mxu0 %vm395_vm1, %v16521_v46  ;;  %v23584_v46 = vld [vmem:[#allocation240_spill] sm:$0xff] }
 0x33f   : > { %23576 = vst [vmem:[#allocation96_spill] sm:$0xff] %v20561_v37  ;;  %v20568_v44 = vadd.f32 %v6672_v24, %v5887_v32  ;;  %v5890_v9 = vadd.f32 %v15198_v12, %v23580_v7  ;;  %15539 = vmatprep.mubr.msk.f32.mxu1 %vm395_vm1, %v23581_v17  ;;  %15733 = vmatprep.mubr.msk.f32.mxu0 %vm395_vm1, %v16522_v13  ;;  %v23583_v37 = vld [vmem:[#allocation206_spill] sm:$0xff]  ;;  %v16523_v32 = vld [vmem:[%s16746_s9 + $0x388] sm:$0xff]  ;;  %v23587_v13 = vld [vmem:[#allocation244_spill] sm:$0xff] }
 0x340   : > { %v5570_v55 = vpop.f32.mrf.mxu1  ;;  %v6682_v47 = vpop.f32.mrf.mxu0  ;;  %v23586_v24 = vld [vmem:[#allocation210_spill] sm:$0xff] }
 0x341   : > { %23579 = vst [vmem:[#allocation101_spill] sm:$0xff] %v20568_v44  ;;  %v20575_v20 = vadd.f32 %v15392_v8, %v5890_v9  ;;  %v5889_v16 = vadd.f32 %v5570_v55, %v23583_v37  ;;  %v16524_v8 = vld [vmem:[%s16746_s9 + $0x398] sm:$0xff] }
 0x342   : > { %v15201_v52 = vpop.f32.mrf.mxu1  ;;  %v15395_v11 = vpop.f32.mrf.mxu0  ;;  %15540 = vmatmul.mubr.msk.f32.gmra.mxu1 %vm395_vm1, %v23584_v46  ;;  %15734 = vmatmul.mubr.msk.f32.gmra.mxu0 %vm395_vm1, %v16523_v32  ;;  %v23590_v32 = vld [vmem:[#allocation248_spill] sm:$0xff] }
 0x343   : > { %23582 = vst [vmem:[#allocation102_spill] sm:$0xff] %v20575_v20  ;;  %v20582_v12 = vadd.f32 %v6682_v47, %v5889_v16  ;;  %v5892_v7 = vadd.f32 %v15201_v52, %v23586_v24  ;;  %15542 = vmatprep.mubr.msk.f32.mxu1 %vm395_vm1, %v23587_v13  ;;  %15736 = vmatprep.mubr.msk.f32.mxu0 %vm395_vm1, %v16524_v8  ;;  %v23589_v20 = vld [vmem:[#allocation214_spill] sm:$0xff]  ;;  %v23592_v47 = vld [vmem:[#allocation220_spill] sm:$0xff] }
 0x344   : > { %v5580_v37 = vpop.f32.mrf.mxu1  ;;  %v6692_v9 = vpop.f32.mrf.mxu0  ;;  %v16525_v16 = vld [vmem:[%s16746_s9 + $0x3a0] sm:$0xff] }
 0x345   : > { %23585 = vst [vmem:[#allocation105_spill] sm:$0xff] %v20582_v12  ;;  %v20589_v55 = vadd.f32 %v15395_v11, %v5892_v7  ;;  %v5891_v44 = vadd.f32 %v5580_v37, %v23589_v20  ;;  %v23593_v8 = vld [vmem:[#allocation250_spill] sm:$0xff]  ;;  %v16526_v11 = vld [vmem:[%s16746_s9 + $0x3a8] sm:$0xff] }
 0x346   : > { %v15204_v46 = vpop.f32.mrf.mxu1  ;;  %v15398_v17 = vpop.f32.mrf.mxu0  ;;  %15543 = vmatmul.mubr.msk.f32.gmra.mxu1 %vm395_vm1, %v23590_v32  ;;  %15737 = vmatmul.mubr.msk.f32.gmra.mxu0 %vm395_vm1, %v16525_v16  ;;  %v23596_v16 = vld [vmem:[#allocation256_spill] sm:$0xff] }
 0x347   : > { %23588 = vst [vmem:[#allocation108_spill] sm:$0xff] %v20589_v55  ;;  %v20596_v52 = vadd.f32 %v6692_v9, %v5891_v44  ;;  %v5894_v24 = vadd.f32 %v15204_v46, %v23592_v47  ;;  %15545 = vmatprep.mubr.msk.f32.mxu1 %vm395_vm1, %v23593_v8  ;;  %15739 = vmatprep.mubr.msk.f32.mxu0 %vm395_vm1, %v16526_v11  ;;  %v23595_v55 = vld [vmem:[#allocation222_spill] sm:$0xff]  ;;  %v16527_v44 = vld [vmem:[%s16746_s9 + $0x3b0] sm:$0xff] }
 0x348   : > { %v5590_v20 = vpop.f32.mrf.mxu1  ;;  %v6702_v7 = vpop.f32.mrf.mxu0  ;;  %v23598_v9 = vld [vmem:[#allocation226_spill] sm:$0xff]  ;;  %v23599_v11 = vld [vmem:[#allocation260_spill] sm:$0xff] }
 0x349   : > { %23591 = vst [vmem:[#allocation113_spill] sm:$0xff] %v20596_v52  ;;  %v20603_v37 = vadd.f32 %v15398_v17, %v5894_v24  ;;  %v5893_v12 = vadd.f32 %v5590_v20, %v23595_v55  ;;  %v16528_v17 = vld [vmem:[%s16746_s9 + $0x3c0] sm:$0xff] }
 0x34a   : > { %v15207_v32 = vpop.f32.mrf.mxu1  ;;  %v15401_v13 = vpop.f32.mrf.mxu0  ;;  %15546 = vmatmul.mubr.msk.f32.gmra.mxu1 %vm395_vm1, %v23596_v16  ;;  %15740 = vmatmul.mubr.msk.f32.gmra.mxu0 %vm395_vm1, %v16527_v44  ;;  %v23602_v44 = vld [vmem:[#allocation264_spill] sm:$0xff] }
 0x34b   : > { %23594 = vst [vmem:[#allocation114_spill] sm:$0xff] %v20603_v37  ;;  %v20610_v46 = vadd.f32 %v6702_v7, %v5893_v12  ;;  %v5896_v47 = vadd.f32 %v15207_v32, %v23598_v9  ;;  %15548 = vmatprep.mubr.msk.f32.mxu1 %vm395_vm1, %v23599_v11  ;;  %15742 = vmatprep.mubr.msk.f32.mxu0 %vm395_vm1, %v16528_v17  ;;  %v23601_v37 = vld [vmem:[#allocation230_spill] sm:$0xff]  ;;  %v16529_v12 = vld [vmem:[%s16746_s9 + $0x3c8] sm:$0xff]  ;;  %v23604_v7 = vld [vmem:[#allocation236_spill] sm:$0xff] }
 0x34c   : > { %v5600_v55 = vpop.f32.mrf.mxu1  ;;  %v6712_v24 = vpop.f32.mrf.mxu0  ;;  %v23605_v17 = vld [vmem:[#allocation266_spill] sm:$0xff] }
 0x34d   : > { %23597 = vst [vmem:[#allocation7_spill] sm:$0xff] %v20610_v46  ;;  %v20617_v20 = vadd.f32 %v15401_v13, %v5896_v47  ;;  %v5895_v52 = vadd.f32 %v5600_v55, %v23601_v37  ;;  %v16530_v13 = vld [vmem:[%s16746_s9 + $0x3d0] sm:$0xff] }
 0x34e   : > { %v15210_v16 = vpop.f32.mrf.mxu1  ;;  %v15404_v8 = vpop.f32.mrf.mxu0  ;;  %15549 = vmatmul.mubr.msk.f32.gmra.mxu1 %vm395_vm1, %v23602_v44  ;;  %15743 = vmatmul.mubr.msk.f32.gmra.mxu0 %vm395_vm1, %v16529_v12  ;;  %v23608_v12 = vld [vmem:[#allocation272_spill] sm:$0xff] }
 0x34f   : > { %23600 = vst [vmem:[#allocation118_spill] sm:$0xff] %v20617_v20  ;;  %v20624_v32 = vadd.f32 %v6712_v24, %v5895_v52  ;;  %v5898_v9 = vadd.f32 %v15210_v16, %v23604_v7  ;;  %15551 = vmatprep.mubr.msk.f32.mxu1 %vm395_vm1, %v23605_v17  ;;  %15745 = vmatprep.mubr.msk.f32.mxu0 %vm395_vm1, %v16530_v13  ;;  %v23607_v20 = vld [vmem:[#allocation238_spill] sm:$0xff]  ;;  %v16531_v52 = vld [vmem:[%s16746_s9 + $0x3d8] sm:$0xff]  ;;  %v23611_v13 = vld [vmem:[#allocation276_spill] sm:$0xff] }
 0x350   : > { %v5610_v37 = vpop.f32.mrf.mxu1  ;;  %v6722_v47 = vpop.f32.mrf.mxu0  ;;  %v23610_v24 = vld [vmem:[#allocation242_spill] sm:$0xff] }
 0x351   : > { %23603 = vst [vmem:[#allocation123_spill] sm:$0xff] %v20624_v32  ;;  %v20631_v55 = vadd.f32 %v15404_v8, %v5898_v9  ;;  %v5897_v46 = vadd.f32 %v5610_v37, %v23607_v20  ;;  %v16532_v8 = vld [vmem:[%s16746_s9 + $0x3e8] sm:$0xff] }
 0x352   : > { %v15213_v44 = vpop.f32.mrf.mxu1  ;;  %v15407_v11 = vpop.f32.mrf.mxu0  ;;  %15552 = vmatmul.mubr.msk.f32.gmra.mxu1 %vm395_vm1, %v23608_v12  ;;  %15746 = vmatmul.mubr.msk.f32.gmra.mxu0 %vm395_vm1, %v16531_v52  ;;  %v23613_v52 = vld [vmem:[#allocation280_spill] sm:$0xff] }
 0x353   : > { %23606 = vst [vmem:[#allocation8_spill] sm:$0xff] %v20631_v55  ;;  %v20638_v16 = vadd.f32 %v6722_v47, %v5897_v46  ;;  %v5900_v7 = vadd.f32 %v15213_v44, %v23610_v24  ;;  %15554 = vmatprep.mubr.msk.f32.mxu1 %vm395_vm1, %v23611_v13  ;;  %15748 = vmatprep.mubr.msk.f32.mxu0 %vm395_vm1, %v16532_v8  ;;  %v16533_v46 = vld [vmem:[%s16746_s9 + $0x3f0] sm:$0xff]  ;;  %v23615_v24 = vld [vmem:[#allocation282_spill] sm:$0xff] }
 0x354   : > { %v5620_v20 = vpop.f32.mrf.mxu1  ;;  %v6732_v9 = vpop.f32.mrf.mxu0 }
 0x355   : > { %23609 = vst [vmem:[#allocation11_spill] sm:$0xff] %v20638_v16  ;;  %v20645_v37 = vadd.f32 %v15407_v11, %v5900_v7  ;;  %v5899_v55 = vadd.f32 %v5620_v20, %v19739_v34  ;;  %v16534_v11 = vld [vmem:[%s16746_s9 + $0x3f8] sm:$0xff] }
 0x356   : > { %v15216_v32 = vpop.f32.mrf.mxu1  ;;  %v15410_v12 = vpop.f32.mrf.mxu0  ;;  %15555 = vmatmul.mubr.msk.f32.gmra.mxu1 %vm395_vm1, %v23613_v52  ;;  %15749 = vmatmul.mubr.msk.f32.gmra.mxu0 %vm395_vm1, %v16533_v46  ;;  %v23617_v46 = vld [vmem:[#allocation286_spill] sm:$0xff] }
 0x357   : > { %23612 = vst [vmem:[#allocation126_spill] sm:$0xff] %v20645_v37  ;;  %v20652_v44 = vadd.f32 %v6732_v9, %v5899_v55  ;;  %v5902_v47 = vadd.f32 %v15216_v32, %v19746_v63  ;;  %15557 = vmatprep.mubr.msk.f32.mxu1 %vm395_vm1, %v23615_v24  ;;  %15751 = vmatprep.mubr.msk.f32.mxu0 %vm395_vm1, %v16534_v11  ;;  %v16535_v63 = vld [vmem:[%s16746_s9 + $0x400] sm:$0xff]  ;;  %v23619_v9 = vld [vmem:[#allocation288_spill] sm:$0xff] }
 0x358   : > { %v5630_v34 = vpop.f32.mrf.mxu1  ;;  %v6742_v7 = vpop.f32.mrf.mxu0 }
 0x359   : > { %23614 = vst [vmem:[#allocation131_spill] sm:$0xff] %v20652_v44  ;;  %v20659_v8 = vadd.f32 %v15410_v12, %v5902_v47  ;;  %v5901_v20 = vadd.f32 %v5630_v34, %v19753_v31  ;;  %v16536_v12 = vld [vmem:[%s16746_s9 + $0x410] sm:$0xff]  ;;  %v23621_v44 = vld [vmem:[#allocation291_spill] sm:$0xff] }
 0x35a   : > { %v15219_v37 = vpop.f32.mrf.mxu1  ;;  %v15413_v16 = vpop.f32.mrf.mxu0  ;;  %15558 = vmatmul.mubr.msk.f32.gmra.mxu1 %vm395_vm1, %v23617_v46  ;;  %15752 = vmatmul.mubr.msk.f32.gmra.mxu0 %vm395_vm1, %v16535_v63  ;;  %v23623_v63 = vld [vmem:[#allocation294_spill] sm:$0xff] }
 0x35b   : > { %23616 = vst [vmem:[#allocation12_spill] sm:$0xff] %v20659_v8  ;;  %v20666_v32 = vadd.f32 %v6742_v7, %v5901_v20  ;;  %v5904_v55 = vadd.f32 %v15219_v37, %v19760_v5  ;;  %15560 = vmatprep.mubr.msk.f32.mxu1 %vm395_vm1, %v23619_v9  ;;  %15754 = vmatprep.mubr.msk.f32.mxu0 %vm395_vm1, %v16536_v12  ;;  %v16537_v5 = vld [vmem:[%s16746_s9 + $0x418] sm:$0xff] }
 0x35c   : > { %v5640_v31 = vpop.f32.mrf.mxu1  ;;  %v6752_v47 = vpop.f32.mrf.mxu0 }
 0x35d   : > { %23618 = vst [vmem:[#allocation15_spill] sm:$0xff] %v20666_v32  ;;  %v20673_v11 = vadd.f32 %v15413_v16, %v5904_v55  ;;  %v5903_v34 = vadd.f32 %v5640_v31, %v19767_v45  ;;  %v16538_v16 = vld [vmem:[%s16746_s9 + $0x420] sm:$0xff] }
 0x35e   : > { %v15418_v8 = vpop.f32.mrf.mxu1  ;;  %15561 = vmatmul.mubr.msk.f32.gmra.mxu1 %vm395_vm1, %v23621_v44  ;;  %v15612_v7 = vpop.f32.mrf.mxu0  ;;  %15755 = vmatmul.mubr.msk.f32.gmra.mxu0 %vm395_vm1, %v16537_v5  ;;  %v23625_v32 = vld [vmem:[#allocation298_spill] sm:$0xff]  ;;  %v23627_v5 = vld [vmem:[#allocation300_spill] sm:$0xff] }
 0x35f   : > { %23620 = vst [vmem:[#allocation134_spill] sm:$0xff] %v20673_v11  ;;  %v20680_v37 = vadd.f32 %v6752_v47, %v5903_v34  ;;  %v8001_v20 = vadd.f32 %v15418_v8, %v19774_v38  ;;  %15563 = vmatprep.mubr.msk.f32.mxu1 %vm395_vm1, %v23623_v63  ;;  %15757 = vmatprep.mubr.msk.f32.mxu0 %vm395_vm1, %v16538_v16  ;;  %v16539_v38 = vld [vmem:[%s16746_s9 + $0x428] sm:$0xff] }
 0x360   : > { %v7233_v45 = vpop.f32.mrf.mxu1  ;;  %v8339_v55 = vpop.f32.mrf.mxu0 }
 0x361   : > { %23622 = vst [vmem:[#allocation139_spill] sm:$0xff] %v20680_v37  ;;  %v20687_v12 = vadd.f32 %v15612_v7, %v8001_v20  ;;  %v8000_v31 = vadd.f32 %v7233_v45, %v19781_v28  ;;  %v16540_v7 = vld [vmem:[%s16746_s9 + $0x438] sm:$0xff]  ;;  %v23629_v37 = vld [vmem:[#allocation303_spill] sm:$0xff] }
 0x362   : > { %v15421_v11 = vpop.f32.mrf.mxu1  ;;  %15564 = vmatmul.mubr.msk.f32.gmra.mxu1 %vm395_vm1, %v23625_v32  ;;  %v15615_v47 = vpop.f32.mrf.mxu0  ;;  %15758 = vmatmul.mubr.msk.f32.gmra.mxu0 %vm395_vm1, %v16539_v38  ;;  %v23631_v38 = vld [vmem:[#allocation306_spill] sm:$0xff] }
 0x363   : > { %23624 = vst [vmem:[#allocation16_spill] sm:$0xff] %v20687_v12  ;;  %v20694_v8 = vadd.f32 %v8339_v55, %v8000_v31  ;;  %v8003_v34 = vadd.f32 %v15421_v11, %v19788_v22  ;;  %15566 = vmatprep.mubr.msk.f32.mxu1 %vm395_vm1, %v23627_v5  ;;  %15760 = vmatprep.mubr.msk.f32.mxu0 %vm395_vm1, %v16540_v7  ;;  %v16541_v22 = vld [vmem:[%s16746_s9 + $0x440] sm:$0xff] }
 0x364   : > { %v7243_v28 = vpop.f32.mrf.mxu1  ;;  %v8349_v20 = vpop.f32.mrf.mxu0 }
 0x365   : > { %23626 = vst [vmem:[#allocation19_spill] sm:$0xff] %v20694_v8  ;;  %v20701_v16 = vadd.f32 %v15615_v47, %v8003_v34  ;;  %v8002_v45 = vadd.f32 %v7243_v28, %v19795_v53  ;;  %v16542_v47 = vld [vmem:[%s16746_s9 + $0x448] sm:$0xff]  ;;  %v23633_v8 = vld [vmem:[#allocation310_spill] sm:$0xff] }
 0x366   : > { %v15424_v12 = vpop.f32.mrf.mxu1  ;;  %15567 = vmatmul.mubr.msk.f32.gmra.mxu1 %vm395_vm1, %v23629_v37  ;;  %v15618_v55 = vpop.f32.mrf.mxu0  ;;  %15761 = vmatmul.mubr.msk.f32.gmra.mxu0 %vm395_vm1, %v16541_v22  ;;  %v23635_v22 = vld [vmem:[#allocation312_spill] sm:$0xff] }
 0x367   : > { %23628 = vst [vmem:[#allocation142_spill] sm:$0xff] %v20701_v16  ;;  %v20708_v11 = vadd.f32 %v8349_v20, %v8002_v45  ;;  %v8005_v31 = vadd.f32 %v15424_v12, %v19802_v58  ;;  %15569 = vmatprep.mubr.msk.f32.mxu1 %vm395_vm1, %v23631_v38  ;;  %15763 = vmatprep.mubr.msk.f32.mxu0 %vm395_vm1, %v16542_v47  ;;  %v16543_v58 = vld [vmem:[%s16746_s9 + $0x450] sm:$0xff] }
 0x368   : > { %v7253_v53 = vpop.f32.mrf.mxu1  ;;  %v8359_v34 = vpop.f32.mrf.mxu0 }
 0x369   : > { %23630 = vst [vmem:[#allocation147_spill] sm:$0xff] %v20708_v11  ;;  %v20715_v7 = vadd.f32 %v15618_v55, %v8005_v31  ;;  %v8004_v28 = vadd.f32 %v7253_v53, %v19809_v14  ;;  %v16544_v55 = vld [vmem:[%s16746_s9 + $0x460] sm:$0xff]  ;;  %v23637_v11 = vld [vmem:[#allocation315_spill] sm:$0xff] }
 0x36a   : > { %v15427_v16 = vpop.f32.mrf.mxu1  ;;  %15570 = vmatmul.mubr.msk.f32.gmra.mxu1 %vm395_vm1, %v23633_v8  ;;  %v15621_v20 = vpop.f32.mrf.mxu0  ;;  %15764 = vmatmul.mubr.msk.f32.gmra.mxu0 %vm395_vm1, %v16543_v58  ;;  %v23639_v58 = vld [vmem:[#allocation318_spill] sm:$0xff] }
 0x36b   : > { %23632 = vst [vmem:[#allocation148_spill] sm:$0xff] %v20715_v7  ;;  %v20722_v12 = vadd.f32 %v8359_v34, %v8004_v28  ;;  %v8007_v45 = vadd.f32 %v15427_v16, %v19816_v2  ;;  %15572 = vmatprep.mubr.msk.f32.mxu1 %vm395_vm1, %v23635_v22  ;;  %15766 = vmatprep.mubr.msk.f32.mxu0 %vm395_vm1, %v16544_v55  ;;  %v16545_v2 = vld [vmem:[%s16746_s9 + $0x468] sm:$0xff] }
 0x36c   : > { %v7263_v14 = vpop.f32.mrf.mxu1  ;;  %v8369_v31 = vpop.f32.mrf.mxu0 }
 0x36d   : > { %23634 = vst [vmem:[#allocation151_spill] sm:$0xff] %v20722_v12  ;;  %v20729_v47 = vadd.f32 %v15621_v20, %v8007_v45  ;;  %v8006_v53 = vadd.f32 %v7263_v14, %v19823_v23  ;;  %v16546_v20 = vld [vmem:[%s16746_s9 + $0x470] sm:$0xff]  ;;  %v23641_v12 = vld [vmem:[#allocation322_spill] sm:$0xff] }
 0x36e   : > { %v15430_v7 = vpop.f32.mrf.mxu1  ;;  %15573 = vmatmul.mubr.msk.f32.gmra.mxu1 %vm395_vm1, %v23637_v11  ;;  %v15624_v34 = vpop.f32.mrf.mxu0  ;;  %15767 = vmatmul.mubr.msk.f32.gmra.mxu0 %vm395_vm1, %v16545_v2  ;;  %v23643_v2 = vld [vmem:[#allocation324_spill] sm:$0xff] }
 0x36f   : > { %23636 = vst [vmem:[#allocation154_spill] sm:$0xff] %v20729_v47  ;;  %v20736_v16 = vadd.f32 %v8369_v31, %v8006_v53  ;;  %v8009_v28 = vadd.f32 %v15430_v7, %v19830_v18  ;;  %15575 = vmatprep.mubr.msk.f32.mxu1 %vm395_vm1, %v23639_v58  ;;  %15769 = vmatprep.mubr.msk.f32.mxu0 %vm395_vm1, %v16546_v20  ;;  %v16547_v18 = vld [vmem:[%s16746_s9 + $0x478] sm:$0xff] }
 0x370   : > { %v7273_v23 = vpop.f32.mrf.mxu1  ;;  %v8379_v45 = vpop.f32.mrf.mxu0 }
 0x371   : > { %23638 = vst [vmem:[#allocation159_spill] sm:$0xff] %v20736_v16  ;;  %v20743_v55 = vadd.f32 %v15624_v34, %v8009_v28  ;;  %v8008_v14 = vadd.f32 %v7273_v23, %v19837_v60  ;;  %v16548_v34 = vld [vmem:[%s16746_s9 + $0x488] sm:$0xff] }
 0x372   : > { %v15433_v47 = vpop.f32.mrf.mxu1  ;;  %15576 = vmatmul.mubr.msk.f32.gmra.mxu1 %vm395_vm1, %v23641_v12  ;;  %v15627_v31 = vpop.f32.mrf.mxu0  ;;  %15770 = vmatmul.mubr.msk.f32.gmra.mxu0 %vm395_vm1, %v16547_v18  ;;  %v23645_v16 = vld [vmem:[#allocation327_spill] sm:$0xff]  ;;  %v23647_v18 = vld [vmem:[#allocation330_spill] sm:$0xff] }
 0x373   : > { %23640 = vst [vmem:[#allocation160_spill] sm:$0xff] %v20743_v55  ;;  %v20750_v7 = vadd.f32 %v8379_v45, %v8008_v14  ;;  %v8011_v53 = vadd.f32 %v15433_v47, %v19844_v15  ;;  %15578 = vmatprep.mubr.msk.f32.mxu1 %vm395_vm1, %v23643_v2  ;;  %15772 = vmatprep.mubr.msk.f32.mxu0 %vm395_vm1, %v16548_v34  ;;  %v16549_v15 = vld [vmem:[%s16746_s9 + $0x490] sm:$0xff] }
 0x374   : > { %v7283_v60 = vpop.f32.mrf.mxu1  ;;  %v8389_v28 = vpop.f32.mrf.mxu0 }
 0x375   : > { %23642 = vst [vmem:[#allocation163_spill] sm:$0xff] %v20750_v7  ;;  %v20757_v20 = vadd.f32 %v15627_v31, %v8011_v53  ;;  %v8010_v23 = vadd.f32 %v7283_v60, %v19851_v21  ;;  %v16550_v31 = vld [vmem:[%s16746_s9 + $0x498] sm:$0xff]  ;;  %v23649_v7 = vld [vmem:[#allocation334_spill] sm:$0xff] }
 0x376   : > { %v15436_v55 = vpop.f32.mrf.mxu1  ;;  %15579 = vmatmul.mubr.msk.f32.gmra.mxu1 %vm395_vm1, %v23645_v16  ;;  %v15630_v45 = vpop.f32.mrf.mxu0  ;;  %15773 = vmatmul.mubr.msk.f32.gmra.mxu0 %vm395_vm1, %v16549_v15  ;;  %v23651_v15 = vld [vmem:[#allocation336_spill] sm:$0xff] }
 0x377   : > { %23644 = vst [vmem:[#allocation166_spill] sm:$0xff] %v20757_v20  ;;  %v20764_v47 = vadd.f32 %v8389_v28, %v8010_v23  ;;  %v8013_v14 = vadd.f32 %v15436_v55, %v19858_v35  ;;  %15581 = vmatprep.mubr.msk.f32.mxu1 %vm395_vm1, %v23647_v18  ;;  %15775 = vmatprep.mubr.msk.f32.mxu0 %vm395_vm1, %v16550_v31  ;;  %v16551_v35 = vld [vmem:[%s16746_s9 + $0x4a0] sm:$0xff] }
 0x378   : > { %v7293_v21 = vpop.f32.mrf.mxu1  ;;  %v8399_v53 = vpop.f32.mrf.mxu0 }
 0x379   : > { %23646 = vst [vmem:[#allocation172_spill] sm:$0xff] %v20764_v47  ;;  %v20771_v34 = vadd.f32 %v15630_v45, %v8013_v14  ;;  %v8012_v60 = vadd.f32 %v7293_v21, %v19865_v50  ;;  %v16552_v45 = vld [vmem:[%s16746_s9 + $0x4b0] sm:$0xff]  ;;  %v23653_v47 = vld [vmem:[#allocation339_spill] sm:$0xff] }
 0x37a   : > { %v15439_v20 = vpop.f32.mrf.mxu1  ;;  %15582 = vmatmul.mubr.msk.f32.gmra.mxu1 %vm395_vm1, %v23649_v7  ;;  %v15633_v28 = vpop.f32.mrf.mxu0  ;;  %15776 = vmatmul.mubr.msk.f32.gmra.mxu0 %vm395_vm1, %v16551_v35  ;;  %v23655_v35 = vld [vmem:[#allocation342_spill] sm:$0xff] }
 0x37b   : > { %23648 = vst [vmem:[#allocation174_spill] sm:$0xff] %v20771_v34  ;;  %v20778_v55 = vadd.f32 %v8399_v53, %v8012_v60  ;;  %v8015_v23 = vadd.f32 %v15439_v20, %v19872_v49  ;;  %15584 = vmatprep.mubr.msk.f32.mxu1 %vm395_vm1, %v23651_v15  ;;  %15778 = vmatprep.mubr.msk.f32.mxu0 %vm395_vm1, %v16552_v45  ;;  %v16553_v49 = vld [vmem:[%s16746_s9 + $0x4b8] sm:$0xff] }
 0x37c   : > { %v7303_v50 = vpop.f32.mrf.mxu1  ;;  %v8409_v14 = vpop.f32.mrf.mxu0 }
 0x37d   : > { %23650 = vst [vmem:[#allocation178_spill] sm:$0xff] %v20778_v55  ;;  %v20785_v31 = vadd.f32 %v15633_v28, %v8015_v23  ;;  %v8014_v21 = vadd.f32 %v7303_v50, %v19879_v10  ;;  %v16554_v28 = vld [vmem:[%s16746_s9 + $0x4c0] sm:$0xff]  ;;  %v23657_v55 = vld [vmem:[#allocation345_spill] sm:$0xff] }
 0x37e   : > { %v15442_v34 = vpop.f32.mrf.mxu1  ;;  %15585 = vmatmul.mubr.msk.f32.gmra.mxu1 %vm395_vm1, %v23653_v47  ;;  %v15636_v53 = vpop.f32.mrf.mxu0  ;;  %15779 = vmatmul.mubr.msk.f32.gmra.mxu0 %vm395_vm1, %v16553_v49 }
 0x37f   : > { %23652 = vst [vmem:[#allocation182_spill] sm:$0xff] %v20785_v31  ;;  %v20792_v20 = vadd.f32 %v8409_v14, %v8014_v21  ;;  %v8017_v60 = vadd.f32 %v15442_v34, %v19886_v62  ;;  %15587 = vmatprep.mubr.msk.f32.mxu1 %vm395_vm1, %v23655_v35  ;;  %15781 = vmatprep.mubr.msk.f32.mxu0 %vm395_vm1, %v16554_v28  ;;  %v16555_v62 = vld [vmem:[%s16746_s9 + $0x4c8] sm:$0xff]  ;;  %v23659_v21 = vld [vmem:[#allocation246_spill] sm:$0xff] }
 0x380   : > { %v7313_v10 = vpop.f32.mrf.mxu1  ;;  %v8419_v23 = vpop.f32.mrf.mxu0  ;;  %v23660_v28 = vld [vmem:[#allocation347_spill] sm:$0xff]  ;;  %v23663_v35 = vld [vmem:[#allocation350_spill] sm:$0xff] }
 0x381   : > { %23654 = vst [vmem:[#allocation188_spill] sm:$0xff] %v20792_v20  ;;  %v20799_v45 = vadd.f32 %v15636_v53, %v8017_v60  ;;  %v8016_v50 = vadd.f32 %v7313_v10, %v19893_v3  ;;  %v16556_v53 = vld [vmem:[%s16746_s9 + $0x4d8] sm:$0xff] }
 0x382   : > { %v15445_v31 = vpop.f32.mrf.mxu1  ;;  %15588 = vmatmul.mubr.msk.f32.gmra.mxu1 %vm395_vm1, %v23657_v55  ;;  %v15639_v14 = vpop.f32.mrf.mxu0  ;;  %15782 = vmatmul.mubr.msk.f32.gmra.mxu0 %vm395_vm1, %v16555_v62  ;;  %v23665_v62 = vld [vmem:[#allocation254_spill] sm:$0xff] }
 0x383   : > { %23656 = vst [vmem:[#allocation190_spill] sm:$0xff] %v20799_v45  ;;  %v20806_v34 = vadd.f32 %v8419_v23, %v8016_v50  ;;  %v8019_v49 = vadd.f32 %v15445_v31, %v23659_v21  ;;  %15590 = vmatprep.mubr.msk.f32.mxu1 %vm395_vm1, %v23660_v28  ;;  %15784 = vmatprep.mubr.msk.f32.mxu0 %vm395_vm1, %v16556_v53  ;;  %v23662_v45 = vld [vmem:[#allocation252_spill] sm:$0xff]  ;;  %v16557_v31 = vld [vmem:[%s16746_s9 + $0x4e0] sm:$0xff]  ;;  %v23666_v53 = vld [vmem:[#allocation353_spill] sm:$0xff] }
 0x384   : > { %v7323_v3 = vpop.f32.mrf.mxu1  ;;  %v8429_v60 = vpop.f32.mrf.mxu0 }
 0x385   : > { %23658 = vst [vmem:[#allocation194_spill] sm:$0xff] %v20806_v34  ;;  %v20813_v10 = vadd.f32 %v15639_v14, %v8019_v49  ;;  %v8018_v20 = vadd.f32 %v7323_v3, %v23662_v45  ;;  %v16558_v14 = vld [vmem:[%s16746_s9 + $0x4e8] sm:$0xff] }
 0x386   : > { %v15448_v55 = vpop.f32.mrf.mxu1  ;;  %15591 = vmatmul.mubr.msk.f32.gmra.mxu1 %vm395_vm1, %v23663_v35  ;;  %v15642_v23 = vpop.f32.mrf.mxu0  ;;  %15785 = vmatmul.mubr.msk.f32.gmra.mxu0 %vm395_vm1, %v16557_v31  ;;  %v23669_v31 = vld [vmem:[#allocation357_spill] sm:$0xff] }
 0x387   : > { %23661 = vst [vmem:[#allocation198_spill] sm:$0xff] %v20813_v10  ;;  %v20820_v50 = vadd.f32 %v8429_v60, %v8018_v20  ;;  %v8021_v21 = vadd.f32 %v15448_v55, %v23665_v62  ;;  %15593 = vmatprep.mubr.msk.f32.mxu1 %vm395_vm1, %v23666_v53  ;;  %15787 = vmatprep.mubr.msk.f32.mxu0 %vm395_vm1, %v16558_v14  ;;  %v23668_v10 = vld [vmem:[#allocation258_spill] sm:$0xff]  ;;  %v16559_v55 = vld [vmem:[%s16746_s9 + $0x4f0] sm:$0xff]  ;;  %v23672_v14 = vld [vmem:[#allocation359_spill] sm:$0xff] }
 0x388   : > { %v7333_v45 = vpop.f32.mrf.mxu1  ;;  %v8439_v49 = vpop.f32.mrf.mxu0  ;;  %v23671_v62 = vld [vmem:[#allocation262_spill] sm:$0xff] }
 0x389   : > { %23664 = vst [vmem:[#allocation204_spill] sm:$0xff] %v20820_v50  ;;  %v20827_v3 = vadd.f32 %v15642_v23, %v8021_v21  ;;  %v8020_v34 = vadd.f32 %v7333_v45, %v23668_v10  ;;  %v16560_v53 = vld [vmem:[%s16746_s9 + $0x500] sm:$0xff]  ;;  %v16561_v45 = vld [vmem:[%s16746_s9 + $0x508] sm:$0xff] }
 0x38a   : > { %v15451_v35 = vpop.f32.mrf.mxu1  ;;  %15594 = vmatmul.mubr.msk.f32.gmra.mxu1 %vm395_vm1, %v23669_v31  ;;  %v15645_v20 = vpop.f32.mrf.mxu0  ;;  %15788 = vmatmul.mubr.msk.f32.gmra.mxu0 %vm395_vm1, %v16559_v55  ;;  %v7145_v10 = vrot.slane %v16560_v53, 2 }
 0x38b   : > { %23667 = vst [vmem:[#allocation206_spill] sm:$0xff] %v20827_v3  ;;  %v20834_v60 = vadd.f32 %v8439_v49, %v8020_v34  ;;  %v8023_v50 = vadd.f32 %v15451_v35, %v23671_v62  ;;  %15596 = vmatprep.mubr.msk.f32.mxu1 %vm395_vm1, %v23672_v14  ;;  %15790 = vmatprep.mubr.msk.f32.mxu0 %vm395_vm1, %v16560_v53  ;;  %v7146_v3 = vrot.slane %v16561_v45, 2  ;;  %v23674_v35 = vld [vmem:[#allocation361_spill] sm:$0xff]  ;;  %v16562_v14 = vld [vmem:[%s16746_s9 + $0x510] sm:$0xff] }
 0x38c   : > { %v7343_v23 = vpop.f32.mrf.mxu1  ;;  %v8449_v21 = vpop.f32.mrf.mxu0 }
 0x38d   : > { %23670 = vst [vmem:[#allocation210_spill] sm:$0xff] %v20834_v60  ;;  %v20842_v31 = vadd.f32 %v15645_v20, %v8023_v50  ;;  %v8022_v34 = vadd.f32 %v7343_v23, %v19939_v41  ;;  %v23676_v60 = vld [vmem:[#allocation363_spill] sm:$0xff]  ;;  %v7148_v50 = vrot.slane %v16562_v14, 2  ;;  %v20856_v23 = vsel %vm3288_vm3, %v7145_v10, %v7146_v3 }
 0x38e   : > { %v15454_v49 = vpop.f32.mrf.mxu1  ;;  %15597 = vmatmul.mubr.msk.f32.gmra.mxu1 %vm395_vm1, %v23674_v35  ;;  %v15648_v55 = vpop.f32.mrf.mxu0  ;;  %15791 = vmatmul.mubr.msk.f32.gmra.mxu0 %vm395_vm1, %v16561_v45  ;;  %v16563_v45 = vld [vmem:[%s16746_s9 + $0x518] sm:$0xff] }
 0x38f   : > { %23673 = vst [vmem:[#allocation214_spill] sm:$0xff] %v20842_v31  ;;  %v20848_v62 = vadd.f32 %v8449_v21, %v8022_v34  ;;  %v8025_v53 = vadd.f32 %v15454_v49, %v19950_v48  ;;  %15599 = vmatprep.mubr.msk.f32.mxu1 %vm395_vm1, %v23676_v60  ;;  %15793 = vmatprep.mubr.msk.f32.mxu0 %vm395_vm1, %v16562_v14  ;;  %v389_v31 = vld [vmem:[%s16746_s9 + $0x528] sm:$0xff]  ;;  %v7150_v21 = vrot.slane %v16563_v45, 2 }
 0x390   : > { %v7353_v20 = vpop.f32.mrf.mxu1  ;;  %v8459_v41 = vpop.f32.mrf.mxu0 }
 0x391   : > { %23675 = vst [vmem:[#allocation220_spill] sm:$0xff] %v20848_v62  ;;  %v20860_v34 = vadd.f32 %v15648_v55, %v8025_v53  ;;  %v8024_v48 = vadd.f32 %v7353_v20, %v19957_v26  ;;  %v23678_v62 = vld [vmem:[#allocation365_spill] sm:$0xff]  ;;  %v20873_v55 = vsel %vm3288_vm3, %v7146_v3, %v7148_v50  ;;  %v390_v26 = vld [vmem:[%s16746_s9 + $0x530] sm:$0xff]  ;;  %v16564_v53 = vld [vmem:[%s16746_s9 + $0x520] sm:$0x3] }
 0x392   : > { %v15457_v49 = vpop.f32.mrf.mxu1  ;;  %15600 = vmatmul.mubr.msk.f32.gmra.mxu1 %vm395_vm1, %v23678_v62  ;;  %v15651_v14 = vpop.f32.mrf.mxu0  ;;  %15794 = vmatmul.mubr.msk.f32.gmra.mxu0 %vm395_vm1, %v16563_v45  ;;  %v7152_v20 = vrot.slane %v16564_v53, 2  ;;  %v20878_v45 = vsel %vm3288_vm3, %v7148_v50, %v7150_v21 }
 0x393   : > { %23677 = vst [vmem:[#allocation222_spill] sm:$0xff] %v20860_v34  ;;  %v20866_v60 = vadd.f32 %v8459_v41, %v8024_v48  ;;  %v8027_v10 = vadd.f32 %v15457_v49, %v19969_v1  ;;  %15602 = vmatprep.mubr.msk.f32.mxu1 %vm395_vm1, %v20856_v23  ;;  %15796 = vmatprep.mubr.msk.f32.mxu0 %vm395_vm1, %v389_v31  ;;  %v391_v41 = vld [vmem:[%s16746_s9 + $0x538] sm:$0xff] }
 0x394   : > { %v7363_v34 = vpop.f32.mrf.mxu1  ;;  %v8469_v62 = vpop.f32.mrf.mxu0  ;;  %v20894_v50 = vsel %vm3288_vm3, %v7150_v21, %v7152_v20  ;;  %v23680_v21 = vld [vmem:[#allocation24_spill] sm:$0xff] }
 0x395   : > { %v20881_v48 = vadd.f32 %v15651_v14, %v8027_v10  ;;  %v8026_v1 = vadd.f32 %v7363_v34, %v19975_v29  ;;  %v392_v29 = vld [vmem:[%s16746_s9 + $0x540] sm:$0xff] }
 0x396   : > { %v15460_v49 = vpop.f32.mrf.mxu1  ;;  %15603 = vmatmul.mubr.msk.f32.gmra.mxu1 %vm395_vm1, %v20873_v55  ;;  %v15654_v3 = vpop.f32.mrf.mxu0  ;;  %15797 = vmatmul.mubr.msk.f32.gmra.mxu0 %vm395_vm1, %v390_v26 }
 0x397   : > { %23679 = vst [vmem:[#allocation226_spill] sm:$0xff] %v20881_v48  ;;  %v20887_v31 = vadd.f32 %v8469_v62, %v8026_v1  ;;  %v8029_v53 = vadd.f32 %v15460_v49, %v19984_v43  ;;  %15605 = vmatprep.mubr.msk.f32.mxu1 %vm395_vm1, %v20878_v45  ;;  %15799 = vmatprep.mubr.msk.f32.mxu0 %vm395_vm1, %v391_v41 }
 0x398   : > { %v7373_v34 = vpop.f32.mrf.mxu1  ;;  %v8479_v14 = vpop.f32.mrf.mxu0 }
 0x399   : > { %v20897_v10 = vadd.f32 %v15654_v3, %v8029_v53  ;;  %v8028_v48 = vadd.f32 %v7373_v34, %v19990_v59  ;;  %v23681_v34 = vld [vmem:[#allocation26_spill] sm:$0xff] }
 0x39a   : > { %v15463_v26 = vpop.f32.mrf.mxu1  ;;  %15606 = vmatmul.mubr.msk.f32.gmra.mxu1 %vm395_vm1, %v20894_v50  ;;  %v15657_v43 = vpop.f32.mrf.mxu0  ;;  %15800 = vmatmul.mubr.msk.f32.gmra.mxu0 %vm395_vm1, %v392_v29  ;;  %v23682_v29 = vld [vmem:[#allocation28_spill] sm:$0xff] }
 0x39b   : > { %v20903_v62 = vadd.f32 %v8479_v14, %v8028_v48  ;;  %v8031_v41 = vadd.f32 %v15463_v26, %v19997_v51  ;;  %15804 = vmatprep.mubr.msk.f32.mxu1 %vm395_vm1, %v23680_v21  ;;  %15998 = vmatprep.mubr.msk.f32.mxu0 %vm395_vm1, %v23357_v56  ;;  %v23683_v21 = vld [vmem:[#allocation30_spill] sm:$0xff] }
 0x39c   : > { %v7383_v20 = vpop.f32.mrf.mxu1  ;;  %v8489_v1 = vpop.f32.mrf.mxu0 }
 0x39d   : > { %v20910_v59 = vadd.f32 %v15657_v43, %v8031_v41  ;;  %v8030_v49 = vadd.f32 %v7383_v20, %v20004_v61  ;;  %v23684_v20 = vld [vmem:[#allocation32_spill] sm:$0xff] }
 0x39e   : > { %v15466_v3 = vpop.f32.mrf.mxu1  ;;  %v15660_v53 = vpop.f32.mrf.mxu0  ;;  %15805 = vmatmul.mubr.msk.f32.vlgmr.msra.gmra.mxu1 %vm395_vm1, %v23681_v34  ;;  %15999 = vmatmul.mubr.msk.f32.vlgmr.msra.gmra.mxu0 %vm395_vm1, %v23358_v39  ;;  %v23685_v34 = vld [vmem:[#allocation34_spill] sm:$0xff] }
 0x39f   : > { %v20917_v51 = vadd.f32 %v8489_v1, %v8030_v49  ;;  %v8033_v48 = vadd.f32 %v15466_v3, %v20015_v0  ;;  %15807 = vmatprep.mubr.msk.f32.mxu1 %vm395_vm1, %v23682_v29  ;;  %16001 = vmatprep.mubr.msk.f32.mxu0 %vm395_vm1, %v23359_v40 }
 0x3a0   : > { %v7393_v56 = vpop.f32.mrf.mxu1  ;;  %v8499_v61 = vpop.f32.mrf.mxu0 }
 0x3a1   : > { %v20924_v14 = vadd.f32 %v15660_v53, %v8033_v48  ;;  %v8032_v26 = vadd.f32 %v7393_v56, %v20022_v25  ;;  %v23686_v48 = vld [vmem:[#allocation36_spill] sm:$0xff] }
 0x3a2   : > { %v15469_v43 = vpop.f32.mrf.mxu1  ;;  %v15663_v41 = vpop.f32.mrf.mxu0  ;;  %15808 = vmatmul.mubr.msk.f32.gmra.mxu1 %vm395_vm1, %v23683_v21  ;;  %16002 = vmatmul.mubr.msk.f32.gmra.mxu0 %vm395_vm1, %v23360_v42 }
 0x3a3   : > { %v20931_v0 = vadd.f32 %v8499_v61, %v8032_v26  ;;  %v8035_v39 = vadd.f32 %v15469_v43, %v20029_v19  ;;  %15810 = vmatprep.mubr.msk.f32.mxu1 %vm395_vm1, %v23684_v20  ;;  %16004 = vmatprep.mubr.msk.f32.mxu0 %vm395_vm1, %v23361_v57  ;;  %v23687_v43 = vld [vmem:[#allocation38_spill] sm:$0xff]  ;;  %v23690_v20 = vld [vmem:[#allocation284_spill] sm:$0xff] }
 0x3a4   : > { %v7403_v40 = vpop.f32.mrf.mxu1  ;;  %v8509_v25 = vpop.f32.mrf.mxu0 }
 0x3a5   : > { %v20938_v1 = vadd.f32 %v15663_v41, %v8035_v39  ;;  %v8034_v49 = vadd.f32 %v7403_v40, %v20036_v4  ;;  %v23688_v41 = vld [vmem:[#allocation40_spill] sm:$0xff] }
 0x3a6   : > { %v15472_v3 = vpop.f32.mrf.mxu1  ;;  %v15666_v53 = vpop.f32.mrf.mxu0  ;;  %15811 = vmatmul.mubr.msk.f32.gmra.mxu1 %vm395_vm1, %v23685_v34  ;;  %16005 = vmatmul.mubr.msk.f32.gmra.mxu0 %vm395_vm1, %v23362_v27 }
 0x3a7   : > { %v20945_v19 = vadd.f32 %v8509_v25, %v8034_v49  ;;  %v8037_v42 = vadd.f32 %v15472_v3, %v20043_v36  ;;  %15813 = vmatprep.mubr.msk.f32.mxu1 %vm395_vm1, %v23686_v48  ;;  %16007 = vmatprep.mubr.msk.f32.mxu0 %vm395_vm1, %v23365_v6  ;;  %v23689_v6 = vld [vmem:[#allocation41_spill] sm:$0xff]  ;;  %v23691_v3 = vld [vmem:[#allocation42_spill] sm:$0xff] }
 0x3a8   : > { %v7413_v57 = vpop.f32.mrf.mxu1  ;;  %v8519_v4 = vpop.f32.mrf.mxu0  ;;  %v23695_v48 = vld [vmem:[#allocation45_spill] sm:$0xff] }
 0x3a9   : > { %v20952_v29 = vadd.f32 %v15666_v53, %v8037_v42  ;;  %v8036_v56 = vadd.f32 %v7413_v57, %v20050_v54  ;;  %v23693_v53 = vld [vmem:[#allocation289_spill] sm:$0xff]  ;;  %v23694_v42 = vld [vmem:[#allocation44_spill] sm:$0xff] }
 0x3aa   : > { %v15475_v61 = vpop.f32.mrf.mxu1  ;;  %v15669_v26 = vpop.f32.mrf.mxu0  ;;  %15814 = vmatmul.mubr.msk.f32.gmra.mxu1 %vm395_vm1, %v23687_v43  ;;  %16008 = vmatmul.mubr.msk.f32.gmra.mxu0 %vm395_vm1, %v23368_v30  ;;  %v23692_v30 = vld [vmem:[#allocation43_spill] sm:$0xff] }
 0x3ab   : > { %v20959_v36 = vadd.f32 %v8519_v4, %v8036_v56  ;;  %v8039_v27 = vadd.f32 %v15475_v61, %v20057_v33  ;;  %15816 = vmatprep.mubr.msk.f32.mxu1 %vm395_vm1, %v23688_v41  ;;  %16010 = vmatprep.mubr.msk.f32.mxu0 %vm395_vm1, %v23689_v6  ;;  %v23696_v61 = vld [vmem:[#allocation293_spill] sm:$0xff]  ;;  %v23697_v41 = vld [vmem:[#allocation46_spill] sm:$0xff]  ;;  %v23698_v6 = vld [vmem:[#allocation47_spill] sm:$0xff] }
 0x3ac   : > { %v7423_v21 = vpop.f32.mrf.mxu1  ;;  %v8529_v54 = vpop.f32.mrf.mxu0 }
 0x3ad   : > { %v20966_v39 = vadd.f32 %v15669_v26, %v8039_v27  ;;  %v8038_v40 = vadd.f32 %v7423_v21, %v23690_v20 }
 0x3ae   : > { %v15478_v25 = vpop.f32.mrf.mxu1  ;;  %v15672_v49 = vpop.f32.mrf.mxu0  ;;  %15817 = vmatmul.mubr.msk.f32.gmra.mxu1 %vm395_vm1, %v23691_v3  ;;  %16011 = vmatmul.mubr.msk.f32.gmra.mxu0 %vm395_vm1, %v23692_v30 }
 0x3af   : > { %v20973_v33 = vadd.f32 %v8529_v54, %v8038_v40  ;;  %v8041_v34 = vadd.f32 %v15478_v25, %v23693_v53  ;;  %15819 = vmatprep.mubr.msk.f32.mxu1 %vm395_vm1, %v23694_v42  ;;  %16013 = vmatprep.mubr.msk.f32.mxu0 %vm395_vm1, %v23695_v48  ;;  %v23699_v54 = vld [vmem:[#allocation295_spill] sm:$0xff]  ;;  %v23700_v40 = vld [vmem:[#allocation48_spill] sm:$0xff]  ;;  %v23701_v25 = vld [vmem:[#allocation49_spill] sm:$0xff] }
 0x3b0   : > { %v7433_v57 = vpop.f32.mrf.mxu1  ;;  %v8539_v4 = vpop.f32.mrf.mxu0  ;;  %v23702_v53 = vld [vmem:[#allocation297_spill] sm:$0xff] }
 0x3b1   : > { %v20980_v56 = vadd.f32 %v15672_v49, %v8041_v34  ;;  %v8040_v26 = vadd.f32 %v7433_v57, %v23696_v61  ;;  %v23703_v57 = vld [vmem:[#allocation50_spill] sm:$0xff] }
 0x3b2   : > { %v15481_v43 = vpop.f32.mrf.mxu1  ;;  %v15675_v27 = vpop.f32.mrf.mxu0  ;;  %15820 = vmatmul.mubr.msk.f32.gmra.mxu1 %vm395_vm1, %v23697_v41  ;;  %16014 = vmatmul.mubr.msk.f32.gmra.mxu0 %vm395_vm1, %v23698_v6  ;;  %v23707_v41 = vld [vmem:[#allocation52_spill] sm:$0xff]  ;;  %v23708_v6 = vld [vmem:[#allocation53_spill] sm:$0xff] }
 0x3b3   : > { %v20987_v21 = vadd.f32 %v8539_v4, %v8040_v26  ;;  %v8043_v20 = vadd.f32 %v15481_v43, %v23699_v54  ;;  %15822 = vmatprep.mubr.msk.f32.mxu1 %vm395_vm1, %v23700_v40  ;;  %16016 = vmatprep.mubr.msk.f32.mxu0 %vm395_vm1, %v23701_v25  ;;  %v23704_v4 = vld [vmem:[#allocation51_spill] sm:$0xff]  ;;  %v23706_v26 = vld [vmem:[#allocation301_spill] sm:$0xff] }
 0x3b4   : > { %v7443_v49 = vpop.f32.mrf.mxu1  ;;  %v8549_v3 = vpop.f32.mrf.mxu0  ;;  %v23710_v40 = vld [vmem:[#allocation305_spill] sm:$0xff] }
 0x3b5   : > { %v20994_v30 = vadd.f32 %v15675_v27, %v8043_v20  ;;  %v8042_v34 = vadd.f32 %v7443_v49, %v23702_v53 }
 0x3b6   : > { %v15484_v42 = vpop.f32.mrf.mxu1  ;;  %v15678_v48 = vpop.f32.mrf.mxu0  ;;  %15823 = vmatmul.mubr.msk.f32.gmra.mxu1 %vm395_vm1, %v23703_v57  ;;  %16017 = vmatmul.mubr.msk.f32.gmra.mxu0 %vm395_vm1, %v23704_v4  ;;  %v23711_v57 = vld [vmem:[#allocation54_spill] sm:$0xff] }
 0x3b7   : > { %v21001_v61 = vadd.f32 %v8549_v3, %v8042_v34  ;;  %v8045_v43 = vadd.f32 %v15484_v42, %v23706_v26  ;;  %15825 = vmatprep.mubr.msk.f32.mxu1 %vm395_vm1, %v23707_v41  ;;  %16019 = vmatprep.mubr.msk.f32.mxu0 %vm395_vm1, %v23708_v6  ;;  %v23712_v3 = vld [vmem:[#allocation55_spill] sm:$0xff]  ;;  %v23715_v26 = vld [vmem:[#allocation56_spill] sm:$0xff]  ;;  %v23716_v41 = vld [vmem:[#allocation57_spill] sm:$0xff] }
 0x3b8   : > { %v7453_v27 = vpop.f32.mrf.mxu1  ;;  %v8559_v54 = vpop.f32.mrf.mxu0  ;;  %v23714_v42 = vld [vmem:[#allocation307_spill] sm:$0xff] }
 0x3b9   : > { %23705 = vst [vmem:[#allocation230_spill] sm:$0xff] %v21001_v61  ;;  %v21008_v20 = vadd.f32 %v15678_v48, %v8045_v43  ;;  %v8044_v25 = vadd.f32 %v7453_v27, %v23710_v40  ;;  %v23718_v27 = vld [vmem:[#allocation309_spill] sm:$0xff]  ;;  %v23719_v61 = vld [vmem:[#allocation58_spill] sm:$0xff] }
 0x3ba   : > { %v15487_v49 = vpop.f32.mrf.mxu1  ;;  %v15681_v53 = vpop.f32.mrf.mxu0  ;;  %15826 = vmatmul.mubr.msk.f32.gmra.mxu1 %vm395_vm1, %v23711_v57  ;;  %16020 = vmatmul.mubr.msk.f32.gmra.mxu0 %vm395_vm1, %v23712_v3 }
 0x3bb   : > { %23709 = vst [vmem:[#allocation236_spill] sm:$0xff] %v21008_v20  ;;  %v21015_v34 = vadd.f32 %v8559_v54, %v8044_v25  ;;  %v8047_v4 = vadd.f32 %v15487_v49, %v23714_v42  ;;  %15828 = vmatprep.mubr.msk.f32.mxu1 %vm395_vm1, %v23715_v26  ;;  %16022 = vmatprep.mubr.msk.f32.mxu0 %vm395_vm1, %v23716_v41  ;;  %v23720_v54 = vld [vmem:[#allocation59_spill] sm:$0xff]  ;;  %v23722_v49 = vld [vmem:[#allocation313_spill] sm:$0xff]  ;;  %v23723_v42 = vld [vmem:[#allocation60_spill] sm:$0xff] }
 0x3bc   : > { %v7463_v48 = vpop.f32.mrf.mxu1  ;;  %v8569_v43 = vpop.f32.mrf.mxu0  ;;  %v23724_v26 = vld [vmem:[#allocation61_spill] sm:$0xff] }
 0x3bd   : > { %23713 = vst [vmem:[#allocation266_spill] sm:$0xff] %v21015_v34  ;;  %v21022_v6 = vadd.f32 %v15681_v53, %v8047_v4  ;;  %v8046_v40 = vadd.f32 %v7463_v48, %v23718_v27  ;;  %v23726_v48 = vld [vmem:[#allocation317_spill] sm:$0xff]  ;;  %v23727_v34 = vld [vmem:[#allocation62_spill] sm:$0xff] }
 0x3be   : > { %v15490_v57 = vpop.f32.mrf.mxu1  ;;  %v15684_v20 = vpop.f32.mrf.mxu0  ;;  %15829 = vmatmul.mubr.msk.f32.gmra.mxu1 %vm395_vm1, %v23719_v61  ;;  %16023 = vmatmul.mubr.msk.f32.gmra.mxu0 %vm395_vm1, %v23720_v54 }
 0x3bf   : > { %23717 = vst [vmem:[#allocation238_spill] sm:$0xff] %v21022_v6  ;;  %v21029_v25 = vadd.f32 %v8569_v43, %v8046_v40  ;;  %v8049_v3 = vadd.f32 %v15490_v57, %v23722_v49  ;;  %15831 = vmatprep.mubr.msk.f32.mxu1 %vm395_vm1, %v23723_v42  ;;  %16025 = vmatprep.mubr.msk.f32.mxu0 %vm395_vm1, %v23724_v26  ;;  %v23728_v43 = vld [vmem:[#allocation63_spill] sm:$0xff]  ;;  %v23731_v49 = vld [vmem:[#allocation64_spill] sm:$0xff]  ;;  %v23732_v42 = vld [vmem:[#allocation65_spill] sm:$0xff] }
 0x3c0   : > { %v7473_v53 = vpop.f32.mrf.mxu1  ;;  %v8579_v4 = vpop.f32.mrf.mxu0  ;;  %v23730_v57 = vld [vmem:[#allocation319_spill] sm:$0xff] }
 0x3c1   : > { %23721 = vst [vmem:[#allocation242_spill] sm:$0xff] %v21029_v25  ;;  %v21036_v41 = vadd.f32 %v15684_v20, %v8049_v3  ;;  %v8048_v27 = vadd.f32 %v7473_v53, %v23726_v48  ;;  %v23734_v53 = vld [vmem:[#allocation321_spill] sm:$0xff]  ;;  %v23735_v25 = vld [vmem:[#allocation66_spill] sm:$0xff] }
 0x3c2   : > { %v15493_v61 = vpop.f32.mrf.mxu1  ;;  %v15687_v6 = vpop.f32.mrf.mxu0  ;;  %15832 = vmatmul.mubr.msk.f32.gmra.mxu1 %vm395_vm1, %v23727_v34  ;;  %16026 = vmatmul.mubr.msk.f32.gmra.mxu0 %vm395_vm1, %v23728_v43 }
 0x3c3   : > { %23725 = vst [vmem:[#allocation276_spill] sm:$0xff] %v21036_v41  ;;  %v21043_v40 = vadd.f32 %v8579_v4, %v8048_v27  ;;  %v8051_v54 = vadd.f32 %v15493_v61, %v23730_v57  ;;  %15834 = vmatprep.mubr.msk.f32.mxu1 %vm395_vm1, %v23731_v49  ;;  %16028 = vmatprep.mubr.msk.f32.mxu0 %vm395_vm1, %v23732_v42  ;;  %v23736_v4 = vld [vmem:[#allocation67_spill] sm:$0xff]  ;;  %v23738_v61 = vld [vmem:[#allocation325_spill] sm:$0xff]  ;;  %v23739_v57 = vld [vmem:[#allocation68_spill] sm:$0xff] }
 0x3c4   : > { %v7483_v20 = vpop.f32.mrf.mxu1  ;;  %v8589_v3 = vpop.f32.mrf.mxu0  ;;  %v23740_v49 = vld [vmem:[#allocation69_spill] sm:$0xff] }
 0x3c5   : > { %23729 = vst [vmem:[#allocation280_spill] sm:$0xff] %v21043_v40  ;;  %v21050_v26 = vadd.f32 %v15687_v6, %v8051_v54  ;;  %v8050_v48 = vadd.f32 %v7483_v20, %v23734_v53  ;;  %v23742_v20 = vld [vmem:[#allocation329_spill] sm:$0xff]  ;;  %v23743_v40 = vld [vmem:[#allocation70_spill] sm:$0xff] }
 0x3c6   : > { %v15496_v34 = vpop.f32.mrf.mxu1  ;;  %v15690_v41 = vpop.f32.mrf.mxu0  ;;  %15835 = vmatmul.mubr.msk.f32.gmra.mxu1 %vm395_vm1, %v23735_v25  ;;  %16029 = vmatmul.mubr.msk.f32.gmra.mxu0 %vm395_vm1, %v23736_v4 }
 0x3c7   : > { %23733 = vst [vmem:[#allocation282_spill] sm:$0xff] %v21050_v26  ;;  %v21057_v27 = vadd.f32 %v8589_v3, %v8050_v48  ;;  %v8053_v43 = vadd.f32 %v15496_v34, %v23738_v61  ;;  %15837 = vmatprep.mubr.msk.f32.mxu1 %vm395_vm1, %v23739_v57  ;;  %16031 = vmatprep.mubr.msk.f32.mxu0 %vm395_vm1, %v23740_v49  ;;  %v23744_v3 = vld [vmem:[#allocation71_spill] sm:$0xff]  ;;  %v23747_v61 = vld [vmem:[#allocation72_spill] sm:$0xff]  ;;  %v23748_v57 = vld [vmem:[#allocation73_spill] sm:$0xff] }
 0x3c8   : > { %v7493_v6 = vpop.f32.mrf.mxu1  ;;  %v8599_v54 = vpop.f32.mrf.mxu0  ;;  %v23746_v34 = vld [vmem:[#allocation331_spill] sm:$0xff] }
 0x3c9   : > { %23737 = vst [vmem:[#allocation286_spill] sm:$0xff] %v21057_v27  ;;  %v21064_v42 = vadd.f32 %v15690_v41, %v8053_v43  ;;  %v8052_v53 = vadd.f32 %v7493_v6, %v23742_v20  ;;  %v23750_v6 = vld [vmem:[#allocation333_spill] sm:$0xff]  ;;  %v23751_v27 = vld [vmem:[#allocation74_spill] sm:$0xff] }
 0x3ca   : > { %v15499_v25 = vpop.f32.mrf.mxu1  ;;  %v15693_v26 = vpop.f32.mrf.mxu0  ;;  %15838 = vmatmul.mubr.msk.f32.gmra.mxu1 %vm395_vm1, %v23743_v40  ;;  %16032 = vmatmul.mubr.msk.f32.gmra.mxu0 %vm395_vm1, %v23744_v3 }
 0x3cb   : > { %23741 = vst [vmem:[#allocation288_spill] sm:$0xff] %v21064_v42  ;;  %v21071_v48 = vadd.f32 %v8599_v54, %v8052_v53  ;;  %v8055_v4 = vadd.f32 %v15499_v25, %v23746_v34  ;;  %15840 = vmatprep.mubr.msk.f32.mxu1 %vm395_vm1, %v23747_v61  ;;  %16034 = vmatprep.mubr.msk.f32.mxu0 %vm395_vm1, %v23748_v57  ;;  %v23752_v54 = vld [vmem:[#allocation75_spill] sm:$0xff]  ;;  %v23754_v25 = vld [vmem:[#allocation337_spill] sm:$0xff]  ;;  %v23755_v34 = vld [vmem:[#allocation76_spill] sm:$0xff] }
 0x3cc   : > { %v7503_v41 = vpop.f32.mrf.mxu1  ;;  %v8609_v43 = vpop.f32.mrf.mxu0  ;;  %v23756_v61 = vld [vmem:[#allocation77_spill] sm:$0xff] }
 0x3cd   : > { %23745 = vst [vmem:[#allocation291_spill] sm:$0xff] %v21071_v48  ;;  %v21078_v49 = vadd.f32 %v15693_v26, %v8055_v4  ;;  %v8054_v20 = vadd.f32 %v7503_v41, %v23750_v6  ;;  %v23758_v41 = vld [vmem:[#allocation341_spill] sm:$0xff]  ;;  %v23759_v48 = vld [vmem:[#allocation79_spill] sm:$0xff] }
 0x3ce   : > { %v15502_v40 = vpop.f32.mrf.mxu1  ;;  %v15696_v42 = vpop.f32.mrf.mxu0  ;;  %15841 = vmatmul.mubr.msk.f32.gmra.mxu1 %vm395_vm1, %v23751_v27  ;;  %16035 = vmatmul.mubr.msk.f32.gmra.mxu0 %vm395_vm1, %v23752_v54 }
 0x3cf   : > { %23749 = vst [vmem:[#allocation294_spill] sm:$0xff] %v21078_v49  ;;  %v21085_v53 = vadd.f32 %v8609_v43, %v8054_v20  ;;  %v8057_v3 = vadd.f32 %v15502_v40, %v23754_v25  ;;  %15843 = vmatprep.mubr.msk.f32.mxu1 %vm395_vm1, %v23755_v34  ;;  %16037 = vmatprep.mubr.msk.f32.mxu0 %vm395_vm1, %v23756_v61  ;;  %v23760_v43 = vld [vmem:[#allocation80_spill] sm:$0xff]  ;;  %v23762_v40 = vld [vmem:[#allocation343_spill] sm:$0xff]  ;;  %v23763_v25 = vld [vmem:[#allocation82_spill] sm:$0xff] }
 0x3d0   : > { %v7513_v26 = vpop.f32.mrf.mxu1  ;;  %v8619_v4 = vpop.f32.mrf.mxu0  ;;  %v23764_v34 = vld [vmem:[#allocation83_spill] sm:$0xff] }
 0x3d1   : > { %23753 = vst [vmem:[#allocation298_spill] sm:$0xff] %v21085_v53  ;;  %v21092_v57 = vadd.f32 %v15696_v42, %v8057_v3  ;;  %v8056_v6 = vadd.f32 %v7513_v26, %v23758_v41  ;;  %v23766_v26 = vld [vmem:[#allocation348_spill] sm:$0xff]  ;;  %v23767_v53 = vld [vmem:[#allocation85_spill] sm:$0xff] }
 0x3d2   : > { %v15505_v27 = vpop.f32.mrf.mxu1  ;;  %v15699_v49 = vpop.f32.mrf.mxu0  ;;  %15844 = vmatmul.mubr.msk.f32.gmra.mxu1 %vm395_vm1, %v23759_v48  ;;  %16038 = vmatmul.mubr.msk.f32.gmra.mxu0 %vm395_vm1, %v23760_v43 }
 0x3d3   : > { %23757 = vst [vmem:[#allocation300_spill] sm:$0xff] %v21092_v57  ;;  %v21099_v20 = vadd.f32 %v8619_v4, %v8056_v6  ;;  %v8059_v54 = vadd.f32 %v15505_v27, %v23762_v40  ;;  %15846 = vmatprep.mubr.msk.f32.mxu1 %vm395_vm1, %v23763_v25  ;;  %16040 = vmatprep.mubr.msk.f32.mxu0 %vm395_vm1, %v23764_v34  ;;  %v23768_v4 = vld [vmem:[#allocation86_spill] sm:$0xff]  ;;  %v23770_v27 = vld [vmem:[#allocation352_spill] sm:$0xff]  ;;  %v23771_v40 = vld [vmem:[#allocation87_spill] sm:$0xff] }
 0x3d4   : > { %v7523_v42 = vpop.f32.mrf.mxu1  ;;  %v8629_v3 = vpop.f32.mrf.mxu0  ;;  %v23772_v25 = vld [vmem:[#allocation88_spill] sm:$0xff] }
 0x3d5   : > { %23761 = vst [vmem:[#allocation303_spill] sm:$0xff] %v21099_v20  ;;  %v21106_v61 = vadd.f32 %v15699_v49, %v8059_v54  ;;  %v8058_v41 = vadd.f32 %v7523_v42, %v23766_v26  ;;  %v23774_v42 = vld [vmem:[#allocation354_spill] sm:$0xff]  ;;  %v23775_v20 = vld [vmem:[#allocation91_spill] sm:$0xff] }
 0x3d6   : > { %v15508_v48 = vpop.f32.mrf.mxu1  ;;  %v15702_v57 = vpop.f32.mrf.mxu0  ;;  %15847 = vmatmul.mubr.msk.f32.gmra.mxu1 %vm395_vm1, %v23767_v53  ;;  %16041 = vmatmul.mubr.msk.f32.gmra.mxu0 %vm395_vm1, %v23768_v4 }
 0x3d7   : > { %23765 = vst [vmem:[#allocation306_spill] sm:$0xff] %v21106_v61  ;;  %v21113_v6 = vadd.f32 %v8629_v3, %v8058_v41  ;;  %v8061_v43 = vadd.f32 %v15508_v48, %v23770_v27  ;;  %15849 = vmatprep.mubr.msk.f32.mxu1 %vm395_vm1, %v23771_v40  ;;  %16043 = vmatprep.mubr.msk.f32.mxu0 %vm395_vm1, %v23772_v25  ;;  %v23776_v3 = vld [vmem:[#allocation92_spill] sm:$0xff]  ;;  %v23779_v27 = vld [vmem:[#allocation94_spill] sm:$0xff]  ;;  %v23780_v40 = vld [vmem:[#allocation95_spill] sm:$0xff] }
 0x3d8   : > { %v7533_v49 = vpop.f32.mrf.mxu1  ;;  %v8639_v54 = vpop.f32.mrf.mxu0  ;;  %v23778_v48 = vld [vmem:[#allocation356_spill] sm:$0xff] }
 0x3d9   : > { %23769 = vst [vmem:[#allocation310_spill] sm:$0xff] %v21113_v6  ;;  %v21120_v34 = vadd.f32 %v15702_v57, %v8061_v43  ;;  %v8060_v26 = vadd.f32 %v7533_v49, %v23774_v42  ;;  %v23782_v49 = vld [vmem:[#allocation20_spill] sm:$0xff]  ;;  %v23783_v6 = vld [vmem:[#allocation97_spill] sm:$0xff] }
 0x3da   : > { %v15511_v53 = vpop.f32.mrf.mxu1  ;;  %v15705_v61 = vpop.f32.mrf.mxu0  ;;  %15850 = vmatmul.mubr.msk.f32.gmra.mxu1 %vm395_vm1, %v23775_v20  ;;  %16044 = vmatmul.mubr.msk.f32.gmra.mxu0 %vm395_vm1, %v23776_v3 }
 0x3db   : > { %23773 = vst [vmem:[#allocation312_spill] sm:$0xff] %v21120_v34  ;;  %v21127_v41 = vadd.f32 %v8639_v54, %v8060_v26  ;;  %v8063_v4 = vadd.f32 %v15511_v53, %v23778_v48  ;;  %15852 = vmatprep.mubr.msk.f32.mxu1 %vm395_vm1, %v23779_v27  ;;  %16046 = vmatprep.mubr.msk.f32.mxu0 %vm395_vm1, %v23780_v40  ;;  %v23784_v54 = vld [vmem:[#allocation98_spill] sm:$0xff]  ;;  %v23786_v53 = vld [vmem:[#allocation21_spill] sm:$0xff]  ;;  %v23787_v48 = vld [vmem:[#allocation99_spill] sm:$0xff] }
 0x3dc   : > { %v7543_v57 = vpop.f32.mrf.mxu1  ;;  %v8649_v43 = vpop.f32.mrf.mxu0  ;;  %v23788_v27 = vld [vmem:[#allocation100_spill] sm:$0xff] }
 0x3dd   : > { %23777 = vst [vmem:[#allocation315_spill] sm:$0xff] %v21127_v41  ;;  %v21134_v25 = vadd.f32 %v15705_v61, %v8063_v4  ;;  %v8062_v42 = vadd.f32 %v7543_v57, %v23782_v49  ;;  %v23790_v57 = vld [vmem:[#allocation22_spill] sm:$0xff]  ;;  %v23791_v41 = vld [vmem:[#allocation103_spill] sm:$0xff] }
 0x3de   : > { %v15514_v20 = vpop.f32.mrf.mxu1  ;;  %v15708_v34 = vpop.f32.mrf.mxu0  ;;  %15853 = vmatmul.mubr.msk.f32.gmra.mxu1 %vm395_vm1, %v23783_v6  ;;  %16047 = vmatmul.mubr.msk.f32.gmra.mxu0 %vm395_vm1, %v23784_v54 }
 0x3df   : > { %23781 = vst [vmem:[#allocation318_spill] sm:$0xff] %v21134_v25  ;;  %v21141_v26 = vadd.f32 %v8649_v43, %v8062_v42  ;;  %v8065_v3 = vadd.f32 %v15514_v20, %v23786_v53  ;;  %15855 = vmatprep.mubr.msk.f32.mxu1 %vm395_vm1, %v23787_v48  ;;  %16049 = vmatprep.mubr.msk.f32.mxu0 %vm395_vm1, %v23788_v27  ;;  %v23792_v43 = vld [vmem:[#allocation104_spill] sm:$0xff]  ;;  %v23794_v20 = vld [vmem:[#allocation23_spill] sm:$0xff]  ;;  %v23795_v53 = vld [vmem:[#allocation106_spill] sm:$0xff] }
 0x3e0   : > { %v7553_v61 = vpop.f32.mrf.mxu1  ;;  %v8659_v4 = vpop.f32.mrf.mxu0  ;;  %v23796_v48 = vld [vmem:[#allocation107_spill] sm:$0xff] }
 0x3e1   : > { %23785 = vst [vmem:[#allocation322_spill] sm:$0xff] %v21141_v26  ;;  %v21148_v40 = vadd.f32 %v15708_v34, %v8065_v3  ;;  %v8064_v49 = vadd.f32 %v7553_v61, %v23790_v57  ;;  %v23798_v61 = vld [vmem:[#allocation25_spill] sm:$0xff] }
 0x3e2   : > { %v15517_v6 = vpop.f32.mrf.mxu1  ;;  %v15711_v25 = vpop.f32.mrf.mxu0  ;;  %15856 = vmatmul.mubr.msk.f32.gmra.mxu1 %vm395_vm1, %v23791_v41  ;;  %16050 = vmatmul.mubr.msk.f32.gmra.mxu0 %vm395_vm1, %v23792_v43  ;;  %v23799_v26 = vld [vmem:[#allocation109_spill] sm:$0xff] }
 0x3e3   : > { %23789 = vst [vmem:[#allocation324_spill] sm:$0xff] %v21148_v40  ;;  %v21155_v42 = vadd.f32 %v8659_v4, %v8064_v49  ;;  %v8067_v54 = vadd.f32 %v15517_v6, %v23794_v20  ;;  %15858 = vmatprep.mubr.msk.f32.mxu1 %vm395_vm1, %v23795_v53  ;;  %16052 = vmatprep.mubr.msk.f32.mxu0 %vm395_vm1, %v23796_v48  ;;  %v23800_v4 = vld [vmem:[#allocation110_spill] sm:$0xff]  ;;  %v23802_v6 = vld [vmem:[#allocation27_spill] sm:$0xff]  ;;  %v23804_v53 = vld [vmem:[#allocation112_spill] sm:$0xff] }
 0x3e4   : > { %v7563_v34 = vpop.f32.mrf.mxu1  ;;  %v8669_v3 = vpop.f32.mrf.mxu0  ;;  %v23803_v20 = vld [vmem:[#allocation111_spill] sm:$0xff] }
 0x3e5   : > { %23793 = vst [vmem:[#allocation327_spill] sm:$0xff] %v21155_v42  ;;  %v21162_v27 = vadd.f32 %v15711_v25, %v8067_v54  ;;  %v8066_v57 = vadd.f32 %v7563_v34, %v23798_v61  ;;  %v23806_v34 = vld [vmem:[#allocation29_spill] sm:$0xff]  ;;  %v23807_v42 = vld [vmem:[#allocation6_spill] sm:$0xff] }
 0x3e6   : > { %v15520_v41 = vpop.f32.mrf.mxu1  ;;  %v15714_v40 = vpop.f32.mrf.mxu0  ;;  %15859 = vmatmul.mubr.msk.f32.gmra.mxu1 %vm395_vm1, %v23799_v26  ;;  %16053 = vmatmul.mubr.msk.f32.gmra.mxu0 %vm395_vm1, %v23800_v4 }
 0x3e7   : > { %23797 = vst [vmem:[#allocation330_spill] sm:$0xff] %v21162_v27  ;;  %v21169_v49 = vadd.f32 %v8669_v3, %v8066_v57  ;;  %v8069_v43 = vadd.f32 %v15520_v41, %v23802_v6  ;;  %15861 = vmatprep.mubr.msk.f32.mxu1 %vm395_vm1, %v23803_v20  ;;  %16055 = vmatprep.mubr.msk.f32.mxu0 %vm395_vm1, %v23804_v53  ;;  %v23808_v3 = vld [vmem:[#allocation115_spill] sm:$0xff]  ;;  %v23811_v6 = vld [vmem:[#allocation116_spill] sm:$0xff]  ;;  %v23812_v20 = vld [vmem:[#allocation117_spill] sm:$0xff] }
 0x3e8   : > { %v7573_v25 = vpop.f32.mrf.mxu1  ;;  %v8679_v54 = vpop.f32.mrf.mxu0  ;;  %v23810_v41 = vld [vmem:[#allocation31_spill] sm:$0xff] }
 0x3e9   : > { %23801 = vst [vmem:[#allocation334_spill] sm:$0xff] %v21169_v49  ;;  %v21176_v48 = vadd.f32 %v15714_v40, %v8069_v43  ;;  %v8068_v61 = vadd.f32 %v7573_v25, %v23806_v34  ;;  %v23814_v25 = vld [vmem:[#allocation33_spill] sm:$0xff]  ;;  %v23815_v49 = vld [vmem:[#allocation119_spill] sm:$0xff] }
 0x3ea   : > { %v15523_v26 = vpop.f32.mrf.mxu1  ;;  %v15717_v27 = vpop.f32.mrf.mxu0  ;;  %15862 = vmatmul.mubr.msk.f32.gmra.mxu1 %vm395_vm1, %v23807_v42  ;;  %16056 = vmatmul.mubr.msk.f32.gmra.mxu0 %vm395_vm1, %v23808_v3 }
 0x3eb   : > { %23805 = vst [vmem:[#allocation336_spill] sm:$0xff] %v21176_v48  ;;  %v21183_v57 = vadd.f32 %v8679_v54, %v8068_v61  ;;  %v8071_v4 = vadd.f32 %v15523_v26, %v23810_v41  ;;  %15864 = vmatprep.mubr.msk.f32.mxu1 %vm395_vm1, %v23811_v6  ;;  %16058 = vmatprep.mubr.msk.f32.mxu0 %vm395_vm1, %v23812_v20  ;;  %v23816_v54 = vld [vmem:[#allocation120_spill] sm:$0xff]  ;;  %v23818_v26 = vld [vmem:[#allocation35_spill] sm:$0xff]  ;;  %v23819_v41 = vld [vmem:[#allocation121_spill] sm:$0xff] }
 0x3ec   : > { %v7583_v40 = vpop.f32.mrf.mxu1  ;;  %v8689_v43 = vpop.f32.mrf.mxu0  ;;  %v23820_v6 = vld [vmem:[#allocation122_spill] sm:$0xff] }
 0x3ed   : > { %23809 = vst [vmem:[#allocation339_spill] sm:$0xff] %v21183_v57  ;;  %v21190_v53 = vadd.f32 %v15717_v27, %v8071_v4  ;;  %v8070_v34 = vadd.f32 %v7583_v40, %v23814_v25  ;;  %v23822_v40 = vld [vmem:[#allocation171_spill] sm:$0xff]  ;;  %v23823_v57 = vld [vmem:[#allocation9_spill] sm:$0xff] }
 0x3ee   : > { %v15526_v42 = vpop.f32.mrf.mxu1  ;;  %v15720_v48 = vpop.f32.mrf.mxu0  ;;  %15865 = vmatmul.mubr.msk.f32.gmra.mxu1 %vm395_vm1, %v23815_v49  ;;  %16059 = vmatmul.mubr.msk.f32.gmra.mxu0 %vm395_vm1, %v23816_v54 }
 0x3ef   : > { %23813 = vst [vmem:[#allocation246_spill] sm:$0xff] %v21190_v53  ;;  %v21197_v61 = vadd.f32 %v8689_v43, %v8070_v34  ;;  %v8073_v3 = vadd.f32 %v15526_v42, %v23818_v26  ;;  %15867 = vmatprep.mubr.msk.f32.mxu1 %vm395_vm1, %v23819_v41  ;;  %16061 = vmatprep.mubr.msk.f32.mxu0 %vm395_vm1, %v23820_v6  ;;  %v23824_v43 = vld [vmem:[#allocation10_spill] sm:$0xff]  ;;  %v23826_v42 = vld [vmem:[#allocation37_spill] sm:$0xff]  ;;  %v23827_v26 = vld [vmem:[#allocation124_spill] sm:$0xff] }
 0x3f0   : > { %v7593_v27 = vpop.f32.mrf.mxu1  ;;  %v8699_v4 = vpop.f32.mrf.mxu0  ;;  %v23828_v41 = vld [vmem:[#allocation125_spill] sm:$0xff] }
 0x3f1   : > { %23817 = vst [vmem:[#allocation347_spill] sm:$0xff] %v21197_v61  ;;  %v21204_v20 = vadd.f32 %v15720_v48, %v8073_v3  ;;  %v8072_v25 = vadd.f32 %v7593_v27, %v23822_v40  ;;  %v23830_v27 = vld [vmem:[#allocation173_spill] sm:$0xff]  ;;  %v23831_v61 = vld [vmem:[#allocation127_spill] sm:$0xff] }
 0x3f2   : > { %v15529_v49 = vpop.f32.mrf.mxu1  ;;  %v15723_v53 = vpop.f32.mrf.mxu0  ;;  %15868 = vmatmul.mubr.msk.f32.gmra.mxu1 %vm395_vm1, %v23823_v57  ;;  %16062 = vmatmul.mubr.msk.f32.gmra.mxu0 %vm395_vm1, %v23824_v43 }
 0x3f3   : > { %23821 = vst [vmem:[#allocation252_spill] sm:$0xff] %v21204_v20  ;;  %v21211_v34 = vadd.f32 %v8699_v4, %v8072_v25  ;;  %v8075_v54 = vadd.f32 %v15529_v49, %v23826_v42  ;;  %15870 = vmatprep.mubr.msk.f32.mxu1 %vm395_vm1, %v23827_v26  ;;  %16064 = vmatprep.mubr.msk.f32.mxu0 %vm395_vm1, %v23828_v41  ;;  %v23832_v4 = vld [vmem:[#allocation128_spill] sm:$0xff]  ;;  %v23834_v49 = vld [vmem:[#allocation39_spill] sm:$0xff]  ;;  %v23835_v42 = vld [vmem:[#allocation129_spill] sm:$0xff] }
 0x3f4   : > { %v7603_v48 = vpop.f32.mrf.mxu1  ;;  %v8709_v3 = vpop.f32.mrf.mxu0  ;;  %v23836_v26 = vld [vmem:[#allocation130_spill] sm:$0xff] }
 0x3f5   : > { %23825 = vst [vmem:[#allocation254_spill] sm:$0xff] %v21211_v34  ;;  %v21218_v6 = vadd.f32 %v15723_v53, %v8075_v54  ;;  %v8074_v40 = vadd.f32 %v7603_v48, %v23830_v27  ;;  %v23838_v48 = vld [vmem:[#allocation177_spill] sm:$0xff] }
 0x3f6   : > { %v15532_v57 = vpop.f32.mrf.mxu1  ;;  %v15726_v20 = vpop.f32.mrf.mxu0  ;;  %15871 = vmatmul.mubr.msk.f32.gmra.mxu1 %vm395_vm1, %v23831_v61  ;;  %16065 = vmatmul.mubr.msk.f32.gmra.mxu0 %vm395_vm1, %v23832_v4  ;;  %v23839_v34 = vld [vmem:[#allocation13_spill] sm:$0xff] }
 0x3f7   : > { %23829 = vst [vmem:[#allocation258_spill] sm:$0xff] %v21218_v6  ;;  %v21225_v25 = vadd.f32 %v8709_v3, %v8074_v40  ;;  %v8077_v43 = vadd.f32 %v15532_v57, %v23834_v49  ;;  %15873 = vmatprep.mubr.msk.f32.mxu1 %vm395_vm1, %v23835_v42  ;;  %16067 = vmatprep.mubr.msk.f32.mxu0 %vm395_vm1, %v23836_v26  ;;  %v23840_v3 = vld [vmem:[#allocation14_spill] sm:$0xff]  ;;  %v23842_v57 = vld [vmem:[#allocation181_spill] sm:$0xff]  ;;  %v23843_v49 = vld [vmem:[#allocation132_spill] sm:$0xff] }
 0x3f8   : > { %v7613_v53 = vpop.f32.mrf.mxu1  ;;  %v8719_v54 = vpop.f32.mrf.mxu0  ;;  %v23844_v42 = vld [vmem:[#allocation133_spill] sm:$0xff] }
 0x3f9   : > { %23833 = vst [vmem:[#allocation262_spill] sm:$0xff] %v21225_v25  ;;  %v21232_v41 = vadd.f32 %v15726_v20, %v8077_v43  ;;  %v8076_v27 = vadd.f32 %v7613_v53, %v23838_v48  ;;  %v23846_v53 = vld [vmem:[#allocation187_spill] sm:$0xff] }
 0x3fa   : > { %v15535_v61 = vpop.f32.mrf.mxu1  ;;  %v15729_v6 = vpop.f32.mrf.mxu0  ;;  %15874 = vmatmul.mubr.msk.f32.gmra.mxu1 %vm395_vm1, %v23839_v34  ;;  %16068 = vmatmul.mubr.msk.f32.gmra.mxu0 %vm395_vm1, %v23840_v3  ;;  %v23847_v25 = vld [vmem:[#allocation135_spill] sm:$0xff] }
 0x3fb   : > { %23837 = vst [vmem:[#allocation361_spill] sm:$0xff] %v21232_v41  ;;  %v21239_v40 = vadd.f32 %v8719_v54, %v8076_v27  ;;  %v8079_v4 = vadd.f32 %v15535_v61, %v23842_v57  ;;  %15876 = vmatprep.mubr.msk.f32.mxu1 %vm395_vm1, %v23843_v49  ;;  %16070 = vmatprep.mubr.msk.f32.mxu0 %vm395_vm1, %v23844_v42  ;;  %v23848_v54 = vld [vmem:[#allocation136_spill] sm:$0xff]  ;;  %v23850_v61 = vld [vmem:[#allocation189_spill] sm:$0xff]  ;;  %v23852_v49 = vld [vmem:[#allocation138_spill] sm:$0xff] }
 0x3fc   : > { %v7623_v20 = vpop.f32.mrf.mxu1  ;;  %v8729_v43 = vpop.f32.mrf.mxu0  ;;  %v23851_v57 = vld [vmem:[#allocation137_spill] sm:$0xff] }
 0x3fd   : > { %23841 = vst [vmem:[#allocation24_spill] sm:$0xff] %v21239_v40  ;;  %v21246_v26 = vadd.f32 %v15729_v6, %v8079_v4  ;;  %v8078_v48 = vadd.f32 %v7623_v20, %v23846_v53  ;;  %v23854_v20 = vld [vmem:[#allocation193_spill] sm:$0xff] }
 0x3fe   : > { %v15538_v34 = vpop.f32.mrf.mxu1  ;;  %v15732_v41 = vpop.f32.mrf.mxu0  ;;  %15877 = vmatmul.mubr.msk.f32.gmra.mxu1 %vm395_vm1, %v23847_v25  ;;  %16071 = vmatmul.mubr.msk.f32.gmra.mxu0 %vm395_vm1, %v23848_v54  ;;  %v23855_v40 = vld [vmem:[#allocation17_spill] sm:$0xff] }
 0x3ff   : > { %23845 = vst [vmem:[#allocation26_spill] sm:$0xff] %v21246_v26  ;;  %v21253_v27 = vadd.f32 %v8729_v43, %v8078_v48  ;;  %v8081_v3 = vadd.f32 %v15538_v34, %v23850_v61  ;;  %15879 = vmatprep.mubr.msk.f32.mxu1 %vm395_vm1, %v23851_v57  ;;  %16073 = vmatprep.mubr.msk.f32.mxu0 %vm395_vm1, %v23852_v49  ;;  %v23856_v43 = vld [vmem:[#allocation18_spill] sm:$0xff]  ;;  %v23858_v34 = vld [vmem:[#allocation197_spill] sm:$0xff]  ;;  %v23859_v61 = vld [vmem:[#allocation140_spill] sm:$0xff] }
 0x400   : > { %v7633_v6 = vpop.f32.mrf.mxu1  ;;  %v8739_v4 = vpop.f32.mrf.mxu0  ;;  %v23860_v57 = vld [vmem:[#allocation141_spill] sm:$0xff] }
 0x401   : > { %23849 = vst [vmem:[#allocation28_spill] sm:$0xff] %v21253_v27  ;;  %v21260_v42 = vadd.f32 %v15732_v41, %v8081_v3  ;;  %v8080_v53 = vadd.f32 %v7633_v6, %v23854_v20  ;;  %v23862_v6 = vld [vmem:[#allocation203_spill] sm:$0xff] }
 0x402   : > { %v15541_v25 = vpop.f32.mrf.mxu1  ;;  %v15735_v26 = vpop.f32.mrf.mxu0  ;;  %15880 = vmatmul.mubr.msk.f32.gmra.mxu1 %vm395_vm1, %v23855_v40  ;;  %16074 = vmatmul.mubr.msk.f32.gmra.mxu0 %vm395_vm1, %v23856_v43  ;;  %v23863_v27 = vld [vmem:[#allocation143_spill] sm:$0xff] }
 0x403   : > { %23853 = vst [vmem:[#allocation30_spill] sm:$0xff] %v21260_v42  ;;  %v21267_v48 = vadd.f32 %v8739_v4, %v8080_v53  ;;  %v8083_v54 = vadd.f32 %v15541_v25, %v23858_v34  ;;  %15882 = vmatprep.mubr.msk.f32.mxu1 %vm395_vm1, %v23859_v61  ;;  %16076 = vmatprep.mubr.msk.f32.mxu0 %vm395_vm1, %v23860_v57  ;;  %v23864_v4 = vld [vmem:[#allocation144_spill] sm:$0xff]  ;;  %v23866_v25 = vld [vmem:[#allocation205_spill] sm:$0xff]  ;;  %v23868_v61 = vld [vmem:[#allocation146_spill] sm:$0xff] }
 0x404   : > { %v7643_v41 = vpop.f32.mrf.mxu1  ;;  %v8749_v3 = vpop.f32.mrf.mxu0  ;;  %v23867_v34 = vld [vmem:[#allocation145_spill] sm:$0xff] }
 0x405   : > { %23857 = vst [vmem:[#allocation32_spill] sm:$0xff] %v21267_v48  ;;  %v21274_v49 = vadd.f32 %v15735_v26, %v8083_v54  ;;  %v8082_v20 = vadd.f32 %v7643_v41, %v23862_v6  ;;  %v23870_v41 = vld [vmem:[#allocation209_spill] sm:$0xff] }
 0x406   : > { %v15544_v40 = vpop.f32.mrf.mxu1  ;;  %v15738_v42 = vpop.f32.mrf.mxu0  ;;  %15883 = vmatmul.mubr.msk.f32.gmra.mxu1 %vm395_vm1, %v23863_v27  ;;  %16077 = vmatmul.mubr.msk.f32.gmra.mxu0 %vm395_vm1, %v23864_v4  ;;  %v23871_v48 = vld [vmem:[#allocation149_spill] sm:$0xff] }
 0x407   : > { %23861 = vst [vmem:[#allocation34_spill] sm:$0xff] %v21274_v49  ;;  %v21281_v53 = vadd.f32 %v8749_v3, %v8082_v20  ;;  %v8085_v43 = vadd.f32 %v15544_v40, %v23866_v25  ;;  %15885 = vmatprep.mubr.msk.f32.mxu1 %vm395_vm1, %v23867_v34  ;;  %16079 = vmatprep.mubr.msk.f32.mxu0 %vm395_vm1, %v23868_v61  ;;  %v23872_v3 = vld [vmem:[#allocation150_spill] sm:$0xff]  ;;  %v23874_v40 = vld [vmem:[#allocation213_spill] sm:$0xff]  ;;  %v23875_v25 = vld [vmem:[#allocation152_spill] sm:$0xff] }
 0x408   : > { %v7653_v26 = vpop.f32.mrf.mxu1  ;;  %v8759_v54 = vpop.f32.mrf.mxu0  ;;  %v23876_v34 = vld [vmem:[#allocation153_spill] sm:$0xff] }
 0x409   : > { %23865 = vst [vmem:[#allocation36_spill] sm:$0xff] %v21281_v53  ;;  %v21288_v57 = vadd.f32 %v15738_v42, %v8085_v43  ;;  %v8084_v6 = vadd.f32 %v7653_v26, %v23870_v41  ;;  %v23878_v26 = vld [vmem:[#allocation219_spill] sm:$0xff] }
 0x40a   : > { %v15547_v27 = vpop.f32.mrf.mxu1  ;;  %v15741_v49 = vpop.f32.mrf.mxu0  ;;  %15886 = vmatmul.mubr.msk.f32.gmra.mxu1 %vm395_vm1, %v23871_v48  ;;  %16080 = vmatmul.mubr.msk.f32.gmra.mxu0 %vm395_vm1, %v23872_v3  ;;  %v23879_v53 = vld [vmem:[#allocation155_spill] sm:$0xff] }
 0x40b   : > { %23869 = vst [vmem:[#allocation38_spill] sm:$0xff] %v21288_v57  ;;  %v21295_v20 = vadd.f32 %v8759_v54, %v8084_v6  ;;  %v8087_v4 = vadd.f32 %v15547_v27, %v23874_v40  ;;  %15888 = vmatprep.mubr.msk.f32.mxu1 %vm395_vm1, %v23875_v25  ;;  %16082 = vmatprep.mubr.msk.f32.mxu0 %vm395_vm1, %v23876_v34  ;;  %v23880_v54 = vld [vmem:[#allocation156_spill] sm:$0xff]  ;;  %v23882_v27 = vld [vmem:[#allocation221_spill] sm:$0xff]  ;;  %v23884_v25 = vld [vmem:[#allocation158_spill] sm:$0xff] }
 0x40c   : > { %v7663_v42 = vpop.f32.mrf.mxu1  ;;  %v8769_v43 = vpop.f32.mrf.mxu0  ;;  %v23883_v40 = vld [vmem:[#allocation157_spill] sm:$0xff] }
 0x40d   : > { %23873 = vst [vmem:[#allocation40_spill] sm:$0xff] %v21295_v20  ;;  %v21302_v61 = vadd.f32 %v15741_v49, %v8087_v4  ;;  %v8086_v41 = vadd.f32 %v7663_v42, %v23878_v26  ;;  %v23886_v42 = vld [vmem:[#allocation225_spill] sm:$0xff] }
 0x40e   : > { %v15550_v48 = vpop.f32.mrf.mxu1  ;;  %v15744_v57 = vpop.f32.mrf.mxu0  ;;  %15889 = vmatmul.mubr.msk.f32.gmra.mxu1 %vm395_vm1, %v23879_v53  ;;  %16083 = vmatmul.mubr.msk.f32.gmra.mxu0 %vm395_vm1, %v23880_v54  ;;  %v23887_v20 = vld [vmem:[#allocation161_spill] sm:$0xff] }
 0x40f   : > { %23877 = vst [vmem:[#allocation41_spill] sm:$0xff] %v21302_v61  ;;  %v21309_v6 = vadd.f32 %v8769_v43, %v8086_v41  ;;  %v8089_v3 = vadd.f32 %v15550_v48, %v23882_v27  ;;  %15891 = vmatprep.mubr.msk.f32.mxu1 %vm395_vm1, %v23883_v40  ;;  %16085 = vmatprep.mubr.msk.f32.mxu0 %vm395_vm1, %v23884_v25  ;;  %v23888_v43 = vld [vmem:[#allocation162_spill] sm:$0xff]  ;;  %v23890_v48 = vld [vmem:[#allocation229_spill] sm:$0xff]  ;;  %v23891_v27 = vld [vmem:[#allocation164_spill] sm:$0xff] }
 0x410   : > { %v7673_v49 = vpop.f32.mrf.mxu1  ;;  %v8779_v4 = vpop.f32.mrf.mxu0  ;;  %v23892_v40 = vld [vmem:[#allocation165_spill] sm:$0xff] }
 0x411   : > { %23881 = vst [vmem:[#allocation284_spill] sm:$0xff] %v21309_v6  ;;  %v21316_v34 = vadd.f32 %v15744_v57, %v8089_v3  ;;  %v8088_v26 = vadd.f32 %v7673_v49, %v23886_v42  ;;  %v23894_v49 = vld [vmem:[#allocation235_spill] sm:$0xff] }
 0x412   : > { %v15553_v53 = vpop.f32.mrf.mxu1  ;;  %v15747_v61 = vpop.f32.mrf.mxu0  ;;  %15892 = vmatmul.mubr.msk.f32.gmra.mxu1 %vm395_vm1, %v23887_v20  ;;  %16086 = vmatmul.mubr.msk.f32.gmra.mxu0 %vm395_vm1, %v23888_v43  ;;  %v23895_v6 = vld [vmem:[#allocation167_spill] sm:$0xff] }
 0x413   : > { %23885 = vst [vmem:[#allocation42_spill] sm:$0xff] %v21316_v34  ;;  %v21323_v41 = vadd.f32 %v8779_v4, %v8088_v26  ;;  %v8091_v54 = vadd.f32 %v15553_v53, %v23890_v48  ;;  %15894 = vmatprep.mubr.msk.f32.mxu1 %vm395_vm1, %v23891_v27  ;;  %16088 = vmatprep.mubr.msk.f32.mxu0 %vm395_vm1, %v23892_v40  ;;  %v23896_v4 = vld [vmem:[#allocation168_spill] sm:$0xff]  ;;  %v23898_v53 = vld [vmem:[#allocation237_spill] sm:$0xff]  ;;  %v23900_v27 = vld [vmem:[#allocation170_spill] sm:$0xff] }
 0x414   : > { %v7683_v57 = vpop.f32.mrf.mxu1  ;;  %v8789_v3 = vpop.f32.mrf.mxu0  ;;  %v23899_v48 = vld [vmem:[#allocation169_spill] sm:$0xff] }
 0x415   : > { %23889 = vst [vmem:[#allocation43_spill] sm:$0xff] %v21323_v41  ;;  %v21330_v25 = vadd.f32 %v15747_v61, %v8091_v54  ;;  %v8090_v42 = vadd.f32 %v7683_v57, %v23894_v49  ;;  %v23902_v57 = vld [vmem:[#allocation241_spill] sm:$0xff]  ;;  %v23903_v41 = vld [vmem:[#allocation175_spill] sm:$0xff] }
 0x416   : > { %v15556_v20 = vpop.f32.mrf.mxu1  ;;  %v15750_v34 = vpop.f32.mrf.mxu0  ;;  %15895 = vmatmul.mubr.msk.f32.gmra.mxu1 %vm395_vm1, %v23895_v6  ;;  %16089 = vmatmul.mubr.msk.f32.gmra.mxu0 %vm395_vm1, %v23896_v4 }
 0x417   : > { %23893 = vst [vmem:[#allocation289_spill] sm:$0xff] %v21330_v25  ;;  %v21337_v26 = vadd.f32 %v8789_v3, %v8090_v42  ;;  %v8093_v43 = vadd.f32 %v15556_v20, %v23898_v53  ;;  %15897 = vmatprep.mubr.msk.f32.mxu1 %vm395_vm1, %v23899_v48  ;;  %16091 = vmatprep.mubr.msk.f32.mxu0 %vm395_vm1, %v23900_v27  ;;  %v23904_v3 = vld [vmem:[#allocation176_spill] sm:$0xff]  ;;  %v23906_v20 = vld [vmem:[#allocation245_spill] sm:$0xff]  ;;  %v23907_v53 = vld [vmem:[#allocation179_spill] sm:$0xff] }
 0x418   : > { %v7693_v61 = vpop.f32.mrf.mxu1  ;;  %v8799_v54 = vpop.f32.mrf.mxu0  ;;  %v23908_v48 = vld [vmem:[#allocation180_spill] sm:$0xff] }
 0x419   : > { %23897 = vst [vmem:[#allocation44_spill] sm:$0xff] %v21337_v26  ;;  %v21344_v40 = vadd.f32 %v15750_v34, %v8093_v43  ;;  %v8092_v49 = vadd.f32 %v7693_v61, %v23902_v57  ;;  %v23910_v61 = vld [vmem:[#allocation251_spill] sm:$0xff] }
 0x41a   : > { %v15559_v6 = vpop.f32.mrf.mxu1  ;;  %v15753_v25 = vpop.f32.mrf.mxu0  ;;  %15898 = vmatmul.mubr.msk.f32.gmra.mxu1 %vm395_vm1, %v23903_v41  ;;  %16092 = vmatmul.mubr.msk.f32.gmra.mxu0 %vm395_vm1, %v23904_v3  ;;  %v23911_v26 = vld [vmem:[#allocation183_spill] sm:$0xff] }
 0x41b   : > { %23901 = vst [vmem:[#allocation45_spill] sm:$0xff] %v21344_v40  ;;  %v21351_v42 = vadd.f32 %v8799_v54, %v8092_v49  ;;  %v8095_v4 = vadd.f32 %v15559_v6, %v23906_v20  ;;  %15900 = vmatprep.mubr.msk.f32.mxu1 %vm395_vm1, %v23907_v53  ;;  %16094 = vmatprep.mubr.msk.f32.mxu0 %vm395_vm1, %v23908_v48  ;;  %v23912_v54 = vld [vmem:[#allocation184_spill] sm:$0xff]  ;;  %v23914_v6 = vld [vmem:[#allocation253_spill] sm:$0xff]  ;;  %v23916_v53 = vld [vmem:[#allocation186_spill] sm:$0xff] }
 0x41c   : > { %v7703_v34 = vpop.f32.mrf.mxu1  ;;  %v8809_v43 = vpop.f32.mrf.mxu0  ;;  %v23915_v20 = vld [vmem:[#allocation185_spill] sm:$0xff] }
 0x41d   : > { %23905 = vst [vmem:[#allocation293_spill] sm:$0xff] %v21351_v42  ;;  %v21358_v27 = vadd.f32 %v15753_v25, %v8095_v4  ;;  %v8094_v57 = vadd.f32 %v7703_v34, %v23910_v61  ;;  %v23918_v34 = vld [vmem:[#allocation257_spill] sm:$0xff]  ;;  %v23919_v42 = vld [vmem:[#allocation191_spill] sm:$0xff] }
 0x41e   : > { %v15562_v41 = vpop.f32.mrf.mxu1  ;;  %v15756_v40 = vpop.f32.mrf.mxu0  ;;  %15901 = vmatmul.mubr.msk.f32.gmra.mxu1 %vm395_vm1, %v23911_v26  ;;  %16095 = vmatmul.mubr.msk.f32.gmra.mxu0 %vm395_vm1, %v23912_v54 }
 0x41f   : > { %23909 = vst [vmem:[#allocation46_spill] sm:$0xff] %v21358_v27  ;;  %v21365_v49 = vadd.f32 %v8809_v43, %v8094_v57  ;;  %v8097_v3 = vadd.f32 %v15562_v41, %v23914_v6  ;;  %15903 = vmatprep.mubr.msk.f32.mxu1 %vm395_vm1, %v23915_v20  ;;  %16097 = vmatprep.mubr.msk.f32.mxu0 %vm395_vm1, %v23916_v53  ;;  %v23920_v43 = vld [vmem:[#allocation192_spill] sm:$0xff]  ;;  %v23922_v41 = vld [vmem:[#allocation261_spill] sm:$0xff]  ;;  %v23923_v6 = vld [vmem:[#allocation195_spill] sm:$0xff] }
 0x420   : > { %v7713_v25 = vpop.f32.mrf.mxu1  ;;  %v8819_v4 = vpop.f32.mrf.mxu0  ;;  %v23924_v20 = vld [vmem:[#allocation196_spill] sm:$0xff] }
 0x421   : > { %23913 = vst [vmem:[#allocation47_spill] sm:$0xff] %v21365_v49  ;;  %v21372_v48 = vadd.f32 %v15756_v40, %v8097_v3  ;;  %v8096_v61 = vadd.f32 %v7713_v25, %v23918_v34  ;;  %v23926_v25 = vld [vmem:[#allocation267_spill] sm:$0xff] }
 0x422   : > { %v15565_v26 = vpop.f32.mrf.mxu1  ;;  %v15759_v27 = vpop.f32.mrf.mxu0  ;;  %15904 = vmatmul.mubr.msk.f32.gmra.mxu1 %vm395_vm1, %v23919_v42  ;;  %16098 = vmatmul.mubr.msk.f32.gmra.mxu0 %vm395_vm1, %v23920_v43  ;;  %v23927_v49 = vld [vmem:[#allocation199_spill] sm:$0xff] }
 0x423   : > { %23917 = vst [vmem:[#allocation295_spill] sm:$0xff] %v21372_v48  ;;  %v21379_v57 = vadd.f32 %v8819_v4, %v8096_v61  ;;  %v8099_v54 = vadd.f32 %v15565_v26, %v23922_v41  ;;  %15906 = vmatprep.mubr.msk.f32.mxu1 %vm395_vm1, %v23923_v6  ;;  %16100 = vmatprep.mubr.msk.f32.mxu0 %vm395_vm1, %v23924_v20  ;;  %v23928_v4 = vld [vmem:[#allocation200_spill] sm:$0xff]  ;;  %v23930_v26 = vld [vmem:[#allocation269_spill] sm:$0xff]  ;;  %v23932_v6 = vld [vmem:[#allocation202_spill] sm:$0xff] }
 0x424   : > { %v7723_v40 = vpop.f32.mrf.mxu1  ;;  %v8829_v3 = vpop.f32.mrf.mxu0  ;;  %v23931_v41 = vld [vmem:[#allocation201_spill] sm:$0xff] }
 0x425   : > { %23921 = vst [vmem:[#allocation48_spill] sm:$0xff] %v21379_v57  ;;  %v21386_v53 = vadd.f32 %v15759_v27, %v8099_v54  ;;  %v8098_v34 = vadd.f32 %v7723_v40, %v23926_v25  ;;  %v23934_v40 = vld [vmem:[#allocation273_spill] sm:$0xff]  ;;  %v23935_v57 = vld [vmem:[#allocation207_spill] sm:$0xff] }
 0x426   : > { %v15568_v42 = vpop.f32.mrf.mxu1  ;;  %v15762_v48 = vpop.f32.mrf.mxu0  ;;  %15907 = vmatmul.mubr.msk.f32.gmra.mxu1 %vm395_vm1, %v23927_v49  ;;  %16101 = vmatmul.mubr.msk.f32.gmra.mxu0 %vm395_vm1, %v23928_v4 }
 0x427   : > { %23925 = vst [vmem:[#allocation49_spill] sm:$0xff] %v21386_v53  ;;  %v21393_v61 = vadd.f32 %v8829_v3, %v8098_v34  ;;  %v8101_v43 = vadd.f32 %v15568_v42, %v23930_v26  ;;  %15909 = vmatprep.mubr.msk.f32.mxu1 %vm395_vm1, %v23931_v41  ;;  %16103 = vmatprep.mubr.msk.f32.mxu0 %vm395_vm1, %v23932_v6  ;;  %v23936_v3 = vld [vmem:[#allocation208_spill] sm:$0xff]  ;;  %v23938_v42 = vld [vmem:[#allocation277_spill] sm:$0xff]  ;;  %v23939_v26 = vld [vmem:[#allocation211_spill] sm:$0xff] }
 0x428   : > { %v7733_v27 = vpop.f32.mrf.mxu1  ;;  %v8839_v54 = vpop.f32.mrf.mxu0  ;;  %v23940_v41 = vld [vmem:[#allocation212_spill] sm:$0xff] }
 0x429   : > { %23929 = vst [vmem:[#allocation297_spill] sm:$0xff] %v21393_v61  ;;  %v21400_v20 = vadd.f32 %v15762_v48, %v8101_v43  ;;  %v8100_v25 = vadd.f32 %v7733_v27, %v23934_v40  ;;  %v23942_v27 = vld [vmem:[#allocation283_spill] sm:$0xff] }
 0x42a   : > { %v15571_v49 = vpop.f32.mrf.mxu1  ;;  %v15765_v53 = vpop.f32.mrf.mxu0  ;;  %15910 = vmatmul.mubr.msk.f32.gmra.mxu1 %vm395_vm1, %v23935_v57  ;;  %16104 = vmatmul.mubr.msk.f32.gmra.mxu0 %vm395_vm1, %v23936_v3  ;;  %v23943_v61 = vld [vmem:[#allocation215_spill] sm:$0xff] }
 0x42b   : > { %23933 = vst [vmem:[#allocation50_spill] sm:$0xff] %v21400_v20  ;;  %v21407_v34 = vadd.f32 %v8839_v54, %v8100_v25  ;;  %v8103_v4 = vadd.f32 %v15571_v49, %v23938_v42  ;;  %15912 = vmatprep.mubr.msk.f32.mxu1 %vm395_vm1, %v23939_v26  ;;  %16106 = vmatprep.mubr.msk.f32.mxu0 %vm395_vm1, %v23940_v41  ;;  %v23944_v54 = vld [vmem:[#allocation216_spill] sm:$0xff]  ;;  %v23946_v49 = vld [vmem:[#allocation78_spill] sm:$0xff]  ;;  %v23947_v42 = vld [vmem:[#allocation217_spill] sm:$0xff] }
 0x42c   : > { %v7743_v48 = vpop.f32.mrf.mxu1  ;;  %v8849_v43 = vpop.f32.mrf.mxu0  ;;  %v23948_v26 = vld [vmem:[#allocation218_spill] sm:$0xff] }
 0x42d   : > { %23937 = vst [vmem:[#allocation51_spill] sm:$0xff] %v21407_v34  ;;  %v21414_v6 = vadd.f32 %v15765_v53, %v8103_v4  ;;  %v8102_v40 = vadd.f32 %v7743_v48, %v23942_v27  ;;  %v23950_v48 = vld [vmem:[#allocation81_spill] sm:$0xff]  ;;  %v23951_v34 = vld [vmem:[#allocation223_spill] sm:$0xff] }
 0x42e   : > { %v15574_v57 = vpop.f32.mrf.mxu1  ;;  %v15768_v20 = vpop.f32.mrf.mxu0  ;;  %15913 = vmatmul.mubr.msk.f32.gmra.mxu1 %vm395_vm1, %v23943_v61  ;;  %16107 = vmatmul.mubr.msk.f32.gmra.mxu0 %vm395_vm1, %v23944_v54 }
 0x42f   : > { %23941 = vst [vmem:[#allocation301_spill] sm:$0xff] %v21414_v6  ;;  %v21421_v25 = vadd.f32 %v8849_v43, %v8102_v40  ;;  %v8105_v3 = vadd.f32 %v15574_v57, %v23946_v49  ;;  %15915 = vmatprep.mubr.msk.f32.mxu1 %vm395_vm1, %v23947_v42  ;;  %16109 = vmatprep.mubr.msk.f32.mxu0 %vm395_vm1, %v23948_v26  ;;  %v23952_v43 = vld [vmem:[#allocation224_spill] sm:$0xff]  ;;  %v23955_v49 = vld [vmem:[#allocation227_spill] sm:$0xff] }
 0x430   : > { %v7753_v53 = vpop.f32.mrf.mxu1  ;;  %v8859_v4 = vpop.f32.mrf.mxu0  ;;  %v23954_v57 = vld [vmem:[#allocation84_spill] sm:$0xff] }
 0x431   : > { %23945 = vst [vmem:[#allocation52_spill] sm:$0xff] %v21421_v25  ;;  %v21428_v41 = vadd.f32 %v15768_v20, %v8105_v3  ;;  %v8104_v27 = vadd.f32 %v7753_v53, %v23950_v48  ;;  %v23956_v42 = vld [vmem:[#allocation228_spill] sm:$0xff]  ;;  %v23958_v53 = vld [vmem:[#allocation89_spill] sm:$0xff]  ;;  %v23959_v25 = vld [vmem:[#allocation231_spill] sm:$0xff] }
 0x432   : > { %v15577_v61 = vpop.f32.mrf.mxu1  ;;  %v15771_v6 = vpop.f32.mrf.mxu0  ;;  %15916 = vmatmul.mubr.msk.f32.gmra.mxu1 %vm395_vm1, %v23951_v34  ;;  %16110 = vmatmul.mubr.msk.f32.gmra.mxu0 %vm395_vm1, %v23952_v43 }
 0x433   : > { %23949 = vst [vmem:[#allocation53_spill] sm:$0xff] %v21428_v41  ;;  %v21435_v40 = vadd.f32 %v8859_v4, %v8104_v27  ;;  %v8107_v54 = vadd.f32 %v15577_v61, %v23954_v57  ;;  %15918 = vmatprep.mubr.msk.f32.mxu1 %vm395_vm1, %v23955_v49  ;;  %16112 = vmatprep.mubr.msk.f32.mxu0 %vm395_vm1, %v23956_v42  ;;  %v23960_v4 = vld [vmem:[#allocation232_spill] sm:$0xff]  ;;  %v23962_v61 = vld [vmem:[#allocation90_spill] sm:$0xff]  ;;  %v23963_v57 = vld [vmem:[#allocation233_spill] sm:$0xff] }
 0x434   : > { %v7763_v20 = vpop.f32.mrf.mxu1  ;;  %v8869_v3 = vpop.f32.mrf.mxu0  ;;  %v23964_v49 = vld [vmem:[#allocation234_spill] sm:$0xff] }
 0x435   : > { %23953 = vst [vmem:[#allocation305_spill] sm:$0xff] %v21435_v40  ;;  %v21442_v26 = vadd.f32 %v15771_v6, %v8107_v54  ;;  %v8106_v48 = vadd.f32 %v7763_v20, %v23958_v53  ;;  %v23966_v20 = vld [vmem:[#allocation93_spill] sm:$0xff]  ;;  %v23967_v40 = vld [vmem:[#allocation239_spill] sm:$0xff] }
 0x436   : > { %v15580_v34 = vpop.f32.mrf.mxu1  ;;  %v15774_v41 = vpop.f32.mrf.mxu0  ;;  %15919 = vmatmul.mubr.msk.f32.gmra.mxu1 %vm395_vm1, %v23959_v25  ;;  %16113 = vmatmul.mubr.msk.f32.gmra.mxu0 %vm395_vm1, %v23960_v4 }
 0x437   : > { %23957 = vst [vmem:[#allocation54_spill] sm:$0xff] %v21442_v26  ;;  %v21449_v27 = vadd.f32 %v8869_v3, %v8106_v48  ;;  %v8109_v43 = vadd.f32 %v15580_v34, %v23962_v61  ;;  %15921 = vmatprep.mubr.msk.f32.mxu1 %vm395_vm1, %v23963_v57  ;;  %16115 = vmatprep.mubr.msk.f32.mxu0 %vm395_vm1, %v23964_v49  ;;  %v23968_v3 = vld [vmem:[#allocation240_spill] sm:$0xff]  ;;  %v23971_v61 = vld [vmem:[#allocation243_spill] sm:$0xff] }
 0x438   : > { %v7773_v6 = vpop.f32.mrf.mxu1  ;;  %v8879_v54 = vpop.f32.mrf.mxu0  ;;  %v23970_v34 = vld [vmem:[#allocation96_spill] sm:$0xff] }
 0x439   : > { %23961 = vst [vmem:[#allocation55_spill] sm:$0xff] %v21449_v27  ;;  %v21456_v42 = vadd.f32 %v15774_v41, %v8109_v43  ;;  %v8108_v53 = vadd.f32 %v7773_v6, %v23966_v20  ;;  %v23972_v57 = vld [vmem:[#allocation244_spill] sm:$0xff]  ;;  %v23974_v6 = vld [vmem:[#allocation101_spill] sm:$0xff]  ;;  %v23975_v27 = vld [vmem:[#allocation247_spill] sm:$0xff] }
 0x43a   : > { %v15583_v25 = vpop.f32.mrf.mxu1  ;;  %v15777_v26 = vpop.f32.mrf.mxu0  ;;  %15922 = vmatmul.mubr.msk.f32.gmra.mxu1 %vm395_vm1, %v23967_v40  ;;  %16116 = vmatmul.mubr.msk.f32.gmra.mxu0 %vm395_vm1, %v23968_v3 }
 0x43b   : > { %23965 = vst [vmem:[#allocation307_spill] sm:$0xff] %v21456_v42  ;;  %v21463_v48 = vadd.f32 %v8879_v54, %v8108_v53  ;;  %v8111_v4 = vadd.f32 %v15583_v25, %v23970_v34  ;;  %15924 = vmatprep.mubr.msk.f32.mxu1 %vm395_vm1, %v23971_v61  ;;  %16118 = vmatprep.mubr.msk.f32.mxu0 %vm395_vm1, %v23972_v57  ;;  %v23976_v54 = vld [vmem:[#allocation248_spill] sm:$0xff]  ;;  %v23978_v25 = vld [vmem:[#allocation102_spill] sm:$0xff]  ;;  %v23979_v34 = vld [vmem:[#allocation249_spill] sm:$0xff] }
 0x43c   : > { %v7783_v41 = vpop.f32.mrf.mxu1  ;;  %v8889_v43 = vpop.f32.mrf.mxu0  ;;  %v23980_v61 = vld [vmem:[#allocation250_spill] sm:$0xff] }
 0x43d   : > { %23969 = vst [vmem:[#allocation56_spill] sm:$0xff] %v21463_v48  ;;  %v21470_v49 = vadd.f32 %v15777_v26, %v8111_v4  ;;  %v8110_v20 = vadd.f32 %v7783_v41, %v23974_v6  ;;  %v23982_v41 = vld [vmem:[#allocation105_spill] sm:$0xff]  ;;  %v23983_v48 = vld [vmem:[#allocation255_spill] sm:$0xff] }
 0x43e   : > { %v15586_v40 = vpop.f32.mrf.mxu1  ;;  %v15780_v42 = vpop.f32.mrf.mxu0  ;;  %15925 = vmatmul.mubr.msk.f32.gmra.mxu1 %vm395_vm1, %v23975_v27  ;;  %16119 = vmatmul.mubr.msk.f32.gmra.mxu0 %vm395_vm1, %v23976_v54 }
 0x43f   : > { %23973 = vst [vmem:[#allocation57_spill] sm:$0xff] %v21470_v49  ;;  %v21477_v53 = vadd.f32 %v8889_v43, %v8110_v20  ;;  %v8113_v3 = vadd.f32 %v15586_v40, %v23978_v25  ;;  %15927 = vmatprep.mubr.msk.f32.mxu1 %vm395_vm1, %v23979_v34  ;;  %16121 = vmatprep.mubr.msk.f32.mxu0 %vm395_vm1, %v23980_v61  ;;  %v23984_v43 = vld [vmem:[#allocation256_spill] sm:$0xff]  ;;  %v23986_v25 = vld [vmem:[#allocation259_spill] sm:$0xff] }
 0x440   : > { %v7793_v26 = vpop.f32.mrf.mxu1  ;;  %v8899_v4 = vpop.f32.mrf.mxu0  ;;  %v23985_v40 = vld [vmem:[#allocation108_spill] sm:$0xff] }
 0x441   : > { %23977 = vst [vmem:[#allocation309_spill] sm:$0xff] %v21477_v53  ;;  %v21484_v57 = vadd.f32 %v15780_v42, %v8113_v3  ;;  %v8112_v6 = vadd.f32 %v7793_v26, %v23982_v41  ;;  %v23987_v34 = vld [vmem:[#allocation260_spill] sm:$0xff]  ;;  %v23989_v26 = vld [vmem:[#allocation113_spill] sm:$0xff]  ;;  %v23990_v53 = vld [vmem:[#allocation263_spill] sm:$0xff] }
 0x442   : > { %v15589_v27 = vpop.f32.mrf.mxu1  ;;  %v15783_v49 = vpop.f32.mrf.mxu0  ;;  %15928 = vmatmul.mubr.msk.f32.gmra.mxu1 %vm395_vm1, %v23983_v48  ;;  %16122 = vmatmul.mubr.msk.f32.gmra.mxu0 %vm395_vm1, %v23984_v43 }
 0x443   : > { %23981 = vst [vmem:[#allocation58_spill] sm:$0xff] %v21484_v57  ;;  %v21491_v20 = vadd.f32 %v8899_v4, %v8112_v6  ;;  %v8115_v54 = vadd.f32 %v15589_v27, %v23985_v40  ;;  %15930 = vmatprep.mubr.msk.f32.mxu1 %vm395_vm1, %v23986_v25  ;;  %16124 = vmatprep.mubr.msk.f32.mxu0 %vm395_vm1, %v23987_v34  ;;  %v23991_v4 = vld [vmem:[#allocation264_spill] sm:$0xff]  ;;  %v23992_v27 = vld [vmem:[#allocation114_spill] sm:$0xff]  ;;  %v23993_v40 = vld [vmem:[#allocation265_spill] sm:$0xff] }
 0x444   : > { %v7803_v42 = vpop.f32.mrf.mxu1  ;;  %v8909_v3 = vpop.f32.mrf.mxu0  ;;  %v23995_v34 = vld [vmem:[#allocation7_spill] sm:$0xff] }
 0x445   : > { %v21498_v61 = vadd.f32 %v15783_v49, %v8115_v54  ;;  %v8114_v41 = vadd.f32 %v7803_v42, %v23989_v26 }
 0x446   : > { %v15592_v48 = vpop.f32.mrf.mxu1  ;;  %v15786_v57 = vpop.f32.mrf.mxu0  ;;  %15931 = vmatmul.mubr.msk.f32.gmra.mxu1 %vm395_vm1, %v23990_v53  ;;  %16125 = vmatmul.mubr.msk.f32.gmra.mxu0 %vm395_vm1, %v23991_v4 }
 0x447   : > { %23988 = vst [vmem:[#allocation59_spill] sm:$0xff] %v21498_v61  ;;  %v21505_v6 = vadd.f32 %v8909_v3, %v8114_v41  ;;  %v8117_v43 = vadd.f32 %v15592_v48, %v23992_v27  ;;  %15933 = vmatprep.mubr.msk.f32.mxu1 %vm395_vm1, %v23993_v40  ;;  %16127 = vmatprep.mubr.msk.f32.mxu0 %vm395_vm1, %v23605_v17  ;;  %v23996_v61 = vld [vmem:[#allocation271_spill] sm:$0xff]  ;;  %v23997_v3 = vld [vmem:[#allocation272_spill] sm:$0xff]  ;;  %v23998_v48 = vld [vmem:[#allocation118_spill] sm:$0xff] }
 0x448   : > { %v7813_v49 = vpop.f32.mrf.mxu1  ;;  %v8919_v54 = vpop.f32.mrf.mxu0  ;;  %v23999_v27 = vld [vmem:[#allocation275_spill] sm:$0xff] }
 0x449   : > { %v21512_v25 = vadd.f32 %v15786_v57, %v8117_v43  ;;  %v8116_v42 = vadd.f32 %v7813_v49, %v23995_v34  ;;  %v24000_v40 = vld [vmem:[#allocation123_spill] sm:$0xff] }
 0x44a   : > { %v15595_v53 = vpop.f32.mrf.mxu1  ;;  %v15789_v26 = vpop.f32.mrf.mxu0  ;;  %15934 = vmatmul.mubr.msk.f32.gmra.mxu1 %vm395_vm1, %v23996_v61  ;;  %16128 = vmatmul.mubr.msk.f32.gmra.mxu0 %vm395_vm1, %v23997_v3  ;;  %v24003_v3 = vld [vmem:[#allocation281_spill] sm:$0xff] }
 0x44b   : > { %23994 = vst [vmem:[#allocation313_spill] sm:$0xff] %v21512_v25  ;;  %v21519_v41 = vadd.f32 %v8919_v54, %v8116_v42  ;;  %v8119_v4 = vadd.f32 %v15595_v53, %v23998_v48  ;;  %15936 = vmatprep.mubr.msk.f32.mxu1 %vm395_vm1, %v23999_v27  ;;  %16130 = vmatprep.mubr.msk.f32.mxu0 %vm395_vm1, %v23611_v13  ;;  %v24001_v25 = vld [vmem:[#allocation279_spill] sm:$0xff]  ;;  %v24002_v42 = vld [vmem:[#allocation8_spill] sm:$0xff] }
 0x44c   : > { %v7823_v17 = vpop.f32.mrf.mxu1  ;;  %v8929_v57 = vpop.f32.mrf.mxu0 }
 0x44d   : > { %v21526_v43 = vadd.f32 %v15789_v26, %v8119_v4  ;;  %v8118_v49 = vadd.f32 %v7823_v17, %v24000_v40  ;;  %v24004_v4 = vld [vmem:[#allocation11_spill] sm:$0xff]  ;;  %v24005_v40 = vld [vmem:[#allocation285_spill] sm:$0xff] }
 0x44e   : > { %v15598_v61 = vpop.f32.mrf.mxu1  ;;  %v15792_v34 = vpop.f32.mrf.mxu0  ;;  %15937 = vmatmul.mubr.msk.f32.gmra.mxu1 %vm395_vm1, %v24001_v25  ;;  %16131 = vmatmul.mubr.msk.f32.gmra.mxu0 %vm395_vm1, %v23613_v52 }
 0x44f   : > { %v21533_v54 = vadd.f32 %v8929_v57, %v8118_v49  ;;  %v8121_v53 = vadd.f32 %v15598_v61, %v24002_v42  ;;  %15939 = vmatprep.mubr.msk.f32.mxu1 %vm395_vm1, %v24003_v3  ;;  %16133 = vmatprep.mubr.msk.f32.mxu0 %vm395_vm1, %v23615_v24  ;;  %v24006_v57 = vld [vmem:[#allocation126_spill] sm:$0xff]  ;;  %v24007_v61 = vld [vmem:[#allocation287_spill] sm:$0xff] }
 0x450   : > { %v7833_v13 = vpop.f32.mrf.mxu1  ;;  %v8939_v26 = vpop.f32.mrf.mxu0 }
 0x451   : > { %v21540_v48 = vadd.f32 %v15792_v34, %v8121_v53  ;;  %v8120_v27 = vadd.f32 %v7833_v13, %v24004_v4  ;;  %v24008_v53 = vld [vmem:[#allocation131_spill] sm:$0xff] }
 0x452   : > { %v15601_v25 = vpop.f32.mrf.mxu1  ;;  %v15795_v17 = vpop.f32.mrf.mxu0  ;;  %15940 = vmatmul.mubr.msk.f32.gmra.mxu1 %vm395_vm1, %v24005_v40  ;;  %16134 = vmatmul.mubr.msk.f32.gmra.mxu0 %vm395_vm1, %v23617_v46  ;;  %v24009_v40 = vld [vmem:[#allocation290_spill] sm:$0xff] }
 0x453   : > { %v21547_v52 = vadd.f32 %v8939_v26, %v8120_v27  ;;  %v8123_v49 = vadd.f32 %v15601_v25, %v24006_v57  ;;  %15942 = vmatprep.mubr.msk.f32.mxu1 %vm395_vm1, %v24007_v61  ;;  %16136 = vmatprep.mubr.msk.f32.mxu0 %vm395_vm1, %v23619_v9  ;;  %v24010_v26 = vld [vmem:[#allocation12_spill] sm:$0xff] }
 0x454   : > { %v7843_v24 = vpop.f32.mrf.mxu1  ;;  %v8949_v34 = vpop.f32.mrf.mxu0  ;;  %v24011_v25 = vld [vmem:[#allocation292_spill] sm:$0xff] }
 0x455   : > { %v21554_v42 = vadd.f32 %v15795_v17, %v8123_v49  ;;  %v8122_v3 = vadd.f32 %v7843_v24, %v24008_v53  ;;  %v24012_v49 = vld [vmem:[#allocation15_spill] sm:$0xff] }
 0x456   : > { %v15604_v13 = vpop.f32.mrf.mxu1  ;;  %v15798_v4 = vpop.f32.mrf.mxu0  ;;  %15943 = vmatmul.mubr.msk.f32.gmra.mxu1 %vm395_vm1, %v24009_v40  ;;  %16137 = vmatmul.mubr.msk.f32.gmra.mxu0 %vm395_vm1, %v23621_v44  ;;  %v24013_v44 = vld [vmem:[#allocation296_spill] sm:$0xff] }
 0x457   : > { %v21561_v46 = vadd.f32 %v8949_v34, %v8122_v3  ;;  %v8125_v27 = vadd.f32 %v15604_v13, %v24010_v26  ;;  %15945 = vmatprep.mubr.msk.f32.mxu1 %vm395_vm1, %v24011_v25  ;;  %16139 = vmatprep.mubr.msk.f32.mxu0 %vm395_vm1, %v23623_v63  ;;  %v24014_v3 = vld [vmem:[#allocation134_spill] sm:$0xff]  ;;  %v24015_v63 = vld [vmem:[#allocation299_spill] sm:$0xff] }
 0x458   : > { %v7853_v9 = vpop.f32.mrf.mxu1  ;;  %v8959_v17 = vpop.f32.mrf.mxu0 }
 0x459   : > { %v21568_v57 = vadd.f32 %v15798_v4, %v8125_v27  ;;  %v8124_v61 = vadd.f32 %v7853_v9, %v24012_v49  ;;  %v24016_v27 = vld [vmem:[#allocation139_spill] sm:$0xff] }
 0x45a   : > { %v15607_v24 = vpop.f32.mrf.mxu1  ;;  %v15801_v53 = vpop.f32.mrf.mxu0  ;;  %15946 = vmatmul.mubr.msk.f32.gmra.mxu1 %vm395_vm1, %v24013_v44  ;;  %16140 = vmatmul.mubr.msk.f32.gmra.mxu0 %vm395_vm1, %v23625_v32  ;;  %v24017_v32 = vld [vmem:[#allocation302_spill] sm:$0xff] }
 0x45b   : > { %v21575_v34 = vadd.f32 %v8959_v17, %v8124_v61  ;;  %v8127_v13 = vadd.f32 %v15607_v24, %v24014_v3  ;;  %15948 = vmatprep.mubr.msk.f32.mxu1 %vm395_vm1, %v24015_v63  ;;  %16142 = vmatprep.mubr.msk.f32.mxu0 %vm395_vm1, %v23627_v5  ;;  %v24018_v61 = vld [vmem:[#allocation16_spill] sm:$0xff] }
 0x45c   : > { %v7863_v4 = vpop.f32.mrf.mxu1  ;;  %v8969_v40 = vpop.f32.mrf.mxu0  ;;  %v24019_v5 = vld [vmem:[#allocation304_spill] sm:$0xff] }
 0x45d   : > { %v21583_v26 = vadd.f32 %v15801_v53, %v8127_v13  ;;  %v8126_v25 = vadd.f32 %v7863_v4, %v24016_v27  ;;  %v21602_v53 = vld [vmem:[%s22173_s2] ss:$0 sm:$0xff]  ;;  %v24020_v13 = vld [vmem:[#allocation19_spill] sm:$0xff] }
 0x45e   : > { %v15806_v9 = vpop.f32.mrf.mxu1  ;;  %15949 = vmatmul.mubr.msk.f32.gmra.mxu1 %vm395_vm1, %v24017_v32  ;;  %v16000_v17 = vpop.f32.mrf.mxu0  ;;  %16143 = vmatmul.mubr.msk.f32.gmra.mxu0 %vm395_vm1, %v23629_v37 }
 0x45f   : > { %v21590_v49 = vadd.f32 %v8969_v40, %v8126_v25  ;;  %v10219_v24 = vadd.f32 %v15806_v9, %v24018_v61  ;;  %15951 = vmatprep.mubr.msk.f32.mxu1 %vm395_vm1, %v24019_v5  ;;  %16145 = vmatprep.mubr.msk.f32.mxu0 %vm395_vm1, %v23631_v38  ;;  %v24021_v40 = vld [vmem:[#allocation308_spill] sm:$0xff]  ;;  %v24022_v9 = vld [vmem:[#allocation142_spill] sm:$0xff]  ;;  %v24023_v61 = vld [vmem:[#allocation311_spill] sm:$0xff] }
 0x460   : > { %v9451_v44 = vpop.f32.mrf.mxu1  ;;  %v10562_v3 = vpop.f32.mrf.mxu0 }
 0x461   : > { %v11330_v37 = vadd.f32 %v16000_v17, %v10219_v24  ;;  %v10218_v63 = vadd.f32 %v9451_v44, %v24020_v13  ;;  %v24024_v44 = vld [vmem:[#allocation147_spill] sm:$0xff]  ;;  %v24025_v13 = vld [vmem:[#allocation314_spill] sm:$0xff] }
 0x462   : > { %v15809_v4 = vpop.f32.mrf.mxu1  ;;  %15952 = vmatmul.mubr.msk.f32.gmra.mxu1 %vm395_vm1, %v24021_v40  ;;  %v16003_v27 = vpop.f32.mrf.mxu0  ;;  %16146 = vmatmul.mubr.msk.f32.gmra.mxu0 %vm395_vm1, %v23633_v8  ;;  %v24026_v40 = vld [vmem:[#allocation148_spill] sm:$0xff] }
 0x463   : > { %v11721_v38 = vadd.f32 %v21602_v53, %v11330_v37  ;;  %v11329_v25 = vadd.f32 %v10562_v3, %v10218_v63  ;;  %v10221_v32 = vadd.f32 %v15809_v4, %v24022_v9  ;;  %15954 = vmatprep.mubr.msk.f32.mxu1 %vm395_vm1, %v24023_v61  ;;  %16148 = vmatprep.mubr.msk.f32.mxu0 %vm395_vm1, %v23635_v22  ;;  %v24027_v9 = vld [vmem:[#allocation316_spill] sm:$0xff]  ;;  %v24028_v61 = vld [vmem:[#allocation151_spill] sm:$0xff] }
 0x464   : > { %v9461_v17 = vpop.f32.mrf.mxu1  ;;  %v10572_v24 = vpop.f32.mrf.mxu0 }
 0x465   : > { %11849 = vst [vmem:[%s21615_s21 + $0x8] sm:$0xff] %v11721_v38  ;;  %v11720_v8 = vadd.f32 %v21602_v53, %v11329_v25  ;;  %v11332_v5 = vadd.f32 %v16003_v27, %v10221_v32  ;;  %v10220_v3 = vadd.f32 %v9461_v17, %v24024_v44 }
 0x466   : > { %v15812_v37 = vpop.f32.mrf.mxu1  ;;  %15955 = vmatmul.mubr.msk.f32.gmra.mxu1 %vm395_vm1, %v24025_v13  ;;  %v16006_v63 = vpop.f32.mrf.mxu0  ;;  %16149 = vmatmul.mubr.msk.f32.gmra.mxu0 %vm395_vm1, %v23637_v11  ;;  %v24031_v13 = vld [vmem:[#allocation323_spill] sm:$0xff] }
 0x467   : > { %11848 = vst [vmem:[%s21615_s21] sm:$0xff] %v11720_v8  ;;  %v11723_v22 = vadd.f32 %v21602_v53, %v11332_v5  ;;  %v11331_v4 = vadd.f32 %v10572_v24, %v10220_v3  ;;  %v10223_v38 = vadd.f32 %v15812_v37, %v24026_v40  ;;  %15957 = vmatprep.mubr.msk.f32.mxu1 %vm395_vm1, %v24027_v9  ;;  %v24029_v5 = vld [vmem:[#allocation320_spill] sm:$0xff]  ;;  %v24030_v3 = vld [vmem:[#allocation154_spill] sm:$0xff]  ;;  %v24032_v40 = vld [vmem:[#allocation159_spill] sm:$0xff] }
 0x468   : > { %16151 = vmatprep.mubr.msk.f32.mxu0 %vm395_vm1, %v23639_v58  ;;  %v9471_v27 = vpop.f32.mrf.mxu1  ;;  %v10582_v25 = vpop.f32.mrf.mxu0 }
 0x469   : > { %11851 = vst [vmem:[%s21615_s21 + $0x18] sm:$0xff] %v11723_v22  ;;  %v11722_v32 = vadd.f32 %v21602_v53, %v11331_v4  ;;  %v11334_v11 = vadd.f32 %v16006_v63, %v10223_v38  ;;  %v10222_v17 = vadd.f32 %v9471_v27, %v24028_v61  ;;  %v24033_v27 = vld [vmem:[#allocation326_spill] sm:$0xff] }
 0x46a   : > { %v15815_v8 = vpop.f32.mrf.mxu1  ;;  %15958 = vmatmul.mubr.msk.f32.gmra.mxu1 %vm395_vm1, %v24029_v5  ;;  %v16009_v24 = vpop.f32.mrf.mxu0  ;;  %16152 = vmatmul.mubr.msk.f32.gmra.mxu0 %vm395_vm1, %v23641_v12 }
 0x46b   : > { %11850 = vst [vmem:[%s21615_s21 + $0x10] sm:$0xff] %v11722_v32  ;;  %v11725_v58 = vadd.f32 %v21602_v53, %v11334_v11  ;;  %v11333_v44 = vadd.f32 %v10582_v25, %v10222_v17  ;;  %v10225_v37 = vadd.f32 %v15815_v8, %v24030_v3  ;;  %15960 = vmatprep.mubr.msk.f32.mxu1 %vm395_vm1, %v24031_v13  ;;  %v24034_v11 = vld [vmem:[#allocation160_spill] sm:$0xff] }
 0x46c   : > { %16154 = vmatprep.mubr.msk.f32.mxu0 %vm395_vm1, %v23643_v2  ;;  %v9481_v63 = vpop.f32.mrf.mxu1  ;;  %v10592_v22 = vpop.f32.mrf.mxu0  ;;  %v24035_v17 = vld [vmem:[#allocation328_spill] sm:$0xff] }
 0x46d   : > { %11853 = vst [vmem:[%s21615_s21 + $0x28] sm:$0xff] %v11725_v58  ;;  %v11724_v4 = vadd.f32 %v21602_v53, %v11333_v44  ;;  %v11336_v12 = vadd.f32 %v16009_v24, %v10225_v37  ;;  %v10224_v38 = vadd.f32 %v9481_v63, %v24032_v40  ;;  %v24036_v58 = vld [vmem:[#allocation163_spill] sm:$0xff]  ;;  %v24037_v37 = vld [vmem:[#allocation332_spill] sm:$0xff] }
 0x46e   : > { %v15818_v9 = vpop.f32.mrf.mxu1  ;;  %15961 = vmatmul.mubr.msk.f32.gmra.mxu1 %vm395_vm1, %v24033_v27  ;;  %v16012_v25 = vpop.f32.mrf.mxu0  ;;  %16155 = vmatmul.mubr.msk.f32.gmra.mxu0 %vm395_vm1, %v23645_v16  ;;  %v24040_v27 = vld [vmem:[#allocation172_spill] sm:$0xff] }
 0x46f   : > { %11852 = vst [vmem:[%s21615_s21 + $0x20] sm:$0xff] %v11724_v4  ;;  %v11727_v2 = vadd.f32 %v21602_v53, %v11336_v12  ;;  %v11335_v32 = vadd.f32 %v10592_v22, %v10224_v38  ;;  %v10227_v61 = vadd.f32 %v15818_v9, %v24034_v11  ;;  %15963 = vmatprep.mubr.msk.f32.mxu1 %vm395_vm1, %v24035_v17  ;;  %v24038_v22 = vld [vmem:[#allocation166_spill] sm:$0xff]  ;;  %v24039_v12 = vld [vmem:[#allocation335_spill] sm:$0xff] }
 0x470   : > { %16157 = vmatprep.mubr.msk.f32.mxu0 %vm395_vm1, %v23647_v18  ;;  %v9491_v8 = vpop.f32.mrf.mxu1  ;;  %v10602_v5 = vpop.f32.mrf.mxu0  ;;  %v24042_v17 = vld [vmem:[#allocation174_spill] sm:$0xff] }
 0x471   : > { %11855 = vst [vmem:[%s21615_s21 + $0x38] sm:$0xff] %v11727_v2  ;;  %v11726_v24 = vadd.f32 %v21602_v53, %v11335_v32  ;;  %v11338_v16 = vadd.f32 %v16012_v25, %v10227_v61  ;;  %v10226_v44 = vadd.f32 %v9491_v8, %v24036_v58  ;;  %v24041_v32 = vld [vmem:[#allocation338_spill] sm:$0xff] }
 0x472   : > { %v15821_v3 = vpop.f32.mrf.mxu1  ;;  %15964 = vmatmul.mubr.msk.f32.gmra.mxu1 %vm395_vm1, %v24037_v37  ;;  %v16015_v13 = vpop.f32.mrf.mxu0  ;;  %16158 = vmatmul.mubr.msk.f32.gmra.mxu0 %vm395_vm1, %v23649_v7 }
 0x473   : > { %11854 = vst [vmem:[%s21615_s21 + $0x30] sm:$0xff] %v11726_v24  ;;  %v11729_v18 = vadd.f32 %v21602_v53, %v11338_v16  ;;  %v11337_v63 = vadd.f32 %v10602_v5, %v10226_v44  ;;  %v10229_v4 = vadd.f32 %v15821_v3, %v24038_v22  ;;  %15966 = vmatprep.mubr.msk.f32.mxu1 %vm395_vm1, %v24039_v12  ;;  %v24043_v5 = vld [vmem:[#allocation340_spill] sm:$0xff]  ;;  %v24044_v24 = vld [vmem:[#allocation342_spill] sm:$0xff]  ;;  %v24047_v22 = vld [vmem:[#allocation345_spill] sm:$0xff] }
 0x474   : > { %16160 = vmatprep.mubr.msk.f32.mxu0 %vm395_vm1, %v23651_v15  ;;  %v9501_v40 = vpop.f32.mrf.mxu1  ;;  %v10612_v38 = vpop.f32.mrf.mxu0  ;;  %v24045_v3 = vld [vmem:[#allocation178_spill] sm:$0xff] }
 0x475   : > { %11857 = vst [vmem:[%s21615_s21 + $0x48] sm:$0xff] %v11729_v18  ;;  %v11728_v9 = vadd.f32 %v21602_v53, %v11337_v63  ;;  %v11340_v7 = vadd.f32 %v16015_v13, %v10229_v4  ;;  %v10228_v25 = vadd.f32 %v9501_v40, %v24040_v27  ;;  %v24046_v18 = vld [vmem:[#allocation344_spill] sm:$0xff]  ;;  %v24048_v40 = vld [vmem:[#allocation182_spill] sm:$0xff] }
 0x476   : > { %v15824_v2 = vpop.f32.mrf.mxu1  ;;  %15967 = vmatmul.mubr.msk.f32.gmra.mxu1 %vm395_vm1, %v24041_v32  ;;  %v16018_v11 = vpop.f32.mrf.mxu0  ;;  %16161 = vmatmul.mubr.msk.f32.gmra.mxu0 %vm395_vm1, %v23653_v47  ;;  %v24050_v32 = vld [vmem:[#allocation188_spill] sm:$0xff] }
 0x477   : > { %11856 = vst [vmem:[%s21615_s21 + $0x40] sm:$0xff] %v11728_v9  ;;  %v11731_v15 = vadd.f32 %v21602_v53, %v11340_v7  ;;  %v11339_v61 = vadd.f32 %v10612_v38, %v10228_v25  ;;  %v10231_v8 = vadd.f32 %v15824_v2, %v24042_v17  ;;  %15969 = vmatprep.mubr.msk.f32.mxu1 %vm395_vm1, %v24043_v5  ;;  %v24049_v9 = vld [vmem:[#allocation346_spill] sm:$0xff] }
 0x478   : > { %16163 = vmatprep.mubr.msk.f32.mxu0 %vm395_vm1, %v24044_v24  ;;  %v9511_v16 = vpop.f32.mrf.mxu1  ;;  %v10622_v58 = vpop.f32.mrf.mxu0  ;;  %v24053_v24 = vld [vmem:[#allocation190_spill] sm:$0xff] }
 0x479   : > { %11859 = vst [vmem:[%s21615_s21 + $0x58] sm:$0xff] %v11731_v15  ;;  %v11730_v44 = vadd.f32 %v21602_v53, %v11339_v61  ;;  %v11342_v47 = vadd.f32 %v16018_v11, %v10231_v8  ;;  %v10230_v37 = vadd.f32 %v9511_v16, %v24045_v3  ;;  %v24051_v61 = vld [vmem:[#allocation349_spill] sm:$0xff]  ;;  %v24052_v8 = vld [vmem:[#allocation350_spill] sm:$0xff] }
 0x47a   : > { %v15827_v13 = vpop.f32.mrf.mxu1  ;;  %15970 = vmatmul.mubr.msk.f32.gmra.mxu1 %vm395_vm1, %v24046_v18  ;;  %v16021_v63 = vpop.f32.mrf.mxu0  ;;  %16164 = vmatmul.mubr.msk.f32.gmra.mxu0 %vm395_vm1, %v24047_v22  ;;  %v24056_v18 = vld [vmem:[#allocation194_spill] sm:$0xff] }
 0x47b   : > { %11858 = vst [vmem:[%s21615_s21 + $0x50] sm:$0xff] %v11730_v44  ;;  %v11733_v4 = vadd.f32 %v21602_v53, %v11342_v47  ;;  %v11341_v12 = vadd.f32 %v10622_v58, %v10230_v37  ;;  %v10233_v38 = vadd.f32 %v15827_v13, %v24048_v40  ;;  %15972 = vmatprep.mubr.msk.f32.mxu1 %vm395_vm1, %v24049_v9  ;;  %v24054_v58 = vld [vmem:[#allocation351_spill] sm:$0xff]  ;;  %v24055_v44 = vld [vmem:[#allocation353_spill] sm:$0xff] }
 0x47c   : > { %16166 = vmatprep.mubr.msk.f32.mxu0 %vm395_vm1, %v23660_v28  ;;  %v9521_v7 = vpop.f32.mrf.mxu1  ;;  %v10632_v27 = vpop.f32.mrf.mxu0  ;;  %v24058_v40 = vld [vmem:[#allocation357_spill] sm:$0xff] }
 0x47d   : > { %11861 = vst [vmem:[%s21615_s21 + $0x68] sm:$0xff] %v11733_v4  ;;  %v11732_v25 = vadd.f32 %v21602_v53, %v11341_v12  ;;  %v11344_v2 = vadd.f32 %v16021_v63, %v10233_v38  ;;  %v10232_v11 = vadd.f32 %v9521_v7, %v24050_v32  ;;  %v24057_v4 = vld [vmem:[#allocation355_spill] sm:$0xff]  ;;  %v24059_v7 = vld [vmem:[#allocation198_spill] sm:$0xff] }
 0x47e   : > { %v15830_v15 = vpop.f32.mrf.mxu1  ;;  %15973 = vmatmul.mubr.msk.f32.gmra.mxu1 %vm395_vm1, %v24051_v61  ;;  %v16024_v17 = vpop.f32.mrf.mxu0  ;;  %16167 = vmatmul.mubr.msk.f32.gmra.mxu0 %vm395_vm1, %v24052_v8 }
 0x47f   : > { %11860 = vst [vmem:[%s21615_s21 + $0x60] sm:$0xff] %v11732_v25  ;;  %v11735_v28 = vadd.f32 %v21602_v53, %v11344_v2  ;;  %v11343_v5 = vadd.f32 %v10632_v27, %v10232_v11  ;;  %v10235_v16 = vadd.f32 %v15830_v15, %v24053_v24  ;;  %15975 = vmatprep.mubr.msk.f32.mxu1 %vm395_vm1, %v24054_v58  ;;  %v24060_v25 = vld [vmem:[#allocation358_spill] sm:$0xff]  ;;  %v24061_v2 = vld [vmem:[#allocation359_spill] sm:$0xff] }
 0x480   : > { %16169 = vmatprep.mubr.msk.f32.mxu0 %vm395_vm1, %v24055_v44  ;;  %v9531_v47 = vpop.f32.mrf.mxu1  ;;  %v10642_v3 = vpop.f32.mrf.mxu0  ;;  %v24064_v44 = vld [vmem:[#allocation206_spill] sm:$0xff] }
 0x481   : > { %11863 = vst [vmem:[%s21615_s21 + $0x78] sm:$0xff] %v11735_v28  ;;  %v11734_v37 = vadd.f32 %v21602_v53, %v11343_v5  ;;  %v11346_v13 = vadd.f32 %v16024_v17, %v10235_v16  ;;  %v10234_v63 = vadd.f32 %v9531_v47, %v24056_v18  ;;  %v24062_v17 = vld [vmem:[#allocation204_spill] sm:$0xff] }
 0x482   : > { %v15833_v22 = vpop.f32.mrf.mxu1  ;;  %15976 = vmatmul.mubr.msk.f32.gmra.mxu1 %vm395_vm1, %v24057_v4  ;;  %v16027_v12 = vpop.f32.mrf.mxu0  ;;  %16170 = vmatmul.mubr.msk.f32.gmra.mxu0 %vm395_vm1, %v24058_v40  ;;  %v24063_v5 = vld [vmem:[#allocation360_spill] sm:$0xff] }
 0x483   : > { %11862 = vst [vmem:[%s21615_s21 + $0x70] sm:$0xff] %v11734_v37  ;;  %v11737_v38 = vadd.f32 %v21602_v53, %v11346_v13  ;;  %v11345_v9 = vadd.f32 %v10642_v3, %v10234_v63  ;;  %v10237_v27 = vadd.f32 %v15833_v22, %v24059_v7  ;;  %15978 = vmatprep.mubr.msk.f32.mxu1 %vm395_vm1, %v24060_v25  ;;  %v24065_v3 = vld [vmem:[#allocation362_spill] sm:$0xff]  ;;  %v24066_v37 = vld [vmem:[#allocation363_spill] sm:$0xff]  ;;  %v24068_v40 = vld [vmem:[#allocation364_spill] sm:$0xff] }
 0x484   : > { %16172 = vmatprep.mubr.msk.f32.mxu0 %vm395_vm1, %v24061_v2  ;;  %v9541_v32 = vpop.f32.mrf.mxu1  ;;  %v10652_v11 = vpop.f32.mrf.mxu0  ;;  %v24067_v22 = vld [vmem:[#allocation210_spill] sm:$0xff] }
 0x485   : > { %11865 = vst [vmem:[%s21615_s21 + $0x88] sm:$0xff] %v11737_v38  ;;  %v11736_v15 = vadd.f32 %v21602_v53, %v11345_v9  ;;  %v11348_v61 = vadd.f32 %v16027_v12, %v10237_v27  ;;  %v10236_v8 = vadd.f32 %v9541_v32, %v24062_v17  ;;  %v24069_v9 = vld [vmem:[#allocation365_spill] sm:$0xff]  ;;  %v24070_v25 = vld [vmem:[#allocation214_spill] sm:$0xff]  ;;  %v24071_v32 = vld [vmem:[#allocation268_spill] sm:$0xff] }
 0x486   : > { %v15836_v28 = vpop.f32.mrf.mxu1  ;;  %15979 = vmatmul.mubr.msk.f32.gmra.mxu1 %vm395_vm1, %v24063_v5  ;;  %v16030_v24 = vpop.f32.mrf.mxu0  ;;  %16173 = vmatmul.mubr.msk.f32.gmra.mxu0 %vm395_vm1, %v23674_v35 }
 0x487   : > { %11864 = vst [vmem:[%s21615_s21 + $0x80] sm:$0xff] %v11736_v15  ;;  %v11739_v16 = vadd.f32 %v21602_v53, %v11348_v61  ;;  %v11347_v58 = vadd.f32 %v10652_v11, %v10236_v8  ;;  %v10239_v47 = vadd.f32 %v15836_v28, %v24064_v44  ;;  %15981 = vmatprep.mubr.msk.f32.mxu1 %vm395_vm1, %v24065_v3  ;;  %v16565_v11 = vld [vmem:[%s16746_s9 + $0x528] sm:$0xff]  ;;  %v16566_v28 = vld [vmem:[%s16746_s9 + $0x530] sm:$0xff]  ;;  %v16567_v3 = vld [vmem:[%s16746_s9 + $0x538] sm:$0xff] }
 0x488   : > { %16175 = vmatprep.mubr.msk.f32.mxu0 %vm395_vm1, %v24066_v37  ;;  %v9551_v13 = vpop.f32.mrf.mxu1  ;;  %v10662_v18 = vpop.f32.mrf.mxu0  ;;  %v9363_v15 = vrot.slane %v16565_v11, 1  ;;  %v10474_v61 = vrot.slane %v16565_v11, 2  ;;  %v9364_v5 = vrot.slane %v16566_v28, 1  ;;  %v24072_v44 = vld [vmem:[#allocation220_spill] sm:$0xff]  ;;  %v9366_v37 = vrot.slane %v16567_v3, 1 }
 0x489   : > { %11867 = vst [vmem:[%s21615_s21 + $0x98] sm:$0xff] %v11739_v16  ;;  %v11738_v63 = vadd.f32 %v21602_v53, %v11347_v58  ;;  %v11350_v35 = vadd.f32 %v16030_v24, %v10239_v47  ;;  %v10238_v4 = vadd.f32 %v9551_v13, %v24067_v22  ;;  %v10475_v24 = vrot.slane %v16566_v28, 2 }
 0x48a   : > { %v15839_v12 = vpop.f32.mrf.mxu1  ;;  %15982 = vmatmul.mubr.msk.f32.gmra.mxu1 %vm395_vm1, %v24068_v40  ;;  %v16033_v38 = vpop.f32.mrf.mxu0  ;;  %16176 = vmatmul.mubr.msk.f32.gmra.mxu0 %vm395_vm1, %v24069_v9  ;;  %v10477_v13 = vrot.slane %v16567_v3, 2  ;;  %v24075_v40 = vld [vmem:[#allocation274_spill] sm:$0xff] }
 0x48b   : > { %11866 = vst [vmem:[%s21615_s21 + $0x90] sm:$0xff] %v11738_v63  ;;  %v11741_v7 = vadd.f32 %v21602_v53, %v11350_v35  ;;  %v11349_v27 = vadd.f32 %v10662_v18, %v10238_v4  ;;  %v10241_v2 = vadd.f32 %v15839_v12, %v24070_v25  ;;  %15984 = vmatprep.mubr.msk.f32.mxu1 %vm395_vm1, %v24071_v32  ;;  %v24073_v18 = vld [vmem:[#allocation270_spill] sm:$0xff] }
 0x48c   : > { %16178 = vmatprep.mubr.msk.f32.mxu0 %vm395_vm1, %v20856_v23  ;;  %v9561_v17 = vpop.f32.mrf.mxu1  ;;  %v10672_v8 = vpop.f32.mrf.mxu0  ;;  %v24074_v4 = vld [vmem:[#allocation222_spill] sm:$0xff]  ;;  %v10476_v25 = vsel %vm3288_vm3, %v10474_v61, %v10475_v24  ;;  %v10478_v61 = vsel %vm3288_vm3, %v10475_v24, %v10477_v13 }
 0x48d   : > { %11869 = vst [vmem:[%s21615_s21 + $0xa8] sm:$0xff] %v11741_v7  ;;  %v11740_v16 = vadd.f32 %v21602_v53, %v11349_v27  ;;  %v11352_v58 = vadd.f32 %v16033_v38, %v10241_v2  ;;  %v10240_v47 = vadd.f32 %v9561_v17, %v24072_v44  ;;  %v393_v38 = vld [vmem:[%s16746_s9 + $0x548] sm:$0x3]  ;;  %v9365_v27 = vsel %vm1649_vm2, %v9363_v15, %v9364_v5 }
 0x48e   : > { %v15842_v23 = vpop.f32.mrf.mxu1  ;;  %15985 = vmatmul.mubr.msk.f32.gmra.mxu1 %vm395_vm1, %v24073_v18  ;;  %v16036_v63 = vpop.f32.mrf.mxu0  ;;  %16179 = vmatmul.mubr.msk.f32.gmra.mxu0 %vm395_vm1, %v20873_v55  ;;  %v16568_v55 = vld [vmem:[%s16746_s9 + $0x540] sm:$0xff]  ;;  %v9367_v15 = vsel %vm1649_vm2, %v9364_v5, %v9366_v37  ;;  %v10481_v44 = vrot.slane %v393_v38, 2 }
 0x48f   : > { %11868 = vst [vmem:[%s21615_s21 + $0xa0] sm:$0xff] %v11740_v16  ;;  %v11743_v35 = vadd.f32 %v21602_v53, %v11352_v58  ;;  %v11351_v22 = vadd.f32 %v10672_v8, %v10240_v47  ;;  %v10243_v12 = vadd.f32 %v15842_v23, %v24074_v4  ;;  %15987 = vmatprep.mubr.msk.f32.mxu1 %vm395_vm1, %v24075_v40  ;;  %v9368_v2 = vrot.slane %v16568_v55, 1  ;;  %v24076_v16 = vld [vmem:[#allocation278_spill] sm:$0xff] }
 0x490   : > { %16181 = vmatprep.mubr.msk.f32.mxu0 %vm395_vm1, %v20878_v45  ;;  %v9571_v9 = vpop.f32.mrf.mxu1  ;;  %v10682_v7 = vpop.f32.mrf.mxu0  ;;  %v10479_v32 = vrot.slane %v16568_v55, 2  ;;  %v9370_v58 = vrot.slane %v393_v38, 1 }
 0x491   : > { %11871 = vst [vmem:[%s21615_s21 + $0xb8] sm:$0xff] %v11743_v35  ;;  %v11742_v11 = vadd.f32 %v21602_v53, %v11351_v22  ;;  %v11354_v17 = vadd.f32 %v16036_v63, %v10243_v12  ;;  %v10242_v8 = vadd.f32 %v9571_v9, %v20866_v60  ;;  %v24077_v60 = vld [vmem:[#allocation226_spill] sm:$0xff] }
 0x492   : > { %v15845_v28 = vpop.f32.mrf.mxu1  ;;  %15988 = vmatmul.mubr.msk.f32.gmra.mxu1 %vm395_vm1, %v24076_v16  ;;  %v16039_v45 = vpop.f32.mrf.mxu0  ;;  %16182 = vmatmul.mubr.msk.f32.gmra.mxu0 %vm395_vm1, %v20894_v50  ;;  %v9369_v50 = vsel %vm1649_vm2, %v9366_v37, %v9368_v2  ;;  %v10480_v5 = vsel %vm3288_vm3, %v10477_v13, %v10479_v32  ;;  %v9371_v40 = vsel %vm1649_vm2, %v9368_v2, %v9370_v58 }
 0x493   : > { %11870 = vst [vmem:[%s21615_s21 + $0xb0] sm:$0xff] %v11742_v11  ;;  %v11745_v47 = vadd.f32 %v21602_v53, %v11354_v17  ;;  %v11353_v3 = vadd.f32 %v10682_v7, %v10242_v8  ;;  %v10245_v23 = vadd.f32 %v15845_v28, %v24077_v60  ;;  %15990 = vmatprep.mubr.msk.f32.mxu1 %vm395_vm1, %v9365_v27 }
 0x494   : > { %16184 = vmatprep.mubr.msk.f32.mxu0 %vm395_vm1, %v10476_v25  ;;  %v9581_v18 = vpop.f32.mrf.mxu1  ;;  %v10692_v63 = vpop.f32.mrf.mxu0  ;;  %v10482_v38 = vsel %vm3288_vm3, %v10479_v32, %v10481_v44 }
 0x495   : > { %11873 = vst [vmem:[%s21615_s21 + $0xc8] sm:$0xff] %v11745_v47  ;;  %v11744_v24 = vadd.f32 %v21602_v53, %v11353_v3  ;;  %v11356_v35 = vadd.f32 %v16039_v45, %v10245_v23  ;;  %v10244_v22 = vadd.f32 %v9581_v18, %v20887_v31 }
 0x496   : > { %v15848_v4 = vpop.f32.mrf.mxu1  ;;  %15991 = vmatmul.mubr.msk.f32.gmra.mxu1 %vm395_vm1, %v9367_v15  ;;  %v16042_v12 = vpop.f32.mrf.mxu0  ;;  %16185 = vmatmul.mubr.msk.f32.gmra.mxu0 %vm395_vm1, %v10478_v61 }
 0x497   : > { %11872 = vst [vmem:[%s21615_s21 + $0xc0] sm:$0xff] %v11744_v24  ;;  %v11747_v37 = vadd.f32 %v21602_v53, %v11356_v35  ;;  %v11355_v13 = vadd.f32 %v10692_v63, %v10244_v22  ;;  %v10247_v9 = vadd.f32 %v15848_v4, %v20897_v10  ;;  %15993 = vmatprep.mubr.msk.f32.mxu1 %vm395_vm1, %v9369_v50 }
 0x498   : > { %16187 = vmatprep.mubr.msk.f32.mxu0 %vm395_vm1, %v10480_v5  ;;  %v9591_v31 = vpop.f32.mrf.mxu1  ;;  %v10702_v7 = vpop.f32.mrf.mxu0 }
 0x499   : > { %11875 = vst [vmem:[%s21615_s21 + $0xd8] sm:$0xff] %v11747_v37  ;;  %v11746_v27 = vadd.f32 %v21602_v53, %v11355_v13  ;;  %v11358_v25 = vadd.f32 %v16042_v12, %v10247_v9  ;;  %v10246_v55 = vadd.f32 %v9591_v31, %v20903_v62 }
 0x49a   : > { %v15851_v2 = vpop.f32.mrf.mxu1  ;;  %15994 = vmatmul.mubr.msk.f32.gmra.mxu1 %vm395_vm1, %v9371_v40  ;;  %v16045_v32 = vpop.f32.mrf.mxu0  ;;  %16188 = vmatmul.mubr.msk.f32.gmra.mxu0 %vm395_vm1, %v10482_v38 }
 0x49b   : > { %11874 = vst [vmem:[%s21615_s21 + $0xd0] sm:$0xff] %v11746_v27  ;;  %v11749_v10 = vadd.f32 %v21602_v53, %v11358_v25  ;;  %v11357_v11 = vadd.f32 %v10702_v7, %v10246_v55  ;;  %v10249_v17 = vadd.f32 %v15851_v2, %v20910_v59 }
 0x49c   : > { %v9601_v8 = vpop.f32.mrf.mxu1  ;;  %v10712_v28 = vpop.f32.mrf.mxu0 }
 0x49d   : > { %11877 = vst [vmem:[%s21615_s21 + $0xe8] sm:$0xff] %v11749_v10  ;;  %v11748_v16 = vadd.f32 %v21602_v53, %v11357_v11  ;;  %v11360_v62 = vadd.f32 %v16045_v32, %v10249_v17  ;;  %v10248_v45 = vadd.f32 %v9601_v8, %v20917_v51 }
 0x49e   : > { %v15854_v15 = vpop.f32.mrf.mxu1  ;;  %v16048_v61 = vpop.f32.mrf.mxu0 }
 0x49f   : > { %11876 = vst [vmem:[%s21615_s21 + $0xe0] sm:$0xff] %v11748_v16  ;;  %v11751_v58 = vadd.f32 %v21602_v53, %v11360_v62  ;;  %v11359_v44 = vadd.f32 %v10712_v28, %v10248_v45  ;;  %v10251_v47 = vadd.f32 %v15854_v15, %v20924_v14 }
 0x4a0   : > { %v9611_v3 = vpop.f32.mrf.mxu1  ;;  %v10722_v59 = vpop.f32.mrf.mxu0 }
 0x4a1   : > { %11879 = vst [vmem:[%s21615_s21 + $0xf8] sm:$0xff] %v11751_v58  ;;  %v11750_v60 = vadd.f32 %v21602_v53, %v11359_v44  ;;  %v11362_v23 = vadd.f32 %v16048_v61, %v10251_v47  ;;  %v10250_v18 = vadd.f32 %v9611_v3, %v20931_v0 }
 0x4a2   : > { %v15857_v63 = vpop.f32.mrf.mxu1  ;;  %v16051_v51 = vpop.f32.mrf.mxu0 }
 0x4a3   : > { %11878 = vst [vmem:[%s21615_s21 + $0xf0] sm:$0xff] %v11750_v60  ;;  %v11753_v50 = vadd.f32 %v21602_v53, %v11362_v23  ;;  %v11361_v5 = vadd.f32 %v10722_v59, %v10250_v18  ;;  %v10253_v24 = vadd.f32 %v15857_v63, %v20938_v1 }
 0x4a4   : > { %v9621_v35 = vpop.f32.mrf.mxu1  ;;  %v10732_v14 = vpop.f32.mrf.mxu0 }
 0x4a5   : > { %11881 = vst [vmem:[%s21615_s21 + $0x108] sm:$0xff] %v11753_v50  ;;  %v11752_v22 = vadd.f32 %v21602_v53, %v11361_v5  ;;  %v11364_v4 = vadd.f32 %v16051_v51, %v10253_v24  ;;  %v10252_v12 = vadd.f32 %v9621_v35, %v20945_v19  ;;  %v24078_v51 = vld [vmem:[#allocation230_spill] sm:$0xff] }
 0x4a6   : > { %v15860_v40 = vpop.f32.mrf.mxu1  ;;  %v16054_v0 = vpop.f32.mrf.mxu0 }
 0x4a7   : > { %11880 = vst [vmem:[%s21615_s21 + $0x100] sm:$0xff] %v11752_v22  ;;  %v11755_v38 = vadd.f32 %v21602_v53, %v11364_v4  ;;  %v11363_v37 = vadd.f32 %v10732_v14, %v10252_v12  ;;  %v10255_v13 = vadd.f32 %v15860_v40, %v20952_v29  ;;  %v24079_v14 = vld [vmem:[#allocation236_spill] sm:$0xff] }
 0x4a8   : > { %v9631_v9 = vpop.f32.mrf.mxu1  ;;  %v10742_v1 = vpop.f32.mrf.mxu0 }
 0x4a9   : > { %11883 = vst [vmem:[%s21615_s21 + $0x118] sm:$0xff] %v11755_v38  ;;  %v11754_v31 = vadd.f32 %v21602_v53, %v11363_v37  ;;  %v11366_v7 = vadd.f32 %v16054_v0, %v10255_v13  ;;  %v10254_v27 = vadd.f32 %v9631_v9, %v20959_v36  ;;  %v24080_v0 = vld [vmem:[#allocation266_spill] sm:$0xff] }
 0x4aa   : > { %v15863_v25 = vpop.f32.mrf.mxu1  ;;  %v16057_v19 = vpop.f32.mrf.mxu0 }
 0x4ab   : > { %11882 = vst [vmem:[%s21615_s21 + $0x110] sm:$0xff] %v11754_v31  ;;  %v11757_v55 = vadd.f32 %v21602_v53, %v11366_v7  ;;  %v11365_v2 = vadd.f32 %v10742_v1, %v10254_v27  ;;  %v10257_v32 = vadd.f32 %v15863_v25, %v20966_v39  ;;  %v24081_v31 = vld [vmem:[#allocation238_spill] sm:$0xff] }
 0x4ac   : > { %v9641_v10 = vpop.f32.mrf.mxu1  ;;  %v10752_v29 = vpop.f32.mrf.mxu0 }
 0x4ad   : > { %11885 = vst [vmem:[%s21615_s21 + $0x128] sm:$0xff] %v11757_v55  ;;  %v11756_v11 = vadd.f32 %v21602_v53, %v11365_v2  ;;  %v11368_v17 = vadd.f32 %v16057_v19, %v10257_v32  ;;  %v10256_v8 = vadd.f32 %v9641_v10, %v20973_v33  ;;  %v24082_v2 = vld [vmem:[#allocation242_spill] sm:$0xff] }
 0x4ae   : > { %v15866_v28 = vpop.f32.mrf.mxu1  ;;  %v16060_v36 = vpop.f32.mrf.mxu0 }
 0x4af   : > { %11884 = vst [vmem:[%s21615_s21 + $0x120] sm:$0xff] %v11756_v11  ;;  %v11759_v16 = vadd.f32 %v21602_v53, %v11368_v17  ;;  %v11367_v62 = vadd.f32 %v10752_v29, %v10256_v8  ;;  %v10259_v45 = vadd.f32 %v15866_v28, %v20980_v56  ;;  %v24083_v8 = vld [vmem:[#allocation276_spill] sm:$0xff] }
 0x4b0   : > { %v9651_v15 = vpop.f32.mrf.mxu1  ;;  %v10762_v39 = vpop.f32.mrf.mxu0 }
 0x4b1   : > { %11887 = vst [vmem:[%s21615_s21 + $0x138] sm:$0xff] %v11759_v16  ;;  %v11758_v61 = vadd.f32 %v21602_v53, %v11367_v62  ;;  %v11370_v58 = vadd.f32 %v16060_v36, %v10259_v45  ;;  %v10258_v44 = vadd.f32 %v9651_v15, %v20987_v21  ;;  %v24084_v15 = vld [vmem:[#allocation280_spill] sm:$0xff] }
 0x4b2   : > { %v15869_v47 = vpop.f32.mrf.mxu1  ;;  %v16063_v33 = vpop.f32.mrf.mxu0 }
 0x4b3   : > { %11886 = vst [vmem:[%s21615_s21 + $0x130] sm:$0xff] %v11758_v61  ;;  %v11761_v3 = vadd.f32 %v21602_v53, %v11370_v58  ;;  %v11369_v59 = vadd.f32 %v10762_v39, %v10258_v44  ;;  %v10261_v60 = vadd.f32 %v15869_v47, %v20994_v30 }
 0x4b4   : > { %v9661_v23 = vpop.f32.mrf.mxu1  ;;  %v10772_v56 = vpop.f32.mrf.mxu0 }
 0x4b5   : > { %11889 = vst [vmem:[%s21615_s21 + $0x148] sm:$0xff] %v11761_v3  ;;  %v11760_v18 = vadd.f32 %v21602_v53, %v11369_v59  ;;  %v11372_v63 = vadd.f32 %v16063_v33, %v10261_v60  ;;  %v10260_v50 = vadd.f32 %v9661_v23, %v24078_v51  ;;  %v24085_v33 = vld [vmem:[#allocation282_spill] sm:$0xff] }
 0x4b6   : > { %v15872_v5 = vpop.f32.mrf.mxu1  ;;  %v16066_v21 = vpop.f32.mrf.mxu0 }
 0x4b7   : > { %11888 = vst [vmem:[%s21615_s21 + $0x140] sm:$0xff] %v11760_v18  ;;  %v11763_v24 = vadd.f32 %v21602_v53, %v11372_v63  ;;  %v11371_v35 = vadd.f32 %v10772_v56, %v10260_v50  ;;  %v10263_v22 = vadd.f32 %v15872_v5, %v24079_v14  ;;  %v24086_v18 = vld [vmem:[#allocation286_spill] sm:$0xff] }
 0x4b8   : > { %v9671_v4 = vpop.f32.mrf.mxu1  ;;  %v10782_v30 = vpop.f32.mrf.mxu0 }
 0x4b9   : > { %11891 = vst [vmem:[%s21615_s21 + $0x158] sm:$0xff] %v11763_v24  ;;  %v11762_v12 = vadd.f32 %v21602_v53, %v11371_v35  ;;  %v11374_v40 = vadd.f32 %v16066_v21, %v10263_v22  ;;  %v10262_v38 = vadd.f32 %v9671_v4, %v24080_v0  ;;  %v24087_v24 = vld [vmem:[#allocation288_spill] sm:$0xff] }
 0x4ba   : > { %v15875_v37 = vpop.f32.mrf.mxu1  ;;  %v16069_v13 = vpop.f32.mrf.mxu0 }
 0x4bb   : > { %11890 = vst [vmem:[%s21615_s21 + $0x150] sm:$0xff] %v11762_v12  ;;  %v11765_v9 = vadd.f32 %v21602_v53, %v11374_v40  ;;  %v11373_v1 = vadd.f32 %v10782_v30, %v10262_v38  ;;  %v10265_v7 = vadd.f32 %v15875_v37, %v24081_v31  ;;  %v24088_v12 = vld [vmem:[#allocation291_spill] sm:$0xff] }
 0x4bc   : > { %v9681_v27 = vpop.f32.mrf.mxu1  ;;  %v10792_v25 = vpop.f32.mrf.mxu0 }
 0x4bd   : > { %11893 = vst [vmem:[%s21615_s21 + $0x168] sm:$0xff] %v11765_v9  ;;  %v11764_v19 = vadd.f32 %v21602_v53, %v11373_v1  ;;  %v11376_v55 = vadd.f32 %v16069_v13, %v10265_v7  ;;  %v10264_v32 = vadd.f32 %v9681_v27, %v24082_v2  ;;  %v24089_v9 = vld [vmem:[#allocation294_spill] sm:$0xff] }
 0x4be   : > { %v15878_v10 = vpop.f32.mrf.mxu1  ;;  %v16072_v29 = vpop.f32.mrf.mxu0 }
 0x4bf   : > { %11892 = vst [vmem:[%s21615_s21 + $0x160] sm:$0xff] %v11764_v19  ;;  %v11767_v11 = vadd.f32 %v21602_v53, %v11376_v55  ;;  %v11375_v17 = vadd.f32 %v10792_v25, %v10264_v32  ;;  %v10267_v28 = vadd.f32 %v15878_v10, %v24083_v8  ;;  %v24090_v19 = vld [vmem:[#allocation298_spill] sm:$0xff] }
 0x4c0   : > { %v9691_v36 = vpop.f32.mrf.mxu1  ;;  %v10802_v16 = vpop.f32.mrf.mxu0 }
 0x4c1   : > { %11895 = vst [vmem:[%s21615_s21 + $0x178] sm:$0xff] %v11767_v11  ;;  %v11766_v62 = vadd.f32 %v21602_v53, %v11375_v17  ;;  %v11378_v45 = vadd.f32 %v16072_v29, %v10267_v28  ;;  %v10266_v39 = vadd.f32 %v9691_v36, %v24084_v15  ;;  %v24091_v11 = vld [vmem:[#allocation300_spill] sm:$0xff] }
 0x4c2   : > { %v15881_v61 = vpop.f32.mrf.mxu1  ;;  %v16075_v58 = vpop.f32.mrf.mxu0 }
 0x4c3   : > { %11894 = vst [vmem:[%s21615_s21 + $0x170] sm:$0xff] %v11766_v62  ;;  %v11769_v44 = vadd.f32 %v21602_v53, %v11378_v45  ;;  %v11377_v47 = vadd.f32 %v10802_v16, %v10266_v39  ;;  %v10269_v3 = vadd.f32 %v15881_v61, %v24085_v33  ;;  %v24092_v62 = vld [vmem:[#allocation303_spill] sm:$0xff] }
 0x4c4   : > { %v9701_v59 = vpop.f32.mrf.mxu1  ;;  %v10812_v60 = vpop.f32.mrf.mxu0 }
 0x4c5   : > { %11897 = vst [vmem:[%s21615_s21 + $0x188] sm:$0xff] %v11769_v44  ;;  %v11768_v23 = vadd.f32 %v21602_v53, %v11377_v47  ;;  %v11380_v56 = vadd.f32 %v16075_v58, %v10269_v3  ;;  %v10268_v63 = vadd.f32 %v9701_v59, %v24086_v18  ;;  %v24093_v44 = vld [vmem:[#allocation306_spill] sm:$0xff] }
 0x4c6   : > { %v15884_v51 = vpop.f32.mrf.mxu1  ;;  %v16078_v50 = vpop.f32.mrf.mxu0 }
 0x4c7   : > { %11896 = vst [vmem:[%s21615_s21 + $0x180] sm:$0xff] %v11768_v23  ;;  %v11771_v5 = vadd.f32 %v21602_v53, %v11380_v56  ;;  %v11379_v21 = vadd.f32 %v10812_v60, %v10268_v63  ;;  %v10271_v35 = vadd.f32 %v15884_v51, %v24087_v24  ;;  %v24094_v23 = vld [vmem:[#allocation310_spill] sm:$0xff] }
 0x4c8   : > { %v9711_v14 = vpop.f32.mrf.mxu1  ;;  %v10822_v22 = vpop.f32.mrf.mxu0 }
 0x4c9   : > { %11899 = vst [vmem:[%s21615_s21 + $0x198] sm:$0xff] %v11771_v5  ;;  %v11770_v4 = vadd.f32 %v21602_v53, %v11379_v21  ;;  %v11382_v30 = vadd.f32 %v16078_v50, %v10271_v35  ;;  %v10270_v40 = vadd.f32 %v9711_v14, %v24088_v12  ;;  %v24095_v5 = vld [vmem:[#allocation312_spill] sm:$0xff] }
 0x4ca   : > { %v15887_v0 = vpop.f32.mrf.mxu1  ;;  %v16081_v38 = vpop.f32.mrf.mxu0 }
 0x4cb   : > { %11898 = vst [vmem:[%s21615_s21 + $0x190] sm:$0xff] %v11770_v4  ;;  %v11773_v37 = vadd.f32 %v21602_v53, %v11382_v30  ;;  %v11381_v13 = vadd.f32 %v10822_v22, %v10270_v40  ;;  %v10273_v1 = vadd.f32 %v15887_v0, %v24089_v9  ;;  %v24096_v4 = vld [vmem:[#allocation315_spill] sm:$0xff] }
 0x4cc   : > { %v9721_v31 = vpop.f32.mrf.mxu1  ;;  %v10832_v7 = vpop.f32.mrf.mxu0 }
 0x4cd   : > { %11901 = vst [vmem:[%s21615_s21 + $0x1a8] sm:$0xff] %v11773_v37  ;;  %v11772_v27 = vadd.f32 %v21602_v53, %v11381_v13  ;;  %v11384_v25 = vadd.f32 %v16081_v38, %v10273_v1  ;;  %v10272_v55 = vadd.f32 %v9721_v31, %v24090_v19  ;;  %v24097_v37 = vld [vmem:[#allocation318_spill] sm:$0xff] }
 0x4ce   : > { %v15890_v2 = vpop.f32.mrf.mxu1  ;;  %v16084_v32 = vpop.f32.mrf.mxu0 }
 0x4cf   : > { %11900 = vst [vmem:[%s21615_s21 + $0x1a0] sm:$0xff] %v11772_v27  ;;  %v11775_v10 = vadd.f32 %v21602_v53, %v11384_v25  ;;  %v11383_v29 = vadd.f32 %v10832_v7, %v10272_v55  ;;  %v10275_v17 = vadd.f32 %v15890_v2, %v24091_v11  ;;  %v24098_v27 = vld [vmem:[#allocation322_spill] sm:$0xff] }
 0x4d0   : > { %v9731_v8 = vpop.f32.mrf.mxu1  ;;  %v10842_v28 = vpop.f32.mrf.mxu0 }
 0x4d1   : > { %11903 = vst [vmem:[%s21615_s21 + $0x1b8] sm:$0xff] %v11775_v10  ;;  %v11774_v36 = vadd.f32 %v21602_v53, %v11383_v29  ;;  %v11386_v16 = vadd.f32 %v16084_v32, %v10275_v17  ;;  %v10274_v45 = vadd.f32 %v9731_v8, %v24092_v62  ;;  %v24099_v10 = vld [vmem:[#allocation324_spill] sm:$0xff] }
 0x4d2   : > { %v15893_v15 = vpop.f32.mrf.mxu1  ;;  %v16087_v39 = vpop.f32.mrf.mxu0 }
 0x4d3   : > { %11902 = vst [vmem:[%s21615_s21 + $0x1b0] sm:$0xff] %v11774_v36  ;;  %v11777_v61 = vadd.f32 %v21602_v53, %v11386_v16  ;;  %v11385_v58 = vadd.f32 %v10842_v28, %v10274_v45  ;;  %v10277_v47 = vadd.f32 %v15893_v15, %v24093_v44  ;;  %v24100_v36 = vld [vmem:[#allocation327_spill] sm:$0xff] }
 0x4d4   : > { %v9741_v33 = vpop.f32.mrf.mxu1  ;;  %v10852_v3 = vpop.f32.mrf.mxu0 }
 0x4d5   : > { %11905 = vst [vmem:[%s21615_s21 + $0x1c8] sm:$0xff] %v11777_v61  ;;  %v11776_v59 = vadd.f32 %v21602_v53, %v11385_v58  ;;  %v11388_v60 = vadd.f32 %v16087_v39, %v10277_v47  ;;  %v10276_v56 = vadd.f32 %v9741_v33, %v24094_v23  ;;  %v24101_v61 = vld [vmem:[#allocation330_spill] sm:$0xff] }
 0x4d6   : > { %v15896_v18 = vpop.f32.mrf.mxu1  ;;  %v16090_v63 = vpop.f32.mrf.mxu0 }
 0x4d7   : > { %11904 = vst [vmem:[%s21615_s21 + $0x1c0] sm:$0xff] %v11776_v59  ;;  %v11779_v51 = vadd.f32 %v21602_v53, %v11388_v60  ;;  %v11387_v50 = vadd.f32 %v10852_v3, %v10276_v56  ;;  %v10279_v21 = vadd.f32 %v15896_v18, %v24095_v5  ;;  %v24102_v59 = vld [vmem:[#allocation334_spill] sm:$0xff] }
 0x4d8   : > { %v9751_v24 = vpop.f32.mrf.mxu1  ;;  %v10862_v35 = vpop.f32.mrf.mxu0 }
 0x4d9   : > { %11907 = vst [vmem:[%s21615_s21 + $0x1d8] sm:$0xff] %v11779_v51  ;;  %v11778_v14 = vadd.f32 %v21602_v53, %v11387_v50  ;;  %v11390_v22 = vadd.f32 %v16090_v63, %v10279_v21  ;;  %v10278_v30 = vadd.f32 %v9751_v24, %v24096_v4  ;;  %v24103_v51 = vld [vmem:[#allocation336_spill] sm:$0xff] }
 0x4da   : > { %v15899_v12 = vpop.f32.mrf.mxu1  ;;  %v16093_v40 = vpop.f32.mrf.mxu0 }
 0x4db   : > { %11906 = vst [vmem:[%s21615_s21 + $0x1d0] sm:$0xff] %v11778_v14  ;;  %v11781_v0 = vadd.f32 %v21602_v53, %v11390_v22  ;;  %v11389_v38 = vadd.f32 %v10862_v35, %v10278_v30  ;;  %v10281_v13 = vadd.f32 %v15899_v12, %v24097_v37  ;;  %v24104_v14 = vld [vmem:[#allocation339_spill] sm:$0xff] }
 0x4dc   : > { %v9761_v9 = vpop.f32.mrf.mxu1  ;;  %v10872_v1 = vpop.f32.mrf.mxu0 }
 0x4dd   : > { %11909 = vst [vmem:[%s21615_s21 + $0x1e8] sm:$0xff] %v11781_v0  ;;  %v11780_v31 = vadd.f32 %v21602_v53, %v11389_v38  ;;  %v11392_v7 = vadd.f32 %v16093_v40, %v10281_v13  ;;  %v10280_v25 = vadd.f32 %v9761_v9, %v24098_v27  ;;  %v24105_v0 = vld [vmem:[#allocation246_spill] sm:$0xff] }
 0x4de   : > { %v15902_v19 = vpop.f32.mrf.mxu1  ;;  %v16096_v55 = vpop.f32.mrf.mxu0 }
 0x4df   : > { %11908 = vst [vmem:[%s21615_s21 + $0x1e0] sm:$0xff] %v11780_v31  ;;  %v11783_v2 = vadd.f32 %v21602_v53, %v11392_v7  ;;  %v11391_v32 = vadd.f32 %v10872_v1, %v10280_v25  ;;  %v10283_v29 = vadd.f32 %v15902_v19, %v24099_v10  ;;  %v24106_v31 = vld [vmem:[#allocation347_spill] sm:$0xff] }
 0x4e0   : > { %v9771_v11 = vpop.f32.mrf.mxu1  ;;  %v10882_v17 = vpop.f32.mrf.mxu0 }
 0x4e1   : > { %11911 = vst [vmem:[%s21615_s21 + $0x1f8] sm:$0xff] %v11783_v2  ;;  %v11782_v8 = vadd.f32 %v21602_v53, %v11391_v32  ;;  %v11394_v28 = vadd.f32 %v16096_v55, %v10283_v29  ;;  %v10282_v16 = vadd.f32 %v9771_v11, %v24100_v36  ;;  %v24107_v2 = vld [vmem:[#allocation252_spill] sm:$0xff] }
 0x4e2   : > { %v15905_v62 = vpop.f32.mrf.mxu1  ;;  %v16099_v45 = vpop.f32.mrf.mxu0 }
 0x4e3   : > { %11910 = vst [vmem:[%s21615_s21 + $0x1f0] sm:$0xff] %v11782_v8  ;;  %v11785_v15 = vadd.f32 %v21602_v53, %v11394_v28  ;;  %v11393_v39 = vadd.f32 %v10882_v17, %v10282_v16  ;;  %v10285_v58 = vadd.f32 %v15905_v62, %v24101_v61  ;;  %v24108_v8 = vld [vmem:[#allocation254_spill] sm:$0xff] }
 0x4e4   : > { %v9781_v44 = vpop.f32.mrf.mxu1  ;;  %v10892_v47 = vpop.f32.mrf.mxu0  ;;  %v21947_v62 = vld [vmem:[%s22173_s2] ss:$0 sm:$0xff] }
 0x4e5   : > { %11913 = vst [vmem:[%s21615_s21 + $0x208] sm:$0xff] %v11785_v15  ;;  %v11784_v33 = vadd.f32 %v21602_v53, %v11393_v39  ;;  %v11396_v3 = vadd.f32 %v16099_v45, %v10285_v58  ;;  %v10284_v60 = vadd.f32 %v9781_v44, %v24102_v59  ;;  %v24109_v39 = vld [vmem:[#allocation258_spill] sm:$0xff] }
 0x4e6   : > { %v15908_v23 = vpop.f32.mrf.mxu1  ;;  %v16102_v56 = vpop.f32.mrf.mxu0 }
 0x4e7   : > { %11912 = vst [vmem:[%s21615_s21 + $0x200] sm:$0xff] %v11784_v33  ;;  %v11787_v18 = vadd.f32 %v21602_v53, %v11396_v3  ;;  %v11395_v63 = vadd.f32 %v10892_v47, %v10284_v60  ;;  %v10287_v50 = vadd.f32 %v15908_v23, %v24103_v51  ;;  %v24110_v33 = vld [vmem:[#allocation262_spill] sm:$0xff] }
 0x4e8   : > { %v9791_v5 = vpop.f32.mrf.mxu1  ;;  %v10902_v21 = vpop.f32.mrf.mxu0 }
 0x4e9   : > { %11915 = vst [vmem:[%s21615_s21 + $0x218] sm:$0xff] %v11787_v18  ;;  %v11786_v24 = vadd.f32 %v21602_v53, %v11395_v63  ;;  %v11398_v35 = vadd.f32 %v16102_v56, %v10287_v50  ;;  %v10286_v22 = vadd.f32 %v9791_v5, %v24104_v14  ;;  %v24111_v18 = vld [vmem:[#allocation361_spill] sm:$0xff] }
 0x4ea   : > { %v15911_v4 = vpop.f32.mrf.mxu1  ;;  %v16105_v30 = vpop.f32.mrf.mxu0 }
 0x4eb   : > { %11914 = vst [vmem:[%s21615_s21 + $0x210] sm:$0xff] %v11786_v24  ;;  %v11789_v12 = vadd.f32 %v21602_v53, %v11398_v35  ;;  %v11397_v40 = vadd.f32 %v10902_v21, %v10286_v22  ;;  %v10289_v38 = vadd.f32 %v15911_v4, %v24105_v0  ;;  %v24112_v24 = vld [vmem:[#allocation24_spill] sm:$0xff] }
 0x4ec   : > { %v9801_v37 = vpop.f32.mrf.mxu1  ;;  %v10912_v13 = vpop.f32.mrf.mxu0 }
 0x4ed   : > { %11917 = vst [vmem:[%s21615_s21 + $0x228] sm:$0xff] %v11789_v12  ;;  %v11788_v9 = vadd.f32 %v21602_v53, %v11397_v40  ;;  %v11400_v1 = vadd.f32 %v16105_v30, %v10289_v38  ;;  %v10288_v7 = vadd.f32 %v9801_v37, %v24106_v31  ;;  %v24113_v12 = vld [vmem:[#allocation26_spill] sm:$0xff] }
 0x4ee   : > { %v15914_v27 = vpop.f32.mrf.mxu1  ;;  %v16108_v25 = vpop.f32.mrf.mxu0 }
 0x4ef   : > { %11916 = vst [vmem:[%s21615_s21 + $0x220] sm:$0xff] %v11788_v9  ;;  %v11791_v19 = vadd.f32 %v21602_v53, %v11400_v1  ;;  %v11399_v55 = vadd.f32 %v10912_v13, %v10288_v7  ;;  %v10291_v32 = vadd.f32 %v15914_v27, %v24107_v2  ;;  %v24114_v9 = vld [vmem:[#allocation28_spill] sm:$0xff] }
 0x4f0   : > { %v9811_v10 = vpop.f32.mrf.mxu1  ;;  %v10922_v29 = vpop.f32.mrf.mxu0 }
 0x4f1   : > { %11919 = vst [vmem:[%s21615_s21 + $0x238] sm:$0xff] %v11791_v19  ;;  %v11790_v11 = vadd.f32 %v21602_v53, %v11399_v55  ;;  %v11402_v17 = vadd.f32 %v16108_v25, %v10291_v32  ;;  %v10290_v28 = vadd.f32 %v9811_v10, %v24108_v8  ;;  %v24115_v19 = vld [vmem:[#allocation30_spill] sm:$0xff] }
 0x4f2   : > { %v15917_v36 = vpop.f32.mrf.mxu1  ;;  %v16111_v16 = vpop.f32.mrf.mxu0 }
 0x4f3   : > { %11918 = vst [vmem:[%s21615_s21 + $0x230] sm:$0xff] %v11790_v11  ;;  %v11793_v45 = vadd.f32 %v21947_v62, %v11402_v17  ;;  %v11401_v15 = vadd.f32 %v10922_v29, %v10290_v28  ;;  %v10293_v61 = vadd.f32 %v15917_v36, %v24109_v39  ;;  %v24116_v11 = vld [vmem:[#allocation32_spill] sm:$0xff] }
 0x4f4   : > { %v9821_v58 = vpop.f32.mrf.mxu1  ;;  %v10932_v53 = vpop.f32.mrf.mxu0 }
 0x4f5   : > { %11921 = vst [vmem:[%s21615_s21 + $0x248] sm:$0xff] %v11793_v45  ;;  %v11792_v44 = vadd.f32 %v21947_v62, %v11401_v15  ;;  %v11404_v47 = vadd.f32 %v16111_v16, %v10293_v61  ;;  %v10292_v3 = vadd.f32 %v9821_v58, %v24110_v33  ;;  %v24117_v45 = vld [vmem:[#allocation34_spill] sm:$0xff] }
 0x4f6   : > { %v15920_v59 = vpop.f32.mrf.mxu1  ;;  %v16114_v60 = vpop.f32.mrf.mxu0 }
 0x4f7   : > { %11920 = vst [vmem:[%s21615_s21 + $0x240] sm:$0xff] %v11792_v44  ;;  %v11795_v23 = vadd.f32 %v21947_v62, %v11404_v47  ;;  %v11403_v56 = vadd.f32 %v10932_v53, %v10292_v3  ;;  %v10295_v63 = vadd.f32 %v15920_v59, %v24111_v18  ;;  %v24118_v44 = vld [vmem:[#allocation36_spill] sm:$0xff] }
 0x4f8   : > { %v9831_v51 = vpop.f32.mrf.mxu1  ;;  %v10942_v50 = vpop.f32.mrf.mxu0 }
 0x4f9   : > { %11923 = vst [vmem:[%s21615_s21 + $0x258] sm:$0xff] %v11795_v23  ;;  %v11794_v5 = vadd.f32 %v21947_v62, %v11403_v56  ;;  %v11406_v21 = vadd.f32 %v16114_v60, %v10295_v63  ;;  %v10294_v35 = vadd.f32 %v9831_v51, %v24112_v24  ;;  %v24119_v23 = vld [vmem:[#allocation38_spill] sm:$0xff] }
 0x4fa   : > { %v15923_v14 = vpop.f32.mrf.mxu1  ;;  %v16117_v22 = vpop.f32.mrf.mxu0 }
 0x4fb   : > { %11922 = vst [vmem:[%s21615_s21 + $0x250] sm:$0xff] %v11794_v5  ;;  %v11797_v4 = vadd.f32 %v21947_v62, %v11406_v21  ;;  %v11405_v30 = vadd.f32 %v10942_v50, %v10294_v35  ;;  %v10297_v40 = vadd.f32 %v15923_v14, %v24113_v12  ;;  %v24120_v5 = vld [vmem:[#allocation40_spill] sm:$0xff] }
 0x4fc   : > { %v9841_v0 = vpop.f32.mrf.mxu1  ;;  %v10952_v38 = vpop.f32.mrf.mxu0 }
 0x4fd   : > { %11925 = vst [vmem:[%s21615_s21 + $0x268] sm:$0xff] %v11797_v4  ;;  %v11796_v37 = vadd.f32 %v21947_v62, %v11405_v30  ;;  %v11408_v13 = vadd.f32 %v16117_v22, %v10297_v40  ;;  %v10296_v1 = vadd.f32 %v9841_v0, %v24114_v9  ;;  %v24121_v4 = vld [vmem:[#allocation41_spill] sm:$0xff] }
 0x4fe   : > { %v15926_v31 = vpop.f32.mrf.mxu1  ;;  %v16120_v7 = vpop.f32.mrf.mxu0 }
 0x4ff   : > { %11924 = vst [vmem:[%s21615_s21 + $0x260] sm:$0xff] %v11796_v37  ;;  %v11799_v27 = vadd.f32 %v21947_v62, %v11408_v13  ;;  %v11407_v25 = vadd.f32 %v10952_v38, %v10296_v1  ;;  %v10299_v55 = vadd.f32 %v15926_v31, %v24115_v19  ;;  %v24122_v37 = vld [vmem:[#allocation284_spill] sm:$0xff] }
 0x500   : > { %v9851_v2 = vpop.f32.mrf.mxu1  ;;  %v10962_v32 = vpop.f32.mrf.mxu0 }
 0x501   : > { %11927 = vst [vmem:[%s21615_s21 + $0x278] sm:$0xff] %v11799_v27  ;;  %v11798_v10 = vadd.f32 %v21947_v62, %v11407_v25  ;;  %v11410_v29 = vadd.f32 %v16120_v7, %v10299_v55  ;;  %v10298_v17 = vadd.f32 %v9851_v2, %v24116_v11  ;;  %v24123_v27 = vld [vmem:[#allocation42_spill] sm:$0xff] }
 0x502   : > { %v15929_v8 = vpop.f32.mrf.mxu1  ;;  %v16123_v28 = vpop.f32.mrf.mxu0 }
 0x503   : > { %11926 = vst [vmem:[%s21615_s21 + $0x270] sm:$0xff] %v11798_v10  ;;  %v11801_v36 = vadd.f32 %v21947_v62, %v11410_v29  ;;  %v11409_v16 = vadd.f32 %v10962_v32, %v10298_v17  ;;  %v10301_v15 = vadd.f32 %v15929_v8, %v24117_v45  ;;  %v24124_v10 = vld [vmem:[#allocation43_spill] sm:$0xff] }
 0x504   : > { %v9861_v39 = vpop.f32.mrf.mxu1  ;;  %v10972_v61 = vpop.f32.mrf.mxu0 }
 0x505   : > { %11929 = vst [vmem:[%s21615_s21 + $0x288] sm:$0xff] %v11801_v36  ;;  %v11800_v58 = vadd.f32 %v21947_v62, %v11409_v16  ;;  %v11412_v53 = vadd.f32 %v16123_v28, %v10301_v15  ;;  %v10300_v47 = vadd.f32 %v9861_v39, %v24118_v44  ;;  %v24125_v36 = vld [vmem:[#allocation289_spill] sm:$0xff] }
 0x506   : > { %v15932_v33 = vpop.f32.mrf.mxu1  ;;  %v16126_v3 = vpop.f32.mrf.mxu0 }
 0x507   : > { %11928 = vst [vmem:[%s21615_s21 + $0x280] sm:$0xff] %v11800_v58  ;;  %v11803_v59 = vadd.f32 %v21947_v62, %v11412_v53  ;;  %v11411_v60 = vadd.f32 %v10972_v61, %v10300_v47  ;;  %v10303_v56 = vadd.f32 %v15932_v33, %v24119_v23  ;;  %v24126_v58 = vld [vmem:[#allocation44_spill] sm:$0xff] }
 0x508   : > { %v9871_v18 = vpop.f32.mrf.mxu1  ;;  %v10982_v63 = vpop.f32.mrf.mxu0 }
 0x509   : > { %11931 = vst [vmem:[%s21615_s21 + $0x298] sm:$0xff] %v11803_v59  ;;  %v11802_v51 = vadd.f32 %v21947_v62, %v11411_v60  ;;  %v11414_v50 = vadd.f32 %v16126_v3, %v10303_v56  ;;  %v10302_v21 = vadd.f32 %v9871_v18, %v24120_v5  ;;  %v24127_v59 = vld [vmem:[#allocation45_spill] sm:$0xff] }
 0x50a   : > { %v15935_v24 = vpop.f32.mrf.mxu1  ;;  %v16129_v35 = vpop.f32.mrf.mxu0 }
 0x50b   : > { %11930 = vst [vmem:[%s21615_s21 + $0x290] sm:$0xff] %v11802_v51  ;;  %v11805_v14 = vadd.f32 %v21947_v62, %v11414_v50  ;;  %v11413_v22 = vadd.f32 %v10982_v63, %v10302_v21  ;;  %v10305_v30 = vadd.f32 %v15935_v24, %v24121_v4  ;;  %v24128_v51 = vld [vmem:[#allocation293_spill] sm:$0xff] }
 0x50c   : > { %v9881_v12 = vpop.f32.mrf.mxu1  ;;  %v10992_v40 = vpop.f32.mrf.mxu0 }
 0x50d   : > { %11933 = vst [vmem:[%s21615_s21 + $0x2a8] sm:$0xff] %v11805_v14  ;;  %v11804_v0 = vadd.f32 %v21947_v62, %v11413_v22  ;;  %v11416_v38 = vadd.f32 %v16129_v35, %v10305_v30  ;;  %v10304_v13 = vadd.f32 %v9881_v12, %v24122_v37  ;;  %v24129_v14 = vld [vmem:[#allocation46_spill] sm:$0xff] }
 0x50e   : > { %v15938_v9 = vpop.f32.mrf.mxu1  ;;  %v16132_v1 = vpop.f32.mrf.mxu0 }
 0x50f   : > { %11932 = vst [vmem:[%s21615_s21 + $0x2a0] sm:$0xff] %v11804_v0  ;;  %v11807_v31 = vadd.f32 %v21947_v62, %v11416_v38  ;;  %v11415_v7 = vadd.f32 %v10992_v40, %v10304_v13  ;;  %v10307_v25 = vadd.f32 %v15938_v9, %v24123_v27  ;;  %v24130_v0 = vld [vmem:[#allocation47_spill] sm:$0xff] }
 0x510   : > { %v9891_v19 = vpop.f32.mrf.mxu1  ;;  %v11002_v55 = vpop.f32.mrf.mxu0 }
 0x511   : > { %11935 = vst [vmem:[%s21615_s21 + $0x2b8] sm:$0xff] %v11807_v31  ;;  %v11806_v2 = vadd.f32 %v21947_v62, %v11415_v7  ;;  %v11418_v32 = vadd.f32 %v16132_v1, %v10307_v25  ;;  %v10306_v29 = vadd.f32 %v9891_v19, %v24124_v10  ;;  %v24131_v31 = vld [vmem:[#allocation295_spill] sm:$0xff] }
 0x512   : > { %v15941_v11 = vpop.f32.mrf.mxu1  ;;  %v16135_v17 = vpop.f32.mrf.mxu0 }
 0x513   : > { %11934 = vst [vmem:[%s21615_s21 + $0x2b0] sm:$0xff] %v11806_v2  ;;  %v11809_v8 = vadd.f32 %v21947_v62, %v11418_v32  ;;  %v11417_v28 = vadd.f32 %v11002_v55, %v10306_v29  ;;  %v10309_v16 = vadd.f32 %v15941_v11, %v24125_v36  ;;  %v24132_v2 = vld [vmem:[#allocation48_spill] sm:$0xff] }
 0x514   : > { %v9901_v45 = vpop.f32.mrf.mxu1  ;;  %v11012_v15 = vpop.f32.mrf.mxu0 }
 0x515   : > { %11937 = vst [vmem:[%s21615_s21 + $0x2c8] sm:$0xff] %v11809_v8  ;;  %v11808_v39 = vadd.f32 %v21947_v62, %v11417_v28  ;;  %v11420_v61 = vadd.f32 %v16135_v17, %v10309_v16  ;;  %v10308_v53 = vadd.f32 %v9901_v45, %v24126_v58  ;;  %v24133_v8 = vld [vmem:[#allocation49_spill] sm:$0xff] }
 0x516   : > { %v15944_v44 = vpop.f32.mrf.mxu1  ;;  %v16138_v47 = vpop.f32.mrf.mxu0 }
 0x517   : > { %11936 = vst [vmem:[%s21615_s21 + $0x2c0] sm:$0xff] %v11808_v39  ;;  %v11811_v33 = vadd.f32 %v21947_v62, %v11420_v61  ;;  %v11419_v3 = vadd.f32 %v11012_v15, %v10308_v53  ;;  %v10311_v60 = vadd.f32 %v15944_v44, %v24127_v59  ;;  %v24134_v39 = vld [vmem:[#allocation297_spill] sm:$0xff] }
 0x518   : > { %v9911_v23 = vpop.f32.mrf.mxu1  ;;  %v11022_v56 = vpop.f32.mrf.mxu0 }
 0x519   : > { %11939 = vst [vmem:[%s21615_s21 + $0x2d8] sm:$0xff] %v11811_v33  ;;  %v11810_v18 = vadd.f32 %v21947_v62, %v11419_v3  ;;  %v11422_v63 = vadd.f32 %v16138_v47, %v10311_v60  ;;  %v10310_v50 = vadd.f32 %v9911_v23, %v24128_v51  ;;  %v24135_v33 = vld [vmem:[#allocation50_spill] sm:$0xff] }
 0x51a   : > { %v15947_v5 = vpop.f32.mrf.mxu1  ;;  %v16141_v21 = vpop.f32.mrf.mxu0 }
 0x51b   : > { %11938 = vst [vmem:[%s21615_s21 + $0x2d0] sm:$0xff] %v11810_v18  ;;  %v11813_v24 = vadd.f32 %v21947_v62, %v11422_v63  ;;  %v11421_v35 = vadd.f32 %v11022_v56, %v10310_v50  ;;  %v10313_v22 = vadd.f32 %v15947_v5, %v24129_v14  ;;  %v24136_v18 = vld [vmem:[#allocation51_spill] sm:$0xff] }
 0x51c   : > { %v9921_v4 = vpop.f32.mrf.mxu1  ;;  %v11032_v30 = vpop.f32.mrf.mxu0 }
 0x51d   : > { %11941 = vst [vmem:[%s21615_s21 + $0x2e8] sm:$0xff] %v11813_v24  ;;  %v11812_v12 = vadd.f32 %v21947_v62, %v11421_v35  ;;  %v11424_v40 = vadd.f32 %v16141_v21, %v10313_v22  ;;  %v10312_v38 = vadd.f32 %v9921_v4, %v24130_v0  ;;  %v24137_v24 = vld [vmem:[#allocation301_spill] sm:$0xff] }
 0x51e   : > { %v15950_v37 = vpop.f32.mrf.mxu1  ;;  %v16144_v13 = vpop.f32.mrf.mxu0 }
 0x51f   : > { %11940 = vst [vmem:[%s21615_s21 + $0x2e0] sm:$0xff] %v11812_v12  ;;  %v11815_v9 = vadd.f32 %v21947_v62, %v11424_v40  ;;  %v11423_v1 = vadd.f32 %v11032_v30, %v10312_v38  ;;  %v10315_v7 = vadd.f32 %v15950_v37, %v24131_v31  ;;  %v24138_v12 = vld [vmem:[#allocation52_spill] sm:$0xff] }
 0x520   : > { %v9931_v27 = vpop.f32.mrf.mxu1  ;;  %v11042_v25 = vpop.f32.mrf.mxu0 }
 0x521   : > { %11943 = vst [vmem:[%s21615_s21 + $0x2f8] sm:$0xff] %v11815_v9  ;;  %v11814_v19 = vadd.f32 %v21947_v62, %v11423_v1  ;;  %v11426_v55 = vadd.f32 %v16144_v13, %v10315_v7  ;;  %v10314_v32 = vadd.f32 %v9931_v27, %v24132_v2  ;;  %v24139_v9 = vld [vmem:[#allocation53_spill] sm:$0xff] }
 0x522   : > { %v15953_v10 = vpop.f32.mrf.mxu1  ;;  %v16147_v29 = vpop.f32.mrf.mxu0 }
 0x523   : > { %11942 = vst [vmem:[%s21615_s21 + $0x2f0] sm:$0xff] %v11814_v19  ;;  %v11817_v11 = vadd.f32 %v21947_v62, %v11426_v55  ;;  %v11425_v17 = vadd.f32 %v11042_v25, %v10314_v32  ;;  %v10317_v28 = vadd.f32 %v15953_v10, %v24133_v8  ;;  %v24140_v19 = vld [vmem:[#allocation305_spill] sm:$0xff] }
 0x524   : > { %v9941_v36 = vpop.f32.mrf.mxu1  ;;  %v11052_v16 = vpop.f32.mrf.mxu0 }
 0x525   : > { %11945 = vst [vmem:[%s21615_s21 + $0x308] sm:$0xff] %v11817_v11  ;;  %v11816_v45 = vadd.f32 %v21947_v62, %v11425_v17  ;;  %v11428_v15 = vadd.f32 %v16147_v29, %v10317_v28  ;;  %v10316_v61 = vadd.f32 %v9941_v36, %v24134_v39  ;;  %v24141_v11 = vld [vmem:[#allocation54_spill] sm:$0xff] }
 0x526   : > { %v15956_v58 = vpop.f32.mrf.mxu1  ;;  %v16150_v53 = vpop.f32.mrf.mxu0 }
 0x527   : > { %11944 = vst [vmem:[%s21615_s21 + $0x300] sm:$0xff] %v11816_v45  ;;  %v11819_v44 = vadd.f32 %v21947_v62, %v11428_v15  ;;  %v11427_v47 = vadd.f32 %v11052_v16, %v10316_v61  ;;  %v10319_v3 = vadd.f32 %v15956_v58, %v24135_v33  ;;  %v24142_v45 = vld [vmem:[#allocation55_spill] sm:$0xff] }
 0x528   : > { %v9951_v59 = vpop.f32.mrf.mxu1  ;;  %v11062_v60 = vpop.f32.mrf.mxu0 }
 0x529   : > { %11947 = vst [vmem:[%s21615_s21 + $0x318] sm:$0xff] %v11819_v44  ;;  %v11818_v23 = vadd.f32 %v21947_v62, %v11427_v47  ;;  %v11430_v56 = vadd.f32 %v16150_v53, %v10319_v3  ;;  %v10318_v63 = vadd.f32 %v9951_v59, %v24136_v18  ;;  %v24143_v44 = vld [vmem:[#allocation307_spill] sm:$0xff] }
 0x52a   : > { %v15959_v51 = vpop.f32.mrf.mxu1  ;;  %v16153_v50 = vpop.f32.mrf.mxu0 }
 0x52b   : > { %11946 = vst [vmem:[%s21615_s21 + $0x310] sm:$0xff] %v11818_v23  ;;  %v11821_v5 = vadd.f32 %v21947_v62, %v11430_v56  ;;  %v11429_v21 = vadd.f32 %v11062_v60, %v10318_v63  ;;  %v10321_v35 = vadd.f32 %v15959_v51, %v24137_v24  ;;  %v24144_v23 = vld [vmem:[#allocation56_spill] sm:$0xff] }
 0x52c   : > { %v9961_v14 = vpop.f32.mrf.mxu1  ;;  %v11072_v22 = vpop.f32.mrf.mxu0 }
 0x52d   : > { %11949 = vst [vmem:[%s21615_s21 + $0x328] sm:$0xff] %v11821_v5  ;;  %v11820_v4 = vadd.f32 %v21947_v62, %v11429_v21  ;;  %v11432_v30 = vadd.f32 %v16153_v50, %v10321_v35  ;;  %v10320_v40 = vadd.f32 %v9961_v14, %v24138_v12  ;;  %v24145_v5 = vld [vmem:[#allocation57_spill] sm:$0xff] }
 0x52e   : > { %v15962_v0 = vpop.f32.mrf.mxu1  ;;  %v16156_v38 = vpop.f32.mrf.mxu0 }
 0x52f   : > { %11948 = vst [vmem:[%s21615_s21 + $0x320] sm:$0xff] %v11820_v4  ;;  %v11823_v37 = vadd.f32 %v21947_v62, %v11432_v30  ;;  %v11431_v13 = vadd.f32 %v11072_v22, %v10320_v40  ;;  %v10323_v1 = vadd.f32 %v15962_v0, %v24139_v9  ;;  %v24146_v4 = vld [vmem:[#allocation309_spill] sm:$0xff] }
 0x530   : > { %v9971_v31 = vpop.f32.mrf.mxu1  ;;  %v11082_v7 = vpop.f32.mrf.mxu0 }
 0x531   : > { %11951 = vst [vmem:[%s21615_s21 + $0x338] sm:$0xff] %v11823_v37  ;;  %v11822_v27 = vadd.f32 %v21947_v62, %v11431_v13  ;;  %v11434_v25 = vadd.f32 %v16156_v38, %v10323_v1  ;;  %v10322_v55 = vadd.f32 %v9971_v31, %v24140_v19  ;;  %v24147_v37 = vld [vmem:[#allocation58_spill] sm:$0xff] }
 0x532   : > { %v15965_v2 = vpop.f32.mrf.mxu1  ;;  %v16159_v32 = vpop.f32.mrf.mxu0 }
 0x533   : > { %11950 = vst [vmem:[%s21615_s21 + $0x330] sm:$0xff] %v11822_v27  ;;  %v11825_v10 = vadd.f32 %v21947_v62, %v11434_v25  ;;  %v11433_v29 = vadd.f32 %v11082_v7, %v10322_v55  ;;  %v10325_v17 = vadd.f32 %v15965_v2, %v24141_v11 }
 0x534   : > { %v9981_v8 = vpop.f32.mrf.mxu1  ;;  %v11092_v28 = vpop.f32.mrf.mxu0 }
 0x535   : > { %11953 = vst [vmem:[%s21615_s21 + $0x348] sm:$0xff] %v11825_v10  ;;  %v11824_v36 = vadd.f32 %v21947_v62, %v11433_v29  ;;  %v11436_v16 = vadd.f32 %v16159_v32, %v10325_v17  ;;  %v10324_v15 = vadd.f32 %v9981_v8, %v24142_v45  ;;  %v24148_v32 = vld [vmem:[#allocation59_spill] sm:$0xff] }
 0x536   : > { %v15968_v39 = vpop.f32.mrf.mxu1  ;;  %v16162_v61 = vpop.f32.mrf.mxu0 }
 0x537   : > { %11952 = vst [vmem:[%s21615_s21 + $0x340] sm:$0xff] %v11824_v36  ;;  %v11827_v58 = vadd.f32 %v21947_v62, %v11436_v16  ;;  %v11435_v53 = vadd.f32 %v11092_v28, %v10324_v15  ;;  %v10327_v47 = vadd.f32 %v15968_v39, %v24143_v44  ;;  %v24149_v15 = vld [vmem:[#allocation313_spill] sm:$0xff] }
 0x538   : > { %v9991_v33 = vpop.f32.mrf.mxu1  ;;  %v11102_v3 = vpop.f32.mrf.mxu0 }
 0x539   : > { %11955 = vst [vmem:[%s21615_s21 + $0x358] sm:$0xff] %v11827_v58  ;;  %v11826_v59 = vadd.f32 %v21947_v62, %v11435_v53  ;;  %v11438_v60 = vadd.f32 %v16162_v61, %v10327_v47  ;;  %v10326_v56 = vadd.f32 %v9991_v33, %v24144_v23 }
 0x53a   : > { %v15971_v18 = vpop.f32.mrf.mxu1  ;;  %v16165_v63 = vpop.f32.mrf.mxu0 }
 0x53b   : > { %11954 = vst [vmem:[%s21615_s21 + $0x350] sm:$0xff] %v11826_v59  ;;  %v11829_v51 = vadd.f32 %v21947_v62, %v11438_v60  ;;  %v11437_v50 = vadd.f32 %v11102_v3, %v10326_v56  ;;  %v10329_v21 = vadd.f32 %v15971_v18, %v24145_v5 }
 0x53c   : > { %v10001_v24 = vpop.f32.mrf.mxu1  ;;  %v11112_v35 = vpop.f32.mrf.mxu0 }
 0x53d   : > { %11957 = vst [vmem:[%s21615_s21 + $0x368] sm:$0xff] %v11829_v51  ;;  %v11828_v14 = vadd.f32 %v21947_v62, %v11437_v50  ;;  %v11440_v22 = vadd.f32 %v16165_v63, %v10329_v21  ;;  %v10328_v30 = vadd.f32 %v10001_v24, %v24146_v4 }
 0x53e   : > { %v15974_v12 = vpop.f32.mrf.mxu1  ;;  %v16168_v40 = vpop.f32.mrf.mxu0 }
 0x53f   : > { %11956 = vst [vmem:[%s21615_s21 + $0x360] sm:$0xff] %v11828_v14  ;;  %v11831_v0 = vadd.f32 %v21947_v62, %v11440_v22  ;;  %v11439_v38 = vadd.f32 %v11112_v35, %v10328_v30  ;;  %v10331_v13 = vadd.f32 %v15974_v12, %v24147_v37 }
 0x540   : > { %v10011_v9 = vpop.f32.mrf.mxu1  ;;  %v11122_v1 = vpop.f32.mrf.mxu0 }
 0x541   : > { %11959 = vst [vmem:[%s21615_s21 + $0x378] sm:$0xff] %v11831_v0  ;;  %v11830_v31 = vadd.f32 %v21947_v62, %v11439_v38  ;;  %v11442_v7 = vadd.f32 %v16168_v40, %v10331_v13  ;;  %v10330_v27 = vadd.f32 %v10011_v9, %v21491_v20 }
 0x542   : > { %v15977_v25 = vpop.f32.mrf.mxu1  ;;  %v16171_v19 = vpop.f32.mrf.mxu0 }
 0x543   : > { %11958 = vst [vmem:[%s21615_s21 + $0x370] sm:$0xff] %v11830_v31  ;;  %v11833_v55 = vadd.f32 %v21947_v62, %v11442_v7  ;;  %v11441_v2 = vadd.f32 %v11122_v1, %v10330_v27  ;;  %v10333_v10 = vadd.f32 %v15977_v25, %v24148_v32 }
 0x544   : > { %v10021_v29 = vpop.f32.mrf.mxu1  ;;  %v11132_v11 = vpop.f32.mrf.mxu0 }
 0x545   : > { %11961 = vst [vmem:[%s21615_s21 + $0x388] sm:$0xff] %v11833_v55  ;;  %v11832_v17 = vadd.f32 %v21947_v62, %v11441_v2  ;;  %v11444_v8 = vadd.f32 %v16171_v19, %v10333_v10  ;;  %v10332_v28 = vadd.f32 %v10021_v29, %v21505_v6 }
 0x546   : > { %v15980_v36 = vpop.f32.mrf.mxu1  ;;  %v16174_v20 = vpop.f32.mrf.mxu0 }
 0x547   : > { %11960 = vst [vmem:[%s21615_s21 + $0x380] sm:$0xff] %v11832_v17  ;;  %v11835_v16 = vadd.f32 %v21947_v62, %v11444_v8  ;;  %v11443_v45 = vadd.f32 %v11132_v11, %v10332_v28  ;;  %v10335_v39 = vadd.f32 %v15980_v36, %v24149_v15 }
 0x548   : > { %v10031_v61 = vpop.f32.mrf.mxu1  ;;  %v11142_v58 = vpop.f32.mrf.mxu0 }
 0x549   : > { %11963 = vst [vmem:[%s21615_s21 + $0x398] sm:$0xff] %v11835_v16  ;;  %v11834_v53 = vadd.f32 %v21947_v62, %v11443_v45  ;;  %v11446_v44 = vadd.f32 %v16174_v20, %v10335_v39  ;;  %v10334_v47 = vadd.f32 %v10031_v61, %v21519_v41 }
 0x54a   : > { %v15983_v33 = vpop.f32.mrf.mxu1  ;;  %v16177_v6 = vpop.f32.mrf.mxu0 }
 0x54b   : > { %11962 = vst [vmem:[%s21615_s21 + $0x390] sm:$0xff] %v11834_v53  ;;  %v11837_v3 = vadd.f32 %v21947_v62, %v11446_v44  ;;  %v11445_v59 = vadd.f32 %v11142_v58, %v10334_v47  ;;  %v10337_v60 = vadd.f32 %v15983_v33, %v21526_v43 }
 0x54c   : > { %v10041_v23 = vpop.f32.mrf.mxu1  ;;  %v11152_v56 = vpop.f32.mrf.mxu0 }
 0x54d   : > { %11965 = vst [vmem:[%s21615_s21 + $0x3a8] sm:$0xff] %v11837_v3  ;;  %v11836_v18 = vadd.f32 %v21947_v62, %v11445_v59  ;;  %v11448_v63 = vadd.f32 %v16177_v6, %v10337_v60  ;;  %v10336_v51 = vadd.f32 %v10041_v23, %v21533_v54 }
 0x54e   : > { %v15986_v50 = vpop.f32.mrf.mxu1  ;;  %v16180_v41 = vpop.f32.mrf.mxu0 }
 0x54f   : > { %11964 = vst [vmem:[%s21615_s21 + $0x3a0] sm:$0xff] %v11836_v18  ;;  %v11839_v5 = vadd.f32 %v21947_v62, %v11448_v63  ;;  %v11447_v21 = vadd.f32 %v11152_v56, %v10336_v51  ;;  %v10339_v24 = vadd.f32 %v15986_v50, %v21540_v48 }
 0x550   : > { %v10051_v35 = vpop.f32.mrf.mxu1  ;;  %v11162_v43 = vpop.f32.mrf.mxu0 }
 0x551   : > { %11967 = vst [vmem:[%s21615_s21 + $0x3b8] sm:$0xff] %v11839_v5  ;;  %v11838_v14 = vadd.f32 %v21947_v62, %v11447_v21  ;;  %v11450_v22 = vadd.f32 %v16180_v41, %v10339_v24  ;;  %v10338_v4 = vadd.f32 %v10051_v35, %v21547_v52 }
 0x552   : > { %v15989_v30 = vpop.f32.mrf.mxu1  ;;  %v16183_v54 = vpop.f32.mrf.mxu0 }
 0x553   : > { %11966 = vst [vmem:[%s21615_s21 + $0x3b0] sm:$0xff] %v11838_v14  ;;  %v11841_v12 = vadd.f32 %v21947_v62, %v11450_v22  ;;  %v11449_v40 = vadd.f32 %v11162_v43, %v10338_v4  ;;  %v10341_v0 = vadd.f32 %v15989_v30, %v21554_v42 }
 0x554   : > { %v10061_v38 = vpop.f32.mrf.mxu1  ;;  %v11172_v48 = vpop.f32.mrf.mxu0 }
 0x555   : > { %11969 = vst [vmem:[%s21615_s21 + $0x3c8] sm:$0xff] %v11841_v12  ;;  %v11840_v37 = vadd.f32 %v21947_v62, %v11449_v40  ;;  %v11452_v13 = vadd.f32 %v16183_v54, %v10341_v0  ;;  %v10340_v9 = vadd.f32 %v10061_v38, %v21561_v46 }
 0x556   : > { %v15992_v1 = vpop.f32.mrf.mxu1  ;;  %v16186_v52 = vpop.f32.mrf.mxu0 }
 0x557   : > { %11968 = vst [vmem:[%s21615_s21 + $0x3c0] sm:$0xff] %v11840_v37  ;;  %v11843_v31 = vadd.f32 %v21947_v62, %v11452_v13  ;;  %v11451_v7 = vadd.f32 %v11172_v48, %v10340_v9  ;;  %v10343_v27 = vadd.f32 %v15992_v1, %v21568_v57 }
 0x558   : > { %v10071_v25 = vpop.f32.mrf.mxu1  ;;  %v11182_v42 = vpop.f32.mrf.mxu0 }
 0x559   : > { %11971 = vst [vmem:[%s21615_s21 + $0x3d8] sm:$0xff] %v11843_v31  ;;  %v11842_v19 = vadd.f32 %v21947_v62, %v11451_v7  ;;  %v11454_v55 = vadd.f32 %v16186_v52, %v10343_v27  ;;  %v10342_v46 = vadd.f32 %v10071_v25, %v21575_v34 }
 0x55a   : > { %v15995_v2 = vpop.f32.mrf.mxu1  ;;  %v16189_v32 = vpop.f32.mrf.mxu0 }
 0x55b   : > { %11970 = vst [vmem:[%s21615_s21 + $0x3d0] sm:$0xff] %v11842_v19  ;;  %v11845_v10 = vadd.f32 %v21947_v62, %v11454_v55  ;;  %v11453_v29 = vadd.f32 %v11182_v42, %v10342_v46  ;;  %v10345_v57 = vadd.f32 %v15995_v2, %v21583_v26 }
 0x55c   : > { %v10081_v11 = vpop.f32.mrf.mxu1  ;;  %v11192_v34 = vpop.f32.mrf.mxu0 }
 0x55d   : > { %11973 = vst [vmem:[%s21615_s21 + $0x3e8] sm:$0xff] %v11845_v10  ;;  %v11844_v17 = vadd.f32 %v21947_v62, %v11453_v29  ;;  %v11456_v8 = vadd.f32 %v16189_v32, %v10345_v57  ;;  %v10344_v28 = vadd.f32 %v10081_v11, %v21590_v49 }
 0x55f   : > { %11972 = vst [vmem:[%s21615_s21 + $0x3e0] sm:$0xff] %v11844_v17  ;;  %v11847_v36 = vadd.f32 %v21947_v62, %v11456_v8  ;;  %v11455_v20 = vadd.f32 %v11192_v34, %v10344_v28 }
 0x561   : > { %11975 = vst [vmem:[%s21615_s21 + $0x3f8] sm:$0xff] %v11847_v36  ;;  %v11846_v26 = vadd.f32 %v21947_v62, %v11455_v20 }
 0x563   : > { %11974 = vst [vmem:[%s21615_s21 + $0x3f0] sm:$0xff] %v11846_v26 }
 0x564   : > { %16583 = shalt.err (!%p16580_p5)
}
 0x565   : > { %s16584_s8 = scalar_lea.hbm %s22117_s30, 16384  ;;  %s16588_s18 = scalar_lea.hbm %s22174_s3, 32768 }
 0x566   : > { %p16585_p6 = scmp.ne.s32.totalorder %s22117_s30, %s16584_s8  ;;  %p16589_p10 = scmp.lt.s32.totalorder %s22117_s30, %s22174_s3 }
 0x567   : > { %p16590_p11 = scmp.lt.s32.totalorder %s16588_s18, %s16584_s8 }
 0x568   : > { %p16586_p7 = pnand %p16585_p6, %p16711_p4 }
 0x569   : > { %p16591_p12 = por %p16590_p11, %p16589_p10 }
 0x56a   : > { %p16587_p9 = pneg %p16586_p7 }
 0x56c   : > { %p16592_p13 = pnand %p16591_p12, %p16587_p9 }
 0x56e   : > { %16595 = shalt.err (!%p16592_p13)
}
 0x56f   : > { %s16649_s9 = smov 128   ;;  %s16650_s23 = smov 8  }
 0x570   : > { %16193 = dma.vmem_to_hbm [thread:$0]  (%p16711_p4), %s22119_s27, 16384, %s22117_s30, %s22126_s15, %s16649_s9, %s16649_s9, %s16650_s23  }
 0x571 PF: > { %p16199_p0 = scmp.ge.s32.totalorder %s16646_s17, 2  ;;  %s12009_s26 = sand.u32 1, %s16626_s12  }
 0x572   : > { %s12010_s28 = scalar_lea.sflag [#allocation4], %s12009_s26 }
 0x573   : > { %p16196_p1 = pnand %p16199_p0, %p16718_p8 }
 0x575   : > { %p16197_p2 = pneg %p16196_p1 }
 0x577   : > { %16621 = dma.done.wait (%p16197_p2), %s12010_s28, 16384  }
 0x578   : > { %16623 = vsyncadd (%p16197_p2), %s12010_s28, 4294950912  ;;  %s16_s17 = sadd.s32 1, %s16646_s17   ;;  %s24150_s12 = smov %s16630_s13 }
 0x579   : > { %p13_p3 = scmp.ge.s32.totalorder %s16_s17, 4   ;;  %s24151_s13 = smov %s16634_s14 }
 0x57a   : > { %s24152_s14 = smov %s16724_s25  ;;  %s24153_s15 = smov %s16642_s16 }
 0x57b   : > { %s24154_s16 = smov %s24156_s20  ;;  %15 = sbr.rel (!%p13_p3) target bundleno = 4 (0x4), region = 81 }
 0x580   :  { %12015 = vsyncpa [#allocation4], 1 }
 0x581   :  { %12017 = vsyncpa [#allocation4 + $0x1], 1 }

</bundles_post_ra>
